<compile_context>
chip_gen: v7x
topology: tpu7x:2x2x1
jax: 0.10.0
libtpu: 0.0.40
codegen_flags: <defaults>
</compile_context>

<pallas_src>
import functools
import math

import jax
import jax.numpy as jnp
from jax import lax
from jax.experimental import pallas as pl
from jax.experimental.pallas import tpu as pltpu


# ------------------------------------------------------------------ kernel --

def _wxb_act_kernel(w_ref, x_ref, b_ref, o_ref, *, act):
    # Lane-dense matmul: M (flattened batch*spatial) is the last dim of both
    # x block (K, TM) and output block (N, TM), so it maps to the 128-lane
    # axis; the tiny channel dims K, N live on sublanes.
    y = jnp.dot(w_ref[...], x_ref[...], preferred_element_type=jnp.float32)
    y = y + b_ref[...]                          # (N, TM) + (N, 1) lane-broadcast
    if act == "relu":
        y = jnp.maximum(y, 0.0)
    elif act == "sigmoid":
        y = jax.nn.sigmoid(y)
    o_ref[...] = y.astype(o_ref.dtype)


def matmul_bias_act(w, x, b, act="none", tile_m=4096):
    """act(w @ x + b[:, None]).  w:(N,K), x:(K,M), b:(N,) -> (N,M) float32.

    M = batch*spatial (huge, lane-dense); K, N are the tiny channel dims.
    M is tiled with a 1-D grid.  No host-side padding of x: the ragged tail
    block relies on Pallas' masked remainder reads/writes.  Layers with
    M <= tile_m run as a single full-array block (one grid step).
    """
    assert tile_m % 128 == 0
    N, K = w.shape
    K2, M = x.shape
    assert K == K2 and b.shape == (N,)
    b2 = b.reshape(N, 1).astype(jnp.float32)

    tm = M if M <= tile_m else tile_m
    grid = (pl.cdiv(M, tm),)

    # Explicit VMEM budget (review): double-buffered x/out blocks plus the
    # resident w/b total well under 2 MiB for every layer of this net; 32 MiB
    # is a safe scoped limit on v5e/v6e (128 MiB) and v7x (64 MiB physical).
    vmem_limit = 32 * 1024 * 1024

    return pl.pallas_call(
        functools.partial(_wxb_act_kernel, act=act),
        out_shape=jax.ShapeDtypeStruct((N, M), jnp.float32),
        grid_spec=pltpu.PrefetchScalarGridSpec(
            num_scalar_prefetch=0,
            grid=grid,
            in_specs=[
                pl.BlockSpec((N, K), lambda i: (0, 0)),    # weights (resident)
                pl.BlockSpec((K, tm), lambda i: (0, i)),   # activations (lane-dense)
                pl.BlockSpec((N, 1), lambda i: (0, 0)),    # bias
            ],
            out_specs=pl.BlockSpec((N, tm), lambda i: (0, i)),
        ),
        compiler_params=pltpu.CompilerParams(
            dimension_semantics=("parallel",),
            vmem_limit_bytes=vmem_limit),
    )(w, x, b2)


# ------------------------------------------------------- conv / deconv ops --

def conv2d_act(x, w, b, *, stride, act):
    """nn.Conv2d (VALID) on channels-first-of-everything activations.

    x: (Cin, B, H, W), w: (Cout, Cin, KH, KW) (PyTorch layout), b: (Cout,)
    -> (Cout, B, OH, OW).
    """
    Cin, B, H, W = x.shape
    Cout, Cin2, KH, KW = w.shape
    assert Cin == Cin2
    OH = (H - KH) // stride + 1
    OW = (W - KW) // stride + 1

    # im2col (XLA glue).  K-axis order (ci, kh, kw) matches w.reshape below;
    # M-axis order (b, oh, ow) matches the network-wide (C, B, H, W) layout,
    # so the matmul output (Cout, B*OH*OW) needs no transpose.
    cols = []
    for kh in range(KH):
        for kw in range(KW):
            cols.append(x[:, :, kh:kh + stride * OH:stride,
                                kw:kw + stride * OW:stride])
    patches = jnp.stack(cols, axis=1)                   # (Cin, KH*KW, B, OH, OW)
    patches = patches.reshape(Cin * KH * KW, B * OH * OW)

    w2 = w.reshape(Cout, Cin * KH * KW)                 # (N, K)
    y = matmul_bias_act(w2, patches, b, act=act)        # (Cout, B*OH*OW)
    return y.reshape(Cout, B, OH, OW)


def conv_transpose2d_act(x, w, b, *, stride, output_padding=(0, 0), act):
    """nn.ConvTranspose2d (no padding), kernel <= stride (non-overlapping).

    x: (Cin, B, IH, IW), w: (Cin, Cout, KH, KW), b: (Cout,)
    -> (Cout, B, OH, OW).
    """
    Cin, B, IH, IW = x.shape
    Cin2, Cout, KH, KW = w.shape
    assert Cin == Cin2
    assert KH <= stride and KW <= stride      # holds for every decoder layer
    OH = (IH - 1) * stride + KH + output_padding[0]
    OW = (IW - 1) * stride + KW + output_padding[1]

    x2 = x.reshape(Cin, B * IH * IW)
    w2 = w.transpose(1, 2, 3, 0).reshape(Cout * KH * KW, Cin)  # rows (co,kh,kw)
    brep = jnp.repeat(b, KH * KW)                              # matches row order
    y = matmul_bias_act(w2, x2, brep, act=act)       # (Cout*KH*KW, B*IH*IW)
    y = y.reshape(Cout, KH, KW, B, IH, IW)

    # Output positions never touched by an input pixel get bias only, then act.
    if act == "relu":
        b_act = jnp.maximum(b, 0.0)
    elif act == "sigmoid":
        b_act = jax.nn.sigmoid(b)
    else:
        b_act = b

    # Non-overlapping scatter as a single pad-to-stride + transpose/reshape
    # (instead of KH*KW+1 dynamic-update-slice passes over the output).
    if KH < stride or KW < stride:
        full = jnp.broadcast_to(b_act.reshape(Cout, 1, 1, 1, 1, 1),
                                (Cout, stride, stride, B, IH, IW))
        y = full.at[:, :KH, :KW].set(y)
    y = y.transpose(0, 3, 4, 1, 5, 2).reshape(Cout, B, IH * stride, IW * stride)

    # Crop the trailing stride gap / extend by output_padding (bias-only rows).
    def _fit(arr, axis, target):
        cur = arr.shape[axis]
        if target < cur:
            idx = [slice(None)] * arr.ndim
            idx[axis] = slice(0, target)
            return arr[tuple(idx)]
        if target > cur:
            pad_shape = list(arr.shape)
            pad_shape[axis] = target - cur
            pad = jnp.broadcast_to(b_act.reshape(Cout, 1, 1, 1),
                                   tuple(pad_shape))
            return jnp.concatenate([arr, pad], axis=axis)
        return arr

    y = _fit(y, 2, OH)
    y = _fit(y, 3, OW)
    return y


# -------------------------------------------------------------- the module --

def forward(params, x):
    # Single layout for the whole net: channels-first-of-everything (C,B,H,W),
    # i.e. matmul-native (C, B*H*W) slabs.  NCHW transposes only at the edges.
    h = jnp.transpose(x, (1, 0, 2, 3))
    h = conv2d_act(h, *params["encConv1"], stride=2, act="relu")
    h = conv2d_act(h, *params["encConv2"], stride=3, act="relu")
    # TODO(synk): encConv3..decConv5 activations + weights all fit in VMEM
    # (<1 MiB total); fusing them into one VMEM-resident pallas_call would
    # remove ~9 kernel launches and their HBM round trips.  Kept as per-layer
    # single-block calls because the in-kernel strided im2col/scatter needed
    # for that fusion has no lowering-safe Mosaic form here.
    h = conv2d_act(h, *params["encConv3"], stride=2, act="relu")
    h = conv2d_act(h, *params["encConv4"], stride=2, act="relu")
    h = conv2d_act(h, *params["encConv5"], stride=2, act="relu")
    z = conv2d_act(h, *params["encConv6"], stride=3, act="relu")

    h = conv_transpose2d_act(z, *params["decConv1"], stride=3, act="relu")
    h = conv_transpose2d_act(h, *params["decConv2"], stride=2, act="relu")
    h = conv_transpose2d_act(h, *params["decConv3"], stride=2,
                             output_padding=(1, 1), act="relu")
    h = conv_transpose2d_act(h, *params["decConv4"], stride=2, act="relu")
    h = conv_transpose2d_act(h, *params["decConv5"], stride=3, act="relu")
    out = conv_transpose2d_act(h, *params["decConv6"], stride=2, act="sigmoid")
    return jnp.transpose(out, (1, 0, 2, 3))


def init_params(key):
    params = {}
    conv_cfg = [("encConv1", 1, 4, 2), ("encConv2", 4, 8, 2),
                ("encConv3", 8, 16, 2), ("encConv4", 16, 32, 3),
                ("encConv5", 32, 64, 2), ("encConv6", 64, 64, 2)]
    deconv_cfg = [("decConv1", 64, 64, 2), ("decConv2", 64, 32, 2),
                  ("decConv3", 32, 16, 2), ("decConv4", 16, 8, 2),
                  ("decConv5", 8, 4, 2), ("decConv6", 4, 1, 2)]
    keys = iter(jax.random.split(key, 2 * (len(conv_cfg) + len(deconv_cfg))))

    def uni(k, shape, bound):
        return jax.random.uniform(k, shape, jnp.float32, -bound, bound)

    for name, cin, cout, k in conv_cfg:           # Conv2d weight (Cout,Cin,K,K)
        bound = 1.0 / math.sqrt(cin * k * k)
        params[name] = (uni(next(keys), (cout, cin, k, k), bound),
                        uni(next(keys), (cout,), bound))
    for name, cin, cout, k in deconv_cfg:         # ConvT weight (Cin,Cout,K,K)
        bound = 1.0 / math.sqrt(cin * k * k)
        params[name] = (uni(next(keys), (cin, cout, k, k), bound),
                        uni(next(keys), (cout,), bound))
    return params


# --------------------------------------------------- pure-XLA reference ----

def ref_forward(params, x):
    def conv(x, w, b, s):
        y = lax.conv_general_dilated(
            x, w, (s, s), "VALID",
            dimension_numbers=("NCHW", "OIHW", "NCHW"))
        return y + b.reshape(1, -1, 1, 1)

    def convT(x, w, b, s, op=(0, 0)):
        KH, KW = w.shape[2], w.shape[3]
        y = lax.conv_general_dilated(
            x, jnp.flip(w, axis=(2, 3)), (1, 1),
            padding=((KH - 1, KH - 1 + op[0]), (KW - 1, KW - 1 + op[1])),
            lhs_dilation=(s, s),
            dimension_numbers=("NCHW", "IOHW", "NCHW"))
        return y + b.reshape(1, -1, 1, 1)

    relu = lambda v: jnp.maximum(v, 0.0)
    h = relu(conv(x, *params["encConv1"], 2))
    h = relu(conv(h, *params["encConv2"], 3))
    h = relu(conv(h, *params["encConv3"], 2))
    h = relu(conv(h, *params["encConv4"], 2))
    h = relu(conv(h, *params["encConv5"], 2))
    z = relu(conv(h, *params["encConv6"], 3))
    h = relu(convT(z, *params["decConv1"], 3))
    h = relu(convT(h, *params["decConv2"], 2))
    h = relu(convT(h, *params["decConv3"], 2, (1, 1)))
    h = relu(convT(h, *params["decConv4"], 2))
    h = relu(convT(h, *params["decConv5"], 3))
    return jax.nn.sigmoid(convT(h, *params["decConv6"], 2))


# ----------------------------------------------------------------- driver --

if __name__ == "__main__":
    # 250x250 input is the size the module implies: encoder -> (64, 2, 2)
    # latent (featureDim = 64*2*2) and the decoder reconstructs 250x250.
    x = jax.random.uniform(jax.random.PRNGKey(0), (2, 1, 250, 250),
                           dtype=jnp.float32)
    params = init_params(jax.random.PRNGKey(1))

    out = jax.jit(forward)(params, x)
    out = jax.block_until_ready(out)
    assert out.shape == (2, 1, 250, 250), out.shape

    ref = jax.block_until_ready(ref_forward(params, x))
    assert jnp.allclose(out, ref, atol=1e-2, rtol=1e-2), (
        float(jnp.max(jnp.abs(out - ref))))

    print("KERNEL_OK")
</pallas_src>

<mosaic_0001>
module attributes {stable_mosaic.version = 11 : i64} {
  func.func @_wxb_act_kernel(%arg0: i32, %arg1: memref<4x4xf32, #tpu.memory_space<vmem>>, %arg2: memref<4x4096xf32, #tpu.memory_space<vmem>>, %arg3: memref<4x1xf32, #tpu.memory_space<vmem>>, %arg4: memref<4x4096xf32, #tpu.memory_space<vmem>>) attributes {dimension_semantics = [#tpu.dimension_semantics<parallel>], iteration_bounds = array<i64: 8>, scalar_prefetch = 0 : i64, scratch_operands = 0 : i64, tpu.core_type = #tpu.core_type<tc>, window_params = [{pipeline_mode = #tpu.pipeline_mode<synchronous>, transform_indices = @transform_0, window_bounds = array<i64: 4, 4>}, {transform_indices = @transform_1, window_bounds = array<i64: 4, 4096>}, {pipeline_mode = #tpu.pipeline_mode<synchronous>, transform_indices = @transform_2, window_bounds = array<i64: 4, 1>}, {transform_indices = @transform_3, window_bounds = array<i64: 4, 4096>}]} {
    %c0 = arith.constant 0 : index
    %c0_0 = arith.constant 0 : index
    %0 = vector.load %arg1[%c0, %c0_0] : memref<4x4xf32, #tpu.memory_space<vmem>>, vector<4x4xf32>
    %c0_1 = arith.constant 0 : index
    %c0_2 = arith.constant 0 : index
    %1 = vector.load %arg2[%c0_1, %c0_2] : memref<4x4096xf32, #tpu.memory_space<vmem>>, vector<4x4096xf32>
    %cst = arith.constant dense<0.000000e+00> : vector<4x4096xf32>
    %2 = tpu.matmul %0, %1, %cst {dimension_numbers = #tpu.dot_dimension_numbers<[1], [0], [0], [1], [0, 0, 1, 1], [], []>} : vector<4x4xf32>, vector<4x4096xf32>, vector<4x4096xf32> -> vector<4x4096xf32>
    %c0_3 = arith.constant 0 : index
    %c0_4 = arith.constant 0 : index
    %3 = vector.load %arg3[%c0_3, %c0_4] : memref<4x1xf32, #tpu.memory_space<vmem>>, vector<4x1xf32>
    %4 = vector.broadcast %3 : vector<4x1xf32> to vector<4x4096xf32>
    %5 = arith.addf %2, %4 : vector<4x4096xf32>
    %cst_5 = arith.constant 0.000000e+00 : f32
    %6 = vector.broadcast %cst_5 : f32 to vector<4x4096xf32>
    %7 = arith.maximumf %5, %6 : vector<4x4096xf32>
    %c0_6 = arith.constant 0 : index
    %c0_7 = arith.constant 0 : index
    %8 = vector.load %arg4[%c0_6, %c0_7] : memref<4x4096xf32, #tpu.memory_space<vmem>>, vector<4x4096xf32>
    tpu.vector_store %arg4[%c0_6, %c0_7], %7 {strides = array<i32>} : memref<4x4096xf32, #tpu.memory_space<vmem>>, vector<4x4096xf32>,
    return
  }
  func.func @transform_0(%arg0: i32) -> (i32, i32) {
    %c0_i32 = arith.constant 0 : i32
    %c0_i32_0 = arith.constant 0 : i32
    %c0_i32_1 = arith.constant 0 : i32
    return %c0_i32, %c0_i32_0 : i32, i32
  }
  func.func @transform_1(%arg0: i32) -> (i32, i32) {
    %c0_i32 = arith.constant 0 : i32
    %c0_i32_0 = arith.constant 0 : i32
    return %c0_i32, %arg0 : i32, i32
  }
  func.func @transform_2(%arg0: i32) -> (i32, i32) {
    %c0_i32 = arith.constant 0 : i32
    %c0_i32_0 = arith.constant 0 : i32
    %c0_i32_1 = arith.constant 0 : i32
    return %c0_i32, %c0_i32_0 : i32, i32
  }
  func.func @transform_3(%arg0: i32) -> (i32, i32) {
    %c0_i32 = arith.constant 0 : i32
    %c0_i32_0 = arith.constant 0 : i32
    return %c0_i32, %arg0 : i32, i32
  }
}

module attributes {stable_mosaic.version = 11 : i64} {
  func.func @_wxb_act_kernel(%arg0: i32, %arg1: memref<8x16xf32, #tpu.memory_space<vmem>>, %arg2: memref<16x3528xf32, #tpu.memory_space<vmem>>, %arg3: memref<8x1xf32, #tpu.memory_space<vmem>>, %arg4: memref<8x3528xf32, #tpu.memory_space<vmem>>) attributes {dimension_semantics = [#tpu.dimension_semantics<parallel>], iteration_bounds = array<i64: 1>, scalar_prefetch = 0 : i64, scratch_operands = 0 : i64, tpu.core_type = #tpu.core_type<tc>, window_params = [{pipeline_mode = #tpu.pipeline_mode<synchronous>, transform_indices = @transform_0, window_bounds = array<i64: 8, 16>}, {transform_indices = @transform_1, window_bounds = array<i64: 16, 3528>}, {pipeline_mode = #tpu.pipeline_mode<synchronous>, transform_indices = @transform_2, window_bounds = array<i64: 8, 1>}, {transform_indices = @transform_3, window_bounds = array<i64: 8, 3528>}]} {
    %c0 = arith.constant 0 : index
    %c0_0 = arith.constant 0 : index
    %0 = vector.load %arg1[%c0, %c0_0] : memref<8x16xf32, #tpu.memory_space<vmem>>, vector<8x16xf32>
    %c0_1 = arith.constant 0 : index
    %c0_2 = arith.constant 0 : index
    %1 = vector.load %arg2[%c0_1, %c0_2] : memref<16x3528xf32, #tpu.memory_space<vmem>>, vector<16x3528xf32>
    %cst = arith.constant dense<0.000000e+00> : vector<8x3528xf32>
    %2 = tpu.matmul %0, %1, %cst {dimension_numbers = #tpu.dot_dimension_numbers<[1], [0], [0], [1], [0, 0, 1, 1], [], []>} : vector<8x16xf32>, vector<16x3528xf32>, vector<8x3528xf32> -> vector<8x3528xf32>
    %c0_3 = arith.constant 0 : index
    %c0_4 = arith.constant 0 : index
    %3 = vector.load %arg3[%c0_3, %c0_4] : memref<8x1xf32, #tpu.memory_space<vmem>>, vector<8x1xf32>
    %4 = vector.broadcast %3 : vector<8x1xf32> to vector<8x3528xf32>
    %5 = arith.addf %2, %4 : vector<8x3528xf32>
    %cst_5 = arith.constant 0.000000e+00 : f32
    %6 = vector.broadcast %cst_5 : f32 to vector<8x3528xf32>
    %7 = arith.maximumf %5, %6 : vector<8x3528xf32>
    %c0_6 = arith.constant 0 : index
    %c0_7 = arith.constant 0 : index
    %8 = vector.load %arg4[%c0_6, %c0_7] : memref<8x3528xf32, #tpu.memory_space<vmem>>, vector<8x3528xf32>
    tpu.vector_store %arg4[%c0_6, %c0_7], %7 {strides = array<i32>} : memref<8x3528xf32, #tpu.memory_space<vmem>>, vector<8x3528xf32>,
    return
  }
  func.func @transform_0(%arg0: i32) -> (i32, i32) {
    %c0_i32 = arith.constant 0 : i32
    %c0_i32_0 = arith.constant 0 : i32
    %c0_i32_1 = arith.constant 0 : i32
    return %c0_i32, %c0_i32_0 : i32, i32
  }
  func.func @transform_1(%arg0: i32) -> (i32, i32) {
    %c0_i32 = arith.constant 0 : i32
    %c0_i32_0 = arith.constant 0 : i32
    return %c0_i32, %arg0 : i32, i32
  }
  func.func @transform_2(%arg0: i32) -> (i32, i32) {
    %c0_i32 = arith.constant 0 : i32
    %c0_i32_0 = arith.constant 0 : i32
    %c0_i32_1 = arith.constant 0 : i32
    return %c0_i32, %c0_i32_0 : i32, i32
  }
  func.func @transform_3(%arg0: i32) -> (i32, i32) {
    %c0_i32 = arith.constant 0 : i32
    %c0_i32_0 = arith.constant 0 : i32
    return %c0_i32, %arg0 : i32, i32
  }
}

module attributes {stable_mosaic.version = 11 : i64} {
  func.func @_wxb_act_kernel(%arg0: i32, %arg1: memref<16x32xf32, #tpu.memory_space<vmem>>, %arg2: memref<32x882xf32, #tpu.memory_space<vmem>>, %arg3: memref<16x1xf32, #tpu.memory_space<vmem>>, %arg4: memref<16x882xf32, #tpu.memory_space<vmem>>) attributes {dimension_semantics = [#tpu.dimension_semantics<parallel>], iteration_bounds = array<i64: 1>, scalar_prefetch = 0 : i64, scratch_operands = 0 : i64, tpu.core_type = #tpu.core_type<tc>, window_params = [{pipeline_mode = #tpu.pipeline_mode<synchronous>, transform_indices = @transform_0, window_bounds = array<i64: 16, 32>}, {transform_indices = @transform_1, window_bounds = array<i64: 32, 882>}, {pipeline_mode = #tpu.pipeline_mode<synchronous>, transform_indices = @transform_2, window_bounds = array<i64: 16, 1>}, {transform_indices = @transform_3, window_bounds = array<i64: 16, 882>}]} {
    %c0 = arith.constant 0 : index
    %c0_0 = arith.constant 0 : index
    %0 = vector.load %arg1[%c0, %c0_0] : memref<16x32xf32, #tpu.memory_space<vmem>>, vector<16x32xf32>
    %c0_1 = arith.constant 0 : index
    %c0_2 = arith.constant 0 : index
    %1 = vector.load %arg2[%c0_1, %c0_2] : memref<32x882xf32, #tpu.memory_space<vmem>>, vector<32x882xf32>
    %cst = arith.constant dense<0.000000e+00> : vector<16x882xf32>
    %2 = tpu.matmul %0, %1, %cst {dimension_numbers = #tpu.dot_dimension_numbers<[1], [0], [0], [1], [0, 0, 1, 1], [], []>} : vector<16x32xf32>, vector<32x882xf32>, vector<16x882xf32> -> vector<16x882xf32>
    %c0_3 = arith.constant 0 : index
    %c0_4 = arith.constant 0 : index
    %3 = vector.load %arg3[%c0_3, %c0_4] : memref<16x1xf32, #tpu.memory_space<vmem>>, vector<16x1xf32>
    %4 = vector.broadcast %3 : vector<16x1xf32> to vector<16x882xf32>
    %5 = arith.addf %2, %4 : vector<16x882xf32>
    %cst_5 = arith.constant 0.000000e+00 : f32
    %6 = vector.broadcast %cst_5 : f32 to vector<16x882xf32>
    %7 = arith.maximumf %5, %6 : vector<16x882xf32>
    %c0_6 = arith.constant 0 : index
    %c0_7 = arith.constant 0 : index
    %8 = vector.load %arg4[%c0_6, %c0_7] : memref<16x882xf32, #tpu.memory_space<vmem>>, vector<16x882xf32>
    tpu.vector_store %arg4[%c0_6, %c0_7], %7 {strides = array<i32>} : memref<16x882xf32, #tpu.memory_space<vmem>>, vector<16x882xf32>,
    return
  }
  func.func @transform_0(%arg0: i32) -> (i32, i32) {
    %c0_i32 = arith.constant 0 : i32
    %c0_i32_0 = arith.constant 0 : i32
    %c0_i32_1 = arith.constant 0 : i32
    return %c0_i32, %c0_i32_0 : i32, i32
  }
  func.func @transform_1(%arg0: i32) -> (i32, i32) {
    %c0_i32 = arith.constant 0 : i32
    %c0_i32_0 = arith.constant 0 : i32
    return %c0_i32, %arg0 : i32, i32
  }
  func.func @transform_2(%arg0: i32) -> (i32, i32) {
    %c0_i32 = arith.constant 0 : i32
    %c0_i32_0 = arith.constant 0 : i32
    %c0_i32_1 = arith.constant 0 : i32
    return %c0_i32, %c0_i32_0 : i32, i32
  }
  func.func @transform_3(%arg0: i32) -> (i32, i32) {
    %c0_i32 = arith.constant 0 : i32
    %c0_i32_0 = arith.constant 0 : i32
    return %c0_i32, %arg0 : i32, i32
  }
}

module attributes {stable_mosaic.version = 11 : i64} {
  func.func @_wxb_act_kernel(%arg0: i32, %arg1: memref<32x144xf32, #tpu.memory_space<vmem>>, %arg2: memref<144x200xf32, #tpu.memory_space<vmem>>, %arg3: memref<32x1xf32, #tpu.memory_space<vmem>>, %arg4: memref<32x200xf32, #tpu.memory_space<vmem>>) attributes {dimension_semantics = [#tpu.dimension_semantics<parallel>], iteration_bounds = array<i64: 1>, scalar_prefetch = 0 : i64, scratch_operands = 0 : i64, tpu.core_type = #tpu.core_type<tc>, window_params = [{pipeline_mode = #tpu.pipeline_mode<synchronous>, transform_indices = @transform_0, window_bounds = array<i64: 32, 144>}, {transform_indices = @transform_1, window_bounds = array<i64: 144, 200>}, {pipeline_mode = #tpu.pipeline_mode<synchronous>, transform_indices = @transform_2, window_bounds = array<i64: 32, 1>}, {transform_indices = @transform_3, window_bounds = array<i64: 32, 200>}]} {
    %c0 = arith.constant 0 : index
    %c0_0 = arith.constant 0 : index
    %0 = vector.load %arg1[%c0, %c0_0] : memref<32x144xf32, #tpu.memory_space<vmem>>, vector<32x144xf32>
    %c0_1 = arith.constant 0 : index
    %c0_2 = arith.constant 0 : index
    %1 = vector.load %arg2[%c0_1, %c0_2] : memref<144x200xf32, #tpu.memory_space<vmem>>, vector<144x200xf32>
    %cst = arith.constant dense<0.000000e+00> : vector<32x200xf32>
    %2 = tpu.matmul %0, %1, %cst {dimension_numbers = #tpu.dot_dimension_numbers<[1], [0], [0], [1], [0, 0, 1, 1], [], []>} : vector<32x144xf32>, vector<144x200xf32>, vector<32x200xf32> -> vector<32x200xf32>
    %c0_3 = arith.constant 0 : index
    %c0_4 = arith.constant 0 : index
    %3 = vector.load %arg3[%c0_3, %c0_4] : memref<32x1xf32, #tpu.memory_space<vmem>>, vector<32x1xf32>
    %4 = vector.broadcast %3 : vector<32x1xf32> to vector<32x200xf32>
    %5 = arith.addf %2, %4 : vector<32x200xf32>
    %cst_5 = arith.constant 0.000000e+00 : f32
    %6 = vector.broadcast %cst_5 : f32 to vector<32x200xf32>
    %7 = arith.maximumf %5, %6 : vector<32x200xf32>
    %c0_6 = arith.constant 0 : index
    %c0_7 = arith.constant 0 : index
    %8 = vector.load %arg4[%c0_6, %c0_7] : memref<32x200xf32, #tpu.memory_space<vmem>>, vector<32x200xf32>
    tpu.vector_store %arg4[%c0_6, %c0_7], %7 {strides = array<i32>} : memref<32x200xf32, #tpu.memory_space<vmem>>, vector<32x200xf32>,
    return
  }
  func.func @transform_0(%arg0: i32) -> (i32, i32) {
    %c0_i32 = arith.constant 0 : i32
    %c0_i32_0 = arith.constant 0 : i32
    %c0_i32_1 = arith.constant 0 : i32
    return %c0_i32, %c0_i32_0 : i32, i32
  }
  func.func @transform_1(%arg0: i32) -> (i32, i32) {
    %c0_i32 = arith.constant 0 : i32
    %c0_i32_0 = arith.constant 0 : i32
    return %c0_i32, %arg0 : i32, i32
  }
  func.func @transform_2(%arg0: i32) -> (i32, i32) {
    %c0_i32 = arith.constant 0 : i32
    %c0_i32_0 = arith.constant 0 : i32
    %c0_i32_1 = arith.constant 0 : i32
    return %c0_i32, %c0_i32_0 : i32, i32
  }
  func.func @transform_3(%arg0: i32) -> (i32, i32) {
    %c0_i32 = arith.constant 0 : i32
    %c0_i32_0 = arith.constant 0 : i32
    return %c0_i32, %arg0 : i32, i32
  }
}

module attributes {stable_mosaic.version = 11 : i64} {
  func.func @_wxb_act_kernel(%arg0: i32, %arg1: memref<64x128xf32, #tpu.memory_space<vmem>>, %arg2: memref<128x50xf32, #tpu.memory_space<vmem>>, %arg3: memref<64x1xf32, #tpu.memory_space<vmem>>, %arg4: memref<64x50xf32, #tpu.memory_space<vmem>>) attributes {dimension_semantics = [#tpu.dimension_semantics<parallel>], iteration_bounds = array<i64: 1>, scalar_prefetch = 0 : i64, scratch_operands = 0 : i64, tpu.core_type = #tpu.core_type<tc>, window_params = [{pipeline_mode = #tpu.pipeline_mode<synchronous>, transform_indices = @transform_0, window_bounds = array<i64: 64, 128>}, {transform_indices = @transform_1, window_bounds = array<i64: 128, 50>}, {pipeline_mode = #tpu.pipeline_mode<synchronous>, transform_indices = @transform_2, window_bounds = array<i64: 64, 1>}, {transform_indices = @transform_3, window_bounds = array<i64: 64, 50>}]} {
    %c0 = arith.constant 0 : index
    %c0_0 = arith.constant 0 : index
    %0 = vector.load %arg1[%c0, %c0_0] : memref<64x128xf32, #tpu.memory_space<vmem>>, vector<64x128xf32>
    %c0_1 = arith.constant 0 : index
    %c0_2 = arith.constant 0 : index
    %1 = vector.load %arg2[%c0_1, %c0_2] : memref<128x50xf32, #tpu.memory_space<vmem>>, vector<128x50xf32>
    %cst = arith.constant dense<0.000000e+00> : vector<64x50xf32>
    %2 = tpu.matmul %0, %1, %cst {dimension_numbers = #tpu.dot_dimension_numbers<[1], [0], [0], [1], [0, 0, 1, 1], [], []>} : vector<64x128xf32>, vector<128x50xf32>, vector<64x50xf32> -> vector<64x50xf32>
    %c0_3 = arith.constant 0 : index
    %c0_4 = arith.constant 0 : index
    %3 = vector.load %arg3[%c0_3, %c0_4] : memref<64x1xf32, #tpu.memory_space<vmem>>, vector<64x1xf32>
    %4 = vector.broadcast %3 : vector<64x1xf32> to vector<64x50xf32>
    %5 = arith.addf %2, %4 : vector<64x50xf32>
    %cst_5 = arith.constant 0.000000e+00 : f32
    %6 = vector.broadcast %cst_5 : f32 to vector<64x50xf32>
    %7 = arith.maximumf %5, %6 : vector<64x50xf32>
    %c0_6 = arith.constant 0 : index
    %c0_7 = arith.constant 0 : index
    %8 = vector.load %arg4[%c0_6, %c0_7] : memref<64x50xf32, #tpu.memory_space<vmem>>, vector<64x50xf32>
    tpu.vector_store %arg4[%c0_6, %c0_7], %7 {strides = array<i32>} : memref<64x50xf32, #tpu.memory_space<vmem>>, vector<64x50xf32>,
    return
  }
  func.func @transform_0(%arg0: i32) -> (i32, i32) {
    %c0_i32 = arith.constant 0 : i32
    %c0_i32_0 = arith.constant 0 : i32
    %c0_i32_1 = arith.constant 0 : i32
    return %c0_i32, %c0_i32_0 : i32, i32
  }
  func.func @transform_1(%arg0: i32) -> (i32, i32) {
    %c0_i32 = arith.constant 0 : i32
    %c0_i32_0 = arith.constant 0 : i32
    return %c0_i32, %arg0 : i32, i32
  }
  func.func @transform_2(%arg0: i32) -> (i32, i32) {
    %c0_i32 = arith.constant 0 : i32
    %c0_i32_0 = arith.constant 0 : i32
    %c0_i32_1 = arith.constant 0 : i32
    return %c0_i32, %c0_i32_0 : i32, i32
  }
  func.func @transform_3(%arg0: i32) -> (i32, i32) {
    %c0_i32 = arith.constant 0 : i32
    %c0_i32_0 = arith.constant 0 : i32
    return %c0_i32, %arg0 : i32, i32
  }
}

module attributes {stable_mosaic.version = 11 : i64} {
  func.func @_wxb_act_kernel(%arg0: i32, %arg1: memref<64x256xf32, #tpu.memory_space<vmem>>, %arg2: memref<256x8xf32, #tpu.memory_space<vmem>>, %arg3: memref<64x1xf32, #tpu.memory_space<vmem>>, %arg4: memref<64x8xf32, #tpu.memory_space<vmem>>) attributes {dimension_semantics = [#tpu.dimension_semantics<parallel>], iteration_bounds = array<i64: 1>, scalar_prefetch = 0 : i64, scratch_operands = 0 : i64, tpu.core_type = #tpu.core_type<tc>, window_params = [{pipeline_mode = #tpu.pipeline_mode<synchronous>, transform_indices = @transform_0, window_bounds = array<i64: 64, 256>}, {transform_indices = @transform_1, window_bounds = array<i64: 256, 8>}, {pipeline_mode = #tpu.pipeline_mode<synchronous>, transform_indices = @transform_2, window_bounds = array<i64: 64, 1>}, {transform_indices = @transform_3, window_bounds = array<i64: 64, 8>}]} {
    %c0 = arith.constant 0 : index
    %c0_0 = arith.constant 0 : index
    %0 = vector.load %arg1[%c0, %c0_0] : memref<64x256xf32, #tpu.memory_space<vmem>>, vector<64x256xf32>
    %c0_1 = arith.constant 0 : index
    %c0_2 = arith.constant 0 : index
    %1 = vector.load %arg2[%c0_1, %c0_2] : memref<256x8xf32, #tpu.memory_space<vmem>>, vector<256x8xf32>
    %cst = arith.constant dense<0.000000e+00> : vector<64x8xf32>
    %2 = tpu.matmul %0, %1, %cst {dimension_numbers = #tpu.dot_dimension_numbers<[1], [0], [0], [1], [0, 0, 1, 1], [], []>} : vector<64x256xf32>, vector<256x8xf32>, vector<64x8xf32> -> vector<64x8xf32>
    %c0_3 = arith.constant 0 : index
    %c0_4 = arith.constant 0 : index
    %3 = vector.load %arg3[%c0_3, %c0_4] : memref<64x1xf32, #tpu.memory_space<vmem>>, vector<64x1xf32>
    %4 = vector.broadcast %3 : vector<64x1xf32> to vector<64x8xf32>
    %5 = arith.addf %2, %4 : vector<64x8xf32>
    %cst_5 = arith.constant 0.000000e+00 : f32
    %6 = vector.broadcast %cst_5 : f32 to vector<64x8xf32>
    %7 = arith.maximumf %5, %6 : vector<64x8xf32>
    %c0_6 = arith.constant 0 : index
    %c0_7 = arith.constant 0 : index
    %8 = vector.load %arg4[%c0_6, %c0_7] : memref<64x8xf32, #tpu.memory_space<vmem>>, vector<64x8xf32>
    tpu.vector_store %arg4[%c0_6, %c0_7], %7 {strides = array<i32>} : memref<64x8xf32, #tpu.memory_space<vmem>>, vector<64x8xf32>,
    return
  }
  func.func @transform_0(%arg0: i32) -> (i32, i32) {
    %c0_i32 = arith.constant 0 : i32
    %c0_i32_0 = arith.constant 0 : i32
    %c0_i32_1 = arith.constant 0 : i32
    return %c0_i32, %c0_i32_0 : i32, i32
  }
  func.func @transform_1(%arg0: i32) -> (i32, i32) {
    %c0_i32 = arith.constant 0 : i32
    %c0_i32_0 = arith.constant 0 : i32
    return %c0_i32, %arg0 : i32, i32
  }
  func.func @transform_2(%arg0: i32) -> (i32, i32) {
    %c0_i32 = arith.constant 0 : i32
    %c0_i32_0 = arith.constant 0 : i32
    %c0_i32_1 = arith.constant 0 : i32
    return %c0_i32, %c0_i32_0 : i32, i32
  }
  func.func @transform_3(%arg0: i32) -> (i32, i32) {
    %c0_i32 = arith.constant 0 : i32
    %c0_i32_0 = arith.constant 0 : i32
    return %c0_i32, %arg0 : i32, i32
  }
}

module attributes {stable_mosaic.version = 11 : i64} {
  func.func @_wxb_act_kernel(%arg0: i32, %arg1: memref<256x64xf32, #tpu.memory_space<vmem>>, %arg2: memref<64x8xf32, #tpu.memory_space<vmem>>, %arg3: memref<256x1xf32, #tpu.memory_space<vmem>>, %arg4: memref<256x8xf32, #tpu.memory_space<vmem>>) attributes {dimension_semantics = [#tpu.dimension_semantics<parallel>], iteration_bounds = array<i64: 1>, scalar_prefetch = 0 : i64, scratch_operands = 0 : i64, tpu.core_type = #tpu.core_type<tc>, window_params = [{pipeline_mode = #tpu.pipeline_mode<synchronous>, transform_indices = @transform_0, window_bounds = array<i64: 256, 64>}, {transform_indices = @transform_1, window_bounds = array<i64: 64, 8>}, {pipeline_mode = #tpu.pipeline_mode<synchronous>, transform_indices = @transform_2, window_bounds = array<i64: 256, 1>}, {transform_indices = @transform_3, window_bounds = array<i64: 256, 8>}]} {
    %c0 = arith.constant 0 : index
    %c0_0 = arith.constant 0 : index
    %0 = vector.load %arg1[%c0, %c0_0] : memref<256x64xf32, #tpu.memory_space<vmem>>, vector<256x64xf32>
    %c0_1 = arith.constant 0 : index
    %c0_2 = arith.constant 0 : index
    %1 = vector.load %arg2[%c0_1, %c0_2] : memref<64x8xf32, #tpu.memory_space<vmem>>, vector<64x8xf32>
    %cst = arith.constant dense<0.000000e+00> : vector<256x8xf32>
    %2 = tpu.matmul %0, %1, %cst {dimension_numbers = #tpu.dot_dimension_numbers<[1], [0], [0], [1], [0, 0, 1, 1], [], []>} : vector<256x64xf32>, vector<64x8xf32>, vector<256x8xf32> -> vector<256x8xf32>
    %c0_3 = arith.constant 0 : index
    %c0_4 = arith.constant 0 : index
    %3 = vector.load %arg3[%c0_3, %c0_4] : memref<256x1xf32, #tpu.memory_space<vmem>>, vector<256x1xf32>
    %4 = vector.broadcast %3 : vector<256x1xf32> to vector<256x8xf32>
    %5 = arith.addf %2, %4 : vector<256x8xf32>
    %cst_5 = arith.constant 0.000000e+00 : f32
    %6 = vector.broadcast %cst_5 : f32 to vector<256x8xf32>
    %7 = arith.maximumf %5, %6 : vector<256x8xf32>
    %c0_6 = arith.constant 0 : index
    %c0_7 = arith.constant 0 : index
    %8 = vector.load %arg4[%c0_6, %c0_7] : memref<256x8xf32, #tpu.memory_space<vmem>>, vector<256x8xf32>
    tpu.vector_store %arg4[%c0_6, %c0_7], %7 {strides = array<i32>} : memref<256x8xf32, #tpu.memory_space<vmem>>, vector<256x8xf32>,
    return
  }
  func.func @transform_0(%arg0: i32) -> (i32, i32) {
    %c0_i32 = arith.constant 0 : i32
    %c0_i32_0 = arith.constant 0 : i32
    %c0_i32_1 = arith.constant 0 : i32
    return %c0_i32, %c0_i32_0 : i32, i32
  }
  func.func @transform_1(%arg0: i32) -> (i32, i32) {
    %c0_i32 = arith.constant 0 : i32
    %c0_i32_0 = arith.constant 0 : i32
    return %c0_i32, %arg0 : i32, i32
  }
  func.func @transform_2(%arg0: i32) -> (i32, i32) {
    %c0_i32 = arith.constant 0 : i32
    %c0_i32_0 = arith.constant 0 : i32
    %c0_i32_1 = arith.constant 0 : i32
    return %c0_i32, %c0_i32_0 : i32, i32
  }
  func.func @transform_3(%arg0: i32) -> (i32, i32) {
    %c0_i32 = arith.constant 0 : i32
    %c0_i32_0 = arith.constant 0 : i32
    return %c0_i32, %arg0 : i32, i32
  }
}

module attributes {stable_mosaic.version = 11 : i64} {
  func.func @_wxb_act_kernel(%arg0: i32, %arg1: memref<128x64xf32, #tpu.memory_space<vmem>>, %arg2: memref<64x50xf32, #tpu.memory_space<vmem>>, %arg3: memref<128x1xf32, #tpu.memory_space<vmem>>, %arg4: memref<128x50xf32, #tpu.memory_space<vmem>>) attributes {dimension_semantics = [#tpu.dimension_semantics<parallel>], iteration_bounds = array<i64: 1>, scalar_prefetch = 0 : i64, scratch_operands = 0 : i64, tpu.core_type = #tpu.core_type<tc>, window_params = [{pipeline_mode = #tpu.pipeline_mode<synchronous>, transform_indices = @transform_0, window_bounds = array<i64: 128, 64>}, {transform_indices = @transform_1, window_bounds = array<i64: 64, 50>}, {pipeline_mode = #tpu.pipeline_mode<synchronous>, transform_indices = @transform_2, window_bounds = array<i64: 128, 1>}, {transform_indices = @transform_3, window_bounds = array<i64: 128, 50>}]} {
    %c0 = arith.constant 0 : index
    %c0_0 = arith.constant 0 : index
    %0 = vector.load %arg1[%c0, %c0_0] : memref<128x64xf32, #tpu.memory_space<vmem>>, vector<128x64xf32>
    %c0_1 = arith.constant 0 : index
    %c0_2 = arith.constant 0 : index
    %1 = vector.load %arg2[%c0_1, %c0_2] : memref<64x50xf32, #tpu.memory_space<vmem>>, vector<64x50xf32>
    %cst = arith.constant dense<0.000000e+00> : vector<128x50xf32>
    %2 = tpu.matmul %0, %1, %cst {dimension_numbers = #tpu.dot_dimension_numbers<[1], [0], [0], [1], [0, 0, 1, 1], [], []>} : vector<128x64xf32>, vector<64x50xf32>, vector<128x50xf32> -> vector<128x50xf32>
    %c0_3 = arith.constant 0 : index
    %c0_4 = arith.constant 0 : index
    %3 = vector.load %arg3[%c0_3, %c0_4] : memref<128x1xf32, #tpu.memory_space<vmem>>, vector<128x1xf32>
    %4 = vector.broadcast %3 : vector<128x1xf32> to vector<128x50xf32>
    %5 = arith.addf %2, %4 : vector<128x50xf32>
    %cst_5 = arith.constant 0.000000e+00 : f32
    %6 = vector.broadcast %cst_5 : f32 to vector<128x50xf32>
    %7 = arith.maximumf %5, %6 : vector<128x50xf32>
    %c0_6 = arith.constant 0 : index
    %c0_7 = arith.constant 0 : index
    %8 = vector.load %arg4[%c0_6, %c0_7] : memref<128x50xf32, #tpu.memory_space<vmem>>, vector<128x50xf32>
    tpu.vector_store %arg4[%c0_6, %c0_7], %7 {strides = array<i32>} : memref<128x50xf32, #tpu.memory_space<vmem>>, vector<128x50xf32>,
    return
  }
  func.func @transform_0(%arg0: i32) -> (i32, i32) {
    %c0_i32 = arith.constant 0 : i32
    %c0_i32_0 = arith.constant 0 : i32
    %c0_i32_1 = arith.constant 0 : i32
    return %c0_i32, %c0_i32_0 : i32, i32
  }
  func.func @transform_1(%arg0: i32) -> (i32, i32) {
    %c0_i32 = arith.constant 0 : i32
    %c0_i32_0 = arith.constant 0 : i32
    return %c0_i32, %arg0 : i32, i32
  }
  func.func @transform_2(%arg0: i32) -> (i32, i32) {
    %c0_i32 = arith.constant 0 : i32
    %c0_i32_0 = arith.constant 0 : i32
    %c0_i32_1 = arith.constant 0 : i32
    return %c0_i32, %c0_i32_0 : i32, i32
  }
  func.func @transform_3(%arg0: i32) -> (i32, i32) {
    %c0_i32 = arith.constant 0 : i32
    %c0_i32_0 = arith.constant 0 : i32
    return %c0_i32, %arg0 : i32, i32
  }
}

module attributes {stable_mosaic.version = 11 : i64} {
  func.func @_wxb_act_kernel(%arg0: i32, %arg1: memref<64x32xf32, #tpu.memory_space<vmem>>, %arg2: memref<32x200xf32, #tpu.memory_space<vmem>>, %arg3: memref<64x1xf32, #tpu.memory_space<vmem>>, %arg4: memref<64x200xf32, #tpu.memory_space<vmem>>) attributes {dimension_semantics = [#tpu.dimension_semantics<parallel>], iteration_bounds = array<i64: 1>, scalar_prefetch = 0 : i64, scratch_operands = 0 : i64, tpu.core_type = #tpu.core_type<tc>, window_params = [{pipeline_mode = #tpu.pipeline_mode<synchronous>, transform_indices = @transform_0, window_bounds = array<i64: 64, 32>}, {transform_indices = @transform_1, window_bounds = array<i64: 32, 200>}, {pipeline_mode = #tpu.pipeline_mode<synchronous>, transform_indices = @transform_2, window_bounds = array<i64: 64, 1>}, {transform_indices = @transform_3, window_bounds = array<i64: 64, 200>}]} {
    %c0 = arith.constant 0 : index
    %c0_0 = arith.constant 0 : index
    %0 = vector.load %arg1[%c0, %c0_0] : memref<64x32xf32, #tpu.memory_space<vmem>>, vector<64x32xf32>
    %c0_1 = arith.constant 0 : index
    %c0_2 = arith.constant 0 : index
    %1 = vector.load %arg2[%c0_1, %c0_2] : memref<32x200xf32, #tpu.memory_space<vmem>>, vector<32x200xf32>
    %cst = arith.constant dense<0.000000e+00> : vector<64x200xf32>
    %2 = tpu.matmul %0, %1, %cst {dimension_numbers = #tpu.dot_dimension_numbers<[1], [0], [0], [1], [0, 0, 1, 1], [], []>} : vector<64x32xf32>, vector<32x200xf32>, vector<64x200xf32> -> vector<64x200xf32>
    %c0_3 = arith.constant 0 : index
    %c0_4 = arith.constant 0 : index
    %3 = vector.load %arg3[%c0_3, %c0_4] : memref<64x1xf32, #tpu.memory_space<vmem>>, vector<64x1xf32>
    %4 = vector.broadcast %3 : vector<64x1xf32> to vector<64x200xf32>
    %5 = arith.addf %2, %4 : vector<64x200xf32>
    %cst_5 = arith.constant 0.000000e+00 : f32
    %6 = vector.broadcast %cst_5 : f32 to vector<64x200xf32>
    %7 = arith.maximumf %5, %6 : vector<64x200xf32>
    %c0_6 = arith.constant 0 : index
    %c0_7 = arith.constant 0 : index
    %8 = vector.load %arg4[%c0_6, %c0_7] : memref<64x200xf32, #tpu.memory_space<vmem>>, vector<64x200xf32>
    tpu.vector_store %arg4[%c0_6, %c0_7], %7 {strides = array<i32>} : memref<64x200xf32, #tpu.memory_space<vmem>>, vector<64x200xf32>,
    return
  }
  func.func @transform_0(%arg0: i32) -> (i32, i32) {
    %c0_i32 = arith.constant 0 : i32
    %c0_i32_0 = arith.constant 0 : i32
    %c0_i32_1 = arith.constant 0 : i32
    return %c0_i32, %c0_i32_0 : i32, i32
  }
  func.func @transform_1(%arg0: i32) -> (i32, i32) {
    %c0_i32 = arith.constant 0 : i32
    %c0_i32_0 = arith.constant 0 : i32
    return %c0_i32, %arg0 : i32, i32
  }
  func.func @transform_2(%arg0: i32) -> (i32, i32) {
    %c0_i32 = arith.constant 0 : i32
    %c0_i32_0 = arith.constant 0 : i32
    %c0_i32_1 = arith.constant 0 : i32
    return %c0_i32, %c0_i32_0 : i32, i32
  }
  func.func @transform_3(%arg0: i32) -> (i32, i32) {
    %c0_i32 = arith.constant 0 : i32
    %c0_i32_0 = arith.constant 0 : i32
    return %c0_i32, %arg0 : i32, i32
  }
}

module attributes {stable_mosaic.version = 11 : i64} {
  func.func @_wxb_act_kernel(%arg0: i32, %arg1: memref<32x16xf32, #tpu.memory_space<vmem>>, %arg2: memref<16x882xf32, #tpu.memory_space<vmem>>, %arg3: memref<32x1xf32, #tpu.memory_space<vmem>>, %arg4: memref<32x882xf32, #tpu.memory_space<vmem>>) attributes {dimension_semantics = [#tpu.dimension_semantics<parallel>], iteration_bounds = array<i64: 1>, scalar_prefetch = 0 : i64, scratch_operands = 0 : i64, tpu.core_type = #tpu.core_type<tc>, window_params = [{pipeline_mode = #tpu.pipeline_mode<synchronous>, transform_indices = @transform_0, window_bounds = array<i64: 32, 16>}, {transform_indices = @transform_1, window_bounds = array<i64: 16, 882>}, {pipeline_mode = #tpu.pipeline_mode<synchronous>, transform_indices = @transform_2, window_bounds = array<i64: 32, 1>}, {transform_indices = @transform_3, window_bounds = array<i64: 32, 882>}]} {
    %c0 = arith.constant 0 : index
    %c0_0 = arith.constant 0 : index
    %0 = vector.load %arg1[%c0, %c0_0] : memref<32x16xf32, #tpu.memory_space<vmem>>, vector<32x16xf32>
    %c0_1 = arith.constant 0 : index
    %c0_2 = arith.constant 0 : index
    %1 = vector.load %arg2[%c0_1, %c0_2] : memref<16x882xf32, #tpu.memory_space<vmem>>, vector<16x882xf32>
    %cst = arith.constant dense<0.000000e+00> : vector<32x882xf32>
    %2 = tpu.matmul %0, %1, %cst {dimension_numbers = #tpu.dot_dimension_numbers<[1], [0], [0], [1], [0, 0, 1, 1], [], []>} : vector<32x16xf32>, vector<16x882xf32>, vector<32x882xf32> -> vector<32x882xf32>
    %c0_3 = arith.constant 0 : index
    %c0_4 = arith.constant 0 : index
    %3 = vector.load %arg3[%c0_3, %c0_4] : memref<32x1xf32, #tpu.memory_space<vmem>>, vector<32x1xf32>
    %4 = vector.broadcast %3 : vector<32x1xf32> to vector<32x882xf32>
    %5 = arith.addf %2, %4 : vector<32x882xf32>
    %cst_5 = arith.constant 0.000000e+00 : f32
    %6 = vector.broadcast %cst_5 : f32 to vector<32x882xf32>
    %7 = arith.maximumf %5, %6 : vector<32x882xf32>
    %c0_6 = arith.constant 0 : index
    %c0_7 = arith.constant 0 : index
    %8 = vector.load %arg4[%c0_6, %c0_7] : memref<32x882xf32, #tpu.memory_space<vmem>>, vector<32x882xf32>
    tpu.vector_store %arg4[%c0_6, %c0_7], %7 {strides = array<i32>} : memref<32x882xf32, #tpu.memory_space<vmem>>, vector<32x882xf32>,
    return
  }
  func.func @transform_0(%arg0: i32) -> (i32, i32) {
    %c0_i32 = arith.constant 0 : i32
    %c0_i32_0 = arith.constant 0 : i32
    %c0_i32_1 = arith.constant 0 : i32
    return %c0_i32, %c0_i32_0 : i32, i32
  }
  func.func @transform_1(%arg0: i32) -> (i32, i32) {
    %c0_i32 = arith.constant 0 : i32
    %c0_i32_0 = arith.constant 0 : i32
    return %c0_i32, %arg0 : i32, i32
  }
  func.func @transform_2(%arg0: i32) -> (i32, i32) {
    %c0_i32 = arith.constant 0 : i32
    %c0_i32_0 = arith.constant 0 : i32
    %c0_i32_1 = arith.constant 0 : i32
    return %c0_i32, %c0_i32_0 : i32, i32
  }
  func.func @transform_3(%arg0: i32) -> (i32, i32) {
    %c0_i32 = arith.constant 0 : i32
    %c0_i32_0 = arith.constant 0 : i32
    return %c0_i32, %arg0 : i32, i32
  }
}

module attributes {stable_mosaic.version = 11 : i64} {
  func.func @_wxb_act_kernel(%arg0: i32, %arg1: memref<16x8xf32, #tpu.memory_space<vmem>>, %arg2: memref<8x3528xf32, #tpu.memory_space<vmem>>, %arg3: memref<16x1xf32, #tpu.memory_space<vmem>>, %arg4: memref<16x3528xf32, #tpu.memory_space<vmem>>) attributes {dimension_semantics = [#tpu.dimension_semantics<parallel>], iteration_bounds = array<i64: 1>, scalar_prefetch = 0 : i64, scratch_operands = 0 : i64, tpu.core_type = #tpu.core_type<tc>, window_params = [{pipeline_mode = #tpu.pipeline_mode<synchronous>, transform_indices = @transform_0, window_bounds = array<i64: 16, 8>}, {transform_indices = @transform_1, window_bounds = array<i64: 8, 3528>}, {pipeline_mode = #tpu.pipeline_mode<synchronous>, transform_indices = @transform_2, window_bounds = array<i64: 16, 1>}, {transform_indices = @transform_3, window_bounds = array<i64: 16, 3528>}]} {
    %c0 = arith.constant 0 : index
    %c0_0 = arith.constant 0 : index
    %0 = vector.load %arg1[%c0, %c0_0] : memref<16x8xf32, #tpu.memory_space<vmem>>, vector<16x8xf32>
    %c0_1 = arith.constant 0 : index
    %c0_2 = arith.constant 0 : index
    %1 = vector.load %arg2[%c0_1, %c0_2] : memref<8x3528xf32, #tpu.memory_space<vmem>>, vector<8x3528xf32>
    %cst = arith.constant dense<0.000000e+00> : vector<16x3528xf32>
    %2 = tpu.matmul %0, %1, %cst {dimension_numbers = #tpu.dot_dimension_numbers<[1], [0], [0], [1], [0, 0, 1, 1], [], []>} : vector<16x8xf32>, vector<8x3528xf32>, vector<16x3528xf32> -> vector<16x3528xf32>
    %c0_3 = arith.constant 0 : index
    %c0_4 = arith.constant 0 : index
    %3 = vector.load %arg3[%c0_3, %c0_4] : memref<16x1xf32, #tpu.memory_space<vmem>>, vector<16x1xf32>
    %4 = vector.broadcast %3 : vector<16x1xf32> to vector<16x3528xf32>
    %5 = arith.addf %2, %4 : vector<16x3528xf32>
    %cst_5 = arith.constant 0.000000e+00 : f32
    %6 = vector.broadcast %cst_5 : f32 to vector<16x3528xf32>
    %7 = arith.maximumf %5, %6 : vector<16x3528xf32>
    %c0_6 = arith.constant 0 : index
    %c0_7 = arith.constant 0 : index
    %8 = vector.load %arg4[%c0_6, %c0_7] : memref<16x3528xf32, #tpu.memory_space<vmem>>, vector<16x3528xf32>
    tpu.vector_store %arg4[%c0_6, %c0_7], %7 {strides = array<i32>} : memref<16x3528xf32, #tpu.memory_space<vmem>>, vector<16x3528xf32>,
    return
  }
  func.func @transform_0(%arg0: i32) -> (i32, i32) {
    %c0_i32 = arith.constant 0 : i32
    %c0_i32_0 = arith.constant 0 : i32
    %c0_i32_1 = arith.constant 0 : i32
    return %c0_i32, %c0_i32_0 : i32, i32
  }
  func.func @transform_1(%arg0: i32) -> (i32, i32) {
    %c0_i32 = arith.constant 0 : i32
    %c0_i32_0 = arith.constant 0 : i32
    return %c0_i32, %arg0 : i32, i32
  }
  func.func @transform_2(%arg0: i32) -> (i32, i32) {
    %c0_i32 = arith.constant 0 : i32
    %c0_i32_0 = arith.constant 0 : i32
    %c0_i32_1 = arith.constant 0 : i32
    return %c0_i32, %c0_i32_0 : i32, i32
  }
  func.func @transform_3(%arg0: i32) -> (i32, i32) {
    %c0_i32 = arith.constant 0 : i32
    %c0_i32_0 = arith.constant 0 : i32
    return %c0_i32, %arg0 : i32, i32
  }
}

module attributes {stable_mosaic.version = 11 : i64} {
  func.func @_wxb_act_kernel(%arg0: i32, %arg1: memref<4x4xf32, #tpu.memory_space<vmem>>, %arg2: memref<4x4096xf32, #tpu.memory_space<vmem>>, %arg3: memref<4x1xf32, #tpu.memory_space<vmem>>, %arg4: memref<4x4096xf32, #tpu.memory_space<vmem>>) attributes {dimension_semantics = [#tpu.dimension_semantics<parallel>], iteration_bounds = array<i64: 8>, scalar_prefetch = 0 : i64, scratch_operands = 0 : i64, tpu.core_type = #tpu.core_type<tc>, window_params = [{pipeline_mode = #tpu.pipeline_mode<synchronous>, transform_indices = @transform_0, window_bounds = array<i64: 4, 4>}, {transform_indices = @transform_1, window_bounds = array<i64: 4, 4096>}, {pipeline_mode = #tpu.pipeline_mode<synchronous>, transform_indices = @transform_2, window_bounds = array<i64: 4, 1>}, {transform_indices = @transform_3, window_bounds = array<i64: 4, 4096>}]} {
    %c0 = arith.constant 0 : index
    %c0_0 = arith.constant 0 : index
    %0 = vector.load %arg1[%c0, %c0_0] : memref<4x4xf32, #tpu.memory_space<vmem>>, vector<4x4xf32>
    %c0_1 = arith.constant 0 : index
    %c0_2 = arith.constant 0 : index
    %1 = vector.load %arg2[%c0_1, %c0_2] : memref<4x4096xf32, #tpu.memory_space<vmem>>, vector<4x4096xf32>
    %cst = arith.constant dense<0.000000e+00> : vector<4x4096xf32>
    %2 = tpu.matmul %0, %1, %cst {dimension_numbers = #tpu.dot_dimension_numbers<[1], [0], [0], [1], [0, 0, 1, 1], [], []>} : vector<4x4xf32>, vector<4x4096xf32>, vector<4x4096xf32> -> vector<4x4096xf32>
    %c0_3 = arith.constant 0 : index
    %c0_4 = arith.constant 0 : index
    %3 = vector.load %arg3[%c0_3, %c0_4] : memref<4x1xf32, #tpu.memory_space<vmem>>, vector<4x1xf32>
    %4 = vector.broadcast %3 : vector<4x1xf32> to vector<4x4096xf32>
    %5 = arith.addf %2, %4 : vector<4x4096xf32>
    %6 = arith.negf %5 : vector<4x4096xf32>
    %7 = math.exp %6 : vector<4x4096xf32>
    %cst_5 = arith.constant 1.000000e+00 : f32
    %8 = vector.broadcast %cst_5 : f32 to vector<4x4096xf32>
    %9 = arith.addf %8, %7 : vector<4x4096xf32>
    %10 = arith.divf %8, %9 : vector<4x4096xf32>
    %c0_6 = arith.constant 0 : index
    %c0_7 = arith.constant 0 : index
    %11 = vector.load %arg4[%c0_6, %c0_7] : memref<4x4096xf32, #tpu.memory_space<vmem>>, vector<4x4096xf32>
    tpu.vector_store %arg4[%c0_6, %c0_7], %10 {strides = array<i32>} : memref<4x4096xf32, #tpu.memory_space<vmem>>, vector<4x4096xf32>,
    return
  }
  func.func @transform_0(%arg0: i32) -> (i32, i32) {
    %c0_i32 = arith.constant 0 : i32
    %c0_i32_0 = arith.constant 0 : i32
    %c0_i32_1 = arith.constant 0 : i32
    return %c0_i32, %c0_i32_0 : i32, i32
  }
  func.func @transform_1(%arg0: i32) -> (i32, i32) {
    %c0_i32 = arith.constant 0 : i32
    %c0_i32_0 = arith.constant 0 : i32
    return %c0_i32, %arg0 : i32, i32
  }
  func.func @transform_2(%arg0: i32) -> (i32, i32) {
    %c0_i32 = arith.constant 0 : i32
    %c0_i32_0 = arith.constant 0 : i32
    %c0_i32_1 = arith.constant 0 : i32
    return %c0_i32, %c0_i32_0 : i32, i32
  }
  func.func @transform_3(%arg0: i32) -> (i32, i32) {
    %c0_i32 = arith.constant 0 : i32
    %c0_i32_0 = arith.constant 0 : i32
    return %c0_i32, %arg0 : i32, i32
  }
}

</mosaic_0001>

<bundles_post_ra>
// kernel: forward.12
= control target key start
LH: loop header
LB: loop body
LE: loop exit
PB: predicated region body
PF: predicated region fallthrough
CT: control target
= control target key end

     0   :  { %s2551_s12 = smov 0   ;;  %s2553_s13 = smov 0   ;;  %s3169_s0 = inlined_call_operand.vmem [shape: f32[4,4], index: 0, kind: input, shape index: {}]   ;;  %s3170_s1 = inlined_call_operand.vmem [shape: f32[4,31250], index: 1, kind: input, shape index: {}]   ;;  %s3171_s2 = inlined_call_operand.vmem [shape: f32[4,1], index: 2, kind: input, shape index: {}]   ;;  %s3172_s3 = inlined_call_operand.vmem [shape: f32[4,31250], index: 3, kind: output, shape index: {}]  }
   0x1   :  { %s2555_s14 = smov 0  }
   0x2 LB: > { %s2564_s15 = sadd.s32 4294967295, %s2461_s14   ;;  %s2566_s16 = sadd.s32 1, %s2461_s14   ;;  %s2461_s14 = sphi %s2555_s14, %s3186_s14   ;;  %s2457_s13 = sphi %s2553_s13, %s3185_s13   ;;  %s2453_s12 = sphi %s2551_s12, %s3184_s12  }
   0x3   : > { %s85_s17 = ssub.s32 %s2461_s14, %s2566_s16  ;;  %s88_s18 = sadd.s32 1, %s2457_s13 }
   0x4   : > { %p86_p0 = scmp.eq.s32.totalorder %s85_s17, 0  ;;  %p98_p1 = scmp.ne.s32.totalorder %s2457_s13, %s2453_s12 }
   0x5   : > { %p99_p2 = scmp.eq.s32.totalorder %s2564_s15, 7  ;;  %p2116_p3 = scmp.ge.s32.totalorder %s2461_s14, 1 }
   0x6   : > { %s2574_s19 = scalar_select %p86_p0, %s2457_s13, %s88_s18  }
   0x7   : > { %p2576_p4 = por %p99_p2, %p98_p1  ;;  %p146_p5 = scmp.lt.s32.totalorder %s2461_s14, 9 }
   0x9   : > { %p147_p6 = pnand %p2116_p3, %p146_p5 }
   0xa   : > { %s2581_s21 = sshll.u32 (!%p147_p6), %s2564_s15, 5  ;;  %v2527_v0 = vmov (!%p147_p6), 0.0   ;;  %v209_v1 = vld [vmem:[%s3171_s2] sm:$0xf] (!%p147_p6)  ;;  %v2528_v2 = vmov (!%p147_p6), 0   ;;  %vm251_vm0 = vcmask (!%p147_p6), 1043456  }
   0xb   : > { %150 = sbr.rel (%p147_p6) target bundleno = 440 (0x1b8), region = 32  ;;  %p178_p7 = scmp.lt.s32.totalorder (!%p147_p6), %s2581_s21, 244  ;;  %380 = vmatprep.mubr.f32.mxu0 (!%p147_p6), %v2527_v0  ;;  %451 = vmatprep.mubr.f32.mxu1 (!%p147_p6), %v2527_v0  ;;  %v2602_v9 = vld [vmem:[%s3169_s0] sm:$0xf] (!%p147_p6)  ;;  %vm247_vm1 = vcmask (!%p147_p6), 31744  }
   0xc   : > { %2358 = vset.pattern.permute.xlu0 (!%p147_p6), %v2528_v2  ;;  %s170_s4 = sand.u32 (!%p147_p6), 1, %s2453_s12  }
   0xd   : > { %212 = vperm.xlu0 (!%p147_p6), %2358, %v209_v1   ;;  %s2117_s5 = sshll.u32 (!%p147_p6), %s170_s4, 7 }
   0xe   : > { %s2705_s6 = scalar_lea.vmem (!%p147_p6), [#allocation2], %s2117_s5  }
  0x12   : > { %s179_s24 = scalar_select %p178_p7, %s2581_s21, 244 }
  0x13   : > { %s1572_s7 = ssub.s32 (%p2576_p4), 245, %s2581_s21  ;;  %s2197_s8 = sshll.u32 (%p2576_p4), %s2564_s15, 7 }
  0x14   : > { %s2119_s25 = sshll.u32 %s179_s24, 2  ;;  %p1573_p8 = scmp.lt.s32.totalorder (%p2576_p4), %s1572_s7, 32 }
  0x15   : > { %s2593_s28 = scalar_lea.vmem %s3170_s1, %s2119_s25  ;;  %s2754_s11 = scalar_lea.vmem (%p2576_p4), %s3172_s3, %s2197_s8  }
  0x16   : > { %v193_v3 = vld [vmem:[%s2593_s28] sm:$0xff]  ;;  %v194_v4 = vld [vmem:[%s2593_s28 + $0x8] sm:$0xff]  ;;  %v195_v5 = vld [vmem:[%s2593_s28 + $0x10] sm:$0xff] }
  0x17   : > { %v231_v6 = vcombine.high %v193_v3, %v193_v3  ;;  %v232_v7 = vcombine.high %v194_v4, %v194_v4  ;;  %v196_v8 = vld [vmem:[%s2593_s28 + $0x18] sm:$0xff]  ;;  %v233_v10 = vcombine.high %v195_v5, %v195_v5  ;;  %v197_v12 = vld [vmem:[%s2593_s28 + $0x20] sm:$0xff]  ;;  %v198_v13 = vld [vmem:[%s2593_s28 + $0x28] sm:$0xff] }
  0x18   : > { %v234_v11 = vcombine.high %v196_v8, %v196_v8  ;;  %v235_v14 = vcombine.high %v197_v12, %v197_v12  ;;  %v236_v15 = vcombine.high %v198_v13, %v198_v13  ;;  %v199_v16 = vld [vmem:[%s2593_s28 + $0x30] sm:$0xff]  ;;  %v200_v17 = vld [vmem:[%s2593_s28 + $0x38] sm:$0xff]  ;;  %v201_v20 = vld [vmem:[%s2593_s28 + $0x40] sm:$0xff] }
  0x19   : > { %2120 = vmatprep.subr.msk.mxu0 %vm251_vm0, %v231_v6  ;;  %2123 = vmatprep.subr.msk.mxu1 %vm251_vm0, %v232_v7  ;;  %v237_v18 = vcombine.high %v199_v16, %v199_v16  ;;  %v238_v19 = vcombine.high %v200_v17, %v200_v17  ;;  %v202_v21 = vld [vmem:[%s2593_s28 + $0x48] sm:$0xff]  ;;  %v239_v22 = vcombine.high %v201_v20, %v201_v20  ;;  %v203_v24 = vld [vmem:[%s2593_s28 + $0x50] sm:$0xff]  ;;  %v204_v25 = vld [vmem:[%s2593_s28 + $0x58] sm:$0xff] }
  0x1a   : > { %2121 = vmatpush1.msk.msra.mxu0 %vm251_vm0, %v193_v3  ;;  %2124 = vmatpush1.msk.msra.mxu1 %vm251_vm0, %v194_v4  ;;  %v240_v23 = vcombine.high %v202_v21, %v202_v21  ;;  %v241_v26 = vcombine.high %v203_v24, %v203_v24  ;;  %v242_v27 = vcombine.high %v204_v25, %v204_v25  ;;  %v205_v28 = vld [vmem:[%s2593_s28 + $0x60] sm:$0xff]  ;;  %v206_v29 = vld [vmem:[%s2593_s28 + $0x68] sm:$0xff]  ;;  %v207_v32 = vld [vmem:[%s2593_s28 + $0x70] sm:$0xff] }
  0x1b   : > { %2122 = vmatmul.mubr.msk.f32.vlgmr.msra.gmra.mrb[0].mxu0 %vm247_vm1, %v2602_v9  ;;  %2125 = vmatmul.mubr.msk.f32.vlgmr.msra.gmra.mrb[0].mxu1 %vm247_vm1, %v2602_v9  ;;  %v243_v30 = vcombine.high %v205_v28, %v205_v28  ;;  %v244_v31 = vcombine.high %v206_v29, %v206_v29  ;;  %v208_v33 = vld [vmem:[%s2593_s28 + $0x78] sm:$0xff]  ;;  %v245_v34 = vcombine.high %v207_v32, %v207_v32 }
  0x1c   : > { %2126 = vmatprep.subr.msk.mxu0 %vm251_vm0, %v233_v10  ;;  %2129 = vmatprep.subr.msk.mxu1 %vm251_vm0, %v234_v11  ;;  %v246_v35 = vcombine.high %v208_v33, %v208_v33 }
  0x1d   : > { %2127 = vmatpush1.msk.msra.mxu0 %vm251_vm0, %v195_v5  ;;  %2130 = vmatpush1.msk.msra.mxu1 %vm251_vm0, %v196_v8 }
  0x1e   : > { %522 = vmatprep.mubr.f32.mxu0 %v2527_v0  ;;  %593 = vmatprep.mubr.f32.mxu1 %v2527_v0 }
  0x1f   : > { %2128 = vmatmul.mubr.msk.f32.vlgmr.msra.gmra.mrb[2].mxu0 %vm247_vm1, %v2602_v9  ;;  %2131 = vmatmul.mubr.msk.f32.vlgmr.msra.gmra.mrb[2].mxu1 %vm247_vm1, %v2602_v9 }
  0x20   : > { %2132 = vmatprep.subr.msk.mxu0 %vm251_vm0, %v235_v14  ;;  %2135 = vmatprep.subr.msk.mxu1 %vm251_vm0, %v236_v15 }
  0x21   : > { %2133 = vmatpush1.msk.msra.mxu0 %vm251_vm0, %v197_v12  ;;  %2136 = vmatpush1.msk.msra.mxu1 %vm251_vm0, %v198_v13 }
  0x22   : > { %664 = vmatprep.mubr.f32.mxu0 %v2527_v0  ;;  %735 = vmatprep.mubr.f32.mxu1 %v2527_v0 }
  0x23   : > { %2134 = vmatmul.mubr.msk.f32.vlgmr.msra.gmra.mrb[4].mxu0 %vm247_vm1, %v2602_v9  ;;  %2137 = vmatmul.mubr.msk.f32.vlgmr.msra.gmra.mrb[4].mxu1 %vm247_vm1, %v2602_v9 }
  0x24   : > { %2138 = vmatprep.subr.msk.mxu0 %vm251_vm0, %v237_v18  ;;  %2141 = vmatprep.subr.msk.mxu1 %vm251_vm0, %v238_v19 }
  0x25   : > { %2139 = vmatpush1.msk.msra.mxu0 %vm251_vm0, %v199_v16  ;;  %2142 = vmatpush1.msk.msra.mxu1 %vm251_vm0, %v200_v17 }
  0x26   : > { %806 = vmatprep.mubr.f32.mxu0 %v2527_v0  ;;  %877 = vmatprep.mubr.f32.mxu1 %v2527_v0 }
  0x27   : > { %2140 = vmatmul.mubr.msk.f32.vlgmr.msra.gmra.mrb[6].mxu0 %vm247_vm1, %v2602_v9  ;;  %2143 = vmatmul.mubr.msk.f32.vlgmr.msra.gmra.mrb[6].mxu1 %vm247_vm1, %v2602_v9 }
  0x28   : > { %2144 = vmatprep.subr.msk.mxu0 %vm251_vm0, %v239_v22  ;;  %2147 = vmatprep.subr.msk.mxu1 %vm251_vm0, %v240_v23 }
  0x29   : > { %2145 = vmatpush1.msk.msra.mxu0 %vm251_vm0, %v201_v20  ;;  %2148 = vmatpush1.msk.msra.mxu1 %vm251_vm0, %v202_v21 }
  0x2a   : > { %948 = vmatprep.mubr.f32.mxu0 %v2527_v0  ;;  %1019 = vmatprep.mubr.f32.mxu1 %v2527_v0 }
  0x2b   : > { %2146 = vmatmul.mubr.msk.f32.vlgmr.msra.gmra.mrb[8].mxu0 %vm247_vm1, %v2602_v9  ;;  %2149 = vmatmul.mubr.msk.f32.vlgmr.msra.gmra.mrb[8].mxu1 %vm247_vm1, %v2602_v9 }
  0x2c   : > { %2150 = vmatprep.subr.msk.mxu0 %vm251_vm0, %v241_v26  ;;  %2153 = vmatprep.subr.msk.mxu1 %vm251_vm0, %v242_v27 }
  0x2d   : > { %2151 = vmatpush1.msk.msra.mxu0 %vm251_vm0, %v203_v24  ;;  %2154 = vmatpush1.msk.msra.mxu1 %vm251_vm0, %v204_v25 }
  0x2e   : > { %1090 = vmatprep.mubr.f32.mxu0 %v2527_v0  ;;  %1161 = vmatprep.mubr.f32.mxu1 %v2527_v0 }
  0x2f   : > { %2152 = vmatmul.mubr.msk.f32.vlgmr.msra.gmra.mrb[10].mxu0 %vm247_vm1, %v2602_v9  ;;  %2155 = vmatmul.mubr.msk.f32.vlgmr.msra.gmra.mrb[10].mxu1 %vm247_vm1, %v2602_v9 }
  0x30   : > { %2156 = vmatprep.subr.msk.mxu0 %vm251_vm0, %v243_v30  ;;  %2159 = vmatprep.subr.msk.mxu1 %vm251_vm0, %v244_v31 }
  0x31   : > { %2157 = vmatpush1.msk.msra.mxu0 %vm251_vm0, %v205_v28  ;;  %2160 = vmatpush1.msk.msra.mxu1 %vm251_vm0, %v206_v29 }
  0x32   : > { %1232 = vmatprep.mubr.f32.mxu0 %v2527_v0  ;;  %1303 = vmatprep.mubr.f32.mxu1 %v2527_v0 }
  0x33   : > { %2158 = vmatmul.mubr.msk.f32.vlgmr.msra.gmra.mrb[12].mxu0 %vm247_vm1, %v2602_v9  ;;  %2161 = vmatmul.mubr.msk.f32.vlgmr.msra.gmra.mrb[12].mxu1 %vm247_vm1, %v2602_v9 }
  0x34   : > { %2162 = vmatprep.subr.msk.mxu0 %vm251_vm0, %v245_v34  ;;  %2165 = vmatprep.subr.msk.mxu1 %vm251_vm0, %v246_v35 }
  0x35   : > { %2163 = vmatpush1.msk.msra.mxu0 %vm251_vm0, %v207_v32  ;;  %2166 = vmatpush1.msk.msra.mxu1 %vm251_vm0, %v208_v33 }
  0x36   : > { %1374 = vmatprep.mubr.f32.mxu0 %v2527_v0  ;;  %1445 = vmatprep.mubr.f32.mxu1 %v2527_v0 }
  0x37   : > { %2164 = vmatmul.mubr.msk.f32.vlgmr.msra.gmra.mrb[14].mxu0 %vm247_vm1, %v2602_v9  ;;  %2167 = vmatmul.mubr.msk.f32.vlgmr.msra.gmra.mrb[14].mxu1 %vm247_vm1, %v2602_v9 }
  0x8c   : > { %v2694_v36 = vpop.permute.xlu0 %212 }
  0xee   : > { %v382_v37 = vpop.f32.mrb[0].mxu0  ;;  %v453_v38 = vpop.f32.mrb[0].mxu1 }
  0xef   : > { %v383_v39 = vadd.f32 %v382_v37, %v2694_v36  ;;  %v384_v40 = vpop.f32.mrb[1].mxu0  ;;  %v454_v41 = vadd.f32 %v453_v38, %v2694_v36  ;;  %v455_v42 = vpop.f32.mrb[1].mxu1 }
  0xf0   : > { %v385_v43 = vadd.f32 %v384_v40, %v2694_v36  ;;  %v456_v44 = vadd.f32 %v455_v42, %v2694_v36 }
  0xf1   : > { %v1452_v45 = vmax.f32 %v383_v39, 0.0  ;;  %v1454_v46 = vmax.f32 %v454_v41, 0.0 }
  0xf2   : > { %v1453_v47 = vmax.f32 %v385_v43, 0.0  ;;  %v1455_v48 = vmax.f32 %v456_v44, 0.0  ;;  %v524_v49 = vpop.f32.mrb[2].mxu0  ;;  %v595_v50 = vpop.f32.mrb[2].mxu1 }
  0xf3   : > { %v525_v51 = vadd.f32 %v524_v49, %v2694_v36  ;;  %v596_v52 = vadd.f32 %v595_v50, %v2694_v36  ;;  %v526_v53 = vpop.f32.mrb[3].mxu0  ;;  %v597_v54 = vpop.f32.mrb[3].mxu1 }
  0xf4   : > { %v1516_v55 = vcombine.low %v1452_v45, %v1453_v47  ;;  %v1517_v56 = vcombine.low %v1454_v46, %v1455_v48  ;;  %v527_v57 = vadd.f32 %v526_v53, %v2694_v36  ;;  %v598_v58 = vadd.f32 %v597_v54, %v2694_v36 }
  0xf5   : > { %v1456_v59 = vmax.f32 %v525_v51, 0.0  ;;  %v1458_v60 = vmax.f32 %v596_v52, 0.0 }
  0xf6   : > { %1548 = vst [vmem:[%s2705_s6] sm:$0xff] %v1516_v55  ;;  %1549 = vst [vmem:[%s2705_s6 + $0x8] sm:$0xff] %v1517_v56  ;;  %v1457_v61 = vmax.f32 %v527_v57, 0.0  ;;  %v1459_v62 = vmax.f32 %v598_v58, 0.0  ;;  %v666_v63 = vpop.f32.mrb[4].mxu0  ;;  %v737_v0 = vpop.f32.mrb[4].mxu1 }
  0xf7   : > { %v667_v1 = vadd.f32 %v666_v63, %v2694_v36  ;;  %v738_v2 = vadd.f32 %v737_v0, %v2694_v36  ;;  %v668_v3 = vpop.f32.mrb[5].mxu0  ;;  %v739_v4 = vpop.f32.mrb[5].mxu1 }
  0xf8   : > { %v1518_v5 = vcombine.low %v1456_v59, %v1457_v61  ;;  %v1519_v6 = vcombine.low %v1458_v60, %v1459_v62  ;;  %v669_v7 = vadd.f32 %v668_v3, %v2694_v36  ;;  %v740_v8 = vadd.f32 %v739_v4, %v2694_v36 }
  0xf9   : > { %v1460_v9 = vmax.f32 %v667_v1, 0.0  ;;  %v1462_v10 = vmax.f32 %v738_v2, 0.0 }
  0xfa   : > { %1550 = vst [vmem:[%s2705_s6 + $0x10] sm:$0xff] %v1518_v5  ;;  %1551 = vst [vmem:[%s2705_s6 + $0x18] sm:$0xff] %v1519_v6  ;;  %v1461_v11 = vmax.f32 %v669_v7, 0.0  ;;  %v1463_v12 = vmax.f32 %v740_v8, 0.0  ;;  %v808_v13 = vpop.f32.mrb[6].mxu0  ;;  %v879_v14 = vpop.f32.mrb[6].mxu1 }
  0xfb   : > { %v809_v15 = vadd.f32 %v808_v13, %v2694_v36  ;;  %v880_v16 = vadd.f32 %v879_v14, %v2694_v36  ;;  %v810_v17 = vpop.f32.mrb[7].mxu0  ;;  %v881_v18 = vpop.f32.mrb[7].mxu1 }
  0xfc   : > { %v1520_v19 = vcombine.low %v1460_v9, %v1461_v11  ;;  %v1521_v20 = vcombine.low %v1462_v10, %v1463_v12  ;;  %v811_v21 = vadd.f32 %v810_v17, %v2694_v36  ;;  %v882_v22 = vadd.f32 %v881_v18, %v2694_v36 }
  0xfd   : > { %v1464_v23 = vmax.f32 %v809_v15, 0.0  ;;  %v1466_v24 = vmax.f32 %v880_v16, 0.0 }
  0xfe   : > { %1552 = vst [vmem:[%s2705_s6 + $0x20] sm:$0xff] %v1520_v19  ;;  %1553 = vst [vmem:[%s2705_s6 + $0x28] sm:$0xff] %v1521_v20  ;;  %v1465_v25 = vmax.f32 %v811_v21, 0.0  ;;  %v1467_v26 = vmax.f32 %v882_v22, 0.0  ;;  %v950_v27 = vpop.f32.mrb[8].mxu0  ;;  %v1021_v28 = vpop.f32.mrb[8].mxu1 }
  0xff   : > { %v951_v29 = vadd.f32 %v950_v27, %v2694_v36  ;;  %v1022_v30 = vadd.f32 %v1021_v28, %v2694_v36  ;;  %v952_v31 = vpop.f32.mrb[9].mxu0  ;;  %v1023_v32 = vpop.f32.mrb[9].mxu1 }
 0x100   : > { %v1522_v33 = vcombine.low %v1464_v23, %v1465_v25  ;;  %v1523_v34 = vcombine.low %v1466_v24, %v1467_v26  ;;  %v953_v35 = vadd.f32 %v952_v31, %v2694_v36  ;;  %v1024_v37 = vadd.f32 %v1023_v32, %v2694_v36 }
 0x101   : > { %v1468_v38 = vmax.f32 %v951_v29, 0.0  ;;  %v1470_v39 = vmax.f32 %v1022_v30, 0.0 }
 0x102   : > { %1554 = vst [vmem:[%s2705_s6 + $0x30] sm:$0xff] %v1522_v33  ;;  %1555 = vst [vmem:[%s2705_s6 + $0x38] sm:$0xff] %v1523_v34  ;;  %v1469_v40 = vmax.f32 %v953_v35, 0.0  ;;  %v1471_v41 = vmax.f32 %v1024_v37, 0.0  ;;  %v1092_v42 = vpop.f32.mrb[10].mxu0  ;;  %v1163_v43 = vpop.f32.mrb[10].mxu1 }
 0x103   : > { %v1093_v44 = vadd.f32 %v1092_v42, %v2694_v36  ;;  %v1164_v45 = vadd.f32 %v1163_v43, %v2694_v36  ;;  %v1094_v46 = vpop.f32.mrb[11].mxu0  ;;  %v1165_v47 = vpop.f32.mrb[11].mxu1 }
 0x104   : > { %v1524_v48 = vcombine.low %v1468_v38, %v1469_v40  ;;  %v1525_v49 = vcombine.low %v1470_v39, %v1471_v41  ;;  %v1095_v50 = vadd.f32 %v1094_v46, %v2694_v36  ;;  %v1166_v51 = vadd.f32 %v1165_v47, %v2694_v36 }
 0x105   : > { %v1472_v52 = vmax.f32 %v1093_v44, 0.0  ;;  %v1474_v53 = vmax.f32 %v1164_v45, 0.0 }
 0x106   : > { %1556 = vst [vmem:[%s2705_s6 + $0x40] sm:$0xff] %v1524_v48  ;;  %1557 = vst [vmem:[%s2705_s6 + $0x48] sm:$0xff] %v1525_v49  ;;  %v1473_v54 = vmax.f32 %v1095_v50, 0.0  ;;  %v1475_v55 = vmax.f32 %v1166_v51, 0.0  ;;  %v1234_v56 = vpop.f32.mrb[12].mxu0  ;;  %v1305_v57 = vpop.f32.mrb[12].mxu1 }
 0x107   : > { %v1235_v58 = vadd.f32 %v1234_v56, %v2694_v36  ;;  %v1306_v59 = vadd.f32 %v1305_v57, %v2694_v36  ;;  %v1236_v60 = vpop.f32.mrb[13].mxu0  ;;  %v1307_v61 = vpop.f32.mrb[13].mxu1 }
 0x108   : > { %v1526_v62 = vcombine.low %v1472_v52, %v1473_v54  ;;  %v1527_v63 = vcombine.low %v1474_v53, %v1475_v55  ;;  %v1237_v0 = vadd.f32 %v1236_v60, %v2694_v36  ;;  %v1308_v1 = vadd.f32 %v1307_v61, %v2694_v36 }
 0x109   : > { %v1476_v2 = vmax.f32 %v1235_v58, 0.0  ;;  %v1478_v3 = vmax.f32 %v1306_v59, 0.0 }
 0x10a   : > { %1558 = vst [vmem:[%s2705_s6 + $0x50] sm:$0xff] %v1526_v62  ;;  %1559 = vst [vmem:[%s2705_s6 + $0x58] sm:$0xff] %v1527_v63  ;;  %v1477_v4 = vmax.f32 %v1237_v0, 0.0  ;;  %v1479_v5 = vmax.f32 %v1308_v1, 0.0  ;;  %v1376_v6 = vpop.f32.mrb[14].mxu0  ;;  %v1447_v7 = vpop.f32.mrb[14].mxu1 }
 0x10b   : > { %v1377_v8 = vadd.f32 %v1376_v6, %v2694_v36  ;;  %v1448_v9 = vadd.f32 %v1447_v7, %v2694_v36  ;;  %v1378_v10 = vpop.f32.mrb[15].mxu0  ;;  %v1449_v11 = vpop.f32.mrb[15].mxu1 }
 0x10c   : > { %v1528_v12 = vcombine.low %v1476_v2, %v1477_v4  ;;  %v1529_v13 = vcombine.low %v1478_v3, %v1479_v5  ;;  %v1379_v14 = vadd.f32 %v1378_v10, %v2694_v36  ;;  %v1450_v15 = vadd.f32 %v1449_v11, %v2694_v36  ;;  %1570 = sbr.rel (!%p2576_p4) target bundleno = 440 (0x1b8), region = 36 }
 0x10d   : > { %v1480_v16 = vmax.f32 %v1377_v8, 0.0  ;;  %v1482_v17 = vmax.f32 %v1448_v9, 0.0 }
 0x10e   : > { %1560 = vst [vmem:[%s2705_s6 + $0x60] sm:$0xff] %v1528_v12  ;;  %1561 = vst [vmem:[%s2705_s6 + $0x68] sm:$0xff] %v1529_v13  ;;  %v1481_v18 = vmax.f32 %v1379_v14, 0.0  ;;  %v1483_v19 = vmax.f32 %v1450_v15, 0.0 }
 0x110   : > { %v1530_v20 = vcombine.low %v1480_v16, %v1481_v18  ;;  %v1531_v21 = vcombine.low %v1482_v17, %v1483_v19 }
 0x112   : > { %1562 = vst [vmem:[%s2705_s6 + $0x70] sm:$0xff] %v1530_v20  ;;  %1563 = vst [vmem:[%s2705_s6 + $0x78] sm:$0xff] %v1531_v21 }
 0x113   : > { %s3188_s7 = smov (!%p1573_p8, %s1572_s7), 32 }
 0x114   : > { %s2170_s12 = sshll.u32 %s3188_s7, 6  ;;  %s2756_s14 = sshll.u32 %s3188_s7, 2 }
 0x115   : > { %p2174_p9 = scmp.eq.s32.totalorder %s2170_s12, 0 }
 0x116   : > { %p1583_p10 = scmp.lt.u32.totalorder (!%p2174_p9), %s2756_s14, 8 }
 0x117   : > { %1582 = sbr.rel (%p2174_p9) target bundleno = 440 (0x1b8), region = 40 }
 0x11e   : > { %1586 = sbr.rel (%p1583_p10) target bundleno = 431 (0x1af), region = 44  ;;  %s2760_s17 = sand.u32 (!%p1583_p10), 7, %s2756_s14  }
 0x11f   : > { %p1602_p11 = scmp.eq.s32.totalorder (!%p1583_p10), %s2760_s17, 0  ;;  %p2175_p12 = scmp.ne.s32.totalorder (!%p1583_p10), %s2760_s17, 0 }
 0x125   : > { %1605 = sbr.rel (%p2175_p12) target bundleno = 360 (0x168), region = 59  ;;  %s1606_s15 = sshrl.u32 (!%p2175_p12), %s2756_s14, 3 }
 0x126   : > { %s2767_s18 = sshrl.u32 (!%p2175_p12), %s1606_s15, 6 }
 0x127   : > { %p2176_p13 = scmp.le.s32.totalorder (!%p2175_p12), %s2767_s18, 0 }
 0x12c   : > { %2041 = sbr.rel (%p2176_p13) target bundleno = 340 (0x154), region = 140  ;;  %s3174_s20 = smov (!%p2176_p13), %s2754_s11 }
 0x12d   : > { %s3175_s21 = smov (!%p2176_p13), %s2705_s6  ;;  %s2776_s22 = smov (!%p2176_p13), 0  }
 0x12e   : > { %s2778_s23 = smov (!%p2176_p13), 0  }
 0x133 LB: >> { %v1619_v36 = vld [vmem:[%s2469_s21] sm:$0xff]  ;;  %v1621_v22 = vld [vmem:[%s2469_s21 + $0x8] sm:$0xff]  ;;  %v1623_v23 = vld [vmem:[%s2469_s21 + $0x10] sm:$0xff]  ;;  %s1747_s24 = sadd.s32 1, %s2473_s22  ;;  %s1613_s23 = sadd.s32 1, %s2477_s23   ;;  %s2477_s23 = sphi %s2778_s23, %s1613_s23   ;;  %s2473_s22 = sphi %s2776_s22, %s3178_s22   ;;  %s2469_s21 = sphi %s3175_s21, %s3177_s21   ;;  %s2465_s20 = sphi %s3174_s20, %s3176_s20  }
 0x134   : >> { %1620 = vst [vmem:[%s2465_s20] sm:$0xff] %v1619_v36  ;;  %1622 = vst [vmem:[%s2465_s20 + $0x8] sm:$0xff] %v1621_v22  ;;  %v1625_v24 = vld [vmem:[%s2469_s21 + $0x18] sm:$0xff]  ;;  %v1627_v25 = vld [vmem:[%s2469_s21 + $0x20] sm:$0xff]  ;;  %p1748_p0 = scmp.ge.s32.totalorder %s1747_s24, %s2767_s18  ;;  %p1612_p1 = scmp.ge.s32.totalorder %s1613_s23, %s2767_s18 }
 0x135   : >> { %1624 = vst [vmem:[%s2465_s20 + $0x10] sm:$0xff] %v1623_v23  ;;  %v1629_v26 = vld [vmem:[%s2469_s21 + $0x28] sm:$0xff]  ;;  %1626 = vst [vmem:[%s2465_s20 + $0x18] sm:$0xff] %v1625_v24  ;;  %v1631_v27 = vld [vmem:[%s2469_s21 + $0x30] sm:$0xff] }
 0x136   : >> { %1628 = vst [vmem:[%s2465_s20 + $0x20] sm:$0xff] %v1627_v25  ;;  %1630 = vst [vmem:[%s2465_s20 + $0x28] sm:$0xff] %v1629_v26  ;;  %v1633_v28 = vld [vmem:[%s2469_s21 + $0x38] sm:$0xff]  ;;  %v1635_v29 = vld [vmem:[%s2469_s21 + $0x40] sm:$0xff]  ;;  %s3190_s24 = smov (%p1748_p0, %s1747_s24), 0 }
 0x137   : >> { %1632 = vst [vmem:[%s2465_s20 + $0x30] sm:$0xff] %v1631_v27  ;;  %1634 = vst [vmem:[%s2465_s20 + $0x38] sm:$0xff] %v1633_v28  ;;  %v1637_v30 = vld [vmem:[%s2469_s21 + $0x48] sm:$0xff]  ;;  %v1639_v31 = vld [vmem:[%s2469_s21 + $0x50] sm:$0xff]  ;;  %s2177_s25 = sshll.u32 %s3190_s24, 9  ;;  %s3178_s22 = smov %s3190_s24 }
 0x138   : >> { %1636 = vst [vmem:[%s2465_s20 + $0x40] sm:$0xff] %v1635_v29  ;;  %v1641_v32 = vld [vmem:[%s2469_s21 + $0x58] sm:$0xff]  ;;  %1638 = vst [vmem:[%s2465_s20 + $0x48] sm:$0xff] %v1637_v30  ;;  %v1643_v33 = vld [vmem:[%s2469_s21 + $0x60] sm:$0xff]  ;;  %s2834_s26 = scalar_lea.vmem %s2705_s6, %s2177_s25 [#allocation2]   ;;  %s2837_s27 = scalar_lea.vmem %s2754_s11, %s2177_s25  }
 0x139   : >> { %1640 = vst [vmem:[%s2465_s20 + $0x50] sm:$0xff] %v1639_v31  ;;  %1642 = vst [vmem:[%s2465_s20 + $0x58] sm:$0xff] %v1641_v32  ;;  %v1645_v34 = vld [vmem:[%s2469_s21 + $0x68] sm:$0xff]  ;;  %v1647_v35 = vld [vmem:[%s2469_s21 + $0x70] sm:$0xff] }
 0x13a   : >> { %1644 = vst [vmem:[%s2465_s20 + $0x60] sm:$0xff] %v1643_v33  ;;  %1646 = vst [vmem:[%s2465_s20 + $0x68] sm:$0xff] %v1645_v34  ;;  %v1649_v37 = vld [vmem:[%s2469_s21 + $0x78] sm:$0xff]  ;;  %v1651_v38 = vld [vmem:[%s2469_s21 + $0x80] sm:$0xff] }
 0x13b   : >> { %1648 = vst [vmem:[%s2465_s20 + $0x70] sm:$0xff] %v1647_v35  ;;  %v1653_v39 = vld [vmem:[%s2469_s21 + $0x88] sm:$0xff]  ;;  %1650 = vst [vmem:[%s2465_s20 + $0x78] sm:$0xff] %v1649_v37  ;;  %v1655_v40 = vld [vmem:[%s2469_s21 + $0x90] sm:$0xff] }
 0x13c   : >> { %1652 = vst [vmem:[%s2465_s20 + $0x80] sm:$0xff] %v1651_v38  ;;  %1654 = vst [vmem:[%s2465_s20 + $0x88] sm:$0xff] %v1653_v39  ;;  %v1657_v41 = vld [vmem:[%s2469_s21 + $0x98] sm:$0xff]  ;;  %v1659_v42 = vld [vmem:[%s2469_s21 + $0xa0] sm:$0xff] }
 0x13d   : >> { %1656 = vst [vmem:[%s2465_s20 + $0x90] sm:$0xff] %v1655_v40  ;;  %1658 = vst [vmem:[%s2465_s20 + $0x98] sm:$0xff] %v1657_v41  ;;  %v1661_v43 = vld [vmem:[%s2469_s21 + $0xa8] sm:$0xff]  ;;  %v1663_v44 = vld [vmem:[%s2469_s21 + $0xb0] sm:$0xff] }
 0x13e   : >> { %1660 = vst [vmem:[%s2465_s20 + $0xa0] sm:$0xff] %v1659_v42  ;;  %v1665_v45 = vld [vmem:[%s2469_s21 + $0xb8] sm:$0xff]  ;;  %1662 = vst [vmem:[%s2465_s20 + $0xa8] sm:$0xff] %v1661_v43  ;;  %v1667_v46 = vld [vmem:[%s2469_s21 + $0xc0] sm:$0xff] }
 0x13f   : >> { %1664 = vst [vmem:[%s2465_s20 + $0xb0] sm:$0xff] %v1663_v44  ;;  %1666 = vst [vmem:[%s2465_s20 + $0xb8] sm:$0xff] %v1665_v45  ;;  %v1669_v47 = vld [vmem:[%s2469_s21 + $0xc8] sm:$0xff]  ;;  %v1671_v48 = vld [vmem:[%s2469_s21 + $0xd0] sm:$0xff] }
 0x140   : >> { %1668 = vst [vmem:[%s2465_s20 + $0xc0] sm:$0xff] %v1667_v46  ;;  %1670 = vst [vmem:[%s2465_s20 + $0xc8] sm:$0xff] %v1669_v47  ;;  %v1673_v49 = vld [vmem:[%s2469_s21 + $0xd8] sm:$0xff]  ;;  %v1675_v50 = vld [vmem:[%s2469_s21 + $0xe0] sm:$0xff] }
 0x141   : >> { %1672 = vst [vmem:[%s2465_s20 + $0xd0] sm:$0xff] %v1671_v48  ;;  %v1677_v51 = vld [vmem:[%s2469_s21 + $0xe8] sm:$0xff]  ;;  %1674 = vst [vmem:[%s2465_s20 + $0xd8] sm:$0xff] %v1673_v49  ;;  %v1679_v52 = vld [vmem:[%s2469_s21 + $0xf0] sm:$0xff] }
 0x142   : >> { %1676 = vst [vmem:[%s2465_s20 + $0xe0] sm:$0xff] %v1675_v50  ;;  %1678 = vst [vmem:[%s2465_s20 + $0xe8] sm:$0xff] %v1677_v51  ;;  %v1681_v53 = vld [vmem:[%s2469_s21 + $0xf8] sm:$0xff]  ;;  %v1683_v54 = vld [vmem:[%s2469_s21 + $0x100] sm:$0xff] }
 0x143   : >> { %1680 = vst [vmem:[%s2465_s20 + $0xf0] sm:$0xff] %v1679_v52  ;;  %1682 = vst [vmem:[%s2465_s20 + $0xf8] sm:$0xff] %v1681_v53  ;;  %v1685_v55 = vld [vmem:[%s2469_s21 + $0x108] sm:$0xff]  ;;  %v1687_v56 = vld [vmem:[%s2469_s21 + $0x110] sm:$0xff] }
 0x144   : >> { %1684 = vst [vmem:[%s2465_s20 + $0x100] sm:$0xff] %v1683_v54  ;;  %v1689_v57 = vld [vmem:[%s2469_s21 + $0x118] sm:$0xff]  ;;  %1686 = vst [vmem:[%s2465_s20 + $0x108] sm:$0xff] %v1685_v55  ;;  %v1691_v58 = vld [vmem:[%s2469_s21 + $0x120] sm:$0xff] }
 0x145   : >> { %1688 = vst [vmem:[%s2465_s20 + $0x110] sm:$0xff] %v1687_v56  ;;  %1690 = vst [vmem:[%s2465_s20 + $0x118] sm:$0xff] %v1689_v57  ;;  %v1693_v59 = vld [vmem:[%s2469_s21 + $0x128] sm:$0xff]  ;;  %v1695_v60 = vld [vmem:[%s2469_s21 + $0x130] sm:$0xff] }
 0x146   : >> { %1692 = vst [vmem:[%s2465_s20 + $0x120] sm:$0xff] %v1691_v58  ;;  %1694 = vst [vmem:[%s2465_s20 + $0x128] sm:$0xff] %v1693_v59  ;;  %v1697_v61 = vld [vmem:[%s2469_s21 + $0x138] sm:$0xff]  ;;  %v1699_v62 = vld [vmem:[%s2469_s21 + $0x140] sm:$0xff] }
 0x147   : >> { %1696 = vst [vmem:[%s2465_s20 + $0x130] sm:$0xff] %v1695_v60  ;;  %v1701_v63 = vld [vmem:[%s2469_s21 + $0x148] sm:$0xff]  ;;  %1698 = vst [vmem:[%s2465_s20 + $0x138] sm:$0xff] %v1697_v61  ;;  %v1703_v0 = vld [vmem:[%s2469_s21 + $0x150] sm:$0xff] }
 0x148   : >> { %1700 = vst [vmem:[%s2465_s20 + $0x140] sm:$0xff] %v1699_v62  ;;  %1702 = vst [vmem:[%s2465_s20 + $0x148] sm:$0xff] %v1701_v63  ;;  %v1705_v1 = vld [vmem:[%s2469_s21 + $0x158] sm:$0xff]  ;;  %v1707_v2 = vld [vmem:[%s2469_s21 + $0x160] sm:$0xff] }
 0x149   : >> { %1704 = vst [vmem:[%s2465_s20 + $0x150] sm:$0xff] %v1703_v0  ;;  %1706 = vst [vmem:[%s2465_s20 + $0x158] sm:$0xff] %v1705_v1  ;;  %v1709_v3 = vld [vmem:[%s2469_s21 + $0x168] sm:$0xff]  ;;  %v1711_v4 = vld [vmem:[%s2469_s21 + $0x170] sm:$0xff] }
 0x14a   : >> { %1708 = vst [vmem:[%s2465_s20 + $0x160] sm:$0xff] %v1707_v2  ;;  %v1713_v5 = vld [vmem:[%s2469_s21 + $0x178] sm:$0xff]  ;;  %1710 = vst [vmem:[%s2465_s20 + $0x168] sm:$0xff] %v1709_v3  ;;  %v1715_v6 = vld [vmem:[%s2469_s21 + $0x180] sm:$0xff] }
 0x14b   : >> { %1712 = vst [vmem:[%s2465_s20 + $0x170] sm:$0xff] %v1711_v4  ;;  %1714 = vst [vmem:[%s2465_s20 + $0x178] sm:$0xff] %v1713_v5  ;;  %v1717_v7 = vld [vmem:[%s2469_s21 + $0x188] sm:$0xff]  ;;  %v1719_v8 = vld [vmem:[%s2469_s21 + $0x190] sm:$0xff] }
 0x14c   : >> { %1716 = vst [vmem:[%s2465_s20 + $0x180] sm:$0xff] %v1715_v6  ;;  %1718 = vst [vmem:[%s2465_s20 + $0x188] sm:$0xff] %v1717_v7  ;;  %v1721_v9 = vld [vmem:[%s2469_s21 + $0x198] sm:$0xff]  ;;  %v1723_v10 = vld [vmem:[%s2469_s21 + $0x1a0] sm:$0xff] }
 0x14d   : >> { %1720 = vst [vmem:[%s2465_s20 + $0x190] sm:$0xff] %v1719_v8  ;;  %v1725_v11 = vld [vmem:[%s2469_s21 + $0x1a8] sm:$0xff]  ;;  %1722 = vst [vmem:[%s2465_s20 + $0x198] sm:$0xff] %v1721_v9  ;;  %v1727_v12 = vld [vmem:[%s2469_s21 + $0x1b0] sm:$0xff]  ;;  %1615 = sbr.rel (!%p1612_p1) target bundleno = 307 (0x133), region = 146 }
 0x14e   : >> { %1724 = vst [vmem:[%s2465_s20 + $0x1a0] sm:$0xff] %v1723_v10  ;;  %1726 = vst [vmem:[%s2465_s20 + $0x1a8] sm:$0xff] %v1725_v11  ;;  %v1729_v13 = vld [vmem:[%s2469_s21 + $0x1b8] sm:$0xff]  ;;  %v1731_v14 = vld [vmem:[%s2469_s21 + $0x1c0] sm:$0xff] }
 0x14f   : >> { %1728 = vst [vmem:[%s2465_s20 + $0x1b0] sm:$0xff] %v1727_v12  ;;  %1730 = vst [vmem:[%s2465_s20 + $0x1b8] sm:$0xff] %v1729_v13  ;;  %v1733_v15 = vld [vmem:[%s2469_s21 + $0x1c8] sm:$0xff]  ;;  %v1735_v16 = vld [vmem:[%s2469_s21 + $0x1d0] sm:$0xff] }
 0x150   : >> { %1732 = vst [vmem:[%s2465_s20 + $0x1c0] sm:$0xff] %v1731_v14  ;;  %v1737_v17 = vld [vmem:[%s2469_s21 + $0x1d8] sm:$0xff]  ;;  %1734 = vst [vmem:[%s2465_s20 + $0x1c8] sm:$0xff] %v1733_v15  ;;  %v1739_v18 = vld [vmem:[%s2469_s21 + $0x1e0] sm:$0xff] }
 0x151   : >> { %1736 = vst [vmem:[%s2465_s20 + $0x1d0] sm:$0xff] %v1735_v16  ;;  %1738 = vst [vmem:[%s2465_s20 + $0x1d8] sm:$0xff] %v1737_v17  ;;  %v1741_v19 = vld [vmem:[%s2469_s21 + $0x1e8] sm:$0xff]  ;;  %v1743_v20 = vld [vmem:[%s2469_s21 + $0x1f0] sm:$0xff] }
 0x152   : >> { %1740 = vst [vmem:[%s2465_s20 + $0x1e0] sm:$0xff] %v1739_v18  ;;  %1742 = vst [vmem:[%s2465_s20 + $0x1e8] sm:$0xff] %v1741_v19  ;;  %v1745_v21 = vld [vmem:[%s2469_s21 + $0x1f8] sm:$0xff]  ;;  %s3177_s21 = smov %s2834_s26 }
 0x153   : >> { %1744 = vst [vmem:[%s2465_s20 + $0x1f0] sm:$0xff] %v1743_v20  ;;  %1746 = vst [vmem:[%s2465_s20 + $0x1f8] sm:$0xff] %v1745_v21  ;;  %s3176_s20 = smov %s2837_s27 }
 0x154 PF: > { %s2943_s28 = sand.u32 63, %s1606_s15   ;;  %s2198_s29 = sshll.u32 %s2767_s18, 13 }
 0x155   : > { %s1758_s30 = sshra.s32 %s2198_s29, 4  ;;  %p2182_p2 = scmp.le.s32.totalorder %s2943_s28, 0 }
 0x156   : > { %s1759_s4 = scalar_lea.vmem %s2705_s6, %s1758_s30 [#allocation2]   ;;  %s1762_s5 = scalar_lea.vmem %s2754_s11, %s1758_s30  }
 0x157   : > { %2055 = sbr.rel (%p2182_p2) target bundleno = 360 (0x168), region = 151  ;;  %s2479_s7 = smov (!%p2182_p2), %s1762_s5  }
 0x158   : > { %s2483_s8 = smov (!%p2182_p2), %s1759_s4   ;;  %s2487_s9 = smov (!%p2182_p2), 0  }
 0x159   : > { %s2491_s10 = smov (!%p2182_p2), 0  }
 0x15e LB: >> { %v1774_v36 = vld [vmem:[%s2485_s8] sm:$0xff]  ;;  %s1776_s12 = sadd.s32 1, %s2489_s9  ;;  %s1768_s10 = sadd.s32 1, %s2493_s10   ;;  %s2493_s10 = sphi %s2491_s10, %s1768_s10   ;;  %s2489_s9 = sphi %s2487_s9, %s2488_s9   ;;  %s2485_s8 = sphi %s2483_s8, %s1781_s8   ;;  %s2481_s7 = sphi %s2479_s7, %s1782_s7  }
 0x15f   : >> { %1775 = vst [vmem:[%s2481_s7] sm:$0xff] %v1774_v36  ;;  %p1777_p3 = scmp.ge.s32.totalorder %s1776_s12, %s2943_s28  ;;  %p1767_p4 = scmp.ge.s32.totalorder %s1768_s10, %s2943_s28 }
 0x161   : >> { %s3192_s12 = smov (%p1777_p3, %s1776_s12), 0  ;;  %1770 = sbr.rel (!%p1767_p4) target bundleno = 350 (0x15e), region = 157 }
 0x162   : >> { %s2183_s15 = sshll.u32 %s3192_s12, 3  ;;  %s2488_s9 = smov %s3192_s12  }
 0x163   : >> { %s1781_s8 = scalar_lea.vmem %s1759_s4, %s2183_s15 [#allocation2]   ;;  %s1782_s7 = scalar_lea.vmem %s1762_s5, %s2183_s15  }
 0x168 PF: > { %1785 = sbr.rel (%p1602_p11) target bundleno = 431 (0x1af), region = 77  ;;  %s2955_s18 = ssub.s32 (!%p1602_p11), %s2756_s14, %s2760_s17 }
 0x169   : > { %s1791_s20 = sshrl.u32 (!%p1602_p11), %s2756_s14, 3  ;;  %s1788_s21 = scalar_lea.vmem (!%p1602_p11), %s2705_s6, %s2955_s18 [#allocation2] }
 0x16a   : > { %s1790_s22 = scalar_lea.vmem (!%p1602_p11), %s2754_s11, %s2955_s18  ;;  %s2964_s23 = sshrl.u32 (!%p1602_p11), %s1791_s20, 6 }
 0x16b   : > { %p2185_p5 = scmp.le.s32.totalorder (!%p1602_p11), %s2964_s23, 0 }
 0x16f   : > { %2069 = sbr.rel (%p2185_p5) target bundleno = 407 (0x197), region = 162  ;;  %s3179_s24 = smov (!%p2185_p5), %s2754_s11 }
 0x170   : > { %s3180_s25 = smov (!%p2185_p5), %s2705_s6  ;;  %s2973_s26 = smov (!%p2185_p5), 0  }
 0x171   : > { %s2975_s27 = smov (!%p2185_p5), 0  }
 0x176 LB: >> { %v1804_v22 = vld [vmem:[%s2501_s25] sm:$0xff]  ;;  %v1806_v23 = vld [vmem:[%s2501_s25 + $0x8] sm:$0xff]  ;;  %v1808_v24 = vld [vmem:[%s2501_s25 + $0x10] sm:$0xff]  ;;  %s1932_s28 = sadd.s32 1, %s2505_s26  ;;  %s1798_s27 = sadd.s32 1, %s2509_s27   ;;  %s2509_s27 = sphi %s2975_s27, %s1798_s27   ;;  %s2505_s26 = sphi %s2973_s26, %s3183_s26   ;;  %s2501_s25 = sphi %s3180_s25, %s3182_s25   ;;  %s2497_s24 = sphi %s3179_s24, %s3181_s24  }
 0x177   : >> { %1805 = vst [vmem:[%s2497_s24] sm:$0xff] %v1804_v22  ;;  %1807 = vst [vmem:[%s2497_s24 + $0x8] sm:$0xff] %v1806_v23  ;;  %v1810_v25 = vld [vmem:[%s2501_s25 + $0x18] sm:$0xff]  ;;  %v1812_v26 = vld [vmem:[%s2501_s25 + $0x20] sm:$0xff]  ;;  %p1933_p6 = scmp.ge.s32.totalorder %s1932_s28, %s2964_s23  ;;  %p1797_p7 = scmp.ge.s32.totalorder %s1798_s27, %s2964_s23 }
 0x178   : >> { %1809 = vst [vmem:[%s2497_s24 + $0x10] sm:$0xff] %v1808_v24  ;;  %v1814_v27 = vld [vmem:[%s2501_s25 + $0x28] sm:$0xff]  ;;  %1811 = vst [vmem:[%s2497_s24 + $0x18] sm:$0xff] %v1810_v25  ;;  %v1816_v28 = vld [vmem:[%s2501_s25 + $0x30] sm:$0xff] }
 0x179   : >> { %1813 = vst [vmem:[%s2497_s24 + $0x20] sm:$0xff] %v1812_v26  ;;  %1815 = vst [vmem:[%s2497_s24 + $0x28] sm:$0xff] %v1814_v27  ;;  %v1818_v29 = vld [vmem:[%s2501_s25 + $0x38] sm:$0xff]  ;;  %v1820_v30 = vld [vmem:[%s2501_s25 + $0x40] sm:$0xff]  ;;  %s3194_s28 = smov (%p1933_p6, %s1932_s28), 0 }
 0x17a   : >> { %1817 = vst [vmem:[%s2497_s24 + $0x30] sm:$0xff] %v1816_v28  ;;  %1819 = vst [vmem:[%s2497_s24 + $0x38] sm:$0xff] %v1818_v29  ;;  %v1822_v31 = vld [vmem:[%s2501_s25 + $0x48] sm:$0xff]  ;;  %v1824_v32 = vld [vmem:[%s2501_s25 + $0x50] sm:$0xff]  ;;  %s2186_s29 = sshll.u32 %s3194_s28, 9  ;;  %s3183_s26 = smov %s3194_s28 }
 0x17b   : >> { %1821 = vst [vmem:[%s2497_s24 + $0x40] sm:$0xff] %v1820_v30  ;;  %v1826_v33 = vld [vmem:[%s2501_s25 + $0x58] sm:$0xff]  ;;  %1823 = vst [vmem:[%s2497_s24 + $0x48] sm:$0xff] %v1822_v31  ;;  %v1828_v34 = vld [vmem:[%s2501_s25 + $0x60] sm:$0xff]  ;;  %s3031_s30 = scalar_lea.vmem %s2705_s6, %s2186_s29 [#allocation2]   ;;  %s3034_s4 = scalar_lea.vmem %s2754_s11, %s2186_s29  }
 0x17c   : >> { %1825 = vst [vmem:[%s2497_s24 + $0x50] sm:$0xff] %v1824_v32  ;;  %1827 = vst [vmem:[%s2497_s24 + $0x58] sm:$0xff] %v1826_v33  ;;  %v1830_v35 = vld [vmem:[%s2501_s25 + $0x68] sm:$0xff]  ;;  %v1832_v37 = vld [vmem:[%s2501_s25 + $0x70] sm:$0xff] }
 0x17d   : >> { %1829 = vst [vmem:[%s2497_s24 + $0x60] sm:$0xff] %v1828_v34  ;;  %1831 = vst [vmem:[%s2497_s24 + $0x68] sm:$0xff] %v1830_v35  ;;  %v1834_v38 = vld [vmem:[%s2501_s25 + $0x78] sm:$0xff]  ;;  %v1836_v39 = vld [vmem:[%s2501_s25 + $0x80] sm:$0xff] }
 0x17e   : >> { %1833 = vst [vmem:[%s2497_s24 + $0x70] sm:$0xff] %v1832_v37  ;;  %v1838_v40 = vld [vmem:[%s2501_s25 + $0x88] sm:$0xff]  ;;  %1835 = vst [vmem:[%s2497_s24 + $0x78] sm:$0xff] %v1834_v38  ;;  %v1840_v41 = vld [vmem:[%s2501_s25 + $0x90] sm:$0xff] }
 0x17f   : >> { %1837 = vst [vmem:[%s2497_s24 + $0x80] sm:$0xff] %v1836_v39  ;;  %1839 = vst [vmem:[%s2497_s24 + $0x88] sm:$0xff] %v1838_v40  ;;  %v1842_v42 = vld [vmem:[%s2501_s25 + $0x98] sm:$0xff]  ;;  %v1844_v43 = vld [vmem:[%s2501_s25 + $0xa0] sm:$0xff] }
 0x180   : >> { %1841 = vst [vmem:[%s2497_s24 + $0x90] sm:$0xff] %v1840_v41  ;;  %1843 = vst [vmem:[%s2497_s24 + $0x98] sm:$0xff] %v1842_v42  ;;  %v1846_v44 = vld [vmem:[%s2501_s25 + $0xa8] sm:$0xff]  ;;  %v1848_v45 = vld [vmem:[%s2501_s25 + $0xb0] sm:$0xff] }
 0x181   : >> { %1845 = vst [vmem:[%s2497_s24 + $0xa0] sm:$0xff] %v1844_v43  ;;  %v1850_v46 = vld [vmem:[%s2501_s25 + $0xb8] sm:$0xff]  ;;  %1847 = vst [vmem:[%s2497_s24 + $0xa8] sm:$0xff] %v1846_v44  ;;  %v1852_v47 = vld [vmem:[%s2501_s25 + $0xc0] sm:$0xff] }
 0x182   : >> { %1849 = vst [vmem:[%s2497_s24 + $0xb0] sm:$0xff] %v1848_v45  ;;  %1851 = vst [vmem:[%s2497_s24 + $0xb8] sm:$0xff] %v1850_v46  ;;  %v1854_v48 = vld [vmem:[%s2501_s25 + $0xc8] sm:$0xff]  ;;  %v1856_v49 = vld [vmem:[%s2501_s25 + $0xd0] sm:$0xff] }
 0x183   : >> { %1853 = vst [vmem:[%s2497_s24 + $0xc0] sm:$0xff] %v1852_v47  ;;  %1855 = vst [vmem:[%s2497_s24 + $0xc8] sm:$0xff] %v1854_v48  ;;  %v1858_v50 = vld [vmem:[%s2501_s25 + $0xd8] sm:$0xff]  ;;  %v1860_v51 = vld [vmem:[%s2501_s25 + $0xe0] sm:$0xff] }
 0x184   : >> { %1857 = vst [vmem:[%s2497_s24 + $0xd0] sm:$0xff] %v1856_v49  ;;  %v1862_v52 = vld [vmem:[%s2501_s25 + $0xe8] sm:$0xff]  ;;  %1859 = vst [vmem:[%s2497_s24 + $0xd8] sm:$0xff] %v1858_v50  ;;  %v1864_v53 = vld [vmem:[%s2501_s25 + $0xf0] sm:$0xff] }
 0x185   : >> { %1861 = vst [vmem:[%s2497_s24 + $0xe0] sm:$0xff] %v1860_v51  ;;  %1863 = vst [vmem:[%s2497_s24 + $0xe8] sm:$0xff] %v1862_v52  ;;  %v1866_v54 = vld [vmem:[%s2501_s25 + $0xf8] sm:$0xff]  ;;  %v1868_v55 = vld [vmem:[%s2501_s25 + $0x100] sm:$0xff] }
 0x186   : >> { %1865 = vst [vmem:[%s2497_s24 + $0xf0] sm:$0xff] %v1864_v53  ;;  %1867 = vst [vmem:[%s2497_s24 + $0xf8] sm:$0xff] %v1866_v54  ;;  %v1870_v56 = vld [vmem:[%s2501_s25 + $0x108] sm:$0xff]  ;;  %v1872_v57 = vld [vmem:[%s2501_s25 + $0x110] sm:$0xff] }
 0x187   : >> { %1869 = vst [vmem:[%s2497_s24 + $0x100] sm:$0xff] %v1868_v55  ;;  %v1874_v58 = vld [vmem:[%s2501_s25 + $0x118] sm:$0xff]  ;;  %1871 = vst [vmem:[%s2497_s24 + $0x108] sm:$0xff] %v1870_v56  ;;  %v1876_v59 = vld [vmem:[%s2501_s25 + $0x120] sm:$0xff] }
 0x188   : >> { %1873 = vst [vmem:[%s2497_s24 + $0x110] sm:$0xff] %v1872_v57  ;;  %1875 = vst [vmem:[%s2497_s24 + $0x118] sm:$0xff] %v1874_v58  ;;  %v1878_v60 = vld [vmem:[%s2501_s25 + $0x128] sm:$0xff]  ;;  %v1880_v61 = vld [vmem:[%s2501_s25 + $0x130] sm:$0xff] }
 0x189   : >> { %1877 = vst [vmem:[%s2497_s24 + $0x120] sm:$0xff] %v1876_v59  ;;  %1879 = vst [vmem:[%s2497_s24 + $0x128] sm:$0xff] %v1878_v60  ;;  %v1882_v62 = vld [vmem:[%s2501_s25 + $0x138] sm:$0xff]  ;;  %v1884_v63 = vld [vmem:[%s2501_s25 + $0x140] sm:$0xff] }
 0x18a   : >> { %1881 = vst [vmem:[%s2497_s24 + $0x130] sm:$0xff] %v1880_v61  ;;  %v1886_v0 = vld [vmem:[%s2501_s25 + $0x148] sm:$0xff]  ;;  %1883 = vst [vmem:[%s2497_s24 + $0x138] sm:$0xff] %v1882_v62  ;;  %v1888_v1 = vld [vmem:[%s2501_s25 + $0x150] sm:$0xff] }
 0x18b   : >> { %1885 = vst [vmem:[%s2497_s24 + $0x140] sm:$0xff] %v1884_v63  ;;  %1887 = vst [vmem:[%s2497_s24 + $0x148] sm:$0xff] %v1886_v0  ;;  %v1890_v2 = vld [vmem:[%s2501_s25 + $0x158] sm:$0xff]  ;;  %v1892_v3 = vld [vmem:[%s2501_s25 + $0x160] sm:$0xff] }
 0x18c   : >> { %1889 = vst [vmem:[%s2497_s24 + $0x150] sm:$0xff] %v1888_v1  ;;  %1891 = vst [vmem:[%s2497_s24 + $0x158] sm:$0xff] %v1890_v2  ;;  %v1894_v4 = vld [vmem:[%s2501_s25 + $0x168] sm:$0xff]  ;;  %v1896_v5 = vld [vmem:[%s2501_s25 + $0x170] sm:$0xff] }
 0x18d   : >> { %1893 = vst [vmem:[%s2497_s24 + $0x160] sm:$0xff] %v1892_v3  ;;  %v1898_v6 = vld [vmem:[%s2501_s25 + $0x178] sm:$0xff]  ;;  %1895 = vst [vmem:[%s2497_s24 + $0x168] sm:$0xff] %v1894_v4  ;;  %v1900_v7 = vld [vmem:[%s2501_s25 + $0x180] sm:$0xff] }
 0x18e   : >> { %1897 = vst [vmem:[%s2497_s24 + $0x170] sm:$0xff] %v1896_v5  ;;  %1899 = vst [vmem:[%s2497_s24 + $0x178] sm:$0xff] %v1898_v6  ;;  %v1902_v8 = vld [vmem:[%s2501_s25 + $0x188] sm:$0xff]  ;;  %v1904_v9 = vld [vmem:[%s2501_s25 + $0x190] sm:$0xff] }
 0x18f   : >> { %1901 = vst [vmem:[%s2497_s24 + $0x180] sm:$0xff] %v1900_v7  ;;  %1903 = vst [vmem:[%s2497_s24 + $0x188] sm:$0xff] %v1902_v8  ;;  %v1906_v10 = vld [vmem:[%s2501_s25 + $0x198] sm:$0xff]  ;;  %v1908_v11 = vld [vmem:[%s2501_s25 + $0x1a0] sm:$0xff] }
 0x190   : >> { %1905 = vst [vmem:[%s2497_s24 + $0x190] sm:$0xff] %v1904_v9  ;;  %v1910_v12 = vld [vmem:[%s2501_s25 + $0x1a8] sm:$0xff]  ;;  %1907 = vst [vmem:[%s2497_s24 + $0x198] sm:$0xff] %v1906_v10  ;;  %v1912_v13 = vld [vmem:[%s2501_s25 + $0x1b0] sm:$0xff]  ;;  %1800 = sbr.rel (!%p1797_p7) target bundleno = 374 (0x176), region = 168 }
 0x191   : >> { %1909 = vst [vmem:[%s2497_s24 + $0x1a0] sm:$0xff] %v1908_v11  ;;  %1911 = vst [vmem:[%s2497_s24 + $0x1a8] sm:$0xff] %v1910_v12  ;;  %v1914_v14 = vld [vmem:[%s2501_s25 + $0x1b8] sm:$0xff]  ;;  %v1916_v15 = vld [vmem:[%s2501_s25 + $0x1c0] sm:$0xff] }
 0x192   : >> { %1913 = vst [vmem:[%s2497_s24 + $0x1b0] sm:$0xff] %v1912_v13  ;;  %1915 = vst [vmem:[%s2497_s24 + $0x1b8] sm:$0xff] %v1914_v14  ;;  %v1918_v16 = vld [vmem:[%s2501_s25 + $0x1c8] sm:$0xff]  ;;  %v1920_v17 = vld [vmem:[%s2501_s25 + $0x1d0] sm:$0xff] }
 0x193   : >> { %1917 = vst [vmem:[%s2497_s24 + $0x1c0] sm:$0xff] %v1916_v15  ;;  %v1922_v18 = vld [vmem:[%s2501_s25 + $0x1d8] sm:$0xff]  ;;  %1919 = vst [vmem:[%s2497_s24 + $0x1c8] sm:$0xff] %v1918_v16  ;;  %v1924_v19 = vld [vmem:[%s2501_s25 + $0x1e0] sm:$0xff] }
 0x194   : >> { %1921 = vst [vmem:[%s2497_s24 + $0x1d0] sm:$0xff] %v1920_v17  ;;  %1923 = vst [vmem:[%s2497_s24 + $0x1d8] sm:$0xff] %v1922_v18  ;;  %v1926_v20 = vld [vmem:[%s2501_s25 + $0x1e8] sm:$0xff]  ;;  %v1928_v21 = vld [vmem:[%s2501_s25 + $0x1f0] sm:$0xff] }
 0x195   : >> { %1925 = vst [vmem:[%s2497_s24 + $0x1e0] sm:$0xff] %v1924_v19  ;;  %1927 = vst [vmem:[%s2497_s24 + $0x1e8] sm:$0xff] %v1926_v20  ;;  %v1930_v36 = vld [vmem:[%s2501_s25 + $0x1f8] sm:$0xff]  ;;  %s3182_s25 = smov %s3031_s30 }
 0x196   : >> { %1929 = vst [vmem:[%s2497_s24 + $0x1f0] sm:$0xff] %v1928_v21  ;;  %1931 = vst [vmem:[%s2497_s24 + $0x1f8] sm:$0xff] %v1930_v36  ;;  %s3181_s24 = smov %s3034_s4 }
 0x197 PF: > { %s3140_s5 = sand.u32 63, %s1791_s20   ;;  %s2200_s7 = sshll.u32 %s2964_s23, 13 }
 0x198   : > { %s1943_s8 = sshra.s32 %s2200_s7, 4  ;;  %p2191_p8 = scmp.le.s32.totalorder %s3140_s5, 0 }
 0x199   : > { %s1944_s9 = scalar_lea.vmem %s2705_s6, %s1943_s8 [#allocation2]   ;;  %s1947_s10 = scalar_lea.vmem %s2754_s11, %s1943_s8  }
 0x19a   : > { %2083 = sbr.rel (%p2191_p8) target bundleno = 427 (0x1ab), region = 173  ;;  %s2511_s12 = smov (!%p2191_p8), %s1947_s10  }
 0x19b   : > { %s2515_s15 = smov (!%p2191_p8), %s1944_s9   ;;  %s2519_s28 = smov (!%p2191_p8), 0  }
 0x19c   : > { %s2523_s27 = smov (!%p2191_p8), 0  }
 0x1a1 LB: >> { %v1959_v22 = vld [vmem:[%s2517_s15] sm:$0xff]  ;;  %s1961_s20 = sadd.s32 1, %s2521_s28  ;;  %s1953_s27 = sadd.s32 1, %s2525_s27   ;;  %s2525_s27 = sphi %s2523_s27, %s1953_s27   ;;  %s2521_s28 = sphi %s2519_s28, %s2520_s28   ;;  %s2517_s15 = sphi %s2515_s15, %s1966_s15   ;;  %s2513_s12 = sphi %s2511_s12, %s1967_s12  }
 0x1a2   : >> { %1960 = vst [vmem:[%s2513_s12] sm:$0xff] %v1959_v22  ;;  %p1962_p9 = scmp.ge.s32.totalorder %s1961_s20, %s3140_s5  ;;  %p1952_p10 = scmp.ge.s32.totalorder %s1953_s27, %s3140_s5 }
 0x1a4   : >> { %s3196_s20 = smov (%p1962_p9, %s1961_s20), 0  ;;  %1955 = sbr.rel (!%p1952_p10) target bundleno = 417 (0x1a1), region = 179 }
 0x1a5   : >> { %s2192_s23 = sshll.u32 %s3196_s20, 3  ;;  %s2520_s28 = smov %s3196_s20  }
 0x1a6   : >> { %s1966_s15 = scalar_lea.vmem %s1944_s9, %s2192_s23 [#allocation2]   ;;  %s1967_s12 = scalar_lea.vmem %s1947_s10, %s2192_s23  }
 0x1ab PF: > { %s2529_s24 = smov 0  }
 0x1ac   : > { %s1968_s25 = sshllo.u32 %s2529_s24, %s2760_s17 }
 0x1ad   : > { %v1977_v23 = vld [vmem:[%s1788_s21] sm:%s1968_s25] }
 0x1ae   : > { %1978 = vst [vmem:[%s1790_s22] sm:%s1968_s25] %v1977_v23 }
 0x1af PF: > { %p2194_p11 = scmp.ge.u32.totalorder %s2756_s14, 8 }
 0x1b0   : > { %s2530_s26 = smov (!%p2194_p11), 0  }
 0x1b1   : > { %1589 = sbr.rel (%p2194_p11) target bundleno = 440 (0x1b8), region = 48  ;;  %s1590_s29 = sshllo.u32 (!%p2194_p11), %s2530_s26, %s2756_s14 }
 0x1b2   : > { %v1599_v24 = vld [vmem:[%s2705_s6] sm:%s1590_s29] (!%p2194_p11) }
 0x1b3   : > { %1600 = vst [vmem:[%s2754_s11] sm:%s1590_s29] (!%p2194_p11), %v1599_v24 }
 0x1b8 PF: > { %p10_p12 = scmp.ge.s32.totalorder %s2566_s16, 10   ;;  %s3184_s12 = smov %s2457_s13 }
 0x1b9   : > { %s3185_s13 = smov %s2574_s19  ;;  %s3186_s14 = smov %s2566_s16 }
 0x1ba   :  { %12 = sbr.rel (!%p10_p12) target bundleno = 2 (0x2), region = 190 }

// kernel: forward.13
= control target key start
LH: loop header
LB: loop body
LE: loop exit
PB: predicated region body
PF: predicated region fallthrough
CT: control target
= control target key end

     0   :  { %v1209_v3 = vmov 0.0   ;;  %v1210_v8 = vmov 0   ;;  %vm77_vm0 = vcmask 130048   ;;  %vm1130_vm1 = vcmask 588800   ;;  %s1563_s1 = inlined_call_operand.vmem [shape: f32[16,3528], index: 1, kind: input, shape index: {}]   ;;  %s1564_s0 = inlined_call_operand.vmem [shape: f32[8,16], index: 0, kind: input, shape index: {}]   ;;  %s1565_s2 = inlined_call_operand.vmem [shape: f32[8,1], index: 2, kind: input, shape index: {}]   ;;  %s1566_s3 = inlined_call_operand.vmem [shape: f32[8,3528], index: 3, kind: output, shape index: {}]  }
   0x1   :  { %v16_v0 = vld [vmem:[%s1563_s1 + $0x8] sm:$0xff]  ;;  %v18_v2 = vld [vmem:[%s1563_s1 + $0x18] sm:$0xff]  ;;  %145 = vmatprep.mubr.f32.mxu0 %v1209_v3  ;;  %216 = vmatprep.mubr.f32.mxu1 %v1209_v3  ;;  %v15_v6 = vld [vmem:[%s1563_s1] sm:$0xff] }
   0x2   :  { %v44_v1 = vld [vmem:[%s1563_s1 + $0xe8] sm:$0xff]  ;;  %v46_v5 = vld [vmem:[%s1563_s1 + $0xf8] sm:$0xff]  ;;  %v43_v7 = vld [vmem:[%s1563_s1 + $0xe0] sm:$0xff]  ;;  %1208 = vset.pattern.permute.xlu0 %v1210_v8 }
   0x3   :  { %v1150_v4 = vpack.c.bf16 %v44_v1, %v16_v0  ;;  %v1154_v9 = vpack.c.bf16 %v46_v5, %v18_v2  ;;  %v1152_v10 = vpack.c.bf16 %v43_v7, %v15_v6  ;;  %v17_v11 = vld [vmem:[%s1563_s1 + $0x10] sm:$0xff]  ;;  %v1260_v13 = vld [vmem:[%s1564_s0] sm:$0xff]  ;;  %v20_v15 = vld [vmem:[%s1563_s1 + $0x28] sm:$0xff] }
   0x4   :  { %v45_v12 = vld [vmem:[%s1563_s1 + $0xf0] sm:$0xff]  ;;  %v48_v16 = vld [vmem:[%s1563_s1 + $0x108] sm:$0xff]  ;;  %v22_v17 = vld [vmem:[%s1563_s1 + $0x38] sm:$0xff] }
   0x5   :  { %1151 = vmatprep.subr.bf16.mxu0 %v1150_v4  ;;  %v1156_v14 = vpack.c.bf16 %v45_v12, %v17_v11  ;;  %1155 = vmatprep.subr.bf16.mxu1 %v1154_v9  ;;  %v1158_v18 = vpack.c.bf16 %v48_v16, %v20_v15  ;;  %v50_v19 = vld [vmem:[%s1563_s1 + $0x118] sm:$0xff]  ;;  %v19_v20 = vld [vmem:[%s1563_s1 + $0x20] sm:$0xff]  ;;  %v21_v24 = vld [vmem:[%s1563_s1 + $0x30] sm:$0xff] }
   0x6   :  { %1153 = vmatpush1.bf16.msra.mxu0 %v1152_v10  ;;  %v47_v21 = vld [vmem:[%s1563_s1 + $0x100] sm:$0xff]  ;;  %v1162_v22 = vpack.c.bf16 %v50_v19, %v22_v17  ;;  %v49_v25 = vld [vmem:[%s1563_s1 + $0x110] sm:$0xff]  ;;  %v24_v26 = vld [vmem:[%s1563_s1 + $0x48] sm:$0xff] }
   0x7   :  { %1157 = vmatpush1.bf16.msra.mxu1 %v1156_v14  ;;  %v1160_v23 = vpack.c.bf16 %v47_v21, %v19_v20  ;;  %1159 = vmatprep.subr.bf16.mxu0 %v1158_v18  ;;  %v1164_v27 = vpack.c.bf16 %v49_v25, %v21_v24  ;;  %v52_v28 = vld [vmem:[%s1563_s1 + $0x128] sm:$0xff]  ;;  %v26_v29 = vld [vmem:[%s1563_s1 + $0x58] sm:$0xff]  ;;  %v23_v33 = vld [vmem:[%s1563_s1 + $0x40] sm:$0xff] }
   0x8   :  { %v54_v30 = vld [vmem:[%s1563_s1 + $0x138] sm:$0xff]  ;;  %1163 = vmatprep.subr.bf16.mxu1 %v1162_v22  ;;  %v1166_v31 = vpack.c.bf16 %v52_v28, %v24_v26  ;;  %v51_v34 = vld [vmem:[%s1563_s1 + $0x120] sm:$0xff]  ;;  %v25_v35 = vld [vmem:[%s1563_s1 + $0x50] sm:$0xff] }
   0x9   :  { %1136 = vmatmul.mubr.msk.f32.vlgmr.msra.gmra.mrb[0].mxu0 %vm77_vm0, %v1260_v13  ;;  %v1170_v32 = vpack.c.bf16 %v54_v30, %v26_v29  ;;  %v1168_v36 = vpack.c.bf16 %v51_v34, %v23_v33  ;;  %v53_v37 = vld [vmem:[%s1563_s1 + $0x130] sm:$0xff]  ;;  %v28_v38 = vld [vmem:[%s1563_s1 + $0x68] sm:$0xff]  ;;  %v30_v41 = vld [vmem:[%s1563_s1 + $0x78] sm:$0xff] }
   0xa   :  { %1137 = vmatmul.mubr.msk.f32.vlgmr.msra.gmra.mrb[0].mxu1 %vm77_vm0, %v1260_v13  ;;  %1161 = vmatpush1.bf16.msra.mxu0 %v1160_v23  ;;  %v56_v39 = vld [vmem:[%s1563_s1 + $0x148] sm:$0xff]  ;;  %v1172_v40 = vpack.c.bf16 %v53_v37, %v25_v35  ;;  %v58_v42 = vld [vmem:[%s1563_s1 + $0x158] sm:$0xff]  ;;  %v27_v43 = vld [vmem:[%s1563_s1 + $0x60] sm:$0xff] }
   0xb   :  { %1165 = vmatpush1.bf16.msra.mxu1 %v1164_v27  ;;  %287 = vmatprep.mubr.f32.mxu0 %v1209_v3  ;;  %v1174_v44 = vpack.c.bf16 %v56_v39, %v28_v38  ;;  %v55_v45 = vld [vmem:[%s1563_s1 + $0x140] sm:$0xff]  ;;  %v29_v46 = vld [vmem:[%s1563_s1 + $0x70] sm:$0xff]  ;;  %v1178_v48 = vpack.c.bf16 %v58_v42, %v30_v41  ;;  %v32_v49 = vld [vmem:[%s1563_s1 + $0x88] sm:$0xff] }
   0xc   :  { %358 = vmatprep.mubr.f32.mxu1 %v1209_v3  ;;  %1167 = vmatprep.subr.bf16.mxu0 %v1166_v31  ;;  %v57_v47 = vld [vmem:[%s1563_s1 + $0x150] sm:$0xff]  ;;  %v60_v50 = vld [vmem:[%s1563_s1 + $0x168] sm:$0xff]  ;;  %v1176_v51 = vpack.c.bf16 %v55_v45, %v27_v43  ;;  %v34_v52 = vld [vmem:[%s1563_s1 + $0x98] sm:$0xff] }
   0xd   :  { %1138 = vmatmul.mubr.msk.f32.vlgmr.msra.gmra.mrb[2].mxu0 %vm77_vm0, %v1260_v13  ;;  %1171 = vmatprep.subr.bf16.mxu1 %v1170_v32  ;;  %v62_v53 = vld [vmem:[%s1563_s1 + $0x178] sm:$0xff]  ;;  %v1180_v54 = vpack.c.bf16 %v57_v47, %v29_v46  ;;  %v31_v55 = vld [vmem:[%s1563_s1 + $0x80] sm:$0xff]  ;;  %v1182_v57 = vpack.c.bf16 %v60_v50, %v32_v49  ;;  %v33_v58 = vld [vmem:[%s1563_s1 + $0x90] sm:$0xff] }
   0xe   :  { %1139 = vmatmul.mubr.msk.f32.vlgmr.msra.gmra.mrb[2].mxu1 %vm77_vm0, %v1260_v13  ;;  %1169 = vmatpush1.bf16.msra.mxu0 %v1168_v36  ;;  %v59_v56 = vld [vmem:[%s1563_s1 + $0x160] sm:$0xff]  ;;  %v61_v59 = vld [vmem:[%s1563_s1 + $0x170] sm:$0xff]  ;;  %v1186_v60 = vpack.c.bf16 %v62_v53, %v34_v52  ;;  %v36_v61 = vld [vmem:[%s1563_s1 + $0xa8] sm:$0xff] }
   0xf   :  { %1173 = vmatpush1.bf16.msra.mxu1 %v1172_v40  ;;  %429 = vmatprep.mubr.f32.mxu0 %v1209_v3  ;;  %v64_v62 = vld [vmem:[%s1563_s1 + $0x188] sm:$0xff]  ;;  %v1184_v63 = vpack.c.bf16 %v59_v56, %v31_v55  ;;  %v38_v0 = vld [vmem:[%s1563_s1 + $0xb8] sm:$0xff]  ;;  %v1188_v2 = vpack.c.bf16 %v61_v59, %v33_v58  ;;  %v35_v4 = vld [vmem:[%s1563_s1 + $0xa0] sm:$0xff] }
  0x10   :  { %500 = vmatprep.mubr.f32.mxu1 %v1209_v3  ;;  %1175 = vmatprep.subr.bf16.mxu0 %v1174_v44  ;;  %v66_v1 = vld [vmem:[%s1563_s1 + $0x198] sm:$0xff]  ;;  %v63_v5 = vld [vmem:[%s1563_s1 + $0x180] sm:$0xff]  ;;  %v1190_v6 = vpack.c.bf16 %v64_v62, %v36_v61  ;;  %v37_v7 = vld [vmem:[%s1563_s1 + $0xb0] sm:$0xff] }
  0x11   :  { %1140 = vmatmul.mubr.msk.f32.vlgmr.msra.gmra.mrb[4].mxu0 %vm77_vm0, %v1260_v13  ;;  %1179 = vmatprep.subr.bf16.mxu1 %v1178_v48  ;;  %v65_v8 = vld [vmem:[%s1563_s1 + $0x190] sm:$0xff]  ;;  %v1194_v9 = vpack.c.bf16 %v66_v1, %v38_v0  ;;  %v40_v10 = vld [vmem:[%s1563_s1 + $0xc8] sm:$0xff]  ;;  %v1192_v12 = vpack.c.bf16 %v63_v5, %v35_v4  ;;  %v42_v14 = vld [vmem:[%s1563_s1 + $0xd8] sm:$0xff] }
  0x12   :  { %1141 = vmatmul.mubr.msk.f32.vlgmr.msra.gmra.mrb[4].mxu1 %vm77_vm0, %v1260_v13  ;;  %1177 = vmatpush1.bf16.msra.mxu0 %v1176_v51  ;;  %v68_v11 = vld [vmem:[%s1563_s1 + $0x1a8] sm:$0xff]  ;;  %v70_v15 = vld [vmem:[%s1563_s1 + $0x1b8] sm:$0xff]  ;;  %v1196_v16 = vpack.c.bf16 %v65_v8, %v37_v7  ;;  %v39_v17 = vld [vmem:[%s1563_s1 + $0xc0] sm:$0xff] }
  0x13   :  { %1181 = vmatpush1.bf16.msra.mxu1 %v1180_v54  ;;  %571 = vmatprep.mubr.f32.mxu0 %v1209_v3  ;;  %v67_v18 = vld [vmem:[%s1563_s1 + $0x1a0] sm:$0xff]  ;;  %v1198_v19 = vpack.c.bf16 %v68_v11, %v40_v10  ;;  %v41_v20 = vld [vmem:[%s1563_s1 + $0xd0] sm:$0xff]  ;;  %v1202_v22 = vpack.c.bf16 %v70_v15, %v42_v14 }
  0x14   :  { %642 = vmatprep.mubr.f32.mxu1 %v1209_v3  ;;  %1183 = vmatprep.subr.bf16.mxu0 %v1182_v57  ;;  %v69_v21 = vld [vmem:[%s1563_s1 + $0x1b0] sm:$0xff]  ;;  %v1200_v23 = vpack.c.bf16 %v67_v18, %v39_v17  ;;  %v71_v25 = vld [vmem:[%s1565_s2] sm:$0xff] }
  0x15   :  { %1142 = vmatmul.mubr.msk.f32.vlgmr.msra.gmra.mrb[6].mxu0 %vm77_vm0, %v1260_v13  ;;  %1187 = vmatprep.subr.bf16.mxu1 %v1186_v60  ;;  %v1204_v24 = vpack.c.bf16 %v69_v21, %v41_v20 }
  0x16   :  { %1143 = vmatmul.mubr.msk.f32.vlgmr.msra.gmra.mrb[6].mxu1 %vm77_vm0, %v1260_v13  ;;  %1185 = vmatpush1.bf16.msra.mxu0 %v1184_v63 }
  0x17   :  { %1189 = vmatpush1.bf16.msra.mxu1 %v1188_v2  ;;  %713 = vmatprep.mubr.f32.mxu0 %v1209_v3 }
  0x18   :  { %784 = vmatprep.mubr.f32.mxu1 %v1209_v3  ;;  %1191 = vmatprep.subr.bf16.mxu0 %v1190_v6 }
  0x19   :  { %1144 = vmatmul.mubr.msk.f32.vlgmr.msra.gmra.mrb[8].mxu0 %vm77_vm0, %v1260_v13  ;;  %1195 = vmatprep.subr.bf16.mxu1 %v1194_v9 }
  0x1a   :  { %1145 = vmatmul.mubr.msk.f32.vlgmr.msra.gmra.mrb[8].mxu1 %vm77_vm0, %v1260_v13  ;;  %1193 = vmatpush1.bf16.msra.mxu0 %v1192_v12 }
  0x1b   :  { %1197 = vmatpush1.bf16.msra.mxu1 %v1196_v16  ;;  %855 = vmatprep.mubr.f32.mxu0 %v1209_v3 }
  0x1c   :  { %926 = vmatprep.mubr.f32.mxu1 %v1209_v3  ;;  %1199 = vmatprep.subr.bf16.mxu0 %v1198_v19 }
  0x1d   :  { %1146 = vmatmul.mubr.msk.f32.vlgmr.msra.gmra.mrb[10].mxu0 %vm77_vm0, %v1260_v13  ;;  %1203 = vmatprep.subr.bf16.mxu1 %v1202_v22 }
  0x1e   :  { %1147 = vmatmul.mubr.msk.f32.vlgmr.msra.gmra.mrb[10].mxu1 %vm77_vm0, %v1260_v13  ;;  %1201 = vmatpush1.bf16.msra.mxu0 %v1200_v23 }
  0x1f   :  { %1205 = vmatpush1.bf16.msra.mxu1 %v1204_v24  ;;  %997 = vmatprep.mubr.f32.mxu0 %v1209_v3 }
  0x20   :  { %1068 = vmatprep.mubr.f32.mxu1 %v1209_v3  ;;  %74 = vperm.xlu0 %1208, %v71_v25  }
  0x21   :  { %1148 = vmatmul.mubr.msk.f32.vlgmr.msra.gmra.mrb[12].mxu0 %vm77_vm0, %v1260_v13 }
  0x22   :  { %1149 = vmatmul.mubr.msk.f32.vlgmr.msra.gmra.mrb[12].mxu1 %vm77_vm0, %v1260_v13 }
  0x9f   :  { %v1449_v26 = vpop.permute.xlu0 %74 }
  0xdc   :  { %v147_v27 = vpop.f32.mrb[0].mxu0 }
  0xdd   :  { %v218_v28 = vpop.f32.mrb[0].mxu1  ;;  %v148_v29 = vadd.f32 %v147_v27, %v1449_v26  ;;  %v149_v30 = vpop.f32.mrb[1].mxu0 }
  0xde   :  { %v219_v31 = vadd.f32 %v218_v28, %v1449_v26  ;;  %v150_v32 = vadd.f32 %v149_v30, %v1449_v26  ;;  %v220_v33 = vpop.f32.mrb[1].mxu1 }
  0xdf   :  { %v1075_v3 = vmax.f32 %v148_v29, 0.0  ;;  %v221_v34 = vadd.f32 %v220_v33, %v1449_v26 }
  0xe0   :  { %v1077_v35 = vmax.f32 %v219_v31, 0.0  ;;  %v1076_v36 = vmax.f32 %v150_v32, 0.0  ;;  %v289_v37 = vpop.f32.mrb[2].mxu0 }
  0xe1   :  { %1103 = vst [vmem:[%s1566_s3] sm:$0xff] %v1075_v3  ;;  %v1078_v13 = vmax.f32 %v221_v34, 0.0  ;;  %v290_v38 = vadd.f32 %v289_v37, %v1449_v26  ;;  %v360_v39 = vpop.f32.mrb[2].mxu1  ;;  %v291_v40 = vpop.f32.mrb[3].mxu0 }
  0xe2   :  { %1105 = vst [vmem:[%s1566_s3 + $0x10] sm:$0xff] %v1077_v35  ;;  %1104 = vst [vmem:[%s1566_s3 + $0x8] sm:$0xff] %v1076_v36  ;;  %v361_v41 = vadd.f32 %v360_v39, %v1449_v26  ;;  %v292_v42 = vadd.f32 %v291_v40, %v1449_v26  ;;  %v362_v43 = vpop.f32.mrb[3].mxu1 }
  0xe3   :  { %1106 = vst [vmem:[%s1566_s3 + $0x18] sm:$0xff] %v1078_v13  ;;  %v1079_v44 = vmax.f32 %v290_v38, 0.0  ;;  %v363_v45 = vadd.f32 %v362_v43, %v1449_v26 }
  0xe4   :  { %v1081_v46 = vmax.f32 %v361_v41, 0.0  ;;  %v1080_v47 = vmax.f32 %v292_v42, 0.0  ;;  %v431_v48 = vpop.f32.mrb[4].mxu0 }
  0xe5   :  { %1107 = vst [vmem:[%s1566_s3 + $0x20] sm:$0xff] %v1079_v44  ;;  %v1082_v49 = vmax.f32 %v363_v45, 0.0  ;;  %v432_v50 = vadd.f32 %v431_v48, %v1449_v26  ;;  %v502_v51 = vpop.f32.mrb[4].mxu1  ;;  %v433_v52 = vpop.f32.mrb[5].mxu0 }
  0xe6   :  { %1109 = vst [vmem:[%s1566_s3 + $0x30] sm:$0xff] %v1081_v46  ;;  %1108 = vst [vmem:[%s1566_s3 + $0x28] sm:$0xff] %v1080_v47  ;;  %v503_v53 = vadd.f32 %v502_v51, %v1449_v26  ;;  %v434_v54 = vadd.f32 %v433_v52, %v1449_v26  ;;  %v504_v55 = vpop.f32.mrb[5].mxu1 }
  0xe7   :  { %1110 = vst [vmem:[%s1566_s3 + $0x38] sm:$0xff] %v1082_v49  ;;  %v1083_v56 = vmax.f32 %v432_v50, 0.0  ;;  %v505_v57 = vadd.f32 %v504_v55, %v1449_v26 }
  0xe8   :  { %v1085_v58 = vmax.f32 %v503_v53, 0.0  ;;  %v1084_v59 = vmax.f32 %v434_v54, 0.0  ;;  %v573_v60 = vpop.f32.mrb[6].mxu0 }
  0xe9   :  { %1111 = vst [vmem:[%s1566_s3 + $0x40] sm:$0xff] %v1083_v56  ;;  %v1086_v61 = vmax.f32 %v505_v57, 0.0  ;;  %v574_v62 = vadd.f32 %v573_v60, %v1449_v26  ;;  %v644_v63 = vpop.f32.mrb[6].mxu1  ;;  %v575_v0 = vpop.f32.mrb[7].mxu0 }
  0xea   :  { %1113 = vst [vmem:[%s1566_s3 + $0x50] sm:$0xff] %v1085_v58  ;;  %1112 = vst [vmem:[%s1566_s3 + $0x48] sm:$0xff] %v1084_v59  ;;  %v645_v1 = vadd.f32 %v644_v63, %v1449_v26  ;;  %v576_v2 = vadd.f32 %v575_v0, %v1449_v26  ;;  %v646_v4 = vpop.f32.mrb[7].mxu1 }
  0xeb   :  { %1114 = vst [vmem:[%s1566_s3 + $0x58] sm:$0xff] %v1086_v61  ;;  %v1087_v5 = vmax.f32 %v574_v62, 0.0  ;;  %v647_v6 = vadd.f32 %v646_v4, %v1449_v26 }
  0xec   :  { %v1089_v7 = vmax.f32 %v645_v1, 0.0  ;;  %v1088_v8 = vmax.f32 %v576_v2, 0.0  ;;  %v715_v9 = vpop.f32.mrb[8].mxu0 }
  0xed   :  { %1115 = vst [vmem:[%s1566_s3 + $0x60] sm:$0xff] %v1087_v5  ;;  %v1090_v10 = vmax.f32 %v647_v6, 0.0  ;;  %v716_v11 = vadd.f32 %v715_v9, %v1449_v26  ;;  %v786_v12 = vpop.f32.mrb[8].mxu1  ;;  %v717_v14 = vpop.f32.mrb[9].mxu0 }
  0xee   :  { %1117 = vst [vmem:[%s1566_s3 + $0x70] sm:$0xff] %v1089_v7  ;;  %1116 = vst [vmem:[%s1566_s3 + $0x68] sm:$0xff] %v1088_v8  ;;  %v787_v15 = vadd.f32 %v786_v12, %v1449_v26  ;;  %v718_v16 = vadd.f32 %v717_v14, %v1449_v26  ;;  %v788_v17 = vpop.f32.mrb[9].mxu1 }
  0xef   :  { %1118 = vst [vmem:[%s1566_s3 + $0x78] sm:$0xff] %v1090_v10  ;;  %v1091_v18 = vmax.f32 %v716_v11, 0.0  ;;  %v789_v19 = vadd.f32 %v788_v17, %v1449_v26 }
  0xf0   :  { %v1093_v20 = vmax.f32 %v787_v15, 0.0  ;;  %v1092_v21 = vmax.f32 %v718_v16, 0.0  ;;  %v857_v22 = vpop.f32.mrb[10].mxu0 }
  0xf1   :  { %1119 = vst [vmem:[%s1566_s3 + $0x80] sm:$0xff] %v1091_v18  ;;  %v1094_v23 = vmax.f32 %v789_v19, 0.0  ;;  %v858_v24 = vadd.f32 %v857_v22, %v1449_v26  ;;  %v928_v25 = vpop.f32.mrb[10].mxu1  ;;  %v859_v27 = vpop.f32.mrb[11].mxu0 }
  0xf2   :  { %1121 = vst [vmem:[%s1566_s3 + $0x90] sm:$0xff] %v1093_v20  ;;  %1120 = vst [vmem:[%s1566_s3 + $0x88] sm:$0xff] %v1092_v21  ;;  %v929_v28 = vadd.f32 %v928_v25, %v1449_v26  ;;  %v860_v29 = vadd.f32 %v859_v27, %v1449_v26  ;;  %v930_v30 = vpop.f32.mrb[11].mxu1 }
  0xf3   :  { %1122 = vst [vmem:[%s1566_s3 + $0x98] sm:$0xff] %v1094_v23  ;;  %v1095_v31 = vmax.f32 %v858_v24, 0.0  ;;  %v931_v32 = vadd.f32 %v930_v30, %v1449_v26 }
  0xf4   :  { %v1097_v33 = vmax.f32 %v929_v28, 0.0  ;;  %v1096_v3 = vmax.f32 %v860_v29, 0.0  ;;  %v999_v34 = vpop.f32.mrb[12].mxu0 }
  0xf5   :  { %1123 = vst [vmem:[%s1566_s3 + $0xa0] sm:$0xff] %v1095_v31  ;;  %v1098_v35 = vmax.f32 %v931_v32, 0.0  ;;  %v1000_v36 = vadd.f32 %v999_v34, %v1449_v26  ;;  %v1070_v37 = vpop.f32.mrb[12].mxu1  ;;  %v1001_v13 = vpop.f32.mrb[13].mxu0 }
  0xf6   :  { %1125 = vst [vmem:[%s1566_s3 + $0xb0] sm:$0xff] %v1097_v33  ;;  %1124 = vst [vmem:[%s1566_s3 + $0xa8] sm:$0xff] %v1096_v3  ;;  %v1071_v38 = vadd.f32 %v1070_v37, %v1449_v26  ;;  %v1002_v39 = vadd.f32 %v1001_v13, %v1449_v26  ;;  %v1072_v40 = vpop.f32.mrb[13].mxu1 }
  0xf7   :  { %1126 = vst [vmem:[%s1566_s3 + $0xb8] sm:$0xff] %v1098_v35  ;;  %v1099_v41 = vmax.f32 %v1000_v36, 0.0  ;;  %v1073_v42 = vadd.f32 %v1072_v40, %v1449_v26 }
  0xf8   :  { %v1101_v43 = vmax.f32 %v1071_v38, 0.0  ;;  %v1100_v44 = vmax.f32 %v1002_v39, 0.0 }
  0xf9   :  { %1127 = vst [vmem:[%s1566_s3 + $0xc0] sm:$0xff] %v1099_v41  ;;  %v1102_v45 = vmax.f32 %v1073_v42, 0.0 }
  0xfa   :  { %1129 = vst [vmem:[%s1566_s3 + $0xd0] sm:$0xff] %v1101_v43  ;;  %1128 = vst [vmem:[%s1566_s3 + $0xc8] sm:$0xff] %v1100_v44 }
  0xfb   :  { %1131 = vst.msk [vmem:[%s1566_s3 + $0xd8] sm:$0xff] %vm1130_vm1, %v1102_v45 }

// kernel: forward.14
= control target key start
LH: loop header
LB: loop body
LE: loop exit
PB: predicated region body
PF: predicated region fallthrough
CT: control target
= control target key end

     0   :  { %v462_v3 = vmov 0.0   ;;  %v463_v8 = vmov 0   ;;  %vm56_vm0 = vcmask 261120   ;;  %vm389_vm1 = vcmask 932864   ;;  %s636_s1 = inlined_call_operand.vmem [shape: f32[32,882], index: 1, kind: input, shape index: {}]   ;;  %s637_s0 = inlined_call_operand.vmem [shape: f32[16,32], index: 0, kind: input, shape index: {}]   ;;  %s638_s2 = inlined_call_operand.vmem [shape: f32[16,1], index: 2, kind: input, shape index: {}]   ;;  %s639_s3 = inlined_call_operand.vmem [shape: f32[16,882], index: 3, kind: output, shape index: {}]  }
   0x1   :  { %v17_v0 = vld [vmem:[%s636_s1 + $0x8] sm:$0xff]  ;;  %v24_v1 = vld [vmem:[%s636_s1 + $0x40] sm:$0xff]  ;;  %127 = vmatprep.mubr.f32.mxu0 %v462_v3  ;;  %204 = vmatprep.mubr.f32.mxu1 %v462_v3  ;;  %v23_v5 = vld [vmem:[%s636_s1 + $0x38] sm:$0xff] }
   0x2   :  { %v16_v2 = vld [vmem:[%s636_s1] sm:$0xff]  ;;  %v427_v4 = vpack.c.bf16 %v24_v1, %v17_v0  ;;  %v19_v6 = vld [vmem:[%s636_s1 + $0x18] sm:$0xff]  ;;  %v26_v7 = vld [vmem:[%s636_s1 + $0x50] sm:$0xff]  ;;  %461 = vset.pattern.permute.xlu0 %v463_v8 }
   0x3   :  { %v429_v9 = vpack.c.bf16 %v23_v5, %v16_v2  ;;  %v435_v10 = vpack.c.bf16 %v26_v7, %v19_v6  ;;  %v18_v11 = vld [vmem:[%s636_s1 + $0x10] sm:$0xff]  ;;  %v25_v12 = vld [vmem:[%s636_s1 + $0x48] sm:$0xff]  ;;  %v31_v13 = vld [vmem:[%s636_s1 + $0x78] sm:$0xff] }
   0x4   :  { %428 = vmatprep.subr.bf16.mxu0 %v427_v4  ;;  %v437_v14 = vpack.c.bf16 %v25_v12, %v18_v11  ;;  %v38_v15 = vld [vmem:[%s636_s1 + $0xb0] sm:$0xff]  ;;  %v37_v17 = vld [vmem:[%s636_s1 + $0xa8] sm:$0xff]  ;;  %v40_v21 = vld [vmem:[%s636_s1 + $0xc0] sm:$0xff] }
   0x5   :  { %v30_v16 = vld [vmem:[%s636_s1 + $0x70] sm:$0xff]  ;;  %430 = vmatpush1.bf16.msra.mxu0 %v429_v9  ;;  %436 = vmatprep.subr.bf16.mxu1 %v435_v10  ;;  %v431_v18 = vpack.c.bf16 %v38_v15, %v31_v13  ;;  %v33_v20 = vld [vmem:[%s636_s1 + $0x88] sm:$0xff]  ;;  %v32_v22 = vld [vmem:[%s636_s1 + $0x80] sm:$0xff] }
   0x6   :  { %v433_v19 = vpack.c.bf16 %v37_v17, %v30_v16  ;;  %438 = vmatpush1.bf16.msra.mxu1 %v437_v14  ;;  %v439_v23 = vpack.c.bf16 %v40_v21, %v33_v20  ;;  %v39_v24 = vld [vmem:[%s636_s1 + $0xb8] sm:$0xff]  ;;  %v21_v25 = vld [vmem:[%s636_s1 + $0x28] sm:$0xff]  ;;  %v28_v27 = vld [vmem:[%s636_s1 + $0x60] sm:$0xff] }
   0x7   :  { %432 = vmatprep.subr.bf16.mxu0 %v431_v18  ;;  %v441_v26 = vpack.c.bf16 %v39_v24, %v32_v22  ;;  %v20_v28 = vld [vmem:[%s636_s1 + $0x20] sm:$0xff]  ;;  %v27_v29 = vld [vmem:[%s636_s1 + $0x58] sm:$0xff]  ;;  %v443_v31 = vpack.c.bf16 %v28_v27, %v21_v25  ;;  %v22_v32 = vld [vmem:[%s636_s1 + $0x30] sm:$0xff] }
   0x8   :  { %440 = vmatprep.subr.bf16.mxu1 %v439_v23  ;;  %v14_v30 = vld [vmem:[%s637_s0] sm:$0xff]  ;;  %v29_v33 = vld [vmem:[%s636_s1 + $0x68] sm:$0xff]  ;;  %v445_v34 = vpack.c.bf16 %v27_v29, %v20_v28  ;;  %v35_v36 = vld [vmem:[%s636_s1 + $0x98] sm:$0xff] }
   0x9   :  { %434 = vmatpush1.bf16.msra.mxu0 %v433_v19  ;;  %v451_v35 = vpack.c.bf16 %v29_v33, %v22_v32  ;;  %v42_v37 = vld [vmem:[%s636_s1 + $0xd0] sm:$0xff]  ;;  %v41_v39 = vld [vmem:[%s636_s1 + $0xc8] sm:$0xff]  ;;  %v36_v40 = vld [vmem:[%s636_s1 + $0xa0] sm:$0xff] }
   0xa   :  { %v34_v38 = vld [vmem:[%s636_s1 + $0x90] sm:$0xff]  ;;  %442 = vmatpush1.bf16.msra.mxu1 %v441_v26  ;;  %444 = vmatprep.subr.bf16.mxu0 %v443_v31  ;;  %v43_v41 = vld [vmem:[%s636_s1 + $0xd8] sm:$0xff]  ;;  %v447_v42 = vpack.c.bf16 %v42_v37, %v35_v36  ;;  %v44_v43 = vld [vmem:[%s638_s2] sm:$0xff] }
   0xb   :  { %452 = vmatprep.subr.bf16.mxu1 %v451_v35  ;;  %v455_v44 = vpack.c.bf16 %v43_v41, %v36_v40  ;;  %48 = vperm.xlu0 %461, %v44_v43   ;;  %v15_v45 = vld [vmem:[%s637_s0 + $0x8] sm:$0xff]  ;;  %v449_v46 = vpack.c.bf16 %v41_v39, %v34_v38 }
   0xc   :  { %402 = vmatmul.mubr.msk.f32.vlgmr.msra.gmra.mrb[0].mxu0 %vm56_vm0, %v14_v30  ;;  %v45_v47 = vld [vmem:[%s638_s2 + $0x8] sm:$0xff] }
   0xd   :  { %404 = vmatmul.mubr.msk.f32.vlgmr.msra.gmra.mrb[0].mxu1 %vm56_vm0, %v14_v30  ;;  %446 = vmatpush1.bf16.msra.mxu0 %v445_v34 }
   0xe   :  { %454 = vmatpush3.bf16.msra.mxu1 %v451_v35  ;;  %133 = vmatprep.mubr.f32.mxu0 %v462_v3 }
   0xf   :  { %210 = vmatprep.mubr.f32.mxu1 %v462_v3  ;;  %448 = vmatprep.subr.bf16.mxu0 %v447_v42 }
  0x10   :  { %403 = vmatmul.mubr.msk.f32.gmra.mrb[2].mxu0 %vm56_vm0, %v15_v45  ;;  %456 = vmatprep.subr.bf16.mxu1 %v455_v44 }
  0x11   :  { %405 = vmatmul.mubr.msk.f32.gmra.mrb[2].mxu1 %vm56_vm0, %v15_v45  ;;  %450 = vmatpush1.bf16.msra.mxu0 %v449_v46 }
  0x12   :  { %458 = vmatpush3.bf16.msra.mxu1 %v455_v44  ;;  %281 = vmatprep.mubr.f32.mxu0 %v462_v3 }
  0x13   :  { %424 = vmatprep.mubr.msk.f32.mxu1 %vm56_vm0, %v14_v30  ;;  %53 = vperm.xlu0 %461, %v45_v47  }
  0x14   :  { %406 = vmatmul.mubr.msk.f32.vlgmr.msra.gmra.mrb[4].mxu0 %vm56_vm0, %v14_v30 }
  0x15   :  { %425 = vmatmul.mubr.msk.f32.vlgmr.msra.gmra.mrb[4].mxu1 %vm56_vm0, %v15_v45  ;;  %287 = vmatprep.mubr.f32.mxu0 %v462_v3 }
  0x18   :  { %407 = vmatmul.mubr.msk.f32.gmra.mrb[6].mxu0 %vm56_vm0, %v15_v45 }
  0x8a   :  { %v49_v48 = vpop.permute.xlu0 %48 }
  0x92   :  { %v54_v55 = vpop.permute.xlu0 %53 }
  0xdf   :  { %v129_v49 = vpop.f32.mrb[0].mxu0 }
  0xe0   :  { %v130_v50 = vadd.f32 %v129_v49, %v49_v48  ;;  %v131_v51 = vpop.f32.mrb[1].mxu0  ;;  %v206_v52 = vpop.f32.mrb[0].mxu1 }
  0xe1   :  { %v132_v53 = vadd.f32 %v131_v51, %v49_v48  ;;  %v207_v54 = vadd.f32 %v206_v52, %v49_v48  ;;  %v208_v56 = vpop.f32.mrb[1].mxu1 }
  0xe2   :  { %v369_v57 = vmax.f32 %v130_v50, 0.0  ;;  %v209_v58 = vadd.f32 %v208_v56, %v49_v48 }
  0xe3   :  { %v370_v59 = vmax.f32 %v132_v53, 0.0  ;;  %v135_v60 = vpop.f32.mrb[2].mxu0  ;;  %v371_v61 = vmax.f32 %v207_v54, 0.0 }
  0xe4   :  { %383 = vst [vmem:[%s639_s3] sm:$0xff] %v369_v57  ;;  %v136_v62 = vadd.f32 %v135_v60, %v54_v55  ;;  %v137_v63 = vpop.f32.mrb[3].mxu0  ;;  %v372_v0 = vmax.f32 %v209_v58, 0.0  ;;  %v212_v1 = vpop.f32.mrb[2].mxu1 }
  0xe5   :  { %384 = vst [vmem:[%s639_s3 + $0x8] sm:$0xff] %v370_v59  ;;  %385 = vst [vmem:[%s639_s3 + $0x10] sm:$0xff] %v371_v61  ;;  %v138_v2 = vadd.f32 %v137_v63, %v54_v55  ;;  %v213_v3 = vadd.f32 %v212_v1, %v54_v55  ;;  %v214_v4 = vpop.f32.mrb[3].mxu1 }
  0xe6   :  { %v376_v5 = vmax.f32 %v136_v62, 0.0  ;;  %386 = vst [vmem:[%s639_s3 + $0x18] sm:$0xff] %v372_v0  ;;  %v215_v6 = vadd.f32 %v214_v4, %v54_v55 }
  0xe7   :  { %v377_v7 = vmax.f32 %v138_v2, 0.0  ;;  %v378_v8 = vmax.f32 %v213_v3, 0.0  ;;  %v283_v9 = vpop.f32.mrb[4].mxu0 }
  0xe8   :  { %391 = vst [vmem:[%s639_s3 + $0x38] sm:$0xff] %v376_v5  ;;  %v379_v10 = vmax.f32 %v215_v6, 0.0  ;;  %v284_v11 = vadd.f32 %v283_v9, %v49_v48  ;;  %v285_v12 = vpop.f32.mrb[5].mxu0  ;;  %v426_v13 = vpop.f32.mrb[4].mxu1 }
  0xe9   :  { %392 = vst [vmem:[%s639_s3 + $0x40] sm:$0xff] %v377_v7  ;;  %393 = vst [vmem:[%s639_s3 + $0x48] sm:$0xff] %v378_v8  ;;  %v286_v14 = vadd.f32 %v285_v12, %v49_v48  ;;  %v366_v15 = vadd.f32 %v426_v13, %v54_v55  ;;  %v360_v16 = vpop.f32.mrb[5].mxu1 }
  0xea   :  { %394 = vst [vmem:[%s639_s3 + $0x50] sm:$0xff] %v379_v10  ;;  %v373_v17 = vmax.f32 %v284_v11, 0.0  ;;  %v361_v18 = vadd.f32 %v360_v16, %v49_v48 }
  0xeb   :  { %v374_v19 = vmax.f32 %v286_v14, 0.0  ;;  %v382_v20 = vmax.f32 %v366_v15, 0.0  ;;  %v289_v21 = vpop.f32.mrb[6].mxu0 }
  0xec   :  { %387 = vst [vmem:[%s639_s3 + $0x20] sm:$0xff] %v373_v17  ;;  %v375_v22 = vmax.f32 %v361_v18, 0.0  ;;  %v290_v23 = vadd.f32 %v289_v21, %v54_v55  ;;  %v291_v24 = vpop.f32.mrb[7].mxu0 }
  0xed   :  { %388 = vst [vmem:[%s639_s3 + $0x28] sm:$0xff] %v374_v19  ;;  %397 = vst.msk [vmem:[%s639_s3 + $0x68] sm:$0xff] %vm389_vm1, %v382_v20  ;;  %v292_v25 = vadd.f32 %v291_v24, %v54_v55 }
  0xee   :  { %390 = vst.msk [vmem:[%s639_s3 + $0x30] sm:$0xff] %vm389_vm1, %v375_v22  ;;  %v380_v26 = vmax.f32 %v290_v23, 0.0 }
  0xef   :  { %v381_v27 = vmax.f32 %v292_v25, 0.0 }
  0xf0   :  { %395 = vst [vmem:[%s639_s3 + $0x58] sm:$0xff] %v380_v26 }
  0xf1   :  { %396 = vst [vmem:[%s639_s3 + $0x60] sm:$0xff] %v381_v27 }

// kernel: forward.15
= control target key start
LH: loop header
LB: loop body
LE: loop exit
PB: predicated region body
PF: predicated region fallthrough
CT: control target
= control target key end

     0   :  { %v266_v3 = vmov 0   ;;  %vm82_vm0 = vcmask 130048   ;;  %vm193_vm1 = vcmask 588800   ;;  %s463_s1 = inlined_call_operand.vmem [shape: f32[144,200], index: 1, kind: input, shape index: {}]   ;;  %s464_s0 = inlined_call_operand.vmem [shape: f32[32,144], index: 0, kind: input, shape index: {}]   ;;  %s465_s2 = inlined_call_operand.vmem [shape: f32[32,1], index: 2, kind: input, shape index: {}]   ;;  %s466_s3 = inlined_call_operand.vmem [shape: f32[32,200], index: 3, kind: output, shape index: {}]  }
   0x1   :  { %v23_v0 = vld [vmem:[%s463_s1 + $0x8] sm:$0xff]  ;;  %v25_v1 = vld [vmem:[%s463_s1 + $0x18] sm:$0xff]  ;;  %v22_v2 = vld [vmem:[%s463_s1] sm:$0xff]  ;;  %265 = vset.pattern.permute.xlu1 %v266_v3  ;;  %264 = vset.pattern.permute.xlu0 %v266_v3 }
   0x2   :  { %v209_v4 = vpack.c.bf16 %v25_v1, %v23_v0  ;;  %v24_v5 = vld [vmem:[%s463_s1 + $0x10] sm:$0xff]  ;;  %v27_v6 = vld [vmem:[%s463_s1 + $0x28] sm:$0xff]  ;;  %v29_v7 = vld [vmem:[%s463_s1 + $0x38] sm:$0xff] }
   0x3   :  { %v211_v8 = vpack.c.bf16 %v24_v5, %v22_v2  ;;  %v213_v9 = vpack.c.bf16 %v29_v7, %v27_v6  ;;  %v26_v10 = vld [vmem:[%s463_s1 + $0x20] sm:$0xff]  ;;  %v28_v11 = vld [vmem:[%s463_s1 + $0x30] sm:$0xff]  ;;  %v31_v12 = vld [vmem:[%s463_s1 + $0x48] sm:$0xff] }
   0x4   :  { %210 = vmatprep.subr.bf16.mxu0 %v209_v4  ;;  %245 = vmatprep.subr.bf16.mxu1 %v209_v4  ;;  %v33_v13 = vld [vmem:[%s463_s1 + $0x58] sm:$0xff]  ;;  %v215_v14 = vpack.c.bf16 %v28_v11, %v26_v10  ;;  %v30_v16 = vld [vmem:[%s463_s1 + $0x40] sm:$0xff]  ;;  %v32_v17 = vld [vmem:[%s463_s1 + $0x50] sm:$0xff] }
   0x5   :  { %212 = vmatpush1.bf16.msra.mxu0 %v211_v8  ;;  %254 = vmatpush1.bf16.msra.mxu1 %v211_v8  ;;  %v217_v15 = vpack.c.bf16 %v33_v13, %v31_v12  ;;  %v35_v18 = vld [vmem:[%s463_s1 + $0x68] sm:$0xff]  ;;  %v37_v19 = vld [vmem:[%s463_s1 + $0x78] sm:$0xff]  ;;  %v219_v20 = vpack.c.bf16 %v32_v17, %v30_v16  ;;  %v34_v22 = vld [vmem:[%s463_s1 + $0x60] sm:$0xff] }
   0x6   :  { %214 = vmatprep.subr.bf16.mxu0 %v213_v9  ;;  %246 = vmatprep.subr.bf16.mxu1 %v213_v9  ;;  %v221_v21 = vpack.c.bf16 %v37_v19, %v35_v18  ;;  %v36_v23 = vld [vmem:[%s463_s1 + $0x70] sm:$0xff]  ;;  %v39_v24 = vld [vmem:[%s463_s1 + $0x88] sm:$0xff]  ;;  %v41_v25 = vld [vmem:[%s463_s1 + $0x98] sm:$0xff] }
   0x7   :  { %v223_v26 = vpack.c.bf16 %v36_v23, %v34_v22  ;;  %v15_v27 = vld [vmem:[%s464_s0 + $0x8] sm:$0xff]  ;;  %v225_v29 = vpack.c.bf16 %v41_v25, %v39_v24  ;;  %v38_v30 = vld [vmem:[%s463_s1 + $0x80] sm:$0xff]  ;;  %v40_v31 = vld [vmem:[%s463_s1 + $0x90] sm:$0xff] }
   0x8   :  { %v19_v28 = vld [vmem:[%s464_s0 + $0x28] sm:$0xff]  ;;  %v45_v33 = vld [vmem:[%s463_s1 + $0xb8] sm:$0xff]  ;;  %205 = vmatprep.mubr.msk.f32.mxu0 %vm82_vm0, %v15_v27  ;;  %v60_v34 = vld [vmem:[%s465_s2 + $0x10] sm:$0xff]  ;;  %v227_v36 = vpack.c.bf16 %v40_v31, %v38_v30 }
   0x9   :  { %216 = vmatpush1.bf16.msra.mxu0 %v215_v14  ;;  %255 = vmatpush1.bf16.msra.mxu1 %v215_v14  ;;  %v43_v32 = vld [vmem:[%s463_s1 + $0xa8] sm:$0xff]  ;;  %v58_v35 = vld [vmem:[%s465_s2] sm:$0xff]  ;;  %v61_v37 = vld [vmem:[%s465_s2 + $0x18] sm:$0xff] }
   0xa   :  { %218 = vmatprep.subr.bf16.mxu0 %v217_v15  ;;  %247 = vmatprep.subr.bf16.mxu1 %v217_v15  ;;  %v229_v38 = vpack.c.bf16 %v45_v33, %v43_v32  ;;  %v42_v39 = vld [vmem:[%s463_s1 + $0xa0] sm:$0xff]  ;;  %v44_v40 = vld [vmem:[%s463_s1 + $0xb0] sm:$0xff]  ;;  %v47_v41 = vld [vmem:[%s463_s1 + $0xc8] sm:$0xff] }
   0xb   :  { %207 = vmatprep.mubr.msk.f32.mxu1 %vm82_vm0, %v19_v28  ;;  %74 = vperm.xlu1 %265, %v60_v34   ;;  %v49_v42 = vld [vmem:[%s463_s1 + $0xd8] sm:$0xff]  ;;  %v59_v43 = vld [vmem:[%s465_s2 + $0x8] sm:$0xff]  ;;  %v231_v44 = vpack.c.bf16 %v44_v40, %v42_v39  ;;  %v46_v46 = vld [vmem:[%s463_s1 + $0xc0] sm:$0xff] }
   0xc   :  { %64 = vperm.xlu0 %264, %v58_v35   ;;  %v233_v45 = vpack.c.bf16 %v49_v42, %v47_v41  ;;  %v48_v47 = vld [vmem:[%s463_s1 + $0xd0] sm:$0xff]  ;;  %v51_v48 = vld [vmem:[%s463_s1 + $0xe8] sm:$0xff]  ;;  %v53_v49 = vld [vmem:[%s463_s1 + $0xf8] sm:$0xff] }
   0xd   :  { %220 = vmatpush1.bf16.msra.mxu0 %v219_v20  ;;  %256 = vmatpush1.bf16.msra.mxu1 %v219_v20  ;;  %v235_v50 = vpack.c.bf16 %v48_v47, %v46_v46  ;;  %v237_v51 = vpack.c.bf16 %v53_v49, %v51_v48  ;;  %v50_v52 = vld [vmem:[%s463_s1 + $0xe0] sm:$0xff]  ;;  %v52_v53 = vld [vmem:[%s463_s1 + $0xf0] sm:$0xff]  ;;  %v55_v54 = vld [vmem:[%s463_s1 + $0x108] sm:$0xff] }
   0xe   :  { %222 = vmatprep.subr.bf16.mxu0 %v221_v21  ;;  %248 = vmatprep.subr.bf16.mxu1 %v221_v21  ;;  %v57_v55 = vld [vmem:[%s463_s1 + $0x118] sm:$0xff]  ;;  %v239_v56 = vpack.c.bf16 %v52_v53, %v50_v52  ;;  %v54_v58 = vld [vmem:[%s463_s1 + $0x100] sm:$0xff]  ;;  %v56_v59 = vld [vmem:[%s463_s1 + $0x110] sm:$0xff] }
   0xf   :  { %79 = vperm.xlu1 %265, %v61_v37   ;;  %v241_v57 = vpack.c.bf16 %v57_v55, %v55_v54  ;;  %v243_v60 = vpack.c.bf16 %v56_v59, %v54_v58  ;;  %v14_v61 = vld [vmem:[%s464_s0] sm:$0xff]  ;;  %v17_v63 = vld [vmem:[%s464_s0 + $0x18] sm:$0xff]  ;;  %v16_v1 = vld [vmem:[%s464_s0 + $0x10] sm:$0xff] }
  0x10   :  { %69 = vperm.xlu0 %264, %v59_v43   ;;  %v18_v62 = vld [vmem:[%s464_s0 + $0x20] sm:$0xff]  ;;  %v21_v0 = vld [vmem:[%s464_s0 + $0x38] sm:$0xff]  ;;  %v20_v2 = vld [vmem:[%s464_s0 + $0x30] sm:$0xff] }
  0x11   :  { %224 = vmatpush1.bf16.msra.mxu0 %v223_v26  ;;  %257 = vmatpush1.bf16.msra.mxu1 %v223_v26 }
  0x12   :  { %226 = vmatprep.subr.bf16.mxu0 %v225_v29  ;;  %249 = vmatprep.subr.bf16.mxu1 %v225_v29 }
  0x15   :  { %228 = vmatpush1.bf16.msra.mxu0 %v227_v36  ;;  %258 = vmatpush1.bf16.msra.mxu1 %v227_v36 }
  0x16   :  { %230 = vmatprep.subr.bf16.mxu0 %v229_v38  ;;  %250 = vmatprep.subr.bf16.mxu1 %v229_v38 }
  0x19   :  { %232 = vmatpush1.bf16.msra.mxu0 %v231_v44  ;;  %259 = vmatpush1.bf16.msra.mxu1 %v231_v44 }
  0x1a   :  { %234 = vmatprep.subr.bf16.mxu0 %v233_v45  ;;  %251 = vmatprep.subr.bf16.mxu1 %v233_v45 }
  0x1d   :  { %236 = vmatpush1.bf16.msra.mxu0 %v235_v50  ;;  %260 = vmatpush1.bf16.msra.mxu1 %v235_v50 }
  0x1e   :  { %238 = vmatprep.subr.bf16.mxu0 %v237_v51  ;;  %252 = vmatprep.subr.bf16.mxu1 %v237_v51 }
  0x21   :  { %240 = vmatpush1.bf16.msra.mxu0 %v239_v56  ;;  %261 = vmatpush1.bf16.msra.mxu1 %v239_v56 }
  0x22   :  { %242 = vmatprep.subr.bf16.mxu0 %v241_v57  ;;  %253 = vmatprep.subr.bf16.mxu1 %v241_v57 }
  0x25   :  { %244 = vmatpush1.bf16.msra.mxu0 %v243_v60  ;;  %262 = vmatpush1.bf16.msra.mxu1 %v243_v60 }
  0x28   :  { %160 = vmatmul.mubr.f32.vlgmr.msra.gmra.mrb[0].mxu0 %v14_v61  ;;  %172 = vmatmul.mubr.f32.vlgmr.msra.gmra.mrb[0].mxu1 %v18_v62 }
  0x29   :  { %206 = vmatprep.mubr.msk.f32.mxu0 %vm82_vm0, %v17_v63  ;;  %208 = vmatprep.mubr.msk.f32.mxu1 %vm82_vm0, %v21_v0 }
  0x2c   :  { %166 = vmatmul.mubr.f32.gmra.mrb[2].mxu0 %v16_v1  ;;  %178 = vmatmul.mubr.f32.gmra.mrb[2].mxu1 %v20_v2 }
  0x8a   :  { %v75_v3 = vpop.permute.xlu1 %74 }
  0x8b   :  { %v65_v4 = vpop.permute.xlu0 %64 }
  0x8e   :  { %v80_v15 = vpop.permute.xlu1 %79 }
  0x8f   :  { %v70_v16 = vpop.permute.xlu0 %69 }
  0xfb   :  { %v161_v5 = vpop.f32.mrb[0].mxu0  ;;  %v173_v6 = vpop.f32.mrb[0].mxu1 }
  0xfc   :  { %v162_v7 = vadd.f32 %v161_v5, %v65_v4  ;;  %v174_v8 = vadd.f32 %v173_v6, %v75_v3  ;;  %v163_v9 = vpop.f32.mrb[1].mxu0  ;;  %v175_v10 = vpop.f32.mrb[1].mxu1 }
  0xfd   :  { %v164_v11 = vadd.f32 %v163_v9, %v65_v4  ;;  %v176_v12 = vadd.f32 %v175_v10, %v75_v3 }
  0xfe   :  { %v184_v13 = vmax.f32 %v162_v7, 0.0  ;;  %v188_v14 = vmax.f32 %v174_v8, 0.0 }
  0xff   :  { %v185_v17 = vmax.f32 %v164_v11, 0.0  ;;  %v189_v18 = vmax.f32 %v176_v12, 0.0  ;;  %v167_v19 = vpop.f32.mrb[2].mxu0  ;;  %v179_v20 = vpop.f32.mrb[2].mxu1 }
 0x100   :  { %192 = vst [vmem:[%s466_s3] sm:$0xff] %v184_v13  ;;  %197 = vst [vmem:[%s466_s3 + $0x20] sm:$0xff] %v188_v14  ;;  %v168_v21 = vadd.f32 %v167_v19, %v70_v16  ;;  %v180_v22 = vadd.f32 %v179_v20, %v80_v15  ;;  %v169_v23 = vpop.f32.mrb[3].mxu0  ;;  %v181_v24 = vpop.f32.mrb[3].mxu1 }
 0x101   :  { %194 = vst.msk [vmem:[%s466_s3 + $0x8] sm:$0xff] %vm193_vm1, %v185_v17  ;;  %198 = vst.msk [vmem:[%s466_s3 + $0x28] sm:$0xff] %vm193_vm1, %v189_v18  ;;  %v170_v25 = vadd.f32 %v169_v23, %v70_v16  ;;  %v182_v26 = vadd.f32 %v181_v24, %v80_v15 }
 0x102   :  { %v186_v27 = vmax.f32 %v168_v21, 0.0  ;;  %v190_v28 = vmax.f32 %v180_v22, 0.0 }
 0x103   :  { %v187_v29 = vmax.f32 %v170_v25, 0.0  ;;  %v191_v30 = vmax.f32 %v182_v26, 0.0 }
 0x104   :  { %195 = vst [vmem:[%s466_s3 + $0x10] sm:$0xff] %v186_v27  ;;  %199 = vst [vmem:[%s466_s3 + $0x30] sm:$0xff] %v190_v28 }
 0x105   :  { %196 = vst.msk [vmem:[%s466_s3 + $0x18] sm:$0xff] %vm193_vm1, %v187_v29  ;;  %200 = vst.msk [vmem:[%s466_s3 + $0x38] sm:$0xff] %vm193_vm1, %v191_v30 }

// kernel: forward.16
= control target key start
LH: loop header
LB: loop body
LE: loop exit
PB: predicated region body
PF: predicated region fallthrough
CT: control target
= control target key end

     0   :  { %v331_v3 = vmov 0   ;;  %vm199_vm0 = vcmask 408576   ;;  %s480_s1 = inlined_call_operand.vmem [shape: f32[128,50], index: 1, kind: input, shape index: {}]   ;;  %s481_s0 = inlined_call_operand.vmem [shape: f32[64,128], index: 0, kind: input, shape index: {}]   ;;  %s482_s2 = inlined_call_operand.vmem [shape: f32[64,1], index: 2, kind: input, shape index: {}]   ;;  %s483_s3 = inlined_call_operand.vmem [shape: f32[64,50], index: 3, kind: output, shape index: {}]  }
   0x1   :  { %v22_v0 = vld [vmem:[%s480_s1] sm:$0xff]  ;;  %v23_v1 = vld [vmem:[%s480_s1 + $0x8] sm:$0xff]  ;;  %v24_v2 = vld [vmem:[%s480_s1 + $0x10] sm:$0xff]  ;;  %330 = vset.pattern.permute.xlu1 %v331_v3  ;;  %329 = vset.pattern.permute.xlu0 %v331_v3 }
   0x2   :  { %v280_v4 = vpack.c.bf16 %v23_v1, %v22_v0  ;;  %v25_v5 = vld [vmem:[%s480_s1 + $0x18] sm:$0xff]  ;;  %v26_v7 = vld [vmem:[%s480_s1 + $0x20] sm:$0xff]  ;;  %v27_v8 = vld [vmem:[%s480_s1 + $0x28] sm:$0xff] }
   0x3   :  { %v284_v6 = vpack.c.bf16 %v25_v5, %v24_v2  ;;  %v288_v9 = vpack.c.bf16 %v27_v8, %v26_v7  ;;  %v14_v10 = vld [vmem:[%s481_s0] sm:$0xff]  ;;  %v28_v12 = vld [vmem:[%s480_s1 + $0x30] sm:$0xff]  ;;  %v29_v13 = vld [vmem:[%s480_s1 + $0x38] sm:$0xff] }
   0x4   :  { %281 = vmatprep.subr.bf16.mxu0 %v280_v4  ;;  %312 = vmatprep.subr.bf16.mxu1 %v280_v4  ;;  %v18_v11 = vld [vmem:[%s481_s0 + $0x20] sm:$0xff]  ;;  %v40_v14 = vld [vmem:[%s482_s2 + $0x10] sm:$0xff]  ;;  %v292_v16 = vpack.c.bf16 %v29_v13, %v28_v12  ;;  %v31_v18 = vld [vmem:[%s480_s1 + $0x48] sm:$0xff] }
   0x5   :  { %283 = vmatpush3.bf16.msra.mxu0 %v280_v4  ;;  %320 = vmatpush3.bf16.msra.mxu1 %v280_v4  ;;  %v38_v15 = vld [vmem:[%s482_s2] sm:$0xff]  ;;  %v41_v19 = vld [vmem:[%s482_s2 + $0x18] sm:$0xff]  ;;  %v39_v20 = vld [vmem:[%s482_s2 + $0x8] sm:$0xff] }
   0x6   :  { %285 = vmatprep.subr.bf16.mxu0 %v284_v6  ;;  %313 = vmatprep.subr.bf16.mxu1 %v284_v6  ;;  %v30_v17 = vld [vmem:[%s480_s1 + $0x40] sm:$0xff]  ;;  %v32_v22 = vld [vmem:[%s480_s1 + $0x50] sm:$0xff]  ;;  %v33_v23 = vld [vmem:[%s480_s1 + $0x58] sm:$0xff] }
   0x7   :  { %268 = vmatprep.mubr.f32.mxu0 %v14_v10  ;;  %274 = vmatprep.mubr.f32.mxu1 %v18_v11  ;;  %v296_v21 = vpack.c.bf16 %v31_v18, %v30_v17  ;;  %v43_v24 = vld [vmem:[%s482_s2 + $0x28] sm:$0xff]  ;;  %v42_v25 = vld [vmem:[%s482_s2 + $0x20] sm:$0xff]  ;;  %v300_v26 = vpack.c.bf16 %v33_v23, %v32_v22  ;;  %v45_v29 = vld [vmem:[%s482_s2 + $0x38] sm:$0xff] }
   0x8   :  { %58 = vperm.xlu1 %330, %v40_v14   ;;  %48 = vperm.xlu0 %329, %v38_v15   ;;  %v34_v27 = vld [vmem:[%s480_s1 + $0x60] sm:$0xff]  ;;  %v35_v28 = vld [vmem:[%s480_s1 + $0x68] sm:$0xff]  ;;  %v44_v30 = vld [vmem:[%s482_s2 + $0x30] sm:$0xff] }
   0x9   :  { %287 = vmatpush3.bf16.msra.mxu0 %v284_v6  ;;  %321 = vmatpush3.bf16.msra.mxu1 %v284_v6  ;;  %v304_v31 = vpack.c.bf16 %v35_v28, %v34_v27  ;;  %v36_v32 = vld [vmem:[%s480_s1 + $0x70] sm:$0xff]  ;;  %v37_v33 = vld [vmem:[%s480_s1 + $0x78] sm:$0xff]  ;;  %v15_v35 = vld [vmem:[%s481_s0 + $0x8] sm:$0xff] }
   0xa   :  { %289 = vmatprep.subr.bf16.mxu0 %v288_v9  ;;  %314 = vmatprep.subr.bf16.mxu1 %v288_v9  ;;  %v308_v34 = vpack.c.bf16 %v37_v33, %v36_v32  ;;  %v19_v36 = vld [vmem:[%s481_s0 + $0x28] sm:$0xff]  ;;  %v16_v37 = vld [vmem:[%s481_s0 + $0x10] sm:$0xff]  ;;  %v17_v39 = vld [vmem:[%s481_s0 + $0x18] sm:$0xff] }
   0xb   :  { %v20_v38 = vld [vmem:[%s481_s0 + $0x30] sm:$0xff]  ;;  %v21_v40 = vld [vmem:[%s481_s0 + $0x38] sm:$0xff] }
   0xc   :  { %63 = vperm.xlu1 %330, %v41_v19   ;;  %53 = vperm.xlu0 %329, %v39_v20  }
   0xd   :  { %291 = vmatpush3.bf16.msra.mxu0 %v288_v9  ;;  %322 = vmatpush3.bf16.msra.mxu1 %v288_v9 }
   0xe   :  { %293 = vmatprep.subr.bf16.mxu0 %v292_v16  ;;  %315 = vmatprep.subr.bf16.mxu1 %v292_v16 }
  0x10   :  { %73 = vperm.xlu1 %330, %v43_v24   ;;  %68 = vperm.xlu0 %329, %v42_v25  }
  0x11   :  { %295 = vmatpush3.bf16.msra.mxu0 %v292_v16  ;;  %323 = vmatpush3.bf16.msra.mxu1 %v292_v16 }
  0x12   :  { %297 = vmatprep.subr.bf16.mxu0 %v296_v21  ;;  %316 = vmatprep.subr.bf16.mxu1 %v296_v21 }
  0x14   :  { %83 = vperm.xlu1 %330, %v45_v29   ;;  %78 = vperm.xlu0 %329, %v44_v30  }
  0x15   :  { %299 = vmatpush3.bf16.msra.mxu0 %v296_v21  ;;  %324 = vmatpush3.bf16.msra.mxu1 %v296_v21 }
  0x16   :  { %301 = vmatprep.subr.bf16.mxu0 %v300_v26  ;;  %317 = vmatprep.subr.bf16.mxu1 %v300_v26 }
  0x19   :  { %303 = vmatpush3.bf16.msra.mxu0 %v300_v26  ;;  %325 = vmatpush3.bf16.msra.mxu1 %v300_v26 }
  0x1a   :  { %305 = vmatprep.subr.bf16.mxu0 %v304_v31  ;;  %318 = vmatprep.subr.bf16.mxu1 %v304_v31 }
  0x1d   :  { %307 = vmatpush3.bf16.msra.mxu0 %v304_v31  ;;  %326 = vmatpush3.bf16.msra.mxu1 %v304_v31 }
  0x1e   :  { %309 = vmatprep.subr.bf16.mxu0 %v308_v34  ;;  %319 = vmatprep.subr.bf16.mxu1 %v308_v34 }
  0x21   :  { %311 = vmatpush3.bf16.msra.mxu0 %v308_v34  ;;  %327 = vmatpush3.bf16.msra.mxu1 %v308_v34 }
  0x24   :  { %269 = vmatmul.mubr.f32.vlgmr.msra.gmra.mrb[0].mxu0 %v15_v35  ;;  %275 = vmatmul.mubr.f32.vlgmr.msra.gmra.mrb[0].mxu1 %v19_v36 }
  0x25   :  { %271 = vmatprep.mubr.f32.mxu0 %v16_v37  ;;  %277 = vmatprep.mubr.f32.mxu1 %v20_v38 }
  0x28   :  { %272 = vmatmul.mubr.f32.gmra.mrb[2].mxu0 %v17_v39  ;;  %278 = vmatmul.mubr.f32.gmra.mrb[2].mxu1 %v21_v40 }
  0x87   :  { %v59_v41 = vpop.permute.xlu1 %58  ;;  %v49_v42 = vpop.permute.xlu0 %48 }
  0x8b   :  { %v64_v43 = vpop.permute.xlu1 %63  ;;  %v54_v44 = vpop.permute.xlu0 %53 }
  0x8f   :  { %v74_v45 = vpop.permute.xlu1 %73  ;;  %v69_v46 = vpop.permute.xlu0 %68 }
  0x93   :  { %v84_v55 = vpop.permute.xlu1 %83  ;;  %v79_v56 = vpop.permute.xlu0 %78 }
  0xf7   :  { %v270_v47 = vpop.f32.mrb[0].mxu0  ;;  %v276_v48 = vpop.f32.mrb[0].mxu1 }
  0xf8   :  { %v158_v49 = vadd.f32 %v270_v47, %v54_v44  ;;  %v178_v50 = vadd.f32 %v276_v48, %v74_v45  ;;  %v152_v51 = vpop.f32.mrb[1].mxu0  ;;  %v172_v52 = vpop.f32.mrb[1].mxu1 }
  0xf9   :  { %v153_v53 = vadd.f32 %v152_v51, %v49_v42  ;;  %v173_v54 = vadd.f32 %v172_v52, %v69_v46 }
  0xfa   :  { %v192_v57 = vmax.f32 %v158_v49, 0.0  ;;  %v196_v58 = vmax.f32 %v178_v50, 0.0 }
  0xfb   :  { %v191_v59 = vmax.f32 %v153_v53, 0.0  ;;  %v195_v60 = vmax.f32 %v173_v54, 0.0  ;;  %v273_v61 = vpop.f32.mrb[2].mxu0  ;;  %v279_v62 = vpop.f32.mrb[2].mxu1 }
  0xfc   :  { %201 = vst.msk [vmem:[%s483_s3 + $0x8] sm:$0xff] %vm199_vm0, %v192_v57  ;;  %205 = vst.msk [vmem:[%s483_s3 + $0x28] sm:$0xff] %vm199_vm0, %v196_v58  ;;  %v168_v63 = vadd.f32 %v273_v61, %v64_v43  ;;  %v188_v0 = vadd.f32 %v279_v62, %v84_v55  ;;  %v162_v1 = vpop.f32.mrb[3].mxu0  ;;  %v182_v2 = vpop.f32.mrb[3].mxu1 }
  0xfd   :  { %200 = vst.msk [vmem:[%s483_s3] sm:$0xff] %vm199_vm0, %v191_v59  ;;  %204 = vst.msk [vmem:[%s483_s3 + $0x20] sm:$0xff] %vm199_vm0, %v195_v60  ;;  %v163_v3 = vadd.f32 %v162_v1, %v59_v41  ;;  %v183_v4 = vadd.f32 %v182_v2, %v79_v56 }
  0xfe   :  { %v194_v5 = vmax.f32 %v168_v63, 0.0  ;;  %v198_v6 = vmax.f32 %v188_v0, 0.0 }
  0xff   :  { %v193_v7 = vmax.f32 %v163_v3, 0.0  ;;  %v197_v8 = vmax.f32 %v183_v4, 0.0 }
 0x100   :  { %203 = vst.msk [vmem:[%s483_s3 + $0x18] sm:$0xff] %vm199_vm0, %v194_v5  ;;  %207 = vst.msk [vmem:[%s483_s3 + $0x38] sm:$0xff] %vm199_vm0, %v198_v6 }
 0x101   :  { %202 = vst.msk [vmem:[%s483_s3 + $0x10] sm:$0xff] %vm199_vm0, %v193_v7  ;;  %206 = vst.msk [vmem:[%s483_s3 + $0x30] sm:$0xff] %vm199_vm0, %v197_v8 }

// kernel: forward.17
= control target key start
LH: loop header
LB: loop body
LE: loop exit
PB: predicated region body
PF: predicated region fallthrough
CT: control target
= control target key end

     0   :  { %v343_v3 = vmov 0   ;;  %vm223_vm0 = vcmask 64512   ;;  %s564_s1 = inlined_call_operand.vmem [shape: f32[256,8], index: 1, kind: input, shape index: {}]   ;;  %s565_s0 = inlined_call_operand.vmem [shape: f32[64,256], index: 0, kind: input, shape index: {}]   ;;  %s566_s2 = inlined_call_operand.vmem [shape: f32[64,1], index: 2, kind: input, shape index: {}]   ;;  %s567_s3 = inlined_call_operand.vmem [shape: f32[64,8], index: 3, kind: output, shape index: {}]  }
   0x1   :  { %v46_v0 = vld [vmem:[%s564_s1 + $0x80] sm:$0xff]  ;;  %v47_v1 = vld [vmem:[%s564_s1 + $0x88] sm:$0xff]  ;;  %342 = vset.pattern.permute.xlu1 %v343_v3  ;;  %341 = vset.pattern.permute.xlu0 %v343_v3  ;;  %v48_v6 = vld [vmem:[%s564_s1 + $0x90] sm:$0xff] }
   0x2   :  { %v30_v2 = vld [vmem:[%s564_s1] sm:$0xff]  ;;  %v292_v4 = vpack.c.bf16 %v47_v1, %v46_v0  ;;  %v31_v5 = vld [vmem:[%s564_s1 + $0x8] sm:$0xff]  ;;  %v49_v7 = vld [vmem:[%s564_s1 + $0x98] sm:$0xff] }
   0x3   :  { %v294_v8 = vpack.c.bf16 %v31_v5, %v30_v2  ;;  %v296_v9 = vpack.c.bf16 %v49_v7, %v48_v6  ;;  %v32_v10 = vld [vmem:[%s564_s1 + $0x10] sm:$0xff]  ;;  %v33_v11 = vld [vmem:[%s564_s1 + $0x18] sm:$0xff]  ;;  %v50_v12 = vld [vmem:[%s564_s1 + $0xa0] sm:$0xff] }
   0x4   :  { %293 = vmatprep.subr.bf16.mxu0 %v292_v4  ;;  %324 = vmatprep.subr.bf16.mxu1 %v292_v4  ;;  %v51_v13 = vld [vmem:[%s564_s1 + $0xa8] sm:$0xff]  ;;  %v298_v14 = vpack.c.bf16 %v33_v11, %v32_v10  ;;  %v34_v16 = vld [vmem:[%s564_s1 + $0x20] sm:$0xff]  ;;  %v52_v18 = vld [vmem:[%s564_s1 + $0xb0] sm:$0xff] }
   0x5   :  { %295 = vmatpush3.bf16.msra.mxu0 %v294_v8  ;;  %332 = vmatpush3.bf16.msra.mxu1 %v294_v8  ;;  %v300_v15 = vpack.c.bf16 %v51_v13, %v50_v12  ;;  %v35_v17 = vld [vmem:[%s564_s1 + $0x28] sm:$0xff]  ;;  %v53_v19 = vld [vmem:[%s564_s1 + $0xb8] sm:$0xff]  ;;  %v36_v22 = vld [vmem:[%s564_s1 + $0x30] sm:$0xff] }
   0x6   :  { %297 = vmatprep.subr.bf16.mxu0 %v296_v9  ;;  %325 = vmatprep.subr.bf16.mxu1 %v296_v9  ;;  %v302_v20 = vpack.c.bf16 %v35_v17, %v34_v16  ;;  %v304_v21 = vpack.c.bf16 %v53_v19, %v52_v18  ;;  %v37_v23 = vld [vmem:[%s564_s1 + $0x38] sm:$0xff]  ;;  %v54_v24 = vld [vmem:[%s564_s1 + $0xc0] sm:$0xff]  ;;  %v55_v25 = vld [vmem:[%s564_s1 + $0xc8] sm:$0xff] }
   0x7   :  { %v15_v26 = vld [vmem:[%s565_s0 + $0x8] sm:$0xff]  ;;  %v306_v28 = vpack.c.bf16 %v37_v23, %v36_v22  ;;  %v308_v29 = vpack.c.bf16 %v55_v25, %v54_v24  ;;  %v38_v30 = vld [vmem:[%s564_s1 + $0x40] sm:$0xff]  ;;  %v56_v32 = vld [vmem:[%s564_s1 + $0xd0] sm:$0xff] }
   0x8   :  { %174 = vmatprep.mubr.f32.mxu0 %v15_v26  ;;  %v23_v27 = vld [vmem:[%s565_s0 + $0x48] sm:$0xff]  ;;  %v57_v33 = vld [vmem:[%s564_s1 + $0xd8] sm:$0xff]  ;;  %v64_v35 = vld [vmem:[%s566_s2 + $0x10] sm:$0xff] }
   0x9   :  { %299 = vmatpush3.bf16.msra.mxu0 %v298_v14  ;;  %333 = vmatpush3.bf16.msra.mxu1 %v298_v14  ;;  %v39_v31 = vld [vmem:[%s564_s1 + $0x48] sm:$0xff]  ;;  %v62_v36 = vld [vmem:[%s566_s2] sm:$0xff]  ;;  %v312_v37 = vpack.c.bf16 %v57_v33, %v56_v32  ;;  %v40_v38 = vld [vmem:[%s564_s1 + $0x50] sm:$0xff] }
   0xa   :  { %301 = vmatprep.subr.bf16.mxu0 %v300_v15  ;;  %326 = vmatprep.subr.bf16.mxu1 %v300_v15  ;;  %v310_v34 = vpack.c.bf16 %v39_v31, %v38_v30  ;;  %v41_v39 = vld [vmem:[%s564_s1 + $0x58] sm:$0xff]  ;;  %v58_v40 = vld [vmem:[%s564_s1 + $0xe0] sm:$0xff]  ;;  %v59_v41 = vld [vmem:[%s564_s1 + $0xe8] sm:$0xff] }
   0xb   :  { %194 = vmatprep.mubr.f32.mxu1 %v23_v27  ;;  %82 = vperm.xlu1 %342, %v64_v35   ;;  %v65_v42 = vld [vmem:[%s566_s2 + $0x18] sm:$0xff]  ;;  %v63_v43 = vld [vmem:[%s566_s2 + $0x8] sm:$0xff]  ;;  %v314_v44 = vpack.c.bf16 %v41_v39, %v40_v38  ;;  %v316_v45 = vpack.c.bf16 %v59_v41, %v58_v40  ;;  %v42_v46 = vld [vmem:[%s564_s1 + $0x60] sm:$0xff] }
   0xc   :  { %72 = vperm.xlu0 %341, %v62_v36   ;;  %v43_v47 = vld [vmem:[%s564_s1 + $0x68] sm:$0xff]  ;;  %v60_v48 = vld [vmem:[%s564_s1 + $0xf0] sm:$0xff]  ;;  %v61_v49 = vld [vmem:[%s564_s1 + $0xf8] sm:$0xff] }
   0xd   :  { %303 = vmatpush3.bf16.msra.mxu0 %v302_v20  ;;  %334 = vmatpush3.bf16.msra.mxu1 %v302_v20  ;;  %v67_v50 = vld [vmem:[%s566_s2 + $0x28] sm:$0xff]  ;;  %v66_v51 = vld [vmem:[%s566_s2 + $0x20] sm:$0xff]  ;;  %v318_v52 = vpack.c.bf16 %v43_v47, %v42_v46  ;;  %v320_v53 = vpack.c.bf16 %v61_v49, %v60_v48  ;;  %v44_v54 = vld [vmem:[%s564_s1 + $0x70] sm:$0xff] }
   0xe   :  { %305 = vmatprep.subr.bf16.mxu0 %v304_v21  ;;  %327 = vmatprep.subr.bf16.mxu1 %v304_v21  ;;  %v45_v55 = vld [vmem:[%s564_s1 + $0x78] sm:$0xff]  ;;  %v68_v57 = vld [vmem:[%s566_s2 + $0x30] sm:$0xff]  ;;  %v14_v59 = vld [vmem:[%s565_s0] sm:$0xff] }
   0xf   :  { %87 = vperm.xlu1 %342, %v65_v42   ;;  %v69_v56 = vld [vmem:[%s566_s2 + $0x38] sm:$0xff]  ;;  %v322_v58 = vpack.c.bf16 %v45_v55, %v44_v54  ;;  %v22_v60 = vld [vmem:[%s565_s0 + $0x40] sm:$0xff]  ;;  %v16_v63 = vld [vmem:[%s565_s0 + $0x10] sm:$0xff] }
  0x10   :  { %77 = vperm.xlu0 %341, %v63_v43   ;;  %v17_v61 = vld [vmem:[%s565_s0 + $0x18] sm:$0xff]  ;;  %v24_v0 = vld [vmem:[%s565_s0 + $0x50] sm:$0xff]  ;;  %v19_v1 = vld [vmem:[%s565_s0 + $0x28] sm:$0xff] }
  0x11   :  { %307 = vmatpush3.bf16.msra.mxu0 %v306_v28  ;;  %335 = vmatpush3.bf16.msra.mxu1 %v306_v28  ;;  %v25_v62 = vld [vmem:[%s565_s0 + $0x58] sm:$0xff]  ;;  %v27_v2 = vld [vmem:[%s565_s0 + $0x68] sm:$0xff]  ;;  %v18_v3 = vld [vmem:[%s565_s0 + $0x20] sm:$0xff] }
  0x12   :  { %309 = vmatprep.subr.bf16.mxu0 %v308_v29  ;;  %328 = vmatprep.subr.bf16.mxu1 %v308_v29  ;;  %v26_v4 = vld [vmem:[%s565_s0 + $0x60] sm:$0xff]  ;;  %v21_v5 = vld [vmem:[%s565_s0 + $0x38] sm:$0xff]  ;;  %v20_v7 = vld [vmem:[%s565_s0 + $0x30] sm:$0xff] }
  0x13   :  { %97 = vperm.xlu1 %342, %v67_v50   ;;  %v29_v6 = vld [vmem:[%s565_s0 + $0x78] sm:$0xff]  ;;  %v28_v8 = vld [vmem:[%s565_s0 + $0x70] sm:$0xff] }
  0x14   :  { %92 = vperm.xlu0 %341, %v66_v51  }
  0x15   :  { %311 = vmatpush3.bf16.msra.mxu0 %v310_v34  ;;  %336 = vmatpush3.bf16.msra.mxu1 %v310_v34 }
  0x16   :  { %313 = vmatprep.subr.bf16.mxu0 %v312_v37  ;;  %329 = vmatprep.subr.bf16.mxu1 %v312_v37 }
  0x17   :  { %107 = vperm.xlu1 %342, %v69_v56  }
  0x18   :  { %102 = vperm.xlu0 %341, %v68_v57  }
  0x19   :  { %315 = vmatpush3.bf16.msra.mxu0 %v314_v44  ;;  %337 = vmatpush3.bf16.msra.mxu1 %v314_v44 }
  0x1a   :  { %317 = vmatprep.subr.bf16.mxu0 %v316_v45  ;;  %330 = vmatprep.subr.bf16.mxu1 %v316_v45 }
  0x1d   :  { %319 = vmatpush3.bf16.msra.mxu0 %v318_v52  ;;  %338 = vmatpush3.bf16.msra.mxu1 %v318_v52 }
  0x1e   :  { %321 = vmatprep.subr.bf16.mxu0 %v320_v53  ;;  %331 = vmatprep.subr.bf16.mxu1 %v320_v53 }
  0x21   :  { %323 = vmatpush3.bf16.msra.mxu0 %v322_v58  ;;  %339 = vmatpush3.bf16.msra.mxu1 %v322_v58 }
  0x24   :  { %175 = vmatmul.mubr.f32.vlgmr.msra.gmra.mrb[0].mxu0 %v14_v59  ;;  %195 = vmatmul.mubr.f32.vlgmr.msra.gmra.mrb[0].mxu1 %v22_v60 }
  0x25   :  { %179 = vmatprep.mubr.f32.mxu0 %v17_v61  ;;  %199 = vmatprep.mubr.f32.mxu1 %v25_v62 }
  0x28   :  { %180 = vmatmul.mubr.f32.gmra.mrb[2].mxu0 %v16_v63  ;;  %200 = vmatmul.mubr.f32.gmra.mrb[2].mxu1 %v24_v0 }
  0x29   :  { %184 = vmatprep.mubr.f32.mxu0 %v19_v1  ;;  %204 = vmatprep.mubr.f32.mxu1 %v27_v2 }
  0x2c   :  { %185 = vmatmul.mubr.f32.gmra.mrb[4].mxu0 %v18_v3  ;;  %205 = vmatmul.mubr.f32.gmra.mrb[4].mxu1 %v26_v4 }
  0x2d   :  { %189 = vmatprep.mubr.f32.mxu0 %v21_v5  ;;  %209 = vmatprep.mubr.f32.mxu1 %v29_v6 }
  0x30   :  { %190 = vmatmul.mubr.f32.gmra.mrb[6].mxu0 %v20_v7  ;;  %210 = vmatmul.mubr.f32.gmra.mrb[6].mxu1 %v28_v8 }
  0x8a   :  { %v83_v10 = vpop.permute.xlu1 %82 }
  0x8b   :  { %v73_v9 = vpop.permute.xlu0 %72 }
  0x8e   :  { %v88_v12 = vpop.permute.xlu1 %87 }
  0x8f   :  { %v78_v11 = vpop.permute.xlu0 %77 }
  0x92   :  { %v98_v30 = vpop.permute.xlu1 %97 }
  0x93   :  { %v93_v19 = vpop.permute.xlu0 %92 }
  0x96   :  { %v108_v52 = vpop.permute.xlu1 %107 }
  0x97   :  { %v103_v41 = vpop.permute.xlu0 %102 }
  0xf7   :  { %v268_v13 = vpop.f32.mrb[0].mxu0  ;;  %v280_v14 = vpop.f32.mrb[0].mxu1 }
  0xf8   :  { %v269_v15 = vpop.f32.mrb[1].mxu0  ;;  %v281_v16 = vpop.f32.mrb[1].mxu1 }
  0xf9   :  { %v270_v17 = vadd.f32 %v269_v15, %v268_v13  ;;  %v282_v18 = vadd.f32 %v281_v16, %v280_v14 }
  0xfb   :  { %v177_v20 = vadd.f32 %v270_v17, %v73_v9  ;;  %v197_v21 = vadd.f32 %v282_v18, %v93_v19  ;;  %v271_v22 = vpop.f32.mrb[2].mxu0  ;;  %v283_v23 = vpop.f32.mrb[2].mxu1 }
  0xfc   :  { %v272_v24 = vpop.f32.mrb[3].mxu0  ;;  %v284_v25 = vpop.f32.mrb[3].mxu1 }
  0xfd   :  { %v215_v26 = vmax.f32 %v177_v20, 0.0  ;;  %v219_v27 = vmax.f32 %v197_v21, 0.0  ;;  %v273_v28 = vadd.f32 %v272_v24, %v271_v22  ;;  %v285_v29 = vadd.f32 %v284_v25, %v283_v23 }
  0xff   :  { %224 = vst.msk [vmem:[%s567_s3] sm:$0xff] %vm223_vm0, %v215_v26  ;;  %228 = vst.msk [vmem:[%s567_s3 + $0x20] sm:$0xff] %vm223_vm0, %v219_v27  ;;  %v182_v31 = vadd.f32 %v273_v28, %v78_v11  ;;  %v202_v32 = vadd.f32 %v285_v29, %v98_v30  ;;  %v274_v33 = vpop.f32.mrb[4].mxu0  ;;  %v286_v34 = vpop.f32.mrb[4].mxu1 }
 0x100   :  { %v275_v35 = vpop.f32.mrb[5].mxu0  ;;  %v287_v36 = vpop.f32.mrb[5].mxu1 }
 0x101   :  { %v216_v37 = vmax.f32 %v182_v31, 0.0  ;;  %v220_v38 = vmax.f32 %v202_v32, 0.0  ;;  %v276_v39 = vadd.f32 %v275_v35, %v274_v33  ;;  %v288_v40 = vadd.f32 %v287_v36, %v286_v34 }
 0x103   :  { %225 = vst.msk [vmem:[%s567_s3 + $0x8] sm:$0xff] %vm223_vm0, %v216_v37  ;;  %229 = vst.msk [vmem:[%s567_s3 + $0x28] sm:$0xff] %vm223_vm0, %v220_v38  ;;  %v187_v42 = vadd.f32 %v276_v39, %v83_v10  ;;  %v207_v43 = vadd.f32 %v288_v40, %v103_v41  ;;  %v277_v44 = vpop.f32.mrb[6].mxu0  ;;  %v289_v45 = vpop.f32.mrb[6].mxu1 }
 0x104   :  { %v278_v46 = vpop.f32.mrb[7].mxu0  ;;  %v290_v47 = vpop.f32.mrb[7].mxu1 }
 0x105   :  { %v217_v48 = vmax.f32 %v187_v42, 0.0  ;;  %v221_v49 = vmax.f32 %v207_v43, 0.0  ;;  %v279_v50 = vadd.f32 %v278_v46, %v277_v44  ;;  %v291_v51 = vadd.f32 %v290_v47, %v289_v45 }
 0x107   :  { %226 = vst.msk [vmem:[%s567_s3 + $0x10] sm:$0xff] %vm223_vm0, %v217_v48  ;;  %230 = vst.msk [vmem:[%s567_s3 + $0x30] sm:$0xff] %vm223_vm0, %v221_v49  ;;  %v192_v53 = vadd.f32 %v279_v50, %v88_v12  ;;  %v212_v54 = vadd.f32 %v291_v51, %v108_v52 }
 0x109   :  { %v218_v55 = vmax.f32 %v192_v53, 0.0  ;;  %v222_v56 = vmax.f32 %v212_v54, 0.0 }
 0x10b   :  { %227 = vst.msk [vmem:[%s567_s3 + $0x18] sm:$0xff] %vm223_vm0, %v218_v55  ;;  %231 = vst.msk [vmem:[%s567_s3 + $0x38] sm:$0xff] %vm223_vm0, %v222_v56 }

// kernel: forward.18
= control target key start
LH: loop header
LB: loop body
LE: loop exit
PB: predicated region body
PF: predicated region fallthrough
CT: control target
= control target key end

     0   :  { %v800_v3 = vmov 0   ;;  %vm246_vm0 = vcmask 523264   ;;  %vm600_vm1 = vcmask 64512   ;;  %s1230_s1 = inlined_call_operand.vmem [shape: f32[64,8], index: 1, kind: input, shape index: {}]   ;;  %s1231_s2 = inlined_call_operand.vmem [shape: f32[256,1], index: 2, kind: input, shape index: {}]   ;;  %s1232_s0 = inlined_call_operand.vmem [shape: f32[256,64], index: 0, kind: input, shape index: {}]   ;;  %s1233_s3 = inlined_call_operand.vmem [shape: f32[256,8], index: 3, kind: output, shape index: {}]  }
   0x1   :  { %v46_v0 = vld [vmem:[%s1230_s1] sm:$0xff]  ;;  %v47_v1 = vld [vmem:[%s1230_s1 + $0x8] sm:$0xff]  ;;  %v48_v2 = vld [vmem:[%s1230_s1 + $0x10] sm:$0xff]  ;;  %799 = vset.pattern.permute.xlu1 %v800_v3  ;;  %798 = vset.pattern.permute.xlu0 %v800_v3 }
   0x2   :  { %v773_v4 = vpack.c.bf16 %v47_v1, %v46_v0  ;;  %v49_v5 = vld [vmem:[%s1230_s1 + $0x18] sm:$0xff]  ;;  %v50_v7 = vld [vmem:[%s1230_s1 + $0x20] sm:$0xff]  ;;  %v51_v8 = vld [vmem:[%s1230_s1 + $0x28] sm:$0xff] }
   0x3   :  { %v777_v6 = vpack.c.bf16 %v49_v5, %v48_v2  ;;  %v56_v9 = vld [vmem:[%s1231_s2 + $0x10] sm:$0xff]  ;;  %v54_v10 = vld [vmem:[%s1231_s2] sm:$0xff]  ;;  %v781_v13 = vpack.c.bf16 %v51_v8, %v50_v7  ;;  %v53_v15 = vld [vmem:[%s1230_s1 + $0x38] sm:$0xff] }
   0x4   :  { %774 = vmatprep.subr.bf16.mxu0 %v773_v4  ;;  %789 = vmatprep.subr.bf16.mxu1 %v773_v4  ;;  %v14_v11 = vld [vmem:[%s1232_s0] sm:$0xff]  ;;  %v52_v14 = vld [vmem:[%s1230_s1 + $0x30] sm:$0xff]  ;;  %v57_v16 = vld [vmem:[%s1231_s2 + $0x18] sm:$0xff] }
   0x5   :  { %776 = vmatpush3.bf16.msra.mxu0 %v773_v4  ;;  %793 = vmatpush3.bf16.msra.mxu1 %v773_v4  ;;  %v30_v12 = vld [vmem:[%s1232_s0 + $0x80] sm:$0xff]  ;;  %v55_v17 = vld [vmem:[%s1231_s2 + $0x8] sm:$0xff]  ;;  %v785_v18 = vpack.c.bf16 %v53_v15, %v52_v14  ;;  %v61_v21 = vld [vmem:[%s1231_s2 + $0x38] sm:$0xff] }
   0x6   :  { %778 = vmatprep.subr.bf16.mxu0 %v777_v6  ;;  %790 = vmatprep.subr.bf16.mxu1 %v777_v6  ;;  %v59_v19 = vld [vmem:[%s1231_s2 + $0x28] sm:$0xff]  ;;  %v58_v20 = vld [vmem:[%s1231_s2 + $0x20] sm:$0xff]  ;;  %v60_v22 = vld [vmem:[%s1231_s2 + $0x30] sm:$0xff] }
   0x7   :  { %98 = vperm.xlu1 %799, %v56_v9   ;;  %88 = vperm.xlu0 %798, %v54_v10   ;;  %v15_v23 = vld [vmem:[%s1232_s0 + $0x8] sm:$0xff]  ;;  %v16_v25 = vld [vmem:[%s1232_s0 + $0x10] sm:$0xff]  ;;  %v62_v28 = vld [vmem:[%s1231_s2 + $0x40] sm:$0xff] }
   0x8   :  { %725 = vmatprep.mubr.msk.f32.mxu0 %vm246_vm0, %v14_v11  ;;  %749 = vmatprep.mubr.msk.f32.mxu1 %vm246_vm0, %v30_v12  ;;  %v31_v24 = vld [vmem:[%s1232_s0 + $0x88] sm:$0xff]  ;;  %v32_v26 = vld [vmem:[%s1232_s0 + $0x90] sm:$0xff]  ;;  %v17_v29 = vld [vmem:[%s1232_s0 + $0x18] sm:$0xff] }
   0x9   :  { %780 = vmatpush3.bf16.msra.mxu0 %v777_v6  ;;  %794 = vmatpush3.bf16.msra.mxu1 %v777_v6  ;;  %v63_v27 = vld [vmem:[%s1231_s2 + $0x48] sm:$0xff]  ;;  %v33_v30 = vld [vmem:[%s1232_s0 + $0x98] sm:$0xff]  ;;  %v18_v31 = vld [vmem:[%s1232_s0 + $0x20] sm:$0xff] }
   0xa   :  { %782 = vmatprep.subr.bf16.mxu0 %v781_v13  ;;  %791 = vmatprep.subr.bf16.mxu1 %v781_v13  ;;  %v34_v32 = vld [vmem:[%s1232_s0 + $0xa0] sm:$0xff]  ;;  %v65_v33 = vld [vmem:[%s1231_s2 + $0x58] sm:$0xff]  ;;  %v64_v34 = vld [vmem:[%s1231_s2 + $0x50] sm:$0xff] }
   0xb   :  { %103 = vperm.xlu1 %799, %v57_v16   ;;  %93 = vperm.xlu0 %798, %v55_v17   ;;  %v19_v35 = vld [vmem:[%s1232_s0 + $0x28] sm:$0xff]  ;;  %v20_v37 = vld [vmem:[%s1232_s0 + $0x30] sm:$0xff]  ;;  %v66_v40 = vld [vmem:[%s1231_s2 + $0x60] sm:$0xff] }
   0xc   :  { %v35_v36 = vld [vmem:[%s1232_s0 + $0xa8] sm:$0xff]  ;;  %v36_v38 = vld [vmem:[%s1232_s0 + $0xb0] sm:$0xff]  ;;  %v21_v41 = vld [vmem:[%s1232_s0 + $0x38] sm:$0xff] }
   0xd   :  { %784 = vmatpush3.bf16.msra.mxu0 %v781_v13  ;;  %795 = vmatpush3.bf16.msra.mxu1 %v781_v13  ;;  %v67_v39 = vld [vmem:[%s1231_s2 + $0x68] sm:$0xff]  ;;  %v37_v42 = vld [vmem:[%s1232_s0 + $0xb8] sm:$0xff]  ;;  %v22_v43 = vld [vmem:[%s1232_s0 + $0x40] sm:$0xff] }
   0xe   :  { %786 = vmatprep.subr.bf16.mxu0 %v785_v18  ;;  %792 = vmatprep.subr.bf16.mxu1 %v785_v18  ;;  %v38_v44 = vld [vmem:[%s1232_s0 + $0xc0] sm:$0xff]  ;;  %v69_v45 = vld [vmem:[%s1231_s2 + $0x78] sm:$0xff]  ;;  %v68_v46 = vld [vmem:[%s1231_s2 + $0x70] sm:$0xff] }
   0xf   :  { %113 = vperm.xlu1 %799, %v59_v19   ;;  %108 = vperm.xlu0 %798, %v58_v20   ;;  %v23_v47 = vld [vmem:[%s1232_s0 + $0x48] sm:$0xff]  ;;  %v24_v49 = vld [vmem:[%s1232_s0 + $0x50] sm:$0xff]  ;;  %v70_v52 = vld [vmem:[%s1231_s2 + $0x80] sm:$0xff] }
  0x10   :  { %v39_v48 = vld [vmem:[%s1232_s0 + $0xc8] sm:$0xff]  ;;  %v40_v50 = vld [vmem:[%s1232_s0 + $0xd0] sm:$0xff]  ;;  %v25_v53 = vld [vmem:[%s1232_s0 + $0x58] sm:$0xff] }
  0x11   :  { %788 = vmatpush3.bf16.msra.mxu0 %v785_v18  ;;  %796 = vmatpush3.bf16.msra.mxu1 %v785_v18  ;;  %v71_v51 = vld [vmem:[%s1231_s2 + $0x88] sm:$0xff]  ;;  %v41_v54 = vld [vmem:[%s1232_s0 + $0xd8] sm:$0xff]  ;;  %v26_v55 = vld [vmem:[%s1232_s0 + $0x60] sm:$0xff] }
  0x12   :  { %v42_v56 = vld [vmem:[%s1232_s0 + $0xe0] sm:$0xff]  ;;  %v73_v57 = vld [vmem:[%s1231_s2 + $0x98] sm:$0xff]  ;;  %v72_v58 = vld [vmem:[%s1231_s2 + $0x90] sm:$0xff] }
  0x13   :  { %123 = vperm.xlu1 %799, %v61_v21   ;;  %118 = vperm.xlu0 %798, %v60_v22   ;;  %v27_v59 = vld [vmem:[%s1232_s0 + $0x68] sm:$0xff]  ;;  %v28_v61 = vld [vmem:[%s1232_s0 + $0x70] sm:$0xff]  ;;  %v74_v0 = vld [vmem:[%s1231_s2 + $0xa0] sm:$0xff] }
  0x14   :  { %726 = vmatmul.mubr.msk.f32.vlgmr.msra.gmra.mrb[0].mxu0 %vm246_vm0, %v15_v23  ;;  %750 = vmatmul.mubr.msk.f32.vlgmr.msra.gmra.mrb[0].mxu1 %vm246_vm0, %v31_v24  ;;  %v43_v60 = vld [vmem:[%s1232_s0 + $0xe8] sm:$0xff]  ;;  %v44_v62 = vld [vmem:[%s1232_s0 + $0xf0] sm:$0xff]  ;;  %v29_v1 = vld [vmem:[%s1232_s0 + $0x78] sm:$0xff] }
  0x15   :  { %728 = vmatprep.mubr.msk.f32.mxu0 %vm246_vm0, %v16_v25  ;;  %752 = vmatprep.mubr.msk.f32.mxu1 %vm246_vm0, %v32_v26  ;;  %v75_v63 = vld [vmem:[%s1231_s2 + $0xa8] sm:$0xff]  ;;  %v45_v2 = vld [vmem:[%s1232_s0 + $0xf8] sm:$0xff]  ;;  %v76_v4 = vld [vmem:[%s1231_s2 + $0xb0] sm:$0xff] }
  0x16   :  { %v77_v3 = vld [vmem:[%s1231_s2 + $0xb8] sm:$0xff]  ;;  %v79_v5 = vld [vmem:[%s1231_s2 + $0xc8] sm:$0xff]  ;;  %v78_v6 = vld [vmem:[%s1231_s2 + $0xc0] sm:$0xff] }
  0x17   :  { %133 = vperm.xlu1 %799, %v63_v27   ;;  %128 = vperm.xlu0 %798, %v62_v28   ;;  %v81_v7 = vld [vmem:[%s1231_s2 + $0xd8] sm:$0xff]  ;;  %v80_v8 = vld [vmem:[%s1231_s2 + $0xd0] sm:$0xff]  ;;  %v83_v9 = vld [vmem:[%s1231_s2 + $0xe8] sm:$0xff] }
  0x18   :  { %729 = vmatmul.mubr.msk.f32.gmra.mrb[2].mxu0 %vm246_vm0, %v17_v29  ;;  %753 = vmatmul.mubr.msk.f32.gmra.mrb[2].mxu1 %vm246_vm0, %v33_v30  ;;  %v82_v10 = vld [vmem:[%s1231_s2 + $0xe0] sm:$0xff]  ;;  %v85_v11 = vld [vmem:[%s1231_s2 + $0xf8] sm:$0xff]  ;;  %v84_v12 = vld [vmem:[%s1231_s2 + $0xf0] sm:$0xff] }
  0x19   :  { %731 = vmatprep.mubr.msk.f32.mxu0 %vm246_vm0, %v18_v31  ;;  %755 = vmatprep.mubr.msk.f32.mxu1 %vm246_vm0, %v34_v32 }
  0x1b   :  { %143 = vperm.xlu1 %799, %v65_v33   ;;  %138 = vperm.xlu0 %798, %v64_v34  }
  0x1c   :  { %732 = vmatmul.mubr.msk.f32.gmra.mrb[4].mxu0 %vm246_vm0, %v19_v35  ;;  %756 = vmatmul.mubr.msk.f32.gmra.mrb[4].mxu1 %vm246_vm0, %v35_v36 }
  0x1d   :  { %734 = vmatprep.mubr.msk.f32.mxu0 %vm246_vm0, %v20_v37  ;;  %758 = vmatprep.mubr.msk.f32.mxu1 %vm246_vm0, %v36_v38 }
  0x1f   :  { %153 = vperm.xlu1 %799, %v67_v39   ;;  %148 = vperm.xlu0 %798, %v66_v40  }
  0x20   :  { %735 = vmatmul.mubr.msk.f32.gmra.mrb[6].mxu0 %vm246_vm0, %v21_v41  ;;  %759 = vmatmul.mubr.msk.f32.gmra.mrb[6].mxu1 %vm246_vm0, %v37_v42 }
  0x21   :  { %737 = vmatprep.mubr.msk.f32.mxu0 %vm246_vm0, %v22_v43  ;;  %761 = vmatprep.mubr.msk.f32.mxu1 %vm246_vm0, %v38_v44 }
  0x23   :  { %163 = vperm.xlu1 %799, %v69_v45   ;;  %158 = vperm.xlu0 %798, %v68_v46  }
  0x24   :  { %738 = vmatmul.mubr.msk.f32.gmra.mrb[8].mxu0 %vm246_vm0, %v23_v47  ;;  %762 = vmatmul.mubr.msk.f32.gmra.mrb[8].mxu1 %vm246_vm0, %v39_v48 }
  0x25   :  { %740 = vmatprep.mubr.msk.f32.mxu0 %vm246_vm0, %v24_v49  ;;  %764 = vmatprep.mubr.msk.f32.mxu1 %vm246_vm0, %v40_v50 }
  0x27   :  { %173 = vperm.xlu1 %799, %v71_v51   ;;  %168 = vperm.xlu0 %798, %v70_v52  }
  0x28   :  { %741 = vmatmul.mubr.msk.f32.gmra.mrb[10].mxu0 %vm246_vm0, %v25_v53  ;;  %765 = vmatmul.mubr.msk.f32.gmra.mrb[10].mxu1 %vm246_vm0, %v41_v54 }
  0x29   :  { %743 = vmatprep.mubr.msk.f32.mxu0 %vm246_vm0, %v26_v55  ;;  %767 = vmatprep.mubr.msk.f32.mxu1 %vm246_vm0, %v42_v56 }
  0x2b   :  { %183 = vperm.xlu1 %799, %v73_v57   ;;  %178 = vperm.xlu0 %798, %v72_v58  }
  0x2c   :  { %744 = vmatmul.mubr.msk.f32.gmra.mrb[12].mxu0 %vm246_vm0, %v27_v59  ;;  %768 = vmatmul.mubr.msk.f32.gmra.mrb[12].mxu1 %vm246_vm0, %v43_v60 }
  0x2d   :  { %746 = vmatprep.mubr.msk.f32.mxu0 %vm246_vm0, %v28_v61  ;;  %770 = vmatprep.mubr.msk.f32.mxu1 %vm246_vm0, %v44_v62 }
  0x2f   :  { %193 = vperm.xlu1 %799, %v75_v63   ;;  %188 = vperm.xlu0 %798, %v74_v0  }
  0x30   :  { %747 = vmatmul.mubr.msk.f32.gmra.mrb[14].mxu0 %vm246_vm0, %v29_v1  ;;  %771 = vmatmul.mubr.msk.f32.gmra.mrb[14].mxu1 %vm246_vm0, %v45_v2 }
  0x33   :  { %203 = vperm.xlu1 %799, %v77_v3   ;;  %198 = vperm.xlu0 %798, %v76_v4  }
  0x37   :  { %213 = vperm.xlu1 %799, %v79_v5   ;;  %208 = vperm.xlu0 %798, %v78_v6  }
  0x3b   :  { %223 = vperm.xlu1 %799, %v81_v7   ;;  %218 = vperm.xlu0 %798, %v80_v8  }
  0x3f   :  { %233 = vperm.xlu1 %799, %v83_v9   ;;  %228 = vperm.xlu0 %798, %v82_v10  }
  0x43   :  { %243 = vperm.xlu1 %799, %v85_v11   ;;  %238 = vperm.xlu0 %798, %v84_v12  }
  0x86   :  { %v99_v13 = vpop.permute.xlu1 %98  ;;  %v89_v14 = vpop.permute.xlu0 %88 }
  0x8a   :  { %v104_v15 = vpop.permute.xlu1 %103  ;;  %v94_v16 = vpop.permute.xlu0 %93 }
  0x8e   :  { %v114_v17 = vpop.permute.xlu1 %113  ;;  %v109_v18 = vpop.permute.xlu0 %108 }
  0x92   :  { %v1069_v19 = vpop.permute.xlu1 %123  ;;  %v1071_v20 = vpop.permute.xlu0 %118 }
  0x96   :  { %v1073_v21 = vpop.permute.xlu1 %133  ;;  %v1075_v22 = vpop.permute.xlu0 %128 }
  0x9a   :  { %v1077_v23 = vpop.permute.xlu1 %143  ;;  %v1079_v24 = vpop.permute.xlu0 %138 }
  0x9e   :  { %v1081_v25 = vpop.permute.xlu1 %153  ;;  %v1083_v26 = vpop.permute.xlu0 %148 }
  0xa2   :  { %v1085_v27 = vpop.permute.xlu1 %163  ;;  %v1087_v28 = vpop.permute.xlu0 %158 }
  0xa6   :  { %v174_v29 = vpop.permute.xlu1 %173  ;;  %v169_v30 = vpop.permute.xlu0 %168 }
  0xaa   :  { %v184_v31 = vpop.permute.xlu1 %183  ;;  %v179_v32 = vpop.permute.xlu0 %178 }
  0xae   :  { %v194_v33 = vpop.permute.xlu1 %193  ;;  %v189_v34 = vpop.permute.xlu0 %188 }
  0xb2   :  { %v204_v35 = vpop.permute.xlu1 %203  ;;  %v199_v36 = vpop.permute.xlu0 %198 }
  0xb6   :  { %v214_v45 = vpop.permute.xlu1 %213  ;;  %v1089_v46 = vpop.permute.xlu0 %208 }
  0xba   :  { %v224_v7 = vpop.permute.xlu1 %223  ;;  %v219_v8 = vpop.permute.xlu0 %218 }
  0xe7   :  { %v727_v37 = vpop.f32.mrb[0].mxu0  ;;  %v751_v38 = vpop.f32.mrb[0].mxu1 }
  0xe8   :  { %v415_v39 = vadd.f32 %v727_v37, %v94_v16  ;;  %v495_v40 = vadd.f32 %v751_v38, %v174_v29  ;;  %v409_v41 = vpop.f32.mrb[1].mxu0  ;;  %v489_v42 = vpop.f32.mrb[1].mxu1 }
  0xe9   :  { %v410_v43 = vadd.f32 %v409_v41, %v89_v14  ;;  %v490_v44 = vadd.f32 %v489_v42, %v169_v30  ;;  %v234_v41 = vpop.permute.xlu1 %233  ;;  %v229_v42 = vpop.permute.xlu0 %228 }
  0xea   :  { %v569_v47 = vmax.f32 %v415_v39, 0.0  ;;  %v585_v48 = vmax.f32 %v495_v40, 0.0 }
  0xeb   :  { %v568_v49 = vmax.f32 %v410_v43, 0.0  ;;  %v584_v50 = vmax.f32 %v490_v44, 0.0  ;;  %v730_v51 = vpop.f32.mrb[2].mxu0  ;;  %v754_v52 = vpop.f32.mrb[2].mxu1 }
  0xec   :  { %602 = vst.msk [vmem:[%s1233_s3 + $0x8] sm:$0xff] %vm600_vm1, %v569_v47  ;;  %618 = vst.msk [vmem:[%s1233_s3 + $0x88] sm:$0xff] %vm600_vm1, %v585_v48  ;;  %v425_v53 = vadd.f32 %v730_v51, %v104_v15  ;;  %v505_v54 = vadd.f32 %v754_v52, %v184_v31  ;;  %v419_v55 = vpop.f32.mrb[3].mxu0  ;;  %v499_v56 = vpop.f32.mrb[3].mxu1 }
  0xed   :  { %601 = vst.msk [vmem:[%s1233_s3] sm:$0xff] %vm600_vm1, %v568_v49  ;;  %617 = vst.msk [vmem:[%s1233_s3 + $0x80] sm:$0xff] %vm600_vm1, %v584_v50  ;;  %v420_v57 = vadd.f32 %v419_v55, %v99_v13  ;;  %v500_v58 = vadd.f32 %v499_v56, %v179_v32 }
  0xee   :  { %v571_v59 = vmax.f32 %v425_v53, 0.0  ;;  %v587_v60 = vmax.f32 %v505_v54, 0.0 }
  0xef   :  { %v570_v61 = vmax.f32 %v420_v57, 0.0  ;;  %v586_v62 = vmax.f32 %v500_v58, 0.0  ;;  %v733_v63 = vpop.f32.mrb[4].mxu0  ;;  %v757_v0 = vpop.f32.mrb[4].mxu1 }
  0xf0   :  { %604 = vst.msk [vmem:[%s1233_s3 + $0x18] sm:$0xff] %vm600_vm1, %v571_v59  ;;  %620 = vst.msk [vmem:[%s1233_s3 + $0x98] sm:$0xff] %vm600_vm1, %v587_v60  ;;  %v435_v1 = vadd.f32 %v733_v63, %v114_v17  ;;  %v515_v2 = vadd.f32 %v757_v0, %v194_v33  ;;  %v429_v3 = vpop.f32.mrb[5].mxu0  ;;  %v509_v4 = vpop.f32.mrb[5].mxu1 }
  0xf1   :  { %603 = vst.msk [vmem:[%s1233_s3 + $0x10] sm:$0xff] %vm600_vm1, %v570_v61  ;;  %619 = vst.msk [vmem:[%s1233_s3 + $0x90] sm:$0xff] %vm600_vm1, %v586_v62  ;;  %v430_v5 = vadd.f32 %v429_v3, %v109_v18  ;;  %v510_v6 = vadd.f32 %v509_v4, %v189_v34  ;;  %v244_v63 = vpop.permute.xlu1 %243  ;;  %v239_v0 = vpop.permute.xlu0 %238 }
  0xf2   :  { %v573_v9 = vmax.f32 %v435_v1, 0.0  ;;  %v589_v10 = vmax.f32 %v515_v2, 0.0 }
  0xf3   :  { %v572_v11 = vmax.f32 %v430_v5, 0.0  ;;  %v588_v12 = vmax.f32 %v510_v6, 0.0  ;;  %v736_v13 = vpop.f32.mrb[6].mxu0  ;;  %v760_v14 = vpop.f32.mrb[6].mxu1 }
  0xf4   :  { %606 = vst.msk [vmem:[%s1233_s3 + $0x28] sm:$0xff] %vm600_vm1, %v573_v9  ;;  %622 = vst.msk [vmem:[%s1233_s3 + $0xa8] sm:$0xff] %vm600_vm1, %v589_v10  ;;  %v445_v15 = vadd.f32 %v736_v13, %v1069_v19  ;;  %v525_v16 = vadd.f32 %v760_v14, %v204_v35  ;;  %v439_v17 = vpop.f32.mrb[7].mxu0  ;;  %v519_v18 = vpop.f32.mrb[7].mxu1 }
  0xf5   :  { %605 = vst.msk [vmem:[%s1233_s3 + $0x20] sm:$0xff] %vm600_vm1, %v572_v11  ;;  %621 = vst.msk [vmem:[%s1233_s3 + $0xa0] sm:$0xff] %vm600_vm1, %v588_v12  ;;  %v440_v29 = vadd.f32 %v439_v17, %v1071_v20  ;;  %v520_v30 = vadd.f32 %v519_v18, %v199_v36 }
  0xf6   :  { %v575_v31 = vmax.f32 %v445_v15, 0.0  ;;  %v591_v32 = vmax.f32 %v525_v16, 0.0 }
  0xf7   :  { %v574_v33 = vmax.f32 %v440_v29, 0.0  ;;  %v590_v19 = vmax.f32 %v520_v30, 0.0  ;;  %v739_v34 = vpop.f32.mrb[8].mxu0  ;;  %v763_v35 = vpop.f32.mrb[8].mxu1 }
  0xf8   :  { %608 = vst.msk [vmem:[%s1233_s3 + $0x38] sm:$0xff] %vm600_vm1, %v575_v31  ;;  %624 = vst.msk [vmem:[%s1233_s3 + $0xb8] sm:$0xff] %vm600_vm1, %v591_v32  ;;  %v455_v37 = vadd.f32 %v739_v34, %v1073_v21  ;;  %v535_v20 = vadd.f32 %v763_v35, %v214_v45  ;;  %v449_v36 = vpop.f32.mrb[9].mxu0  ;;  %v529_v38 = vpop.f32.mrb[9].mxu1 }
  0xf9   :  { %607 = vst.msk [vmem:[%s1233_s3 + $0x30] sm:$0xff] %vm600_vm1, %v574_v33  ;;  %623 = vst.msk [vmem:[%s1233_s3 + $0xb0] sm:$0xff] %vm600_vm1, %v590_v19  ;;  %v450_v39 = vadd.f32 %v449_v36, %v1075_v22  ;;  %v530_v40 = vadd.f32 %v529_v38, %v1089_v46 }
  0xfa   :  { %v577_v21 = vmax.f32 %v455_v37, 0.0  ;;  %v593_v43 = vmax.f32 %v535_v20, 0.0 }
  0xfb   :  { %v576_v44 = vmax.f32 %v450_v39, 0.0  ;;  %v592_v45 = vmax.f32 %v530_v40, 0.0  ;;  %v742_v47 = vpop.f32.mrb[10].mxu0  ;;  %v766_v48 = vpop.f32.mrb[10].mxu1 }
  0xfc   :  { %610 = vst.msk [vmem:[%s1233_s3 + $0x48] sm:$0xff] %vm600_vm1, %v577_v21  ;;  %626 = vst.msk [vmem:[%s1233_s3 + $0xc8] sm:$0xff] %vm600_vm1, %v593_v43  ;;  %v465_v22 = vadd.f32 %v742_v47, %v1077_v23  ;;  %v545_v46 = vadd.f32 %v766_v48, %v224_v7  ;;  %v459_v49 = vpop.f32.mrb[11].mxu0  ;;  %v539_v50 = vpop.f32.mrb[11].mxu1 }
  0xfd   :  { %609 = vst.msk [vmem:[%s1233_s3 + $0x40] sm:$0xff] %vm600_vm1, %v576_v44  ;;  %625 = vst.msk [vmem:[%s1233_s3 + $0xc0] sm:$0xff] %vm600_vm1, %v592_v45  ;;  %v460_v51 = vadd.f32 %v459_v49, %v1079_v24  ;;  %v540_v52 = vadd.f32 %v539_v50, %v219_v8 }
  0xfe   :  { %v579_v53 = vmax.f32 %v465_v22, 0.0  ;;  %v595_v54 = vmax.f32 %v545_v46, 0.0 }
  0xff   :  { %v578_v55 = vmax.f32 %v460_v51, 0.0  ;;  %v594_v23 = vmax.f32 %v540_v52, 0.0  ;;  %v745_v56 = vpop.f32.mrb[12].mxu0  ;;  %v769_v57 = vpop.f32.mrb[12].mxu1 }
 0x100   :  { %612 = vst.msk [vmem:[%s1233_s3 + $0x58] sm:$0xff] %vm600_vm1, %v579_v53  ;;  %628 = vst.msk [vmem:[%s1233_s3 + $0xd8] sm:$0xff] %vm600_vm1, %v595_v54  ;;  %v475_v58 = vadd.f32 %v745_v56, %v1081_v25  ;;  %v555_v24 = vadd.f32 %v769_v57, %v234_v41  ;;  %v469_v59 = vpop.f32.mrb[13].mxu0  ;;  %v549_v60 = vpop.f32.mrb[13].mxu1 }
 0x101   :  { %611 = vst.msk [vmem:[%s1233_s3 + $0x50] sm:$0xff] %vm600_vm1, %v578_v55  ;;  %627 = vst.msk [vmem:[%s1233_s3 + $0xd0] sm:$0xff] %vm600_vm1, %v594_v23  ;;  %v470_v61 = vadd.f32 %v469_v59, %v1083_v26  ;;  %v550_v62 = vadd.f32 %v549_v60, %v229_v42 }
 0x102   :  { %v581_v1 = vmax.f32 %v475_v58, 0.0  ;;  %v597_v25 = vmax.f32 %v555_v24, 0.0 }
 0x103   :  { %v580_v2 = vmax.f32 %v470_v61, 0.0  ;;  %v596_v3 = vmax.f32 %v550_v62, 0.0  ;;  %v748_v4 = vpop.f32.mrb[14].mxu0  ;;  %v772_v5 = vpop.f32.mrb[14].mxu1 }
 0x104   :  { %614 = vst.msk [vmem:[%s1233_s3 + $0x68] sm:$0xff] %vm600_vm1, %v581_v1  ;;  %630 = vst.msk [vmem:[%s1233_s3 + $0xe8] sm:$0xff] %vm600_vm1, %v597_v25  ;;  %v485_v26 = vadd.f32 %v748_v4, %v1085_v27  ;;  %v565_v6 = vadd.f32 %v772_v5, %v244_v63  ;;  %v479_v7 = vpop.f32.mrb[15].mxu0  ;;  %v559_v8 = vpop.f32.mrb[15].mxu1 }
 0x105   :  { %613 = vst.msk [vmem:[%s1233_s3 + $0x60] sm:$0xff] %vm600_vm1, %v580_v2  ;;  %629 = vst.msk [vmem:[%s1233_s3 + $0xe0] sm:$0xff] %vm600_vm1, %v596_v3  ;;  %v480_v9 = vadd.f32 %v479_v7, %v1087_v28  ;;  %v560_v10 = vadd.f32 %v559_v8, %v239_v0 }
 0x106   :  { %v583_v11 = vmax.f32 %v485_v26, 0.0  ;;  %v599_v12 = vmax.f32 %v565_v6, 0.0 }
 0x107   :  { %v582_v13 = vmax.f32 %v480_v9, 0.0  ;;  %v598_v27 = vmax.f32 %v560_v10, 0.0 }
 0x108   :  { %616 = vst.msk [vmem:[%s1233_s3 + $0x78] sm:$0xff] %vm600_vm1, %v583_v11  ;;  %632 = vst.msk [vmem:[%s1233_s3 + $0xf8] sm:$0xff] %vm600_vm1, %v599_v12 }
 0x109   :  { %615 = vst.msk [vmem:[%s1233_s3 + $0x70] sm:$0xff] %vm600_vm1, %v582_v13  ;;  %631 = vst.msk [vmem:[%s1233_s3 + $0xf0] sm:$0xff] %vm600_vm1, %v598_v27 }

// kernel: forward.19
= control target key start
LH: loop header
LB: loop body
LE: loop exit
PB: predicated region body
PF: predicated region fallthrough
CT: control target
= control target key end

     0   :  { %v472_v3 = vmov 0   ;;  %vm134_vm0 = vcmask 523264   ;;  %vm344_vm1 = vcmask 408576   ;;  %s696_s1 = inlined_call_operand.vmem [shape: f32[64,50], index: 1, kind: input, shape index: {}]   ;;  %s697_s0 = inlined_call_operand.vmem [shape: f32[128,64], index: 0, kind: input, shape index: {}]   ;;  %s698_s2 = inlined_call_operand.vmem [shape: f32[128,1], index: 2, kind: input, shape index: {}]   ;;  %s699_s3 = inlined_call_operand.vmem [shape: f32[128,50], index: 3, kind: output, shape index: {}]  }
   0x1   :  { %v30_v0 = vld [vmem:[%s696_s1] sm:$0xff]  ;;  %v31_v1 = vld [vmem:[%s696_s1 + $0x8] sm:$0xff]  ;;  %v32_v2 = vld [vmem:[%s696_s1 + $0x10] sm:$0xff]  ;;  %471 = vset.pattern.permute.xlu1 %v472_v3  ;;  %470 = vset.pattern.permute.xlu0 %v472_v3 }
   0x2   :  { %v445_v4 = vpack.c.bf16 %v31_v1, %v30_v0  ;;  %v33_v5 = vld [vmem:[%s696_s1 + $0x18] sm:$0xff]  ;;  %v34_v7 = vld [vmem:[%s696_s1 + $0x20] sm:$0xff]  ;;  %v35_v8 = vld [vmem:[%s696_s1 + $0x28] sm:$0xff] }
   0x3   :  { %v449_v6 = vpack.c.bf16 %v33_v5, %v32_v2  ;;  %v14_v9 = vld [vmem:[%s697_s0] sm:$0xff]  ;;  %v453_v11 = vpack.c.bf16 %v35_v8, %v34_v7  ;;  %v36_v12 = vld [vmem:[%s696_s1 + $0x30] sm:$0xff]  ;;  %v37_v13 = vld [vmem:[%s696_s1 + $0x38] sm:$0xff] }
   0x4   :  { %446 = vmatprep.subr.bf16.mxu0 %v445_v4  ;;  %461 = vmatprep.subr.bf16.mxu1 %v445_v4  ;;  %v22_v10 = vld [vmem:[%s697_s0 + $0x40] sm:$0xff]  ;;  %v40_v14 = vld [vmem:[%s698_s2 + $0x10] sm:$0xff]  ;;  %v457_v16 = vpack.c.bf16 %v37_v13, %v36_v12  ;;  %v41_v17 = vld [vmem:[%s698_s2 + $0x18] sm:$0xff] }
   0x5   :  { %448 = vmatpush3.bf16.msra.mxu0 %v445_v4  ;;  %465 = vmatpush3.bf16.msra.mxu1 %v445_v4  ;;  %v38_v15 = vld [vmem:[%s698_s2] sm:$0xff]  ;;  %v39_v18 = vld [vmem:[%s698_s2 + $0x8] sm:$0xff]  ;;  %v16_v23 = vld [vmem:[%s697_s0 + $0x10] sm:$0xff] }
   0x6   :  { %450 = vmatprep.subr.bf16.mxu0 %v449_v6  ;;  %462 = vmatprep.subr.bf16.mxu1 %v449_v6  ;;  %v43_v19 = vld [vmem:[%s698_s2 + $0x28] sm:$0xff]  ;;  %v42_v20 = vld [vmem:[%s698_s2 + $0x20] sm:$0xff]  ;;  %v24_v24 = vld [vmem:[%s697_s0 + $0x50] sm:$0xff] }
   0x7   :  { %421 = vmatprep.mubr.msk.f32.mxu0 %vm134_vm0, %v14_v9  ;;  %433 = vmatprep.mubr.msk.f32.mxu1 %vm134_vm0, %v22_v10  ;;  %v15_v21 = vld [vmem:[%s697_s0 + $0x8] sm:$0xff]  ;;  %v45_v25 = vld [vmem:[%s698_s2 + $0x38] sm:$0xff]  ;;  %v44_v26 = vld [vmem:[%s698_s2 + $0x30] sm:$0xff] }
   0x8   :  { %66 = vperm.xlu1 %471, %v40_v14   ;;  %56 = vperm.xlu0 %470, %v38_v15   ;;  %v23_v22 = vld [vmem:[%s697_s0 + $0x48] sm:$0xff]  ;;  %v17_v27 = vld [vmem:[%s697_s0 + $0x18] sm:$0xff]  ;;  %v18_v29 = vld [vmem:[%s697_s0 + $0x20] sm:$0xff] }
   0x9   :  { %452 = vmatpush3.bf16.msra.mxu0 %v449_v6  ;;  %466 = vmatpush3.bf16.msra.mxu1 %v449_v6  ;;  %v25_v28 = vld [vmem:[%s697_s0 + $0x58] sm:$0xff]  ;;  %v26_v30 = vld [vmem:[%s697_s0 + $0x60] sm:$0xff]  ;;  %v47_v31 = vld [vmem:[%s698_s2 + $0x48] sm:$0xff] }
   0xa   :  { %454 = vmatprep.subr.bf16.mxu0 %v453_v11  ;;  %463 = vmatprep.subr.bf16.mxu1 %v453_v11  ;;  %v46_v32 = vld [vmem:[%s698_s2 + $0x40] sm:$0xff]  ;;  %v19_v33 = vld [vmem:[%s697_s0 + $0x28] sm:$0xff]  ;;  %v20_v35 = vld [vmem:[%s697_s0 + $0x30] sm:$0xff] }
   0xb   :  { %v27_v34 = vld [vmem:[%s697_s0 + $0x68] sm:$0xff]  ;;  %v28_v36 = vld [vmem:[%s697_s0 + $0x70] sm:$0xff]  ;;  %v49_v37 = vld [vmem:[%s698_s2 + $0x58] sm:$0xff] }
   0xc   :  { %71 = vperm.xlu1 %471, %v41_v17   ;;  %61 = vperm.xlu0 %470, %v39_v18   ;;  %v48_v38 = vld [vmem:[%s698_s2 + $0x50] sm:$0xff]  ;;  %v21_v39 = vld [vmem:[%s697_s0 + $0x38] sm:$0xff]  ;;  %v51_v41 = vld [vmem:[%s698_s2 + $0x68] sm:$0xff] }
   0xd   :  { %456 = vmatpush3.bf16.msra.mxu0 %v453_v11  ;;  %467 = vmatpush3.bf16.msra.mxu1 %v453_v11  ;;  %v29_v40 = vld [vmem:[%s697_s0 + $0x78] sm:$0xff]  ;;  %v50_v42 = vld [vmem:[%s698_s2 + $0x60] sm:$0xff]  ;;  %v52_v44 = vld [vmem:[%s698_s2 + $0x70] sm:$0xff] }
   0xe   :  { %458 = vmatprep.subr.bf16.mxu0 %v457_v16  ;;  %464 = vmatprep.subr.bf16.mxu1 %v457_v16  ;;  %v53_v43 = vld [vmem:[%s698_s2 + $0x78] sm:$0xff] }
  0x10   :  { %81 = vperm.xlu1 %471, %v43_v19   ;;  %76 = vperm.xlu0 %470, %v42_v20  }
  0x11   :  { %460 = vmatpush3.bf16.msra.mxu0 %v457_v16  ;;  %468 = vmatpush3.bf16.msra.mxu1 %v457_v16 }
  0x14   :  { %422 = vmatmul.mubr.msk.f32.vlgmr.msra.gmra.mrb[0].mxu0 %vm134_vm0, %v15_v21  ;;  %434 = vmatmul.mubr.msk.f32.vlgmr.msra.gmra.mrb[0].mxu1 %vm134_vm0, %v23_v22 }
  0x15   :  { %424 = vmatprep.mubr.msk.f32.mxu0 %vm134_vm0, %v16_v23  ;;  %436 = vmatprep.mubr.msk.f32.mxu1 %vm134_vm0, %v24_v24 }
  0x16   :  { %91 = vperm.xlu1 %471, %v45_v25   ;;  %86 = vperm.xlu0 %470, %v44_v26  }
  0x18   :  { %425 = vmatmul.mubr.msk.f32.gmra.mrb[2].mxu0 %vm134_vm0, %v17_v27  ;;  %437 = vmatmul.mubr.msk.f32.gmra.mrb[2].mxu1 %vm134_vm0, %v25_v28 }
  0x19   :  { %427 = vmatprep.mubr.msk.f32.mxu0 %vm134_vm0, %v18_v29  ;;  %439 = vmatprep.mubr.msk.f32.mxu1 %vm134_vm0, %v26_v30 }
  0x1a   :  { %101 = vperm.xlu1 %471, %v47_v31   ;;  %96 = vperm.xlu0 %470, %v46_v32  }
  0x1c   :  { %428 = vmatmul.mubr.msk.f32.gmra.mrb[4].mxu0 %vm134_vm0, %v19_v33  ;;  %440 = vmatmul.mubr.msk.f32.gmra.mrb[4].mxu1 %vm134_vm0, %v27_v34 }
  0x1d   :  { %430 = vmatprep.mubr.msk.f32.mxu0 %vm134_vm0, %v20_v35  ;;  %442 = vmatprep.mubr.msk.f32.mxu1 %vm134_vm0, %v28_v36 }
  0x1e   :  { %111 = vperm.xlu1 %471, %v49_v37   ;;  %106 = vperm.xlu0 %470, %v48_v38  }
  0x20   :  { %431 = vmatmul.mubr.msk.f32.gmra.mrb[6].mxu0 %vm134_vm0, %v21_v39  ;;  %443 = vmatmul.mubr.msk.f32.gmra.mrb[6].mxu1 %vm134_vm0, %v29_v40 }
  0x22   :  { %121 = vperm.xlu1 %471, %v51_v41   ;;  %116 = vperm.xlu0 %470, %v50_v42  }
  0x26   :  { %131 = vperm.xlu1 %471, %v53_v43   ;;  %126 = vperm.xlu0 %470, %v52_v44  }
  0x87   :  { %v67_v45 = vpop.permute.xlu1 %66  ;;  %v57_v46 = vpop.permute.xlu0 %56 }
  0x8b   :  { %v72_v47 = vpop.permute.xlu1 %71  ;;  %v62_v48 = vpop.permute.xlu0 %61 }
  0x8f   :  { %v82_v49 = vpop.permute.xlu1 %81  ;;  %v77_v50 = vpop.permute.xlu0 %76 }
  0x95   :  { %v92_v51 = vpop.permute.xlu1 %91  ;;  %v629_v52 = vpop.permute.xlu0 %86 }
  0x99   :  { %v102_v53 = vpop.permute.xlu1 %101  ;;  %v97_v54 = vpop.permute.xlu0 %96 }
  0x9d   :  { %v112_v55 = vpop.permute.xlu1 %111  ;;  %v107_v56 = vpop.permute.xlu0 %106 }
  0xa1   :  { %v122_v1 = vpop.permute.xlu1 %121  ;;  %v117_v2 = vpop.permute.xlu0 %116 }
  0xa5   :  { %v132_v27 = vpop.permute.xlu1 %131  ;;  %v127_v28 = vpop.permute.xlu0 %126 }
  0xe7   :  { %v423_v57 = vpop.f32.mrb[0].mxu0  ;;  %v435_v58 = vpop.f32.mrb[0].mxu1 }
  0xe8   :  { %v255_v59 = vadd.f32 %v423_v57, %v62_v48  ;;  %v295_v60 = vadd.f32 %v435_v58, %v102_v53  ;;  %v249_v61 = vpop.f32.mrb[1].mxu0  ;;  %v289_v62 = vpop.f32.mrb[1].mxu1 }
  0xe9   :  { %v250_v63 = vadd.f32 %v249_v61, %v57_v46  ;;  %v290_v0 = vadd.f32 %v289_v62, %v97_v54 }
  0xea   :  { %v329_v3 = vmax.f32 %v255_v59, 0.0  ;;  %v337_v4 = vmax.f32 %v295_v60, 0.0 }
  0xeb   :  { %v328_v5 = vmax.f32 %v250_v63, 0.0  ;;  %v336_v6 = vmax.f32 %v290_v0, 0.0  ;;  %v426_v7 = vpop.f32.mrb[2].mxu0  ;;  %v438_v8 = vpop.f32.mrb[2].mxu1 }
  0xec   :  { %346 = vst.msk [vmem:[%s699_s3 + $0x8] sm:$0xff] %vm344_vm1, %v329_v3  ;;  %354 = vst.msk [vmem:[%s699_s3 + $0x48] sm:$0xff] %vm344_vm1, %v337_v4  ;;  %v265_v9 = vadd.f32 %v426_v7, %v72_v47  ;;  %v305_v10 = vadd.f32 %v438_v8, %v112_v55  ;;  %v259_v11 = vpop.f32.mrb[3].mxu0  ;;  %v299_v12 = vpop.f32.mrb[3].mxu1 }
  0xed   :  { %345 = vst.msk [vmem:[%s699_s3] sm:$0xff] %vm344_vm1, %v328_v5  ;;  %353 = vst.msk [vmem:[%s699_s3 + $0x40] sm:$0xff] %vm344_vm1, %v336_v6  ;;  %v260_v13 = vadd.f32 %v259_v11, %v67_v45  ;;  %v300_v14 = vadd.f32 %v299_v12, %v107_v56 }
  0xee   :  { %v331_v15 = vmax.f32 %v265_v9, 0.0  ;;  %v339_v16 = vmax.f32 %v305_v10, 0.0 }
  0xef   :  { %v330_v17 = vmax.f32 %v260_v13, 0.0  ;;  %v338_v18 = vmax.f32 %v300_v14, 0.0  ;;  %v429_v19 = vpop.f32.mrb[4].mxu0  ;;  %v441_v20 = vpop.f32.mrb[4].mxu1 }
  0xf0   :  { %348 = vst.msk [vmem:[%s699_s3 + $0x18] sm:$0xff] %vm344_vm1, %v331_v15  ;;  %356 = vst.msk [vmem:[%s699_s3 + $0x58] sm:$0xff] %vm344_vm1, %v339_v16  ;;  %v275_v21 = vadd.f32 %v429_v19, %v82_v49  ;;  %v315_v22 = vadd.f32 %v441_v20, %v122_v1  ;;  %v269_v23 = vpop.f32.mrb[5].mxu0  ;;  %v309_v24 = vpop.f32.mrb[5].mxu1 }
  0xf1   :  { %347 = vst.msk [vmem:[%s699_s3 + $0x10] sm:$0xff] %vm344_vm1, %v330_v17  ;;  %355 = vst.msk [vmem:[%s699_s3 + $0x50] sm:$0xff] %vm344_vm1, %v338_v18  ;;  %v270_v25 = vadd.f32 %v269_v23, %v77_v50  ;;  %v310_v26 = vadd.f32 %v309_v24, %v117_v2 }
  0xf2   :  { %v333_v29 = vmax.f32 %v275_v21, 0.0  ;;  %v341_v30 = vmax.f32 %v315_v22, 0.0 }
  0xf3   :  { %v332_v31 = vmax.f32 %v270_v25, 0.0  ;;  %v340_v32 = vmax.f32 %v310_v26, 0.0  ;;  %v432_v33 = vpop.f32.mrb[6].mxu0  ;;  %v444_v34 = vpop.f32.mrb[6].mxu1 }
  0xf4   :  { %350 = vst.msk [vmem:[%s699_s3 + $0x28] sm:$0xff] %vm344_vm1, %v333_v29  ;;  %358 = vst.msk [vmem:[%s699_s3 + $0x68] sm:$0xff] %vm344_vm1, %v341_v30  ;;  %v285_v35 = vadd.f32 %v432_v33, %v92_v51  ;;  %v325_v36 = vadd.f32 %v444_v34, %v132_v27  ;;  %v279_v37 = vpop.f32.mrb[7].mxu0  ;;  %v319_v38 = vpop.f32.mrb[7].mxu1 }
  0xf5   :  { %349 = vst.msk [vmem:[%s699_s3 + $0x20] sm:$0xff] %vm344_vm1, %v332_v31  ;;  %357 = vst.msk [vmem:[%s699_s3 + $0x60] sm:$0xff] %vm344_vm1, %v340_v32  ;;  %v280_v39 = vadd.f32 %v279_v37, %v629_v52  ;;  %v320_v40 = vadd.f32 %v319_v38, %v127_v28 }
  0xf6   :  { %v335_v41 = vmax.f32 %v285_v35, 0.0  ;;  %v343_v42 = vmax.f32 %v325_v36, 0.0 }
  0xf7   :  { %v334_v43 = vmax.f32 %v280_v39, 0.0  ;;  %v342_v44 = vmax.f32 %v320_v40, 0.0 }
  0xf8   :  { %352 = vst.msk [vmem:[%s699_s3 + $0x38] sm:$0xff] %vm344_vm1, %v335_v41  ;;  %360 = vst.msk [vmem:[%s699_s3 + $0x78] sm:$0xff] %vm344_vm1, %v343_v42 }
  0xf9   :  { %351 = vst.msk [vmem:[%s699_s3 + $0x30] sm:$0xff] %vm344_vm1, %v334_v43  ;;  %359 = vst.msk [vmem:[%s699_s3 + $0x70] sm:$0xff] %vm344_vm1, %v342_v44 }

// kernel: forward.20
= control target key start
LH: loop header
LB: loop body
LE: loop exit
PB: predicated region body
PF: predicated region fallthrough
CT: control target
= control target key end

     0   :  { %v277_v3 = vmov 0.0   ;;  %v278_v8 = vmov 0   ;;  %vm78_vm0 = vcmask 261120   ;;  %vm233_vm1 = vcmask 588800   ;;  %s435_s1 = inlined_call_operand.vmem [shape: f32[32,200], index: 1, kind: input, shape index: {}]   ;;  %s436_s2 = inlined_call_operand.vmem [shape: f32[64,1], index: 2, kind: input, shape index: {}]   ;;  %s437_s0 = inlined_call_operand.vmem [shape: f32[64,32], index: 0, kind: input, shape index: {}]   ;;  %s438_s3 = inlined_call_operand.vmem [shape: f32[64,200], index: 3, kind: output, shape index: {}]  }
   0x1   :  { %v23_v0 = vld [vmem:[%s435_s1 + $0x8] sm:$0xff]  ;;  %v25_v1 = vld [vmem:[%s435_s1 + $0x18] sm:$0xff]  ;;  %v22_v2 = vld [vmem:[%s435_s1] sm:$0xff]  ;;  %167 = vmatprep.mubr.f32.mxu0 %v277_v3  ;;  %191 = vmatprep.mubr.f32.mxu1 %v277_v3 }
   0x2   :  { %v261_v4 = vpack.c.bf16 %v25_v1, %v23_v0  ;;  %v24_v5 = vld [vmem:[%s435_s1 + $0x10] sm:$0xff]  ;;  %v27_v6 = vld [vmem:[%s435_s1 + $0x28] sm:$0xff]  ;;  %v29_v7 = vld [vmem:[%s435_s1 + $0x38] sm:$0xff]  ;;  %276 = vset.pattern.permute.xlu1 %v278_v8  ;;  %275 = vset.pattern.permute.xlu0 %v278_v8 }
   0x3   :  { %v263_v9 = vpack.c.bf16 %v24_v5, %v22_v2  ;;  %v265_v10 = vpack.c.bf16 %v29_v7, %v27_v6  ;;  %v26_v11 = vld [vmem:[%s435_s1 + $0x20] sm:$0xff]  ;;  %v28_v12 = vld [vmem:[%s435_s1 + $0x30] sm:$0xff]  ;;  %v33_v16 = vld [vmem:[%s436_s2 + $0x18] sm:$0xff] }
   0x4   :  { %262 = vmatprep.subr.bf16.mxu0 %v261_v4  ;;  %269 = vmatprep.subr.bf16.mxu1 %v261_v4  ;;  %v267_v13 = vpack.c.bf16 %v28_v12, %v26_v11  ;;  %v32_v14 = vld [vmem:[%s436_s2 + $0x10] sm:$0xff]  ;;  %v30_v15 = vld [vmem:[%s436_s2] sm:$0xff]  ;;  %v31_v17 = vld [vmem:[%s436_s2 + $0x8] sm:$0xff] }
   0x5   :  { %264 = vmatpush1.bf16.msra.mxu0 %v263_v9  ;;  %271 = vmatpush1.bf16.msra.mxu1 %v263_v9  ;;  %v14_v18 = vld [vmem:[%s437_s0] sm:$0xff]  ;;  %v35_v20 = vld [vmem:[%s436_s2 + $0x28] sm:$0xff]  ;;  %v37_v24 = vld [vmem:[%s436_s2 + $0x38] sm:$0xff] }
   0x6   :  { %266 = vmatprep.subr.bf16.mxu0 %v265_v10  ;;  %270 = vmatprep.subr.bf16.mxu1 %v265_v10  ;;  %v18_v19 = vld [vmem:[%s437_s0 + $0x20] sm:$0xff]  ;;  %v15_v22 = vld [vmem:[%s437_s0 + $0x8] sm:$0xff]  ;;  %v36_v25 = vld [vmem:[%s436_s2 + $0x30] sm:$0xff] }
   0x7   :  { %50 = vperm.xlu1 %276, %v32_v14   ;;  %40 = vperm.xlu0 %275, %v30_v15   ;;  %v34_v21 = vld [vmem:[%s436_s2 + $0x20] sm:$0xff]  ;;  %v19_v23 = vld [vmem:[%s437_s0 + $0x28] sm:$0xff]  ;;  %v16_v26 = vld [vmem:[%s437_s0 + $0x10] sm:$0xff] }
   0x8   :  { %v20_v27 = vld [vmem:[%s437_s0 + $0x30] sm:$0xff]  ;;  %v17_v28 = vld [vmem:[%s437_s0 + $0x18] sm:$0xff] }
   0x9   :  { %268 = vmatpush1.bf16.msra.mxu0 %v267_v13  ;;  %272 = vmatpush1.bf16.msra.mxu1 %v267_v13  ;;  %v21_v29 = vld [vmem:[%s437_s0 + $0x38] sm:$0xff] }
   0xb   :  { %55 = vperm.xlu1 %276, %v33_v16   ;;  %45 = vperm.xlu0 %275, %v31_v17  }
   0xc   :  { %253 = vmatmul.mubr.msk.f32.vlgmr.msra.gmra.mrb[0].mxu0 %vm78_vm0, %v14_v18  ;;  %257 = vmatmul.mubr.msk.f32.vlgmr.msra.gmra.mrb[0].mxu1 %vm78_vm0, %v18_v19 }
   0xd   :  { %173 = vmatprep.mubr.f32.mxu0 %v277_v3  ;;  %197 = vmatprep.mubr.f32.mxu1 %v277_v3 }
   0xf   :  { %65 = vperm.xlu1 %276, %v35_v20   ;;  %60 = vperm.xlu0 %275, %v34_v21  }
  0x10   :  { %254 = vmatmul.mubr.msk.f32.gmra.mrb[2].mxu0 %vm78_vm0, %v15_v22  ;;  %258 = vmatmul.mubr.msk.f32.gmra.mrb[2].mxu1 %vm78_vm0, %v19_v23 }
  0x11   :  { %179 = vmatprep.mubr.f32.mxu0 %v277_v3  ;;  %203 = vmatprep.mubr.f32.mxu1 %v277_v3 }
  0x13   :  { %75 = vperm.xlu1 %276, %v37_v24   ;;  %70 = vperm.xlu0 %275, %v36_v25  }
  0x14   :  { %255 = vmatmul.mubr.msk.f32.gmra.mrb[4].mxu0 %vm78_vm0, %v16_v26  ;;  %259 = vmatmul.mubr.msk.f32.gmra.mrb[4].mxu1 %vm78_vm0, %v20_v27 }
  0x15   :  { %185 = vmatprep.mubr.f32.mxu0 %v277_v3  ;;  %209 = vmatprep.mubr.f32.mxu1 %v277_v3 }
  0x18   :  { %256 = vmatmul.mubr.msk.f32.gmra.mrb[6].mxu0 %vm78_vm0, %v17_v28  ;;  %260 = vmatmul.mubr.msk.f32.gmra.mrb[6].mxu1 %vm78_vm0, %v21_v29 }
  0x86   :  { %v41_v30 = vpop.permute.xlu0 %40  ;;  %v51_v31 = vpop.permute.xlu1 %50 }
  0x8a   :  { %v46_v32 = vpop.permute.xlu0 %45  ;;  %v56_v33 = vpop.permute.xlu1 %55 }
  0x8e   :  { %v61_v34 = vpop.permute.xlu0 %60  ;;  %v66_v43 = vpop.permute.xlu1 %65 }
  0x92   :  { %v71_v56 = vpop.permute.xlu0 %70  ;;  %v76_v5 = vpop.permute.xlu1 %75 }
  0xdf   :  { %v169_v35 = vpop.f32.mrb[0].mxu0  ;;  %v193_v36 = vpop.f32.mrb[0].mxu1 }
  0xe0   :  { %v170_v37 = vadd.f32 %v169_v35, %v41_v30  ;;  %v194_v38 = vadd.f32 %v193_v36, %v61_v34  ;;  %v171_v39 = vpop.f32.mrb[1].mxu0  ;;  %v195_v40 = vpop.f32.mrb[1].mxu1 }
  0xe1   :  { %v172_v41 = vadd.f32 %v171_v39, %v41_v30  ;;  %v196_v42 = vadd.f32 %v195_v40, %v61_v34 }
  0xe2   :  { %v216_v44 = vmax.f32 %v170_v37, 0.0  ;;  %v224_v45 = vmax.f32 %v194_v38, 0.0 }
  0xe3   :  { %v217_v46 = vmax.f32 %v172_v41, 0.0  ;;  %v225_v47 = vmax.f32 %v196_v42, 0.0  ;;  %v175_v48 = vpop.f32.mrb[2].mxu0  ;;  %v199_v49 = vpop.f32.mrb[2].mxu1 }
  0xe4   :  { %232 = vst [vmem:[%s438_s3] sm:$0xff] %v216_v44  ;;  %241 = vst [vmem:[%s438_s3 + $0x40] sm:$0xff] %v224_v45  ;;  %v176_v50 = vadd.f32 %v175_v48, %v46_v32  ;;  %v200_v51 = vadd.f32 %v199_v49, %v66_v43  ;;  %v177_v52 = vpop.f32.mrb[3].mxu0  ;;  %v201_v53 = vpop.f32.mrb[3].mxu1 }
  0xe5   :  { %234 = vst.msk [vmem:[%s438_s3 + $0x8] sm:$0xff] %vm233_vm1, %v217_v46  ;;  %242 = vst.msk [vmem:[%s438_s3 + $0x48] sm:$0xff] %vm233_vm1, %v225_v47  ;;  %v178_v54 = vadd.f32 %v177_v52, %v46_v32  ;;  %v202_v55 = vadd.f32 %v201_v53, %v66_v43 }
  0xe6   :  { %v218_v57 = vmax.f32 %v176_v50, 0.0  ;;  %v226_v58 = vmax.f32 %v200_v51, 0.0 }
  0xe7   :  { %v219_v59 = vmax.f32 %v178_v54, 0.0  ;;  %v227_v60 = vmax.f32 %v202_v55, 0.0  ;;  %v181_v61 = vpop.f32.mrb[4].mxu0  ;;  %v205_v62 = vpop.f32.mrb[4].mxu1 }
  0xe8   :  { %235 = vst [vmem:[%s438_s3 + $0x10] sm:$0xff] %v218_v57  ;;  %243 = vst [vmem:[%s438_s3 + $0x50] sm:$0xff] %v226_v58  ;;  %v182_v63 = vadd.f32 %v181_v61, %v51_v31  ;;  %v206_v0 = vadd.f32 %v205_v62, %v71_v56  ;;  %v183_v1 = vpop.f32.mrb[5].mxu0  ;;  %v207_v2 = vpop.f32.mrb[5].mxu1 }
  0xe9   :  { %236 = vst.msk [vmem:[%s438_s3 + $0x18] sm:$0xff] %vm233_vm1, %v219_v59  ;;  %244 = vst.msk [vmem:[%s438_s3 + $0x58] sm:$0xff] %vm233_vm1, %v227_v60  ;;  %v184_v3 = vadd.f32 %v183_v1, %v51_v31  ;;  %v208_v4 = vadd.f32 %v207_v2, %v71_v56 }
  0xea   :  { %v220_v6 = vmax.f32 %v182_v63, 0.0  ;;  %v228_v7 = vmax.f32 %v206_v0, 0.0 }
  0xeb   :  { %v221_v8 = vmax.f32 %v184_v3, 0.0  ;;  %v229_v9 = vmax.f32 %v208_v4, 0.0  ;;  %v187_v10 = vpop.f32.mrb[6].mxu0  ;;  %v211_v11 = vpop.f32.mrb[6].mxu1 }
  0xec   :  { %237 = vst [vmem:[%s438_s3 + $0x20] sm:$0xff] %v220_v6  ;;  %245 = vst [vmem:[%s438_s3 + $0x60] sm:$0xff] %v228_v7  ;;  %v188_v12 = vadd.f32 %v187_v10, %v56_v33  ;;  %v212_v13 = vadd.f32 %v211_v11, %v76_v5  ;;  %v189_v14 = vpop.f32.mrb[7].mxu0  ;;  %v213_v15 = vpop.f32.mrb[7].mxu1 }
  0xed   :  { %238 = vst.msk [vmem:[%s438_s3 + $0x28] sm:$0xff] %vm233_vm1, %v221_v8  ;;  %246 = vst.msk [vmem:[%s438_s3 + $0x68] sm:$0xff] %vm233_vm1, %v229_v9  ;;  %v190_v16 = vadd.f32 %v189_v14, %v56_v33  ;;  %v214_v17 = vadd.f32 %v213_v15, %v76_v5 }
  0xee   :  { %v222_v18 = vmax.f32 %v188_v12, 0.0  ;;  %v230_v19 = vmax.f32 %v212_v13, 0.0 }
  0xef   :  { %v223_v20 = vmax.f32 %v190_v16, 0.0  ;;  %v231_v21 = vmax.f32 %v214_v17, 0.0 }
  0xf0   :  { %239 = vst [vmem:[%s438_s3 + $0x30] sm:$0xff] %v222_v18  ;;  %247 = vst [vmem:[%s438_s3 + $0x70] sm:$0xff] %v230_v19 }
  0xf1   :  { %240 = vst.msk [vmem:[%s438_s3 + $0x38] sm:$0xff] %vm233_vm1, %v223_v20  ;;  %248 = vst.msk [vmem:[%s438_s3 + $0x78] sm:$0xff] %vm233_vm1, %v231_v21 }

// kernel: forward.21
= control target key start
LH: loop header
LB: loop body
LE: loop exit
PB: predicated region body
PF: predicated region fallthrough
CT: control target
= control target key end

     0   :  { %v536_v3 = vmov 0.0   ;;  %v537_v6 = vmov 0   ;;  %vm56_vm0 = vcmask 130048   ;;  %vm455_vm1 = vcmask 932864   ;;  %s776_s1 = inlined_call_operand.vmem [shape: f32[16,882], index: 1, kind: input, shape index: {}]   ;;  %s777_s0 = inlined_call_operand.vmem [shape: f32[32,16], index: 0, kind: input, shape index: {}]   ;;  %s778_s2 = inlined_call_operand.vmem [shape: f32[32,1], index: 2, kind: input, shape index: {}]   ;;  %s779_s3 = inlined_call_operand.vmem [shape: f32[32,882], index: 3, kind: output, shape index: {}]  }
   0x1   :  { %v19_v0 = vld [vmem:[%s776_s1 + $0x8] sm:$0xff]  ;;  %v26_v1 = vld [vmem:[%s776_s1 + $0x40] sm:$0xff]  ;;  %133 = vmatprep.mubr.f32.mxu0 %v536_v3  ;;  %151 = vmatprep.mubr.f32.mxu1 %v536_v3  ;;  %v25_v5 = vld [vmem:[%s776_s1 + $0x38] sm:$0xff] }
   0x2   :  { %v18_v2 = vld [vmem:[%s776_s1] sm:$0xff]  ;;  %v514_v4 = vpack.c.bf16 %v26_v1, %v19_v0  ;;  %535 = vset.pattern.permute.xlu1 %v537_v6  ;;  %534 = vset.pattern.permute.xlu0 %v537_v6  ;;  %v21_v9 = vld [vmem:[%s776_s1 + $0x18] sm:$0xff]  ;;  %v28_v10 = vld [vmem:[%s776_s1 + $0x50] sm:$0xff] }
   0x3   :  { %v516_v7 = vpack.c.bf16 %v25_v5, %v18_v2  ;;  %v14_v8 = vld [vmem:[%s777_s0] sm:$0xff]  ;;  %v23_v11 = vld [vmem:[%s776_s1 + $0x28] sm:$0xff]  ;;  %v518_v12 = vpack.c.bf16 %v28_v10, %v21_v9  ;;  %v20_v14 = vld [vmem:[%s776_s1 + $0x10] sm:$0xff] }
   0x4   :  { %515 = vmatprep.subr.bf16.mxu0 %v514_v4  ;;  %530 = vmatprep.subr.bf16.mxu1 %v514_v4  ;;  %v30_v13 = vld [vmem:[%s776_s1 + $0x60] sm:$0xff]  ;;  %v27_v15 = vld [vmem:[%s776_s1 + $0x48] sm:$0xff]  ;;  %v17_v16 = vld [vmem:[%s777_s0 + $0x18] sm:$0xff] }
   0x5   :  { %517 = vmatpush1.bf16.msra.mxu0 %v516_v7  ;;  %531 = vmatpush1.bf16.msra.mxu1 %v516_v7  ;;  %v522_v17 = vpack.c.bf16 %v30_v13, %v23_v11  ;;  %v520_v18 = vpack.c.bf16 %v27_v15, %v20_v14  ;;  %v22_v19 = vld [vmem:[%s776_s1 + $0x20] sm:$0xff]  ;;  %v29_v20 = vld [vmem:[%s776_s1 + $0x58] sm:$0xff]  ;;  %v24_v22 = vld [vmem:[%s776_s1 + $0x30] sm:$0xff] }
   0x6   :  { %519 = vmatprep.subr.bf16.mxu1 %v518_v12  ;;  %v524_v21 = vpack.c.bf16 %v29_v20, %v22_v19  ;;  %v31_v23 = vld [vmem:[%s776_s1 + $0x68] sm:$0xff]  ;;  %v34_v25 = vld [vmem:[%s778_s2 + $0x10] sm:$0xff]  ;;  %v32_v27 = vld [vmem:[%s778_s2] sm:$0xff] }
   0x7   :  { %523 = vmatprep.subr.bf16.mxu0 %v522_v17  ;;  %v526_v24 = vpack.c.bf16 %v31_v23, %v24_v22  ;;  %v15_v26 = vld [vmem:[%s777_s0 + $0x8] sm:$0xff]  ;;  %48 = vperm.xlu1 %535, %v34_v25   ;;  %v35_v28 = vld [vmem:[%s778_s2 + $0x18] sm:$0xff]  ;;  %v16_v29 = vld [vmem:[%s777_s0 + $0x10] sm:$0xff] }
   0x8   :  { %482 = vmatmul.mubr.msk.f32.vlgmr.msra.gmra.mrb[0].mxu0 %vm56_vm0, %v14_v8  ;;  %485 = vmatmul.mubr.msk.f32.vlgmr.msra.gmra.mrb[0].mxu1 %vm56_vm0, %v17_v16  ;;  %v33_v30 = vld [vmem:[%s778_s2 + $0x8] sm:$0xff] }
   0x9   :  { %521 = vmatpush1.bf16.msra.mxu1 %v520_v18  ;;  %525 = vmatpush1.bf16.msra.mxu0 %v524_v21 }
   0xa   :  { %139 = vmatprep.mubr.f32.mxu0 %v536_v3  ;;  %222 = vmatprep.mubr.f32.mxu1 %v536_v3 }
   0xb   :  { %527 = vmatprep.subr.bf16.mxu1 %v526_v24  ;;  %38 = vperm.xlu0 %534, %v32_v27  }
   0xc   :  { %483 = vmatmul.mubr.msk.f32.gmra.mrb[2].mxu0 %vm56_vm0, %v15_v26  ;;  %486 = vmatmul.mubr.msk.f32.vlgmr.msra.gmra.mrb[2].mxu1 %vm56_vm0, %v14_v8 }
   0xd   :  { %529 = vmatpush3.bf16.msra.mxu1 %v526_v24  ;;  %145 = vmatprep.mubr.f32.mxu0 %v536_v3 }
   0xe   :  { %228 = vmatprep.mubr.f32.mxu1 %v536_v3  ;;  %53 = vperm.xlu1 %535, %v35_v28  }
   0xf   :  { %43 = vperm.xlu0 %534, %v33_v30  }
  0x10   :  { %484 = vmatmul.mubr.msk.f32.gmra.mrb[4].mxu0 %vm56_vm0, %v16_v29  ;;  %487 = vmatmul.mubr.msk.f32.gmra.mrb[4].mxu1 %vm56_vm0, %v15_v26 }
  0x11   :  { %234 = vmatprep.mubr.f32.mxu1 %v536_v3  ;;  %311 = vmatprep.mubr.f32.mxu0 %v536_v3 }
  0x14   :  { %488 = vmatmul.mubr.msk.f32.gmra.mrb[6].mxu1 %vm56_vm0, %v16_v29  ;;  %490 = vmatmul.mubr.msk.f32.vlgmr.msra.gmra.mrb[6].mxu0 %vm56_vm0, %v14_v8 }
  0x15   :  { %240 = vmatprep.mubr.f32.mxu1 %v536_v3  ;;  %317 = vmatprep.mubr.f32.mxu0 %v536_v3 }
  0x18   :  { %489 = vmatmul.mubr.msk.f32.gmra.mrb[8].mxu1 %vm56_vm0, %v17_v16  ;;  %491 = vmatmul.mubr.msk.f32.gmra.mrb[8].mxu0 %vm56_vm0, %v15_v26 }
  0x19   :  { %323 = vmatprep.mubr.f32.mxu0 %v536_v3  ;;  %508 = vmatprep.mubr.msk.f32.mxu1 %vm56_vm0, %v14_v8 }
  0x1c   :  { %492 = vmatmul.mubr.msk.f32.gmra.mrb[10].mxu0 %vm56_vm0, %v16_v29  ;;  %509 = vmatmul.mubr.msk.f32.vlgmr.msra.gmra.mrb[10].mxu1 %vm56_vm0, %v15_v26 }
  0x1d   :  { %329 = vmatprep.mubr.f32.mxu0 %v536_v3  ;;  %511 = vmatprep.mubr.msk.f32.mxu1 %vm56_vm0, %v16_v29 }
  0x20   :  { %493 = vmatmul.mubr.msk.f32.gmra.mrb[12].mxu0 %vm56_vm0, %v17_v16  ;;  %512 = vmatmul.mubr.msk.f32.gmra.mrb[12].mxu1 %vm56_vm0, %v17_v16 }
  0x86   :  { %v652_v31 = vpop.permute.xlu1 %48 }
  0x8a   :  { %v654_v32 = vpop.permute.xlu0 %38 }
  0x8d   :  { %v656_v33 = vpop.permute.xlu1 %53 }
  0x8e   :  { %v662_v42 = vpop.permute.xlu0 %43 }
  0xdb   :  { %v135_v34 = vpop.f32.mrb[0].mxu0  ;;  %v153_v35 = vpop.f32.mrb[0].mxu1 }
  0xdc   :  { %v154_v36 = vadd.f32 %v153_v35, %v656_v33  ;;  %v136_v37 = vadd.f32 %v135_v34, %v654_v32  ;;  %v137_v38 = vpop.f32.mrb[1].mxu0  ;;  %v155_v39 = vpop.f32.mrb[1].mxu1 }
  0xdd   :  { %v138_v40 = vadd.f32 %v137_v38, %v654_v32  ;;  %v156_v41 = vadd.f32 %v155_v39, %v656_v33 }
  0xde   :  { %v442_v43 = vmax.f32 %v154_v36, 0.0  ;;  %v421_v44 = vmax.f32 %v136_v37, 0.0 }
  0xdf   :  { %v422_v45 = vmax.f32 %v138_v40, 0.0  ;;  %v443_v46 = vmax.f32 %v156_v41, 0.0  ;;  %v141_v47 = vpop.f32.mrb[2].mxu0  ;;  %v224_v48 = vpop.f32.mrb[2].mxu1 }
  0xe0   :  { %471 = vst [vmem:[%s779_s3 + $0xa8] sm:$0xff] %v442_v43  ;;  %449 = vst [vmem:[%s779_s3] sm:$0xff] %v421_v44  ;;  %v225_v49 = vadd.f32 %v224_v48, %v654_v32  ;;  %v142_v50 = vadd.f32 %v141_v47, %v662_v42  ;;  %v143_v51 = vpop.f32.mrb[3].mxu0  ;;  %v226_v52 = vpop.f32.mrb[3].mxu1 }
  0xe1   :  { %450 = vst [vmem:[%s779_s3 + $0x8] sm:$0xff] %v422_v45  ;;  %472 = vst [vmem:[%s779_s3 + $0xb0] sm:$0xff] %v443_v46  ;;  %v144_v53 = vadd.f32 %v143_v51, %v662_v42  ;;  %v227_v54 = vadd.f32 %v226_v52, %v654_v32 }
  0xe2   :  { %v423_v55 = vmax.f32 %v225_v49, 0.0  ;;  %v428_v56 = vmax.f32 %v142_v50, 0.0 }
  0xe3   :  { %v429_v57 = vmax.f32 %v144_v53, 0.0  ;;  %v424_v58 = vmax.f32 %v227_v54, 0.0  ;;  %v147_v59 = vpop.f32.mrb[4].mxu0  ;;  %v230_v60 = vpop.f32.mrb[4].mxu1 }
  0xe4   :  { %451 = vst [vmem:[%s779_s3 + $0x10] sm:$0xff] %v423_v55  ;;  %457 = vst [vmem:[%s779_s3 + $0x38] sm:$0xff] %v428_v56  ;;  %v148_v61 = vadd.f32 %v147_v59, %v652_v31  ;;  %v231_v62 = vadd.f32 %v230_v60, %v662_v42  ;;  %v149_v63 = vpop.f32.mrb[5].mxu0  ;;  %v232_v0 = vpop.f32.mrb[5].mxu1 }
  0xe5   :  { %458 = vst [vmem:[%s779_s3 + $0x40] sm:$0xff] %v429_v57  ;;  %452 = vst [vmem:[%s779_s3 + $0x18] sm:$0xff] %v424_v58  ;;  %v150_v1 = vadd.f32 %v149_v63, %v652_v31  ;;  %v233_v2 = vadd.f32 %v232_v0, %v662_v42 }
  0xe6   :  { %v435_v3 = vmax.f32 %v148_v61, 0.0  ;;  %v430_v4 = vmax.f32 %v231_v62, 0.0 }
  0xe7   :  { %v436_v5 = vmax.f32 %v150_v1, 0.0  ;;  %v431_v6 = vmax.f32 %v233_v2, 0.0  ;;  %v236_v7 = vpop.f32.mrb[6].mxu1  ;;  %v313_v8 = vpop.f32.mrb[6].mxu0 }
  0xe8   :  { %464 = vst [vmem:[%s779_s3 + $0x70] sm:$0xff] %v435_v3  ;;  %459 = vst [vmem:[%s779_s3 + $0x48] sm:$0xff] %v430_v4  ;;  %v237_v9 = vadd.f32 %v236_v7, %v652_v31  ;;  %v314_v10 = vadd.f32 %v313_v8, %v654_v32  ;;  %v238_v11 = vpop.f32.mrb[7].mxu1  ;;  %v315_v12 = vpop.f32.mrb[7].mxu0 }
  0xe9   :  { %465 = vst [vmem:[%s779_s3 + $0x78] sm:$0xff] %v436_v5  ;;  %460 = vst [vmem:[%s779_s3 + $0x50] sm:$0xff] %v431_v6  ;;  %v239_v13 = vadd.f32 %v238_v11, %v652_v31  ;;  %v316_v14 = vadd.f32 %v315_v12, %v654_v32 }
  0xea   :  { %v437_v15 = vmax.f32 %v237_v9, 0.0  ;;  %v425_v16 = vmax.f32 %v314_v10, 0.0 }
  0xeb   :  { %v438_v17 = vmax.f32 %v239_v13, 0.0  ;;  %v426_v18 = vmax.f32 %v316_v14, 0.0  ;;  %v242_v19 = vpop.f32.mrb[8].mxu1  ;;  %v319_v20 = vpop.f32.mrb[8].mxu0 }
  0xec   :  { %466 = vst [vmem:[%s779_s3 + $0x80] sm:$0xff] %v437_v15  ;;  %453 = vst [vmem:[%s779_s3 + $0x20] sm:$0xff] %v425_v16  ;;  %v243_v21 = vadd.f32 %v242_v19, %v656_v33  ;;  %v320_v22 = vadd.f32 %v319_v20, %v662_v42  ;;  %v244_v23 = vpop.f32.mrb[9].mxu1  ;;  %v321_v24 = vpop.f32.mrb[9].mxu0 }
  0xed   :  { %467 = vst [vmem:[%s779_s3 + $0x88] sm:$0xff] %v438_v17  ;;  %454 = vst [vmem:[%s779_s3 + $0x28] sm:$0xff] %v426_v18  ;;  %v245_v25 = vadd.f32 %v244_v23, %v656_v33  ;;  %v322_v26 = vadd.f32 %v321_v24, %v662_v42 }
  0xee   :  { %v444_v27 = vmax.f32 %v243_v21, 0.0  ;;  %v432_v28 = vmax.f32 %v320_v22, 0.0 }
  0xef   :  { %v445_v29 = vmax.f32 %v245_v25, 0.0  ;;  %v433_v30 = vmax.f32 %v322_v26, 0.0  ;;  %v325_v34 = vpop.f32.mrb[10].mxu0  ;;  %v510_v35 = vpop.f32.mrb[10].mxu1 }
  0xf0   :  { %473 = vst [vmem:[%s779_s3 + $0xb8] sm:$0xff] %v444_v27  ;;  %461 = vst [vmem:[%s779_s3 + $0x58] sm:$0xff] %v432_v28  ;;  %v326_v36 = vadd.f32 %v325_v34, %v652_v31  ;;  %v408_v37 = vadd.f32 %v510_v35, %v662_v42  ;;  %v327_v38 = vpop.f32.mrb[11].mxu0  ;;  %v402_v39 = vpop.f32.mrb[11].mxu1 }
  0xf1   :  { %474 = vst [vmem:[%s779_s3 + $0xc0] sm:$0xff] %v445_v29  ;;  %462 = vst [vmem:[%s779_s3 + $0x60] sm:$0xff] %v433_v30  ;;  %v328_v40 = vadd.f32 %v327_v38, %v652_v31  ;;  %v403_v41 = vadd.f32 %v402_v39, %v654_v32 }
  0xf2   :  { %v439_v43 = vmax.f32 %v326_v36, 0.0  ;;  %v434_v44 = vmax.f32 %v408_v37, 0.0 }
  0xf3   :  { %v440_v45 = vmax.f32 %v328_v40, 0.0  ;;  %v427_v46 = vmax.f32 %v403_v41, 0.0  ;;  %v331_v42 = vpop.f32.mrb[12].mxu0  ;;  %v513_v47 = vpop.f32.mrb[12].mxu1 }
  0xf4   :  { %468 = vst [vmem:[%s779_s3 + $0x90] sm:$0xff] %v439_v43  ;;  %463 = vst.msk [vmem:[%s779_s3 + $0x68] sm:$0xff] %vm455_vm1, %v434_v44  ;;  %v332_v48 = vadd.f32 %v331_v42, %v656_v33  ;;  %v418_v49 = vadd.f32 %v513_v47, %v656_v33  ;;  %v333_v32 = vpop.f32.mrb[13].mxu0  ;;  %v412_v50 = vpop.f32.mrb[13].mxu1 }
  0xf5   :  { %469 = vst [vmem:[%s779_s3 + $0x98] sm:$0xff] %v440_v45  ;;  %456 = vst.msk [vmem:[%s779_s3 + $0x30] sm:$0xff] %vm455_vm1, %v427_v46  ;;  %v334_v51 = vadd.f32 %v333_v32, %v656_v33  ;;  %v413_v52 = vadd.f32 %v412_v50, %v652_v31 }
  0xf6   :  { %v446_v53 = vmax.f32 %v332_v48, 0.0  ;;  %v448_v54 = vmax.f32 %v418_v49, 0.0 }
  0xf7   :  { %v447_v55 = vmax.f32 %v334_v51, 0.0  ;;  %v441_v56 = vmax.f32 %v413_v52, 0.0 }
  0xf8   :  { %475 = vst [vmem:[%s779_s3 + $0xc8] sm:$0xff] %v446_v53  ;;  %477 = vst.msk [vmem:[%s779_s3 + $0xd8] sm:$0xff] %vm455_vm1, %v448_v54 }
  0xf9   :  { %476 = vst [vmem:[%s779_s3 + $0xd0] sm:$0xff] %v447_v55  ;;  %470 = vst.msk [vmem:[%s779_s3 + $0xa0] sm:$0xff] %vm455_vm1, %v441_v56 }

// kernel: forward.22
= control target key start
LH: loop header
LB: loop body
LE: loop exit
PB: predicated region body
PF: predicated region fallthrough
CT: control target
= control target key end

     0   :  { %v1289_v3 = vmov 0.0   ;;  %vm56_vm0 = vcmask 64512   ;;  %v1290_v15 = vmov 0   ;;  %vm1224_vm1 = vcmask 588800   ;;  %s1725_s1 = inlined_call_operand.vmem [shape: f32[8,3528], index: 1, kind: input, shape index: {}]   ;;  %s1726_s0 = inlined_call_operand.vmem [shape: f32[16,8], index: 0, kind: input, shape index: {}]   ;;  %s1727_s2 = inlined_call_operand.vmem [shape: f32[16,1], index: 2, kind: input, shape index: {}]   ;;  %s1728_s3 = inlined_call_operand.vmem [shape: f32[16,3528], index: 3, kind: output, shape index: {}]  }
   0x1   :  { %v17_v0 = vld [vmem:[%s1725_s1 + $0x8] sm:$0xff]  ;;  %v19_v1 = vld [vmem:[%s1725_s1 + $0x18] sm:$0xff]  ;;  %v16_v2 = vld [vmem:[%s1725_s1] sm:$0xff]  ;;  %127 = vmatprep.mubr.f32.mxu0 %v1289_v3  ;;  %204 = vmatprep.mubr.f32.mxu1 %v1289_v3 }
   0x2   :  { %63 = vmatprep.subr.mxu0 %v17_v0  ;;  %140 = vmatprep.subr.mxu1 %v19_v1  ;;  %v18_v4 = vld [vmem:[%s1725_s1 + $0x10] sm:$0xff]  ;;  %v1328_v5 = vld [vmem:[%s1726_s0] sm:$0xff]  ;;  %v21_v6 = vld [vmem:[%s1725_s1 + $0x28] sm:$0xff] }
   0x3   :  { %64 = vmatpush1.msra.mxu0 %v16_v2  ;;  %141 = vmatpush1.msra.mxu1 %v18_v4  ;;  %v23_v7 = vld [vmem:[%s1725_s1 + $0x38] sm:$0xff]  ;;  %v20_v8 = vld [vmem:[%s1725_s1 + $0x20] sm:$0xff]  ;;  %v22_v9 = vld [vmem:[%s1725_s1 + $0x30] sm:$0xff] }
   0x4   :  { %1258 = vmatmul.mubr.msk.f32.vlgmr.msra.gmra.mrb[0].mxu0 %vm56_vm0, %v1328_v5  ;;  %1260 = vmatmul.mubr.msk.f32.vlgmr.msra.gmra.mrb[0].mxu1 %vm56_vm0, %v1328_v5  ;;  %v1349_v10 = vld [vmem:[%s1726_s0 + $0x8] sm:$0xff]  ;;  %v27_v12 = vld [vmem:[%s1725_s1 + $0x58] sm:$0xff]  ;;  %v24_v13 = vld [vmem:[%s1725_s1 + $0x40] sm:$0xff] }
   0x5   :  { %217 = vmatprep.subr.mxu0 %v21_v6  ;;  %294 = vmatprep.subr.mxu1 %v23_v7  ;;  %v25_v11 = vld [vmem:[%s1725_s1 + $0x48] sm:$0xff]  ;;  %v26_v14 = vld [vmem:[%s1725_s1 + $0x50] sm:$0xff]  ;;  %v31_v17 = vld [vmem:[%s1725_s1 + $0x78] sm:$0xff] }
   0x6   :  { %218 = vmatpush1.msra.mxu0 %v20_v8  ;;  %295 = vmatpush1.msra.mxu1 %v22_v9  ;;  %v29_v16 = vld [vmem:[%s1725_s1 + $0x68] sm:$0xff]  ;;  %v44_v18 = vld [vmem:[%s1727_s2] sm:$0xff]  ;;  %v30_v20 = vld [vmem:[%s1725_s1 + $0x70] sm:$0xff] }
   0x7   :  { %133 = vmatprep.mubr.f32.mxu0 %v1289_v3  ;;  %210 = vmatprep.mubr.f32.mxu1 %v1289_v3  ;;  %v28_v19 = vld [vmem:[%s1725_s1 + $0x60] sm:$0xff]  ;;  %v33_v21 = vld [vmem:[%s1725_s1 + $0x88] sm:$0xff]  ;;  %v35_v22 = vld [vmem:[%s1725_s1 + $0x98] sm:$0xff] }
   0x8   :  { %1259 = vmatmul.mubr.msk.f32.gmra.mrb[2].mxu0 %vm56_vm0, %v1349_v10  ;;  %1261 = vmatmul.mubr.msk.f32.gmra.mrb[2].mxu1 %vm56_vm0, %v1349_v10  ;;  %v45_v23 = vld [vmem:[%s1727_s2 + $0x8] sm:$0xff]  ;;  %v32_v24 = vld [vmem:[%s1725_s1 + $0x80] sm:$0xff]  ;;  %v34_v25 = vld [vmem:[%s1725_s1 + $0x90] sm:$0xff] }
   0x9   :  { %281 = vmatprep.mubr.f32.mxu0 %v1289_v3  ;;  %358 = vmatprep.mubr.f32.mxu1 %v1289_v3  ;;  %v37_v26 = vld [vmem:[%s1725_s1 + $0xa8] sm:$0xff]  ;;  %v39_v27 = vld [vmem:[%s1725_s1 + $0xb8] sm:$0xff]  ;;  %v36_v28 = vld [vmem:[%s1725_s1 + $0xa0] sm:$0xff] }
   0xa   :  { %371 = vmatprep.subr.mxu0 %v25_v11  ;;  %448 = vmatprep.subr.mxu1 %v27_v12  ;;  %v38_v29 = vld [vmem:[%s1725_s1 + $0xb0] sm:$0xff]  ;;  %v41_v30 = vld [vmem:[%s1725_s1 + $0xc8] sm:$0xff]  ;;  %v43_v31 = vld [vmem:[%s1725_s1 + $0xd8] sm:$0xff] }
   0xb   :  { %1288 = vset.pattern.permute.xlu0 %v1290_v15  ;;  %v40_v32 = vld [vmem:[%s1725_s1 + $0xc0] sm:$0xff]  ;;  %v42_v33 = vld [vmem:[%s1725_s1 + $0xd0] sm:$0xff] }
   0xc   :  { %1262 = vmatmul.mubr.msk.f32.vlgmr.msra.gmra.mrb[4].mxu0 %vm56_vm0, %v1328_v5  ;;  %1264 = vmatmul.mubr.msk.f32.vlgmr.msra.gmra.mrb[4].mxu1 %vm56_vm0, %v1328_v5 }
   0xd   :  { %372 = vmatpush1.msra.mxu0 %v24_v13  ;;  %449 = vmatpush1.msra.mxu1 %v26_v14 }
   0xe   :  { %287 = vmatprep.mubr.f32.mxu0 %v1289_v3  ;;  %364 = vmatprep.mubr.f32.mxu1 %v1289_v3 }
   0xf   :  { %525 = vmatprep.subr.mxu0 %v29_v16  ;;  %602 = vmatprep.subr.mxu1 %v31_v17 }
  0x10   :  { %1263 = vmatmul.mubr.msk.f32.gmra.mrb[6].mxu0 %vm56_vm0, %v1349_v10  ;;  %1265 = vmatmul.mubr.msk.f32.gmra.mrb[6].mxu1 %vm56_vm0, %v1349_v10 }
  0x11   :  { %435 = vmatprep.mubr.f32.mxu0 %v1289_v3  ;;  %512 = vmatprep.mubr.f32.mxu1 %v1289_v3 }
  0x12   :  { %48 = vperm.xlu0 %1288, %v44_v18  }
  0x14   :  { %1266 = vmatmul.mubr.msk.f32.vlgmr.msra.gmra.mrb[8].mxu0 %vm56_vm0, %v1328_v5  ;;  %1268 = vmatmul.mubr.msk.f32.vlgmr.msra.gmra.mrb[8].mxu1 %vm56_vm0, %v1328_v5 }
  0x15   :  { %526 = vmatpush1.msra.mxu0 %v28_v19  ;;  %603 = vmatpush1.msra.mxu1 %v30_v20 }
  0x16   :  { %441 = vmatprep.mubr.f32.mxu0 %v1289_v3  ;;  %518 = vmatprep.mubr.f32.mxu1 %v1289_v3 }
  0x17   :  { %679 = vmatprep.subr.mxu0 %v33_v21  ;;  %756 = vmatprep.subr.mxu1 %v35_v22 }
  0x18   :  { %1267 = vmatmul.mubr.msk.f32.gmra.mrb[10].mxu0 %vm56_vm0, %v1349_v10  ;;  %1269 = vmatmul.mubr.msk.f32.gmra.mrb[10].mxu1 %vm56_vm0, %v1349_v10 }
  0x19   :  { %589 = vmatprep.mubr.f32.mxu0 %v1289_v3  ;;  %666 = vmatprep.mubr.f32.mxu1 %v1289_v3 }
  0x1a   :  { %53 = vperm.xlu0 %1288, %v45_v23  }
  0x1c   :  { %1270 = vmatmul.mubr.msk.f32.vlgmr.msra.gmra.mrb[12].mxu0 %vm56_vm0, %v1328_v5  ;;  %1272 = vmatmul.mubr.msk.f32.vlgmr.msra.gmra.mrb[12].mxu1 %vm56_vm0, %v1328_v5 }
  0x1d   :  { %680 = vmatpush1.msra.mxu0 %v32_v24  ;;  %757 = vmatpush1.msra.mxu1 %v34_v25 }
  0x1e   :  { %595 = vmatprep.mubr.f32.mxu0 %v1289_v3  ;;  %672 = vmatprep.mubr.f32.mxu1 %v1289_v3 }
  0x1f   :  { %833 = vmatprep.subr.mxu0 %v37_v26  ;;  %910 = vmatprep.subr.mxu1 %v39_v27 }
  0x20   :  { %1271 = vmatmul.mubr.msk.f32.gmra.mrb[14].mxu0 %vm56_vm0, %v1349_v10  ;;  %1273 = vmatmul.mubr.msk.f32.gmra.mrb[14].mxu1 %vm56_vm0, %v1349_v10 }
  0x21   :  { %743 = vmatprep.mubr.f32.mxu0 %v1289_v3  ;;  %820 = vmatprep.mubr.f32.mxu1 %v1289_v3 }
  0x24   :  { %1274 = vmatmul.mubr.msk.f32.vlgmr.msra.gmra.mrb[16].mxu0 %vm56_vm0, %v1328_v5  ;;  %1276 = vmatmul.mubr.msk.f32.vlgmr.msra.gmra.mrb[16].mxu1 %vm56_vm0, %v1328_v5 }
  0x25   :  { %834 = vmatpush1.msra.mxu0 %v36_v28  ;;  %911 = vmatpush1.msra.mxu1 %v38_v29 }
  0x26   :  { %749 = vmatprep.mubr.f32.mxu0 %v1289_v3  ;;  %826 = vmatprep.mubr.f32.mxu1 %v1289_v3 }
  0x27   :  { %987 = vmatprep.subr.mxu0 %v41_v30  ;;  %1064 = vmatprep.subr.mxu1 %v43_v31 }
  0x28   :  { %1275 = vmatmul.mubr.msk.f32.gmra.mrb[18].mxu0 %vm56_vm0, %v1349_v10  ;;  %1277 = vmatmul.mubr.msk.f32.gmra.mrb[18].mxu1 %vm56_vm0, %v1349_v10 }
  0x29   :  { %897 = vmatprep.mubr.f32.mxu0 %v1289_v3  ;;  %974 = vmatprep.mubr.f32.mxu1 %v1289_v3 }
  0x2c   :  { %1278 = vmatmul.mubr.msk.f32.vlgmr.msra.gmra.mrb[20].mxu0 %vm56_vm0, %v1328_v5  ;;  %1280 = vmatmul.mubr.msk.f32.vlgmr.msra.gmra.mrb[20].mxu1 %vm56_vm0, %v1328_v5 }
  0x2d   :  { %988 = vmatpush1.msra.mxu0 %v40_v32  ;;  %1065 = vmatpush1.msra.mxu1 %v42_v33 }
  0x2e   :  { %903 = vmatprep.mubr.f32.mxu0 %v1289_v3  ;;  %980 = vmatprep.mubr.f32.mxu1 %v1289_v3 }
  0x30   :  { %1279 = vmatmul.mubr.msk.f32.gmra.mrb[22].mxu0 %vm56_vm0, %v1349_v10  ;;  %1281 = vmatmul.mubr.msk.f32.gmra.mrb[22].mxu1 %vm56_vm0, %v1349_v10 }
  0x31   :  { %1051 = vmatprep.mubr.f32.mxu0 %v1289_v3  ;;  %1128 = vmatprep.mubr.f32.mxu1 %v1289_v3 }
  0x34   :  { %1282 = vmatmul.mubr.msk.f32.vlgmr.msra.gmra.mrb[24].mxu0 %vm56_vm0, %v1328_v5  ;;  %1284 = vmatmul.mubr.msk.f32.vlgmr.msra.gmra.mrb[24].mxu1 %vm56_vm0, %v1328_v5 }
  0x35   :  { %1057 = vmatprep.mubr.f32.mxu0 %v1289_v3  ;;  %1134 = vmatprep.mubr.f32.mxu1 %v1289_v3 }
  0x38   :  { %1283 = vmatmul.mubr.msk.f32.gmra.mrb[26].mxu0 %vm56_vm0, %v1349_v10  ;;  %1285 = vmatmul.mubr.msk.f32.gmra.mrb[26].mxu1 %vm56_vm0, %v1349_v10 }
  0x91   :  { %v1495_v34 = vpop.permute.xlu0 %48 }
  0x99   :  { %v1501_v43 = vpop.permute.xlu0 %53 }
  0xd7   :  { %v129_v35 = vpop.f32.mrb[0].mxu0  ;;  %v206_v36 = vpop.f32.mrb[0].mxu1 }
  0xd8   :  { %v130_v37 = vadd.f32 %v129_v35, %v1495_v34  ;;  %v207_v38 = vadd.f32 %v206_v36, %v1495_v34  ;;  %v131_v39 = vpop.f32.mrb[1].mxu0  ;;  %v208_v40 = vpop.f32.mrb[1].mxu1 }
  0xd9   :  { %v132_v41 = vadd.f32 %v131_v39, %v1495_v34  ;;  %v209_v42 = vadd.f32 %v208_v40, %v1495_v34 }
  0xda   :  { %v1141_v44 = vmax.f32 %v130_v37, 0.0  ;;  %v1143_v45 = vmax.f32 %v207_v38, 0.0 }
  0xdb   :  { %v1142_v46 = vmax.f32 %v132_v41, 0.0  ;;  %v1144_v47 = vmax.f32 %v209_v42, 0.0  ;;  %v135_v48 = vpop.f32.mrb[2].mxu0  ;;  %v212_v49 = vpop.f32.mrb[2].mxu1 }
  0xdc   :  { %1197 = vst [vmem:[%s1728_s3] sm:$0xff] %v1141_v44  ;;  %1199 = vst [vmem:[%s1728_s3 + $0x10] sm:$0xff] %v1143_v45  ;;  %v136_v50 = vadd.f32 %v135_v48, %v1501_v43  ;;  %v213_v51 = vadd.f32 %v212_v49, %v1501_v43  ;;  %v137_v52 = vpop.f32.mrb[3].mxu0  ;;  %v214_v53 = vpop.f32.mrb[3].mxu1 }
  0xdd   :  { %1198 = vst [vmem:[%s1728_s3 + $0x8] sm:$0xff] %v1142_v46  ;;  %1200 = vst [vmem:[%s1728_s3 + $0x18] sm:$0xff] %v1144_v47  ;;  %v138_v54 = vadd.f32 %v137_v52, %v1501_v43  ;;  %v215_v55 = vadd.f32 %v214_v53, %v1501_v43 }
  0xde   :  { %v1169_v56 = vmax.f32 %v136_v50, 0.0  ;;  %v1171_v57 = vmax.f32 %v213_v51, 0.0 }
  0xdf   :  { %v1170_v58 = vmax.f32 %v138_v54, 0.0  ;;  %v1172_v59 = vmax.f32 %v215_v55, 0.0  ;;  %v283_v60 = vpop.f32.mrb[4].mxu0  ;;  %v360_v61 = vpop.f32.mrb[4].mxu1 }
  0xe0   :  { %1226 = vst [vmem:[%s1728_s3 + $0xe0] sm:$0xff] %v1169_v56  ;;  %1228 = vst [vmem:[%s1728_s3 + $0xf0] sm:$0xff] %v1171_v57  ;;  %v284_v62 = vadd.f32 %v283_v60, %v1495_v34  ;;  %v361_v63 = vadd.f32 %v360_v61, %v1495_v34  ;;  %v285_v0 = vpop.f32.mrb[5].mxu0  ;;  %v362_v1 = vpop.f32.mrb[5].mxu1 }
  0xe1   :  { %1227 = vst [vmem:[%s1728_s3 + $0xe8] sm:$0xff] %v1170_v58  ;;  %1229 = vst [vmem:[%s1728_s3 + $0xf8] sm:$0xff] %v1172_v59  ;;  %v286_v2 = vadd.f32 %v285_v0, %v1495_v34  ;;  %v363_v3 = vadd.f32 %v362_v1, %v1495_v34 }
  0xe2   :  { %v1145_v4 = vmax.f32 %v284_v62, 0.0  ;;  %v1147_v5 = vmax.f32 %v361_v63, 0.0 }
  0xe3   :  { %v1146_v6 = vmax.f32 %v286_v2, 0.0  ;;  %v1148_v7 = vmax.f32 %v363_v3, 0.0  ;;  %v289_v8 = vpop.f32.mrb[6].mxu0  ;;  %v366_v9 = vpop.f32.mrb[6].mxu1 }
  0xe4   :  { %1201 = vst [vmem:[%s1728_s3 + $0x20] sm:$0xff] %v1145_v4  ;;  %1203 = vst [vmem:[%s1728_s3 + $0x30] sm:$0xff] %v1147_v5  ;;  %v290_v10 = vadd.f32 %v289_v8, %v1501_v43  ;;  %v367_v11 = vadd.f32 %v366_v9, %v1501_v43  ;;  %v291_v12 = vpop.f32.mrb[7].mxu0  ;;  %v368_v13 = vpop.f32.mrb[7].mxu1 }
  0xe5   :  { %1202 = vst [vmem:[%s1728_s3 + $0x28] sm:$0xff] %v1146_v6  ;;  %1204 = vst [vmem:[%s1728_s3 + $0x38] sm:$0xff] %v1148_v7  ;;  %v292_v14 = vadd.f32 %v291_v12, %v1501_v43  ;;  %v369_v15 = vadd.f32 %v368_v13, %v1501_v43 }
  0xe6   :  { %v1173_v16 = vmax.f32 %v290_v10, 0.0  ;;  %v1175_v17 = vmax.f32 %v367_v11, 0.0 }
  0xe7   :  { %v1174_v18 = vmax.f32 %v292_v14, 0.0  ;;  %v1176_v19 = vmax.f32 %v369_v15, 0.0  ;;  %v437_v20 = vpop.f32.mrb[8].mxu0  ;;  %v514_v21 = vpop.f32.mrb[8].mxu1 }
  0xe8   :  { %1230 = vst [vmem:[%s1728_s3 + $0x100] sm:$0xff] %v1173_v16  ;;  %1232 = vst [vmem:[%s1728_s3 + $0x110] sm:$0xff] %v1175_v17  ;;  %v438_v22 = vadd.f32 %v437_v20, %v1495_v34  ;;  %v515_v23 = vadd.f32 %v514_v21, %v1495_v34  ;;  %v439_v24 = vpop.f32.mrb[9].mxu0  ;;  %v516_v25 = vpop.f32.mrb[9].mxu1 }
  0xe9   :  { %1231 = vst [vmem:[%s1728_s3 + $0x108] sm:$0xff] %v1174_v18  ;;  %1233 = vst [vmem:[%s1728_s3 + $0x118] sm:$0xff] %v1176_v19  ;;  %v440_v26 = vadd.f32 %v439_v24, %v1495_v34  ;;  %v517_v27 = vadd.f32 %v516_v25, %v1495_v34 }
  0xea   :  { %v1149_v28 = vmax.f32 %v438_v22, 0.0  ;;  %v1151_v29 = vmax.f32 %v515_v23, 0.0 }
  0xeb   :  { %v1150_v30 = vmax.f32 %v440_v26, 0.0  ;;  %v1152_v31 = vmax.f32 %v517_v27, 0.0  ;;  %v443_v32 = vpop.f32.mrb[10].mxu0  ;;  %v520_v33 = vpop.f32.mrb[10].mxu1 }
  0xec   :  { %1205 = vst [vmem:[%s1728_s3 + $0x40] sm:$0xff] %v1149_v28  ;;  %1207 = vst [vmem:[%s1728_s3 + $0x50] sm:$0xff] %v1151_v29  ;;  %v444_v35 = vadd.f32 %v443_v32, %v1501_v43  ;;  %v521_v36 = vadd.f32 %v520_v33, %v1501_v43  ;;  %v445_v37 = vpop.f32.mrb[11].mxu0  ;;  %v522_v38 = vpop.f32.mrb[11].mxu1 }
  0xed   :  { %1206 = vst [vmem:[%s1728_s3 + $0x48] sm:$0xff] %v1150_v30  ;;  %1208 = vst [vmem:[%s1728_s3 + $0x58] sm:$0xff] %v1152_v31  ;;  %v446_v39 = vadd.f32 %v445_v37, %v1501_v43  ;;  %v523_v40 = vadd.f32 %v522_v38, %v1501_v43 }
  0xee   :  { %v1177_v41 = vmax.f32 %v444_v35, 0.0  ;;  %v1179_v42 = vmax.f32 %v521_v36, 0.0 }
  0xef   :  { %v1178_v44 = vmax.f32 %v446_v39, 0.0  ;;  %v1180_v45 = vmax.f32 %v523_v40, 0.0  ;;  %v591_v46 = vpop.f32.mrb[12].mxu0  ;;  %v668_v47 = vpop.f32.mrb[12].mxu1 }
  0xf0   :  { %1234 = vst [vmem:[%s1728_s3 + $0x120] sm:$0xff] %v1177_v41  ;;  %1236 = vst [vmem:[%s1728_s3 + $0x130] sm:$0xff] %v1179_v42  ;;  %v592_v48 = vadd.f32 %v591_v46, %v1495_v34  ;;  %v669_v49 = vadd.f32 %v668_v47, %v1495_v34  ;;  %v593_v50 = vpop.f32.mrb[13].mxu0  ;;  %v670_v51 = vpop.f32.mrb[13].mxu1 }
  0xf1   :  { %1235 = vst [vmem:[%s1728_s3 + $0x128] sm:$0xff] %v1178_v44  ;;  %1237 = vst [vmem:[%s1728_s3 + $0x138] sm:$0xff] %v1180_v45  ;;  %v594_v52 = vadd.f32 %v593_v50, %v1495_v34  ;;  %v671_v53 = vadd.f32 %v670_v51, %v1495_v34 }
  0xf2   :  { %v1153_v54 = vmax.f32 %v592_v48, 0.0  ;;  %v1155_v55 = vmax.f32 %v669_v49, 0.0 }
  0xf3   :  { %v1154_v56 = vmax.f32 %v594_v52, 0.0  ;;  %v1156_v57 = vmax.f32 %v671_v53, 0.0  ;;  %v597_v58 = vpop.f32.mrb[14].mxu0  ;;  %v674_v59 = vpop.f32.mrb[14].mxu1 }
  0xf4   :  { %1209 = vst [vmem:[%s1728_s3 + $0x60] sm:$0xff] %v1153_v54  ;;  %1211 = vst [vmem:[%s1728_s3 + $0x70] sm:$0xff] %v1155_v55  ;;  %v598_v60 = vadd.f32 %v597_v58, %v1501_v43  ;;  %v675_v61 = vadd.f32 %v674_v59, %v1501_v43  ;;  %v599_v62 = vpop.f32.mrb[15].mxu0  ;;  %v676_v63 = vpop.f32.mrb[15].mxu1 }
  0xf5   :  { %1210 = vst [vmem:[%s1728_s3 + $0x68] sm:$0xff] %v1154_v56  ;;  %1212 = vst [vmem:[%s1728_s3 + $0x78] sm:$0xff] %v1156_v57  ;;  %v600_v0 = vadd.f32 %v599_v62, %v1501_v43  ;;  %v677_v1 = vadd.f32 %v676_v63, %v1501_v43 }
  0xf6   :  { %v1181_v2 = vmax.f32 %v598_v60, 0.0  ;;  %v1183_v3 = vmax.f32 %v675_v61, 0.0 }
  0xf7   :  { %v1182_v4 = vmax.f32 %v600_v0, 0.0  ;;  %v1184_v5 = vmax.f32 %v677_v1, 0.0  ;;  %v745_v6 = vpop.f32.mrb[16].mxu0  ;;  %v822_v7 = vpop.f32.mrb[16].mxu1 }
  0xf8   :  { %1238 = vst [vmem:[%s1728_s3 + $0x140] sm:$0xff] %v1181_v2  ;;  %1240 = vst [vmem:[%s1728_s3 + $0x150] sm:$0xff] %v1183_v3  ;;  %v746_v8 = vadd.f32 %v745_v6, %v1495_v34  ;;  %v823_v9 = vadd.f32 %v822_v7, %v1495_v34  ;;  %v747_v10 = vpop.f32.mrb[17].mxu0  ;;  %v824_v11 = vpop.f32.mrb[17].mxu1 }
  0xf9   :  { %1239 = vst [vmem:[%s1728_s3 + $0x148] sm:$0xff] %v1182_v4  ;;  %1241 = vst [vmem:[%s1728_s3 + $0x158] sm:$0xff] %v1184_v5  ;;  %v748_v12 = vadd.f32 %v747_v10, %v1495_v34  ;;  %v825_v13 = vadd.f32 %v824_v11, %v1495_v34 }
  0xfa   :  { %v1157_v14 = vmax.f32 %v746_v8, 0.0  ;;  %v1159_v15 = vmax.f32 %v823_v9, 0.0 }
  0xfb   :  { %v1158_v16 = vmax.f32 %v748_v12, 0.0  ;;  %v1160_v17 = vmax.f32 %v825_v13, 0.0  ;;  %v751_v18 = vpop.f32.mrb[18].mxu0  ;;  %v828_v19 = vpop.f32.mrb[18].mxu1 }
  0xfc   :  { %1213 = vst [vmem:[%s1728_s3 + $0x80] sm:$0xff] %v1157_v14  ;;  %1215 = vst [vmem:[%s1728_s3 + $0x90] sm:$0xff] %v1159_v15  ;;  %v752_v20 = vadd.f32 %v751_v18, %v1501_v43  ;;  %v829_v21 = vadd.f32 %v828_v19, %v1501_v43  ;;  %v753_v22 = vpop.f32.mrb[19].mxu0  ;;  %v830_v23 = vpop.f32.mrb[19].mxu1 }
  0xfd   :  { %1214 = vst [vmem:[%s1728_s3 + $0x88] sm:$0xff] %v1158_v16  ;;  %1216 = vst [vmem:[%s1728_s3 + $0x98] sm:$0xff] %v1160_v17  ;;  %v754_v24 = vadd.f32 %v753_v22, %v1501_v43  ;;  %v831_v25 = vadd.f32 %v830_v23, %v1501_v43 }
  0xfe   :  { %v1185_v26 = vmax.f32 %v752_v20, 0.0  ;;  %v1187_v27 = vmax.f32 %v829_v21, 0.0 }
  0xff   :  { %v1186_v28 = vmax.f32 %v754_v24, 0.0  ;;  %v1188_v29 = vmax.f32 %v831_v25, 0.0  ;;  %v899_v30 = vpop.f32.mrb[20].mxu0  ;;  %v976_v31 = vpop.f32.mrb[20].mxu1 }
 0x100   :  { %1242 = vst [vmem:[%s1728_s3 + $0x160] sm:$0xff] %v1185_v26  ;;  %1244 = vst [vmem:[%s1728_s3 + $0x170] sm:$0xff] %v1187_v27  ;;  %v900_v32 = vadd.f32 %v899_v30, %v1495_v34  ;;  %v977_v33 = vadd.f32 %v976_v31, %v1495_v34  ;;  %v901_v35 = vpop.f32.mrb[21].mxu0  ;;  %v978_v36 = vpop.f32.mrb[21].mxu1 }
 0x101   :  { %1243 = vst [vmem:[%s1728_s3 + $0x168] sm:$0xff] %v1186_v28  ;;  %1245 = vst [vmem:[%s1728_s3 + $0x178] sm:$0xff] %v1188_v29  ;;  %v902_v37 = vadd.f32 %v901_v35, %v1495_v34  ;;  %v979_v38 = vadd.f32 %v978_v36, %v1495_v34 }
 0x102   :  { %v1161_v39 = vmax.f32 %v900_v32, 0.0  ;;  %v1163_v40 = vmax.f32 %v977_v33, 0.0 }
 0x103   :  { %v1162_v41 = vmax.f32 %v902_v37, 0.0  ;;  %v1164_v42 = vmax.f32 %v979_v38, 0.0  ;;  %v905_v44 = vpop.f32.mrb[22].mxu0  ;;  %v982_v45 = vpop.f32.mrb[22].mxu1 }
 0x104   :  { %1217 = vst [vmem:[%s1728_s3 + $0xa0] sm:$0xff] %v1161_v39  ;;  %1219 = vst [vmem:[%s1728_s3 + $0xb0] sm:$0xff] %v1163_v40  ;;  %v906_v46 = vadd.f32 %v905_v44, %v1501_v43  ;;  %v983_v47 = vadd.f32 %v982_v45, %v1501_v43  ;;  %v907_v48 = vpop.f32.mrb[23].mxu0  ;;  %v984_v49 = vpop.f32.mrb[23].mxu1 }
 0x105   :  { %1218 = vst [vmem:[%s1728_s3 + $0xa8] sm:$0xff] %v1162_v41  ;;  %1220 = vst [vmem:[%s1728_s3 + $0xb8] sm:$0xff] %v1164_v42  ;;  %v908_v50 = vadd.f32 %v907_v48, %v1501_v43  ;;  %v985_v51 = vadd.f32 %v984_v49, %v1501_v43 }
 0x106   :  { %v1189_v52 = vmax.f32 %v906_v46, 0.0  ;;  %v1191_v53 = vmax.f32 %v983_v47, 0.0 }
 0x107   :  { %v1190_v54 = vmax.f32 %v908_v50, 0.0  ;;  %v1192_v55 = vmax.f32 %v985_v51, 0.0  ;;  %v1053_v56 = vpop.f32.mrb[24].mxu0  ;;  %v1130_v57 = vpop.f32.mrb[24].mxu1 }
 0x108   :  { %1246 = vst [vmem:[%s1728_s3 + $0x180] sm:$0xff] %v1189_v52  ;;  %1248 = vst [vmem:[%s1728_s3 + $0x190] sm:$0xff] %v1191_v53  ;;  %v1054_v58 = vadd.f32 %v1053_v56, %v1495_v34  ;;  %v1131_v59 = vadd.f32 %v1130_v57, %v1495_v34  ;;  %v1055_v60 = vpop.f32.mrb[25].mxu0  ;;  %v1132_v61 = vpop.f32.mrb[25].mxu1 }
 0x109   :  { %1247 = vst [vmem:[%s1728_s3 + $0x188] sm:$0xff] %v1190_v54  ;;  %1249 = vst [vmem:[%s1728_s3 + $0x198] sm:$0xff] %v1192_v55  ;;  %v1056_v62 = vadd.f32 %v1055_v60, %v1495_v34  ;;  %v1133_v63 = vadd.f32 %v1132_v61, %v1495_v34 }
 0x10a   :  { %v1165_v0 = vmax.f32 %v1054_v58, 0.0  ;;  %v1167_v1 = vmax.f32 %v1131_v59, 0.0 }
 0x10b   :  { %v1166_v2 = vmax.f32 %v1056_v62, 0.0  ;;  %v1168_v3 = vmax.f32 %v1133_v63, 0.0  ;;  %v1059_v4 = vpop.f32.mrb[26].mxu0  ;;  %v1136_v5 = vpop.f32.mrb[26].mxu1 }
 0x10c   :  { %1221 = vst [vmem:[%s1728_s3 + $0xc0] sm:$0xff] %v1165_v0  ;;  %1223 = vst [vmem:[%s1728_s3 + $0xd0] sm:$0xff] %v1167_v1  ;;  %v1060_v6 = vadd.f32 %v1059_v4, %v1501_v43  ;;  %v1137_v7 = vadd.f32 %v1136_v5, %v1501_v43  ;;  %v1061_v34 = vpop.f32.mrb[27].mxu0  ;;  %v1138_v8 = vpop.f32.mrb[27].mxu1 }
 0x10d   :  { %1222 = vst [vmem:[%s1728_s3 + $0xc8] sm:$0xff] %v1166_v2  ;;  %1225 = vst.msk [vmem:[%s1728_s3 + $0xd8] sm:$0xff] %vm1224_vm1, %v1168_v3  ;;  %v1062_v9 = vadd.f32 %v1061_v34, %v1501_v43  ;;  %v1139_v10 = vadd.f32 %v1138_v8, %v1501_v43 }
 0x10e   :  { %v1193_v11 = vmax.f32 %v1060_v6, 0.0  ;;  %v1195_v12 = vmax.f32 %v1137_v7, 0.0 }
 0x10f   :  { %v1194_v13 = vmax.f32 %v1062_v9, 0.0  ;;  %v1196_v14 = vmax.f32 %v1139_v10, 0.0 }
 0x110   :  { %1250 = vst [vmem:[%s1728_s3 + $0x1a0] sm:$0xff] %v1193_v11  ;;  %1252 = vst [vmem:[%s1728_s3 + $0x1b0] sm:$0xff] %v1195_v12 }
 0x111   :  { %1251 = vst [vmem:[%s1728_s3 + $0x1a8] sm:$0xff] %v1194_v13  ;;  %1253 = vst.msk [vmem:[%s1728_s3 + $0x1b8] sm:$0xff] %vm1224_vm1, %v1196_v14 }

// kernel: forward.23
= control target key start
LH: loop header
LB: loop body
LE: loop exit
PB: predicated region body
PF: predicated region fallthrough
CT: control target
= control target key end

     0   :  { %s2871_s12 = smov 0   ;;  %s2873_s13 = smov 0   ;;  %s3510_s0 = inlined_call_operand.vmem [shape: f32[4,4], index: 0, kind: input, shape index: {}]   ;;  %s3511_s1 = inlined_call_operand.vmem [shape: f32[4,31250], index: 1, kind: input, shape index: {}]   ;;  %s3512_s2 = inlined_call_operand.vmem [shape: f32[4,1], index: 2, kind: input, shape index: {}]   ;;  %s3513_s3 = inlined_call_operand.vmem [shape: f32[4,31250], index: 3, kind: output, shape index: {}]  }
   0x1   :  { %s2875_s14 = smov 0  }
   0x2 LB: > { %s2884_s15 = sadd.s32 4294967295, %s2781_s14   ;;  %s2886_s16 = sadd.s32 1, %s2781_s14   ;;  %s2781_s14 = sphi %s2875_s14, %s3527_s14   ;;  %s2777_s13 = sphi %s2873_s13, %s3526_s13   ;;  %s2773_s12 = sphi %s2871_s12, %s3525_s12  }
   0x3   : > { %s85_s17 = ssub.s32 %s2781_s14, %s2886_s16  ;;  %s88_s18 = sadd.s32 1, %s2777_s13 }
   0x4   : > { %p86_p0 = scmp.eq.s32.totalorder %s85_s17, 0  ;;  %p98_p1 = scmp.ne.s32.totalorder %s2777_s13, %s2773_s12 }
   0x5   : > { %p99_p2 = scmp.eq.s32.totalorder %s2884_s15, 7  ;;  %p2276_p3 = scmp.ge.s32.totalorder %s2781_s14, 1 }
   0x6   : > { %s2894_s19 = scalar_select %p86_p0, %s2777_s13, %s88_s18  }
   0x7   : > { %p2896_p4 = por %p99_p2, %p98_p1  ;;  %p146_p5 = scmp.lt.s32.totalorder %s2781_s14, 9 }
   0x9   : > { %p147_p6 = pnand %p2276_p3, %p146_p5 }
   0xa   : > { %s2901_s21 = sshll.u32 (!%p147_p6), %s2884_s15, 5  ;;  %v2847_v0 = vmov (!%p147_p6), 0.0   ;;  %v209_v1 = vld [vmem:[%s3512_s2] sm:$0xf] (!%p147_p6)  ;;  %v2848_v2 = vmov (!%p147_p6), 0   ;;  %vm251_vm0 = vcmask (!%p147_p6), 1043456  }
   0xb   : > { %150 = sbr.rel (%p147_p6) target bundleno = 490 (0x1ea), region = 32  ;;  %p178_p7 = scmp.lt.s32.totalorder (!%p147_p6), %s2901_s21, 244  ;;  %380 = vmatprep.mubr.f32.mxu0 (!%p147_p6), %v2847_v0  ;;  %451 = vmatprep.mubr.f32.mxu1 (!%p147_p6), %v2847_v0  ;;  %v2922_v9 = vld [vmem:[%s3510_s0] sm:$0xf] (!%p147_p6)  ;;  %vm247_vm1 = vcmask (!%p147_p6), 31744  }
   0xc   : > { %2550 = vset.pattern.permute.xlu0 (!%p147_p6), %v2848_v2  ;;  %s170_s4 = sand.u32 (!%p147_p6), 1, %s2773_s12  }
   0xd   : > { %212 = vperm.xlu0 (!%p147_p6), %2550, %v209_v1   ;;  %s3035_s5 = sshll.u32 (!%p147_p6), %s170_s4, 7 }
   0xe   : > { %s3054_s6 = scalar_lea.vmem (!%p147_p6), [#allocation2], %s3035_s5  }
  0x12   : > { %s179_s24 = scalar_select %p178_p7, %s2901_s21, 244 }
  0x13   : > { %s1732_s7 = ssub.s32 (%p2896_p4), 245, %s2901_s21  ;;  %s2389_s8 = sshll.u32 (%p2896_p4), %s2884_s15, 7 }
  0x14   : > { %s2279_s25 = sshll.u32 %s179_s24, 2  ;;  %p1733_p8 = scmp.lt.s32.totalorder (%p2896_p4), %s1732_s7, 32 }
  0x15   : > { %s2913_s28 = scalar_lea.vmem %s3511_s1, %s2279_s25  ;;  %s3095_s11 = scalar_lea.vmem (%p2896_p4), %s3513_s3, %s2389_s8  }
  0x16   : > { %v193_v3 = vld [vmem:[%s2913_s28] sm:$0xff]  ;;  %v194_v4 = vld [vmem:[%s2913_s28 + $0x8] sm:$0xff]  ;;  %v195_v5 = vld [vmem:[%s2913_s28 + $0x10] sm:$0xff] }
  0x17   : > { %v231_v6 = vcombine.high %v193_v3, %v193_v3  ;;  %v232_v7 = vcombine.high %v194_v4, %v194_v4  ;;  %v196_v8 = vld [vmem:[%s2913_s28 + $0x18] sm:$0xff]  ;;  %v233_v10 = vcombine.high %v195_v5, %v195_v5  ;;  %v197_v12 = vld [vmem:[%s2913_s28 + $0x20] sm:$0xff]  ;;  %v198_v13 = vld [vmem:[%s2913_s28 + $0x28] sm:$0xff] }
  0x18   : > { %v234_v11 = vcombine.high %v196_v8, %v196_v8  ;;  %v235_v14 = vcombine.high %v197_v12, %v197_v12  ;;  %v236_v15 = vcombine.high %v198_v13, %v198_v13  ;;  %v199_v16 = vld [vmem:[%s2913_s28 + $0x30] sm:$0xff]  ;;  %v200_v17 = vld [vmem:[%s2913_s28 + $0x38] sm:$0xff]  ;;  %v201_v20 = vld [vmem:[%s2913_s28 + $0x40] sm:$0xff] }
  0x19   : > { %2280 = vmatprep.subr.msk.mxu0 %vm251_vm0, %v231_v6  ;;  %2283 = vmatprep.subr.msk.mxu1 %vm251_vm0, %v232_v7  ;;  %v237_v18 = vcombine.high %v199_v16, %v199_v16  ;;  %v238_v19 = vcombine.high %v200_v17, %v200_v17  ;;  %v202_v21 = vld [vmem:[%s2913_s28 + $0x48] sm:$0xff]  ;;  %v239_v22 = vcombine.high %v201_v20, %v201_v20  ;;  %v203_v24 = vld [vmem:[%s2913_s28 + $0x50] sm:$0xff]  ;;  %v204_v25 = vld [vmem:[%s2913_s28 + $0x58] sm:$0xff] }
  0x1a   : > { %2281 = vmatpush1.msk.msra.mxu0 %vm251_vm0, %v193_v3  ;;  %2284 = vmatpush1.msk.msra.mxu1 %vm251_vm0, %v194_v4  ;;  %v240_v23 = vcombine.high %v202_v21, %v202_v21  ;;  %v241_v26 = vcombine.high %v203_v24, %v203_v24  ;;  %v242_v27 = vcombine.high %v204_v25, %v204_v25  ;;  %v205_v28 = vld [vmem:[%s2913_s28 + $0x60] sm:$0xff]  ;;  %v206_v29 = vld [vmem:[%s2913_s28 + $0x68] sm:$0xff]  ;;  %v207_v32 = vld [vmem:[%s2913_s28 + $0x70] sm:$0xff] }
  0x1b   : > { %2282 = vmatmul.mubr.msk.f32.vlgmr.msra.gmra.mrb[0].mxu0 %vm247_vm1, %v2922_v9  ;;  %2285 = vmatmul.mubr.msk.f32.vlgmr.msra.gmra.mrb[0].mxu1 %vm247_vm1, %v2922_v9  ;;  %v243_v30 = vcombine.high %v205_v28, %v205_v28  ;;  %v244_v31 = vcombine.high %v206_v29, %v206_v29  ;;  %v208_v33 = vld [vmem:[%s2913_s28 + $0x78] sm:$0xff]  ;;  %v245_v34 = vcombine.high %v207_v32, %v207_v32 }
  0x1c   : > { %2286 = vmatprep.subr.msk.mxu0 %vm251_vm0, %v233_v10  ;;  %2289 = vmatprep.subr.msk.mxu1 %vm251_vm0, %v234_v11  ;;  %v246_v35 = vcombine.high %v208_v33, %v208_v33 }
  0x1d   : > { %2287 = vmatpush1.msk.msra.mxu0 %vm251_vm0, %v195_v5  ;;  %2290 = vmatpush1.msk.msra.mxu1 %vm251_vm0, %v196_v8 }
  0x1e   : > { %522 = vmatprep.mubr.f32.mxu0 %v2847_v0  ;;  %593 = vmatprep.mubr.f32.mxu1 %v2847_v0 }
  0x1f   : > { %2288 = vmatmul.mubr.msk.f32.vlgmr.msra.gmra.mrb[2].mxu0 %vm247_vm1, %v2922_v9  ;;  %2291 = vmatmul.mubr.msk.f32.vlgmr.msra.gmra.mrb[2].mxu1 %vm247_vm1, %v2922_v9 }
  0x20   : > { %2292 = vmatprep.subr.msk.mxu0 %vm251_vm0, %v235_v14  ;;  %2295 = vmatprep.subr.msk.mxu1 %vm251_vm0, %v236_v15 }
  0x21   : > { %2293 = vmatpush1.msk.msra.mxu0 %vm251_vm0, %v197_v12  ;;  %2296 = vmatpush1.msk.msra.mxu1 %vm251_vm0, %v198_v13 }
  0x22   : > { %664 = vmatprep.mubr.f32.mxu0 %v2847_v0  ;;  %735 = vmatprep.mubr.f32.mxu1 %v2847_v0 }
  0x23   : > { %2294 = vmatmul.mubr.msk.f32.vlgmr.msra.gmra.mrb[4].mxu0 %vm247_vm1, %v2922_v9  ;;  %2297 = vmatmul.mubr.msk.f32.vlgmr.msra.gmra.mrb[4].mxu1 %vm247_vm1, %v2922_v9 }
  0x24   : > { %2298 = vmatprep.subr.msk.mxu0 %vm251_vm0, %v237_v18  ;;  %2301 = vmatprep.subr.msk.mxu1 %vm251_vm0, %v238_v19 }
  0x25   : > { %2299 = vmatpush1.msk.msra.mxu0 %vm251_vm0, %v199_v16  ;;  %2302 = vmatpush1.msk.msra.mxu1 %vm251_vm0, %v200_v17 }
  0x26   : > { %806 = vmatprep.mubr.f32.mxu0 %v2847_v0  ;;  %877 = vmatprep.mubr.f32.mxu1 %v2847_v0 }
  0x27   : > { %2300 = vmatmul.mubr.msk.f32.vlgmr.msra.gmra.mrb[6].mxu0 %vm247_vm1, %v2922_v9  ;;  %2303 = vmatmul.mubr.msk.f32.vlgmr.msra.gmra.mrb[6].mxu1 %vm247_vm1, %v2922_v9 }
  0x28   : > { %2304 = vmatprep.subr.msk.mxu0 %vm251_vm0, %v239_v22  ;;  %2307 = vmatprep.subr.msk.mxu1 %vm251_vm0, %v240_v23 }
  0x29   : > { %2305 = vmatpush1.msk.msra.mxu0 %vm251_vm0, %v201_v20  ;;  %2308 = vmatpush1.msk.msra.mxu1 %vm251_vm0, %v202_v21 }
  0x2a   : > { %948 = vmatprep.mubr.f32.mxu0 %v2847_v0  ;;  %1019 = vmatprep.mubr.f32.mxu1 %v2847_v0 }
  0x2b   : > { %2306 = vmatmul.mubr.msk.f32.vlgmr.msra.gmra.mrb[8].mxu0 %vm247_vm1, %v2922_v9  ;;  %2309 = vmatmul.mubr.msk.f32.vlgmr.msra.gmra.mrb[8].mxu1 %vm247_vm1, %v2922_v9 }
  0x2c   : > { %2310 = vmatprep.subr.msk.mxu0 %vm251_vm0, %v241_v26  ;;  %2313 = vmatprep.subr.msk.mxu1 %vm251_vm0, %v242_v27 }
  0x2d   : > { %2311 = vmatpush1.msk.msra.mxu0 %vm251_vm0, %v203_v24  ;;  %2314 = vmatpush1.msk.msra.mxu1 %vm251_vm0, %v204_v25 }
  0x2e   : > { %1090 = vmatprep.mubr.f32.mxu0 %v2847_v0  ;;  %1161 = vmatprep.mubr.f32.mxu1 %v2847_v0 }
  0x2f   : > { %2312 = vmatmul.mubr.msk.f32.vlgmr.msra.gmra.mrb[10].mxu0 %vm247_vm1, %v2922_v9  ;;  %2315 = vmatmul.mubr.msk.f32.vlgmr.msra.gmra.mrb[10].mxu1 %vm247_vm1, %v2922_v9 }
  0x30   : > { %2316 = vmatprep.subr.msk.mxu0 %vm251_vm0, %v243_v30  ;;  %2319 = vmatprep.subr.msk.mxu1 %vm251_vm0, %v244_v31 }
  0x31   : > { %2317 = vmatpush1.msk.msra.mxu0 %vm251_vm0, %v205_v28  ;;  %2320 = vmatpush1.msk.msra.mxu1 %vm251_vm0, %v206_v29 }
  0x32   : > { %1232 = vmatprep.mubr.f32.mxu0 %v2847_v0  ;;  %1303 = vmatprep.mubr.f32.mxu1 %v2847_v0 }
  0x33   : > { %2318 = vmatmul.mubr.msk.f32.vlgmr.msra.gmra.mrb[12].mxu0 %vm247_vm1, %v2922_v9  ;;  %2321 = vmatmul.mubr.msk.f32.vlgmr.msra.gmra.mrb[12].mxu1 %vm247_vm1, %v2922_v9 }
  0x34   : > { %2322 = vmatprep.subr.msk.mxu0 %vm251_vm0, %v245_v34  ;;  %2325 = vmatprep.subr.msk.mxu1 %vm251_vm0, %v246_v35 }
  0x35   : > { %2323 = vmatpush1.msk.msra.mxu0 %vm251_vm0, %v207_v32  ;;  %2326 = vmatpush1.msk.msra.mxu1 %vm251_vm0, %v208_v33 }
  0x36   : > { %1374 = vmatprep.mubr.f32.mxu0 %v2847_v0  ;;  %1445 = vmatprep.mubr.f32.mxu1 %v2847_v0 }
  0x37   : > { %2324 = vmatmul.mubr.msk.f32.vlgmr.msra.gmra.mrb[14].mxu0 %vm247_vm1, %v2922_v9  ;;  %2327 = vmatmul.mubr.msk.f32.vlgmr.msra.gmra.mrb[14].mxu1 %vm247_vm1, %v2922_v9 }
  0x8c   : > { %v3014_v36 = vpop.permute.xlu0 %212 }
  0xee   : > { %v382_v37 = vpop.f32.mrb[0].mxu0  ;;  %v453_v38 = vpop.f32.mrb[0].mxu1 }
  0xef   : > { %v383_v39 = vadd.f32 %v382_v37, %v3014_v36  ;;  %v384_v40 = vpop.f32.mrb[1].mxu0  ;;  %v454_v41 = vadd.f32 %v453_v38, %v3014_v36  ;;  %v455_v42 = vpop.f32.mrb[1].mxu1 }
  0xf0   : > { %v385_v43 = vadd.f32 %v384_v40, %v3014_v36  ;;  %v456_v44 = vadd.f32 %v455_v42, %v3014_v36 }
  0xf1   : > { %v2328_v45 = vmul.f32 -1.442695, %v383_v39  ;;  %v2330_v46 = vmul.f32 -1.442695, %v454_v41 }
  0xf2   : > { %v2329_v47 = vmul.f32 -1.442695, %v385_v43  ;;  %v2331_v48 = vmul.f32 -1.442695, %v456_v44  ;;  %v524_v49 = vpop.f32.mrb[2].mxu0  ;;  %v595_v50 = vpop.f32.mrb[2].mxu1 }
  0xf3   : > { %2567 = vpow2.f32 %v2328_v45  ;;  %v525_v51 = vadd.f32 %v524_v49, %v3014_v36  ;;  %v596_v52 = vadd.f32 %v595_v50, %v3014_v36  ;;  %v526_v53 = vpop.f32.mrb[3].mxu0  ;;  %v597_v54 = vpop.f32.mrb[3].mxu1 }
  0xf4   : > { %2569 = vpow2.f32 %v2329_v47  ;;  %v527_v55 = vadd.f32 %v526_v53, %v3014_v36  ;;  %v598_v56 = vadd.f32 %v597_v54, %v3014_v36 }
  0xf5   : > { %2571 = vpow2.f32 %v2330_v46  ;;  %v2332_v57 = vmul.f32 -1.442695, %v525_v51  ;;  %v2334_v58 = vmul.f32 -1.442695, %v596_v52 }
  0xf6   : > { %2573 = vpow2.f32 %v2331_v48  ;;  %v2333_v59 = vmul.f32 -1.442695, %v527_v55  ;;  %v2335_v60 = vmul.f32 -1.442695, %v598_v56  ;;  %v666_v61 = vpop.f32.mrb[4].mxu0  ;;  %v737_v62 = vpop.f32.mrb[4].mxu1 }
  0xf7   : > { %2575 = vpow2.f32 %v2332_v57  ;;  %v667_v63 = vadd.f32 %v666_v61, %v3014_v36  ;;  %v738_v0 = vadd.f32 %v737_v62, %v3014_v36  ;;  %v668_v1 = vpop.f32.mrb[5].mxu0  ;;  %v739_v2 = vpop.f32.mrb[5].mxu1 }
  0xf8   : > { %2577 = vpow2.f32 %v2334_v58  ;;  %v669_v3 = vadd.f32 %v668_v1, %v3014_v36  ;;  %v740_v4 = vadd.f32 %v739_v2, %v3014_v36 }
  0xf9   : > { %2579 = vpow2.f32 %v2333_v59  ;;  %v2336_v5 = vmul.f32 -1.442695, %v667_v63  ;;  %v2338_v6 = vmul.f32 -1.442695, %v738_v0 }
  0xfa   : > { %2581 = vpow2.f32 %v2335_v60  ;;  %v2337_v7 = vmul.f32 -1.442695, %v669_v3  ;;  %v2339_v8 = vmul.f32 -1.442695, %v740_v4  ;;  %v808_v9 = vpop.f32.mrb[6].mxu0  ;;  %v879_v10 = vpop.f32.mrb[6].mxu1 }
  0xfb   : > { %2583 = vpow2.f32 %v2336_v5  ;;  %v809_v11 = vadd.f32 %v808_v9, %v3014_v36  ;;  %v810_v12 = vpop.f32.mrb[7].mxu0  ;;  %v881_v13 = vpop.f32.mrb[7].mxu1  ;;  %v880_v41 = vadd.f32 %v879_v10, %v3014_v36 }
  0xfc   : > { %2585 = vpow2.f32 %v2338_v6  ;;  %v811_v44 = vadd.f32 %v810_v12, %v3014_v36  ;;  %v882_v48 = vadd.f32 %v881_v13, %v3014_v36 }
  0xfd   : > { %v2568_v14 = vpop.eup %2567  ;;  %2587 = vpow2.f32 %v2337_v7  ;;  %v2340_v15 = vmul.f32 -1.442695, %v809_v11  ;;  %v2342_v57 = vmul.f32 -1.442695, %v880_v41 }
  0xfe   : > { %v2570_v16 = vpop.eup %2569  ;;  %v1548_v17 = vadd.f32 1.0, %v2568_v14  ;;  %2589 = vpow2.f32 %v2339_v8  ;;  %v950_v18 = vpop.f32.mrb[8].mxu0  ;;  %v2341_v61 = vmul.f32 -1.442695, %v811_v44  ;;  %v2343_v1 = vmul.f32 -1.442695, %v882_v48 }
  0xff   : > { %v2572_v19 = vpop.eup %2571  ;;  %v1549_v20 = vadd.f32 1.0, %v2570_v16  ;;  %2591 = vpow2.f32 %v2340_v15  ;;  %v1021_v21 = vpop.f32.mrb[8].mxu1  ;;  %v951_v53 = vadd.f32 %v950_v18, %v3014_v36 }
 0x100   : > { %v952_v22 = vpop.f32.mrb[9].mxu0  ;;  %v2574_v23 = vpop.eup %2573  ;;  %2593 = vrcp.f32 %v1548_v17  ;;  %v1550_v24 = vadd.f32 1.0, %v2572_v19  ;;  %v1022_v58 = vadd.f32 %v1021_v21, %v3014_v36 }
 0x101   : > { %v1023_v25 = vpop.f32.mrb[9].mxu1  ;;  %v2576_v26 = vpop.eup %2575  ;;  %2595 = vrcp.f32 %v1549_v20  ;;  %v1551_v27 = vadd.f32 1.0, %v2574_v23  ;;  %v953_v62 = vadd.f32 %v952_v22, %v3014_v36  ;;  %v2344_v7 = vmul.f32 -1.442695, %v951_v53 }
 0x102   : > { %v2578_v28 = vpop.eup %2577  ;;  %2597 = vrcp.f32 %v1550_v24  ;;  %v1552_v29 = vadd.f32 1.0, %v2576_v26  ;;  %v1092_v30 = vpop.f32.mrb[10].mxu0  ;;  %v1024_v2 = vadd.f32 %v1023_v25, %v3014_v36  ;;  %v2346_v11 = vmul.f32 -1.442695, %v1022_v58 }
 0x103   : > { %v2580_v31 = vpop.eup %2579  ;;  %2599 = vrcp.f32 %v1551_v27  ;;  %v1554_v32 = vadd.f32 1.0, %v2578_v28  ;;  %v1163_v33 = vpop.f32.mrb[10].mxu1  ;;  %v1093_v8 = vadd.f32 %v1092_v30, %v3014_v36  ;;  %v2345_v15 = vmul.f32 -1.442695, %v953_v62 }
 0x104   : > { %v1094_v34 = vpop.f32.mrb[11].mxu0  ;;  %v2582_v35 = vpop.eup %2581  ;;  %2601 = vrcp.f32 %v1552_v29  ;;  %v1553_v37 = vadd.f32 1.0, %v2580_v31  ;;  %v1164_v12 = vadd.f32 %v1163_v33, %v3014_v36  ;;  %v2347_v18 = vmul.f32 -1.442695, %v1024_v2 }
 0x105   : > { %v1165_v38 = vpop.f32.mrb[11].mxu1  ;;  %v2584_v39 = vpop.eup %2583  ;;  %2603 = vrcp.f32 %v1554_v32  ;;  %v1555_v40 = vadd.f32 1.0, %v2582_v35  ;;  %v1095_v16 = vadd.f32 %v1094_v34, %v3014_v36  ;;  %v2348_v21 = vmul.f32 -1.442695, %v1093_v8 }
 0x106   : > { %v2586_v42 = vpop.eup %2585  ;;  %2605 = vrcp.f32 %v1553_v37  ;;  %v1556_v43 = vadd.f32 1.0, %v2584_v39  ;;  %v1234_v45 = vpop.f32.mrb[12].mxu0  ;;  %v1166_v19 = vadd.f32 %v1165_v38, %v3014_v36  ;;  %v2350_v25 = vmul.f32 -1.442695, %v1164_v12 }
 0x107   : > { %v2588_v46 = vpop.eup %2587  ;;  %2607 = vrcp.f32 %v1555_v40  ;;  %v1558_v47 = vadd.f32 1.0, %v2586_v42  ;;  %v1305_v49 = vpop.f32.mrb[12].mxu1  ;;  %v1235_v22 = vadd.f32 %v1234_v45, %v3014_v36  ;;  %v2349_v29 = vmul.f32 -1.442695, %v1095_v16 }
 0x108   : > { %v3033_v50 = vpop.f32.mrb[13].mxu0  ;;  %v2590_v51 = vpop.eup %2589  ;;  %2609 = vrcp.f32 %v1556_v43  ;;  %v1557_v52 = vadd.f32 1.0, %v2588_v46  ;;  %v1306_v26 = vadd.f32 %v1305_v49, %v3014_v36  ;;  %v2351_v31 = vmul.f32 -1.442695, %v1166_v19 }
 0x109   : > { %v3038_v54 = vpop.f32.mrb[13].mxu1  ;;  %v2592_v55 = vpop.eup %2591  ;;  %2611 = vrcp.f32 %v1558_v47  ;;  %v1559_v56 = vadd.f32 1.0, %v2590_v51  ;;  %v2352_v33 = vmul.f32 -1.442695, %v1235_v22 }
 0x10a   : > { %v2594_v59 = vpop.eup %2593  ;;  %2613 = vrcp.f32 %v1557_v52  ;;  %v1560_v60 = vadd.f32 1.0, %v2592_v55  ;;  %v3042_v63 = vpop.f32.mrb[14].mxu0  ;;  %v2354_v37 = vmul.f32 -1.442695, %v1306_v26  ;;  %v1308_v62 = vadd.f32 %v3038_v54, %v3014_v36 }
 0x10b   : > { %v2596_v0 = vpop.eup %2595  ;;  %2615 = vrcp.f32 %v1559_v56  ;;  %v3045_v3 = vpop.f32.mrb[14].mxu1  ;;  %v1377_v2 = vadd.f32 %v3042_v63, %v3014_v36 }
 0x10c   : > { %v3047_v4 = vpop.f32.mrb[15].mxu0  ;;  %v2598_v5 = vpop.eup %2597  ;;  %v1676_v6 = vcombine.low %v2594_v59, %v2596_v0  ;;  %2617 = vrcp.f32 %v1560_v60  ;;  %v1237_v59 = vadd.f32 %v3033_v50, %v3014_v36 }
 0x10d   : > { %v3050_v9 = vpop.f32.mrb[15].mxu1  ;;  %v2600_v10 = vpop.eup %2599  ;;  %2619 = vpow2.f32 %v2342_v57 }
 0x10e   : > { %v2602_v13 = vpop.eup %2601  ;;  %1708 = vst [vmem:[%s3054_s6] sm:$0xff] %v1676_v6  ;;  %v1677_v14 = vcombine.low %v2598_v5, %v2600_v10  ;;  %2621 = vpow2.f32 %v2341_v61  ;;  %v2353_v50 = vmul.f32 -1.442695, %v1237_v59  ;;  %v1379_v10 = vadd.f32 %v3047_v4, %v3014_v36 }
 0x10f   : > { %v2604_v17 = vpop.eup %2603  ;;  %2623 = vpow2.f32 %v2343_v1  ;;  %v1450_v63 = vadd.f32 %v3050_v9, %v3014_v36 }
 0x110   : > { %v2606_v20 = vpop.eup %2605  ;;  %1709 = vst [vmem:[%s3054_s6 + $0x8] sm:$0xff] %v1677_v14  ;;  %2625 = vpow2.f32 %v2344_v7  ;;  %v1448_v7 = vadd.f32 %v3045_v3, %v3014_v36 }
 0x111   : > { %v2608_v23 = vpop.eup %2607  ;;  %v1678_v24 = vcombine.low %v2602_v13, %v2606_v20  ;;  %2627 = vpow2.f32 %v2346_v11  ;;  %v2355_v11 = vmul.f32 -1.442695, %v1308_v62  ;;  %v2356_v13 = vmul.f32 -1.442695, %v1377_v2 }
 0x112   : > { %v2610_v27 = vpop.eup %2609  ;;  %v1679_v28 = vcombine.low %v2604_v17, %v2608_v23  ;;  %2629 = vpow2.f32 %v2345_v15  ;;  %v2358_v16 = vmul.f32 -1.442695, %v1448_v7  ;;  %v2359_v4 = vmul.f32 -1.442695, %v1450_v63 }
 0x113   : > { %v2612_v30 = vpop.eup %2611  ;;  %1710 = vst [vmem:[%s3054_s6 + $0x10] sm:$0xff] %v1678_v24  ;;  %2631 = vpow2.f32 %v2347_v18  ;;  %v2357_v18 = vmul.f32 -1.442695, %v1379_v10 }
 0x114   : > { %v2614_v32 = vpop.eup %2613  ;;  %1711 = vst [vmem:[%s3054_s6 + $0x18] sm:$0xff] %v1679_v28  ;;  %2633 = vpow2.f32 %v2348_v21 }
 0x115   : > { %v2616_v34 = vpop.eup %2615  ;;  %v1680_v35 = vcombine.low %v2610_v27, %v2614_v32  ;;  %2635 = vpow2.f32 %v2350_v25 }
 0x116   : > { %v2618_v38 = vpop.eup %2617  ;;  %v1681_v39 = vcombine.low %v2612_v30, %v2616_v34  ;;  %2637 = vpow2.f32 %v2349_v29 }
 0x117   : > { %v2620_v40 = vpop.eup %2619  ;;  %1712 = vst [vmem:[%s3054_s6 + $0x20] sm:$0xff] %v1680_v35  ;;  %2639 = vpow2.f32 %v2351_v31 }
 0x118   : > { %v2622_v41 = vpop.eup %2621  ;;  %1713 = vst [vmem:[%s3054_s6 + $0x28] sm:$0xff] %v1681_v39  ;;  %v1562_v42 = vadd.f32 1.0, %v2620_v40  ;;  %2641 = vpow2.f32 %v2352_v33 }
 0x119   : > { %v2624_v43 = vpop.eup %2623  ;;  %v1561_v44 = vadd.f32 1.0, %v2622_v41  ;;  %2643 = vpow2.f32 %v2354_v37 }
 0x11a   : > { %v2626_v45 = vpop.eup %2625  ;;  %2645 = vrcp.f32 %v1562_v42  ;;  %v1563_v46 = vadd.f32 1.0, %v2624_v43 }
 0x11b   : > { %v2628_v47 = vpop.eup %2627  ;;  %2647 = vrcp.f32 %v1561_v44  ;;  %v1564_v48 = vadd.f32 1.0, %v2626_v45 }
 0x11c   : > { %v2630_v49 = vpop.eup %2629  ;;  %2649 = vrcp.f32 %v1563_v46  ;;  %v1566_v51 = vadd.f32 1.0, %v2628_v47 }
 0x11d   : > { %v2632_v52 = vpop.eup %2631  ;;  %2651 = vrcp.f32 %v1564_v48  ;;  %v1565_v53 = vadd.f32 1.0, %v2630_v49 }
 0x11e   : > { %v2634_v55 = vpop.eup %2633  ;;  %2653 = vrcp.f32 %v1566_v51  ;;  %v1567_v56 = vadd.f32 1.0, %v2632_v52 }
 0x11f   : > { %v2636_v57 = vpop.eup %2635  ;;  %2655 = vrcp.f32 %v1565_v53  ;;  %v1568_v58 = vadd.f32 1.0, %v2634_v55 }
 0x120   : > { %v2638_v60 = vpop.eup %2637  ;;  %2657 = vrcp.f32 %v1567_v56  ;;  %v1570_v61 = vadd.f32 1.0, %v2636_v57 }
 0x121   : > { %v2640_v0 = vpop.eup %2639  ;;  %2659 = vrcp.f32 %v1568_v58  ;;  %v1569_v1 = vadd.f32 1.0, %v2638_v60 }
 0x122   : > { %v2642_v5 = vpop.eup %2641  ;;  %2661 = vrcp.f32 %v1570_v61  ;;  %v1571_v6 = vadd.f32 1.0, %v2640_v0 }
 0x123   : > { %v2644_v8 = vpop.eup %2643  ;;  %2663 = vrcp.f32 %v1569_v1  ;;  %v1572_v27 = vadd.f32 1.0, %v2642_v5 }
 0x124   : > { %v2646_v54 = vpop.eup %2645  ;;  %2665 = vrcp.f32 %v1571_v6  ;;  %v1574_v29 = vadd.f32 1.0, %v2644_v8 }
 0x125   : > { %v2648_v12 = vpop.eup %2647  ;;  %2667 = vpow2.f32 %v2353_v50 }
 0x126   : > { %v2650_v14 = vpop.eup %2649  ;;  %v1682_v15 = vcombine.low %v2618_v38, %v2648_v12  ;;  %2669 = vpow2.f32 %v2355_v11 }
 0x127   : > { %v2652_v3 = vpop.eup %2651  ;;  %v1683_v17 = vcombine.low %v2646_v54, %v2650_v14  ;;  %2671 = vpow2.f32 %v2356_v13 }
 0x128   : > { %v2654_v19 = vpop.eup %2653  ;;  %1714 = vst [vmem:[%s3054_s6 + $0x30] sm:$0xff] %v1682_v15  ;;  %2673 = vpow2.f32 %v2358_v16 }
 0x129   : > { %v2656_v20 = vpop.eup %2655  ;;  %1715 = vst [vmem:[%s3054_s6 + $0x38] sm:$0xff] %v1683_v17  ;;  %2675 = vpow2.f32 %v2357_v18 }
 0x12a   : > { %v2658_v21 = vpop.eup %2657  ;;  %v1684_v36 = vcombine.low %v2652_v3, %v2656_v20  ;;  %2677 = vpow2.f32 %v2359_v4 }
 0x12b   : > { %v2660_v9 = vpop.eup %2659  ;;  %v1685_v22 = vcombine.low %v2654_v19, %v2658_v21  ;;  %2679 = vrcp.f32 %v1572_v27 }
 0x12c   : > { %v2662_v23 = vpop.eup %2661  ;;  %1716 = vst [vmem:[%s3054_s6 + $0x40] sm:$0xff] %v1684_v36  ;;  %2681 = vrcp.f32 %v1574_v29 }
 0x12d   : > { %v2664_v24 = vpop.eup %2663  ;;  %1717 = vst [vmem:[%s3054_s6 + $0x48] sm:$0xff] %v1685_v22 }
 0x12e   : > { %v2666_v25 = vpop.eup %2665  ;;  %v1686_v26 = vcombine.low %v2660_v9, %v2664_v24 }
 0x12f   : > { %v1687_v28 = vcombine.low %v2662_v23, %v2666_v25  ;;  %v2668_v30 = vpop.eup %2667 }
 0x130   : > { %1718 = vst [vmem:[%s3054_s6 + $0x50] sm:$0xff] %v1686_v26  ;;  %v2670_v31 = vpop.eup %2669  ;;  %v1573_v32 = vadd.f32 1.0, %v2668_v30 }
 0x131   : > { %1719 = vst [vmem:[%s3054_s6 + $0x58] sm:$0xff] %v1687_v28  ;;  %v2672_v33 = vpop.eup %2671  ;;  %v1575_v34 = vadd.f32 1.0, %v2670_v31 }
 0x132   : > { %v2674_v35 = vpop.eup %2673  ;;  %2683 = vrcp.f32 %v1573_v32  ;;  %v1576_v37 = vadd.f32 1.0, %v2672_v33 }
 0x133   : > { %v2676_v38 = vpop.eup %2675  ;;  %2685 = vrcp.f32 %v1575_v34  ;;  %v1578_v39 = vadd.f32 1.0, %v2674_v35 }
 0x134   : > { %v2678_v40 = vpop.eup %2677  ;;  %2687 = vrcp.f32 %v1576_v37  ;;  %v1577_v41 = vadd.f32 1.0, %v2676_v38 }
 0x135   : > { %2689 = vrcp.f32 %v1578_v39  ;;  %v1579_v42 = vadd.f32 1.0, %v2678_v40  ;;  %v2680_v43 = vpop.eup %2679 }
 0x136   : > { %2691 = vrcp.f32 %v1577_v41  ;;  %v2682_v44 = vpop.eup %2681 }
 0x137   : > { %2693 = vrcp.f32 %v1579_v42 }
 0x13c   : > { %v2684_v45 = vpop.eup %2683 }
 0x13d   : > { %v2686_v46 = vpop.eup %2685  ;;  %v1688_v47 = vcombine.low %v2680_v43, %v2684_v45 }
 0x13e   : > { %v2688_v48 = vpop.eup %2687  ;;  %v1689_v49 = vcombine.low %v2682_v44, %v2686_v46  ;;  %1730 = sbr.rel (!%p2896_p4) target bundleno = 490 (0x1ea), region = 36 }
 0x13f   : > { %v2690_v51 = vpop.eup %2689  ;;  %1720 = vst [vmem:[%s3054_s6 + $0x60] sm:$0xff] %v1688_v47 }
 0x140   : > { %v2692_v52 = vpop.eup %2691  ;;  %1721 = vst [vmem:[%s3054_s6 + $0x68] sm:$0xff] %v1689_v49 }
 0x141   : > { %v2694_v53 = vpop.eup %2693  ;;  %v1690_v55 = vcombine.low %v2688_v48, %v2692_v52 }
 0x142   : > { %v1691_v56 = vcombine.low %v2690_v51, %v2694_v53 }
 0x143   : > { %1722 = vst [vmem:[%s3054_s6 + $0x70] sm:$0xff] %v1690_v55 }
 0x144   : > { %1723 = vst [vmem:[%s3054_s6 + $0x78] sm:$0xff] %v1691_v56 }
 0x145   : > { %s3529_s7 = smov (!%p1733_p8, %s1732_s7), 32 }
 0x146   : > { %s2362_s12 = sshll.u32 %s3529_s7, 6  ;;  %s3097_s14 = sshll.u32 %s3529_s7, 2 }
 0x147   : > { %p2366_p9 = scmp.eq.s32.totalorder %s2362_s12, 0 }
 0x148   : > { %p1743_p10 = scmp.lt.u32.totalorder (!%p2366_p9), %s3097_s14, 8 }
 0x149   : > { %1742 = sbr.rel (%p2366_p9) target bundleno = 490 (0x1ea), region = 40 }
 0x150   : > { %1746 = sbr.rel (%p1743_p10) target bundleno = 481 (0x1e1), region = 44  ;;  %s3101_s17 = sand.u32 (!%p1743_p10), 7, %s3097_s14  }
 0x151   : > { %p1762_p11 = scmp.eq.s32.totalorder (!%p1743_p10), %s3101_s17, 0  ;;  %p2367_p12 = scmp.ne.s32.totalorder (!%p1743_p10), %s3101_s17, 0 }
 0x157   : > { %1765 = sbr.rel (%p2367_p12) target bundleno = 410 (0x19a), region = 59  ;;  %s1766_s15 = sshrl.u32 (!%p2367_p12), %s3097_s14, 3 }
 0x158   : > { %s3108_s18 = sshrl.u32 (!%p2367_p12), %s1766_s15, 6 }
 0x159   : > { %p2368_p13 = scmp.le.s32.totalorder (!%p2367_p12), %s3108_s18, 0 }
 0x15e   : > { %2201 = sbr.rel (%p2368_p13) target bundleno = 390 (0x186), region = 140  ;;  %s3515_s20 = smov (!%p2368_p13), %s3095_s11 }
 0x15f   : > { %s3516_s21 = smov (!%p2368_p13), %s3054_s6  ;;  %s3117_s22 = smov (!%p2368_p13), 0  }
 0x160   : > { %s3119_s23 = smov (!%p2368_p13), 0  }
 0x165 LB: >> { %v1779_v57 = vld [vmem:[%s2789_s21] sm:$0xff]  ;;  %v1781_v58 = vld [vmem:[%s2789_s21 + $0x8] sm:$0xff]  ;;  %v1783_v59 = vld [vmem:[%s2789_s21 + $0x10] sm:$0xff]  ;;  %s1907_s24 = sadd.s32 1, %s2793_s22  ;;  %s1773_s23 = sadd.s32 1, %s2797_s23   ;;  %s2797_s23 = sphi %s3119_s23, %s1773_s23   ;;  %s2793_s22 = sphi %s3117_s22, %s3519_s22   ;;  %s2789_s21 = sphi %s3516_s21, %s3518_s21   ;;  %s2785_s20 = sphi %s3515_s20, %s3517_s20  }
 0x166   : >> { %1780 = vst [vmem:[%s2785_s20] sm:$0xff] %v1779_v57  ;;  %1782 = vst [vmem:[%s2785_s20 + $0x8] sm:$0xff] %v1781_v58  ;;  %v1785_v60 = vld [vmem:[%s2789_s21 + $0x18] sm:$0xff]  ;;  %v1787_v61 = vld [vmem:[%s2789_s21 + $0x20] sm:$0xff]  ;;  %p1908_p0 = scmp.ge.s32.totalorder %s1907_s24, %s3108_s18  ;;  %p1772_p1 = scmp.ge.s32.totalorder %s1773_s23, %s3108_s18 }
 0x167   : >> { %1784 = vst [vmem:[%s2785_s20 + $0x10] sm:$0xff] %v1783_v59  ;;  %v1789_v62 = vld [vmem:[%s2789_s21 + $0x28] sm:$0xff]  ;;  %1786 = vst [vmem:[%s2785_s20 + $0x18] sm:$0xff] %v1785_v60  ;;  %v1791_v0 = vld [vmem:[%s2789_s21 + $0x30] sm:$0xff] }
 0x168   : >> { %1788 = vst [vmem:[%s2785_s20 + $0x20] sm:$0xff] %v1787_v61  ;;  %1790 = vst [vmem:[%s2785_s20 + $0x28] sm:$0xff] %v1789_v62  ;;  %v1793_v1 = vld [vmem:[%s2789_s21 + $0x38] sm:$0xff]  ;;  %v1795_v2 = vld [vmem:[%s2789_s21 + $0x40] sm:$0xff]  ;;  %s3531_s24 = smov (%p1908_p0, %s1907_s24), 0 }
 0x169   : >> { %1792 = vst [vmem:[%s2785_s20 + $0x30] sm:$0xff] %v1791_v0  ;;  %1794 = vst [vmem:[%s2785_s20 + $0x38] sm:$0xff] %v1793_v1  ;;  %v1797_v5 = vld [vmem:[%s2789_s21 + $0x48] sm:$0xff]  ;;  %v1799_v6 = vld [vmem:[%s2789_s21 + $0x50] sm:$0xff]  ;;  %s2369_s25 = sshll.u32 %s3531_s24, 9  ;;  %s3519_s22 = smov %s3531_s24 }
 0x16a   : >> { %1796 = vst [vmem:[%s2785_s20 + $0x40] sm:$0xff] %v1795_v2  ;;  %v1801_v7 = vld [vmem:[%s2789_s21 + $0x58] sm:$0xff]  ;;  %1798 = vst [vmem:[%s2785_s20 + $0x48] sm:$0xff] %v1797_v5  ;;  %v1803_v8 = vld [vmem:[%s2789_s21 + $0x60] sm:$0xff]  ;;  %s3175_s26 = scalar_lea.vmem %s3054_s6, %s2369_s25 [#allocation2]   ;;  %s3178_s27 = scalar_lea.vmem %s3095_s11, %s2369_s25  }
 0x16b   : >> { %1800 = vst [vmem:[%s2785_s20 + $0x50] sm:$0xff] %v1799_v6  ;;  %1802 = vst [vmem:[%s2785_s20 + $0x58] sm:$0xff] %v1801_v7  ;;  %v1805_v50 = vld [vmem:[%s2789_s21 + $0x68] sm:$0xff]  ;;  %v1807_v10 = vld [vmem:[%s2789_s21 + $0x70] sm:$0xff] }
 0x16c   : >> { %1804 = vst [vmem:[%s2785_s20 + $0x60] sm:$0xff] %v1803_v8  ;;  %1806 = vst [vmem:[%s2785_s20 + $0x68] sm:$0xff] %v1805_v50  ;;  %v1809_v54 = vld [vmem:[%s2789_s21 + $0x78] sm:$0xff]  ;;  %v1811_v11 = vld [vmem:[%s2789_s21 + $0x80] sm:$0xff] }
 0x16d   : >> { %1808 = vst [vmem:[%s2785_s20 + $0x70] sm:$0xff] %v1807_v10  ;;  %v1813_v63 = vld [vmem:[%s2789_s21 + $0x88] sm:$0xff]  ;;  %1810 = vst [vmem:[%s2785_s20 + $0x78] sm:$0xff] %v1809_v54  ;;  %v1815_v12 = vld [vmem:[%s2789_s21 + $0x90] sm:$0xff] }
 0x16e   : >> { %1812 = vst [vmem:[%s2785_s20 + $0x80] sm:$0xff] %v1811_v11  ;;  %1814 = vst [vmem:[%s2785_s20 + $0x88] sm:$0xff] %v1813_v63  ;;  %v1817_v13 = vld [vmem:[%s2789_s21 + $0x98] sm:$0xff]  ;;  %v1819_v14 = vld [vmem:[%s2789_s21 + $0xa0] sm:$0xff] }
 0x16f   : >> { %1816 = vst [vmem:[%s2785_s20 + $0x90] sm:$0xff] %v1815_v12  ;;  %1818 = vst [vmem:[%s2785_s20 + $0x98] sm:$0xff] %v1817_v13  ;;  %v1821_v15 = vld [vmem:[%s2789_s21 + $0xa8] sm:$0xff]  ;;  %v1823_v16 = vld [vmem:[%s2789_s21 + $0xb0] sm:$0xff] }
 0x170   : >> { %1820 = vst [vmem:[%s2785_s20 + $0xa0] sm:$0xff] %v1819_v14  ;;  %v1825_v3 = vld [vmem:[%s2789_s21 + $0xb8] sm:$0xff]  ;;  %1822 = vst [vmem:[%s2785_s20 + $0xa8] sm:$0xff] %v1821_v15  ;;  %v1827_v17 = vld [vmem:[%s2789_s21 + $0xc0] sm:$0xff] }
 0x171   : >> { %1824 = vst [vmem:[%s2785_s20 + $0xb0] sm:$0xff] %v1823_v16  ;;  %1826 = vst [vmem:[%s2785_s20 + $0xb8] sm:$0xff] %v1825_v3  ;;  %v1829_v18 = vld [vmem:[%s2789_s21 + $0xc8] sm:$0xff]  ;;  %v1831_v19 = vld [vmem:[%s2789_s21 + $0xd0] sm:$0xff] }
 0x172   : >> { %1828 = vst [vmem:[%s2785_s20 + $0xc0] sm:$0xff] %v1827_v17  ;;  %1830 = vst [vmem:[%s2785_s20 + $0xc8] sm:$0xff] %v1829_v18  ;;  %v1833_v4 = vld [vmem:[%s2789_s21 + $0xd8] sm:$0xff]  ;;  %v1835_v20 = vld [vmem:[%s2789_s21 + $0xe0] sm:$0xff] }
 0x173   : >> { %1832 = vst [vmem:[%s2785_s20 + $0xd0] sm:$0xff] %v1831_v19  ;;  %v1837_v21 = vld [vmem:[%s2789_s21 + $0xe8] sm:$0xff]  ;;  %1834 = vst [vmem:[%s2785_s20 + $0xd8] sm:$0xff] %v1833_v4  ;;  %v1839_v36 = vld [vmem:[%s2789_s21 + $0xf0] sm:$0xff] }
 0x174   : >> { %1836 = vst [vmem:[%s2785_s20 + $0xe0] sm:$0xff] %v1835_v20  ;;  %1838 = vst [vmem:[%s2785_s20 + $0xe8] sm:$0xff] %v1837_v21  ;;  %v1841_v9 = vld [vmem:[%s2789_s21 + $0xf8] sm:$0xff]  ;;  %v1843_v22 = vld [vmem:[%s2789_s21 + $0x100] sm:$0xff] }
 0x175   : >> { %1840 = vst [vmem:[%s2785_s20 + $0xf0] sm:$0xff] %v1839_v36  ;;  %1842 = vst [vmem:[%s2785_s20 + $0xf8] sm:$0xff] %v1841_v9  ;;  %v1845_v23 = vld [vmem:[%s2789_s21 + $0x108] sm:$0xff]  ;;  %v1847_v24 = vld [vmem:[%s2789_s21 + $0x110] sm:$0xff] }
 0x176   : >> { %1844 = vst [vmem:[%s2785_s20 + $0x100] sm:$0xff] %v1843_v22  ;;  %v1849_v25 = vld [vmem:[%s2789_s21 + $0x118] sm:$0xff]  ;;  %1846 = vst [vmem:[%s2785_s20 + $0x108] sm:$0xff] %v1845_v23  ;;  %v1851_v26 = vld [vmem:[%s2789_s21 + $0x120] sm:$0xff] }
 0x177   : >> { %1848 = vst [vmem:[%s2785_s20 + $0x110] sm:$0xff] %v1847_v24  ;;  %1850 = vst [vmem:[%s2785_s20 + $0x118] sm:$0xff] %v1849_v25  ;;  %v1853_v27 = vld [vmem:[%s2789_s21 + $0x128] sm:$0xff]  ;;  %v1855_v28 = vld [vmem:[%s2789_s21 + $0x130] sm:$0xff] }
 0x178   : >> { %1852 = vst [vmem:[%s2785_s20 + $0x120] sm:$0xff] %v1851_v26  ;;  %1854 = vst [vmem:[%s2785_s20 + $0x128] sm:$0xff] %v1853_v27  ;;  %v1857_v29 = vld [vmem:[%s2789_s21 + $0x138] sm:$0xff]  ;;  %v1859_v30 = vld [vmem:[%s2789_s21 + $0x140] sm:$0xff] }
 0x179   : >> { %1856 = vst [vmem:[%s2785_s20 + $0x130] sm:$0xff] %v1855_v28  ;;  %v1861_v31 = vld [vmem:[%s2789_s21 + $0x148] sm:$0xff]  ;;  %1858 = vst [vmem:[%s2785_s20 + $0x138] sm:$0xff] %v1857_v29  ;;  %v1863_v32 = vld [vmem:[%s2789_s21 + $0x150] sm:$0xff] }
 0x17a   : >> { %1860 = vst [vmem:[%s2785_s20 + $0x140] sm:$0xff] %v1859_v30  ;;  %1862 = vst [vmem:[%s2785_s20 + $0x148] sm:$0xff] %v1861_v31  ;;  %v1865_v33 = vld [vmem:[%s2789_s21 + $0x158] sm:$0xff]  ;;  %v1867_v34 = vld [vmem:[%s2789_s21 + $0x160] sm:$0xff] }
 0x17b   : >> { %1864 = vst [vmem:[%s2785_s20 + $0x150] sm:$0xff] %v1863_v32  ;;  %1866 = vst [vmem:[%s2785_s20 + $0x158] sm:$0xff] %v1865_v33  ;;  %v1869_v35 = vld [vmem:[%s2789_s21 + $0x168] sm:$0xff]  ;;  %v1871_v37 = vld [vmem:[%s2789_s21 + $0x170] sm:$0xff] }
 0x17c   : >> { %1868 = vst [vmem:[%s2785_s20 + $0x160] sm:$0xff] %v1867_v34  ;;  %v1873_v38 = vld [vmem:[%s2789_s21 + $0x178] sm:$0xff]  ;;  %1870 = vst [vmem:[%s2785_s20 + $0x168] sm:$0xff] %v1869_v35  ;;  %v1875_v39 = vld [vmem:[%s2789_s21 + $0x180] sm:$0xff] }
 0x17d   : >> { %1872 = vst [vmem:[%s2785_s20 + $0x170] sm:$0xff] %v1871_v37  ;;  %1874 = vst [vmem:[%s2785_s20 + $0x178] sm:$0xff] %v1873_v38  ;;  %v1877_v40 = vld [vmem:[%s2789_s21 + $0x188] sm:$0xff]  ;;  %v1879_v41 = vld [vmem:[%s2789_s21 + $0x190] sm:$0xff] }
 0x17e   : >> { %1876 = vst [vmem:[%s2785_s20 + $0x180] sm:$0xff] %v1875_v39  ;;  %1878 = vst [vmem:[%s2785_s20 + $0x188] sm:$0xff] %v1877_v40  ;;  %v1881_v42 = vld [vmem:[%s2789_s21 + $0x198] sm:$0xff]  ;;  %v1883_v43 = vld [vmem:[%s2789_s21 + $0x1a0] sm:$0xff] }
 0x17f   : >> { %1880 = vst [vmem:[%s2785_s20 + $0x190] sm:$0xff] %v1879_v41  ;;  %v1885_v44 = vld [vmem:[%s2789_s21 + $0x1a8] sm:$0xff]  ;;  %1882 = vst [vmem:[%s2785_s20 + $0x198] sm:$0xff] %v1881_v42  ;;  %v1887_v45 = vld [vmem:[%s2789_s21 + $0x1b0] sm:$0xff]  ;;  %1775 = sbr.rel (!%p1772_p1) target bundleno = 357 (0x165), region = 146 }
 0x180   : >> { %1884 = vst [vmem:[%s2785_s20 + $0x1a0] sm:$0xff] %v1883_v43  ;;  %1886 = vst [vmem:[%s2785_s20 + $0x1a8] sm:$0xff] %v1885_v44  ;;  %v1889_v46 = vld [vmem:[%s2789_s21 + $0x1b8] sm:$0xff]  ;;  %v1891_v47 = vld [vmem:[%s2789_s21 + $0x1c0] sm:$0xff] }
 0x181   : >> { %1888 = vst [vmem:[%s2785_s20 + $0x1b0] sm:$0xff] %v1887_v45  ;;  %1890 = vst [vmem:[%s2785_s20 + $0x1b8] sm:$0xff] %v1889_v46  ;;  %v1893_v48 = vld [vmem:[%s2789_s21 + $0x1c8] sm:$0xff]  ;;  %v1895_v49 = vld [vmem:[%s2789_s21 + $0x1d0] sm:$0xff] }
 0x182   : >> { %1892 = vst [vmem:[%s2785_s20 + $0x1c0] sm:$0xff] %v1891_v47  ;;  %v1897_v51 = vld [vmem:[%s2789_s21 + $0x1d8] sm:$0xff]  ;;  %1894 = vst [vmem:[%s2785_s20 + $0x1c8] sm:$0xff] %v1893_v48  ;;  %v1899_v52 = vld [vmem:[%s2789_s21 + $0x1e0] sm:$0xff] }
 0x183   : >> { %1896 = vst [vmem:[%s2785_s20 + $0x1d0] sm:$0xff] %v1895_v49  ;;  %1898 = vst [vmem:[%s2785_s20 + $0x1d8] sm:$0xff] %v1897_v51  ;;  %v1901_v53 = vld [vmem:[%s2789_s21 + $0x1e8] sm:$0xff]  ;;  %v1903_v55 = vld [vmem:[%s2789_s21 + $0x1f0] sm:$0xff] }
 0x184   : >> { %1900 = vst [vmem:[%s2785_s20 + $0x1e0] sm:$0xff] %v1899_v52  ;;  %1902 = vst [vmem:[%s2785_s20 + $0x1e8] sm:$0xff] %v1901_v53  ;;  %v1905_v56 = vld [vmem:[%s2789_s21 + $0x1f8] sm:$0xff]  ;;  %s3518_s21 = smov %s3175_s26 }
 0x185   : >> { %1904 = vst [vmem:[%s2785_s20 + $0x1f0] sm:$0xff] %v1903_v55  ;;  %1906 = vst [vmem:[%s2785_s20 + $0x1f8] sm:$0xff] %v1905_v56  ;;  %s3517_s20 = smov %s3178_s27 }
 0x186 PF: > { %s3284_s28 = sand.u32 63, %s1766_s15   ;;  %s2390_s29 = sshll.u32 %s3108_s18, 13 }
 0x187   : > { %s1918_s30 = sshra.s32 %s2390_s29, 4  ;;  %p2374_p2 = scmp.le.s32.totalorder %s3284_s28, 0 }
 0x188   : > { %s1919_s4 = scalar_lea.vmem %s3054_s6, %s1918_s30 [#allocation2]   ;;  %s1922_s5 = scalar_lea.vmem %s3095_s11, %s1918_s30  }
 0x189   : > { %2215 = sbr.rel (%p2374_p2) target bundleno = 410 (0x19a), region = 151  ;;  %s2799_s7 = smov (!%p2374_p2), %s1922_s5  }
 0x18a   : > { %s2803_s8 = smov (!%p2374_p2), %s1919_s4   ;;  %s2807_s9 = smov (!%p2374_p2), 0  }
 0x18b   : > { %s2811_s10 = smov (!%p2374_p2), 0  }
 0x190 LB: >> { %v1934_v57 = vld [vmem:[%s2805_s8] sm:$0xff]  ;;  %s1936_s12 = sadd.s32 1, %s2809_s9  ;;  %s1928_s10 = sadd.s32 1, %s2813_s10   ;;  %s2813_s10 = sphi %s2811_s10, %s1928_s10   ;;  %s2809_s9 = sphi %s2807_s9, %s2808_s9   ;;  %s2805_s8 = sphi %s2803_s8, %s1941_s8   ;;  %s2801_s7 = sphi %s2799_s7, %s1942_s7  }
 0x191   : >> { %1935 = vst [vmem:[%s2801_s7] sm:$0xff] %v1934_v57  ;;  %p1937_p3 = scmp.ge.s32.totalorder %s1936_s12, %s3284_s28  ;;  %p1927_p4 = scmp.ge.s32.totalorder %s1928_s10, %s3284_s28 }
 0x193   : >> { %s3533_s12 = smov (%p1937_p3, %s1936_s12), 0  ;;  %1930 = sbr.rel (!%p1927_p4) target bundleno = 400 (0x190), region = 157 }
 0x194   : >> { %s2375_s15 = sshll.u32 %s3533_s12, 3  ;;  %s2808_s9 = smov %s3533_s12  }
 0x195   : >> { %s1941_s8 = scalar_lea.vmem %s1919_s4, %s2375_s15 [#allocation2]   ;;  %s1942_s7 = scalar_lea.vmem %s1922_s5, %s2375_s15  }
 0x19a PF: > { %1945 = sbr.rel (%p1762_p11) target bundleno = 481 (0x1e1), region = 77  ;;  %s3296_s18 = ssub.s32 (!%p1762_p11), %s3097_s14, %s3101_s17 }
 0x19b   : > { %s1951_s20 = sshrl.u32 (!%p1762_p11), %s3097_s14, 3  ;;  %s1948_s21 = scalar_lea.vmem (!%p1762_p11), %s3054_s6, %s3296_s18 [#allocation2] }
 0x19c   : > { %s1950_s22 = scalar_lea.vmem (!%p1762_p11), %s3095_s11, %s3296_s18  ;;  %s3305_s23 = sshrl.u32 (!%p1762_p11), %s1951_s20, 6 }
 0x19d   : > { %p2377_p5 = scmp.le.s32.totalorder (!%p1762_p11), %s3305_s23, 0 }
 0x1a1   : > { %2229 = sbr.rel (%p2377_p5) target bundleno = 457 (0x1c9), region = 162  ;;  %s3520_s24 = smov (!%p2377_p5), %s3095_s11 }
 0x1a2   : > { %s3521_s25 = smov (!%p2377_p5), %s3054_s6  ;;  %s3314_s26 = smov (!%p2377_p5), 0  }
 0x1a3   : > { %s3316_s27 = smov (!%p2377_p5), 0  }
 0x1a8 LB: >> { %v1964_v58 = vld [vmem:[%s2821_s25] sm:$0xff]  ;;  %v1966_v59 = vld [vmem:[%s2821_s25 + $0x8] sm:$0xff]  ;;  %v1968_v60 = vld [vmem:[%s2821_s25 + $0x10] sm:$0xff]  ;;  %s2092_s28 = sadd.s32 1, %s2825_s26  ;;  %s1958_s27 = sadd.s32 1, %s2829_s27   ;;  %s2829_s27 = sphi %s3316_s27, %s1958_s27   ;;  %s2825_s26 = sphi %s3314_s26, %s3524_s26   ;;  %s2821_s25 = sphi %s3521_s25, %s3523_s25   ;;  %s2817_s24 = sphi %s3520_s24, %s3522_s24  }
 0x1a9   : >> { %1965 = vst [vmem:[%s2817_s24] sm:$0xff] %v1964_v58  ;;  %1967 = vst [vmem:[%s2817_s24 + $0x8] sm:$0xff] %v1966_v59  ;;  %v1970_v61 = vld [vmem:[%s2821_s25 + $0x18] sm:$0xff]  ;;  %v1972_v62 = vld [vmem:[%s2821_s25 + $0x20] sm:$0xff]  ;;  %p2093_p6 = scmp.ge.s32.totalorder %s2092_s28, %s3305_s23  ;;  %p1957_p7 = scmp.ge.s32.totalorder %s1958_s27, %s3305_s23 }
 0x1aa   : >> { %1969 = vst [vmem:[%s2817_s24 + $0x10] sm:$0xff] %v1968_v60  ;;  %v1974_v0 = vld [vmem:[%s2821_s25 + $0x28] sm:$0xff]  ;;  %1971 = vst [vmem:[%s2817_s24 + $0x18] sm:$0xff] %v1970_v61  ;;  %v1976_v1 = vld [vmem:[%s2821_s25 + $0x30] sm:$0xff] }
 0x1ab   : >> { %1973 = vst [vmem:[%s2817_s24 + $0x20] sm:$0xff] %v1972_v62  ;;  %1975 = vst [vmem:[%s2817_s24 + $0x28] sm:$0xff] %v1974_v0  ;;  %v1978_v2 = vld [vmem:[%s2821_s25 + $0x38] sm:$0xff]  ;;  %v1980_v5 = vld [vmem:[%s2821_s25 + $0x40] sm:$0xff]  ;;  %s3535_s28 = smov (%p2093_p6, %s2092_s28), 0 }
 0x1ac   : >> { %1977 = vst [vmem:[%s2817_s24 + $0x30] sm:$0xff] %v1976_v1  ;;  %1979 = vst [vmem:[%s2817_s24 + $0x38] sm:$0xff] %v1978_v2  ;;  %v1982_v6 = vld [vmem:[%s2821_s25 + $0x48] sm:$0xff]  ;;  %v1984_v7 = vld [vmem:[%s2821_s25 + $0x50] sm:$0xff]  ;;  %s2378_s29 = sshll.u32 %s3535_s28, 9  ;;  %s3524_s26 = smov %s3535_s28 }
 0x1ad   : >> { %1981 = vst [vmem:[%s2817_s24 + $0x40] sm:$0xff] %v1980_v5  ;;  %v1986_v8 = vld [vmem:[%s2821_s25 + $0x58] sm:$0xff]  ;;  %1983 = vst [vmem:[%s2817_s24 + $0x48] sm:$0xff] %v1982_v6  ;;  %v1988_v50 = vld [vmem:[%s2821_s25 + $0x60] sm:$0xff]  ;;  %s3372_s30 = scalar_lea.vmem %s3054_s6, %s2378_s29 [#allocation2]   ;;  %s3375_s4 = scalar_lea.vmem %s3095_s11, %s2378_s29  }
 0x1ae   : >> { %1985 = vst [vmem:[%s2817_s24 + $0x50] sm:$0xff] %v1984_v7  ;;  %1987 = vst [vmem:[%s2817_s24 + $0x58] sm:$0xff] %v1986_v8  ;;  %v1990_v10 = vld [vmem:[%s2821_s25 + $0x68] sm:$0xff]  ;;  %v1992_v54 = vld [vmem:[%s2821_s25 + $0x70] sm:$0xff] }
 0x1af   : >> { %1989 = vst [vmem:[%s2817_s24 + $0x60] sm:$0xff] %v1988_v50  ;;  %1991 = vst [vmem:[%s2817_s24 + $0x68] sm:$0xff] %v1990_v10  ;;  %v1994_v11 = vld [vmem:[%s2821_s25 + $0x78] sm:$0xff]  ;;  %v1996_v63 = vld [vmem:[%s2821_s25 + $0x80] sm:$0xff] }
 0x1b0   : >> { %1993 = vst [vmem:[%s2817_s24 + $0x70] sm:$0xff] %v1992_v54  ;;  %v1998_v12 = vld [vmem:[%s2821_s25 + $0x88] sm:$0xff]  ;;  %1995 = vst [vmem:[%s2817_s24 + $0x78] sm:$0xff] %v1994_v11  ;;  %v2000_v13 = vld [vmem:[%s2821_s25 + $0x90] sm:$0xff] }
 0x1b1   : >> { %1997 = vst [vmem:[%s2817_s24 + $0x80] sm:$0xff] %v1996_v63  ;;  %1999 = vst [vmem:[%s2817_s24 + $0x88] sm:$0xff] %v1998_v12  ;;  %v2002_v14 = vld [vmem:[%s2821_s25 + $0x98] sm:$0xff]  ;;  %v2004_v15 = vld [vmem:[%s2821_s25 + $0xa0] sm:$0xff] }
 0x1b2   : >> { %2001 = vst [vmem:[%s2817_s24 + $0x90] sm:$0xff] %v2000_v13  ;;  %2003 = vst [vmem:[%s2817_s24 + $0x98] sm:$0xff] %v2002_v14  ;;  %v2006_v16 = vld [vmem:[%s2821_s25 + $0xa8] sm:$0xff]  ;;  %v2008_v3 = vld [vmem:[%s2821_s25 + $0xb0] sm:$0xff] }
 0x1b3   : >> { %2005 = vst [vmem:[%s2817_s24 + $0xa0] sm:$0xff] %v2004_v15  ;;  %v2010_v17 = vld [vmem:[%s2821_s25 + $0xb8] sm:$0xff]  ;;  %2007 = vst [vmem:[%s2817_s24 + $0xa8] sm:$0xff] %v2006_v16  ;;  %v2012_v18 = vld [vmem:[%s2821_s25 + $0xc0] sm:$0xff] }
 0x1b4   : >> { %2009 = vst [vmem:[%s2817_s24 + $0xb0] sm:$0xff] %v2008_v3  ;;  %2011 = vst [vmem:[%s2817_s24 + $0xb8] sm:$0xff] %v2010_v17  ;;  %v2014_v19 = vld [vmem:[%s2821_s25 + $0xc8] sm:$0xff]  ;;  %v2016_v4 = vld [vmem:[%s2821_s25 + $0xd0] sm:$0xff] }
 0x1b5   : >> { %2013 = vst [vmem:[%s2817_s24 + $0xc0] sm:$0xff] %v2012_v18  ;;  %2015 = vst [vmem:[%s2817_s24 + $0xc8] sm:$0xff] %v2014_v19  ;;  %v2018_v20 = vld [vmem:[%s2821_s25 + $0xd8] sm:$0xff]  ;;  %v2020_v21 = vld [vmem:[%s2821_s25 + $0xe0] sm:$0xff] }
 0x1b6   : >> { %2017 = vst [vmem:[%s2817_s24 + $0xd0] sm:$0xff] %v2016_v4  ;;  %v2022_v36 = vld [vmem:[%s2821_s25 + $0xe8] sm:$0xff]  ;;  %2019 = vst [vmem:[%s2817_s24 + $0xd8] sm:$0xff] %v2018_v20  ;;  %v2024_v9 = vld [vmem:[%s2821_s25 + $0xf0] sm:$0xff] }
 0x1b7   : >> { %2021 = vst [vmem:[%s2817_s24 + $0xe0] sm:$0xff] %v2020_v21  ;;  %2023 = vst [vmem:[%s2817_s24 + $0xe8] sm:$0xff] %v2022_v36  ;;  %v2026_v22 = vld [vmem:[%s2821_s25 + $0xf8] sm:$0xff]  ;;  %v2028_v23 = vld [vmem:[%s2821_s25 + $0x100] sm:$0xff] }
 0x1b8   : >> { %2025 = vst [vmem:[%s2817_s24 + $0xf0] sm:$0xff] %v2024_v9  ;;  %2027 = vst [vmem:[%s2817_s24 + $0xf8] sm:$0xff] %v2026_v22  ;;  %v2030_v24 = vld [vmem:[%s2821_s25 + $0x108] sm:$0xff]  ;;  %v2032_v25 = vld [vmem:[%s2821_s25 + $0x110] sm:$0xff] }
 0x1b9   : >> { %2029 = vst [vmem:[%s2817_s24 + $0x100] sm:$0xff] %v2028_v23  ;;  %v2034_v26 = vld [vmem:[%s2821_s25 + $0x118] sm:$0xff]  ;;  %2031 = vst [vmem:[%s2817_s24 + $0x108] sm:$0xff] %v2030_v24  ;;  %v2036_v27 = vld [vmem:[%s2821_s25 + $0x120] sm:$0xff] }
 0x1ba   : >> { %2033 = vst [vmem:[%s2817_s24 + $0x110] sm:$0xff] %v2032_v25  ;;  %2035 = vst [vmem:[%s2817_s24 + $0x118] sm:$0xff] %v2034_v26  ;;  %v2038_v28 = vld [vmem:[%s2821_s25 + $0x128] sm:$0xff]  ;;  %v2040_v29 = vld [vmem:[%s2821_s25 + $0x130] sm:$0xff] }
 0x1bb   : >> { %2037 = vst [vmem:[%s2817_s24 + $0x120] sm:$0xff] %v2036_v27  ;;  %2039 = vst [vmem:[%s2817_s24 + $0x128] sm:$0xff] %v2038_v28  ;;  %v2042_v30 = vld [vmem:[%s2821_s25 + $0x138] sm:$0xff]  ;;  %v2044_v31 = vld [vmem:[%s2821_s25 + $0x140] sm:$0xff] }
 0x1bc   : >> { %2041 = vst [vmem:[%s2817_s24 + $0x130] sm:$0xff] %v2040_v29  ;;  %v2046_v32 = vld [vmem:[%s2821_s25 + $0x148] sm:$0xff]  ;;  %2043 = vst [vmem:[%s2817_s24 + $0x138] sm:$0xff] %v2042_v30  ;;  %v2048_v33 = vld [vmem:[%s2821_s25 + $0x150] sm:$0xff] }
 0x1bd   : >> { %2045 = vst [vmem:[%s2817_s24 + $0x140] sm:$0xff] %v2044_v31  ;;  %2047 = vst [vmem:[%s2817_s24 + $0x148] sm:$0xff] %v2046_v32  ;;  %v2050_v34 = vld [vmem:[%s2821_s25 + $0x158] sm:$0xff]  ;;  %v2052_v35 = vld [vmem:[%s2821_s25 + $0x160] sm:$0xff] }
 0x1be   : >> { %2049 = vst [vmem:[%s2817_s24 + $0x150] sm:$0xff] %v2048_v33  ;;  %2051 = vst [vmem:[%s2817_s24 + $0x158] sm:$0xff] %v2050_v34  ;;  %v2054_v37 = vld [vmem:[%s2821_s25 + $0x168] sm:$0xff]  ;;  %v2056_v38 = vld [vmem:[%s2821_s25 + $0x170] sm:$0xff] }
 0x1bf   : >> { %2053 = vst [vmem:[%s2817_s24 + $0x160] sm:$0xff] %v2052_v35  ;;  %v2058_v39 = vld [vmem:[%s2821_s25 + $0x178] sm:$0xff]  ;;  %2055 = vst [vmem:[%s2817_s24 + $0x168] sm:$0xff] %v2054_v37  ;;  %v2060_v40 = vld [vmem:[%s2821_s25 + $0x180] sm:$0xff] }
 0x1c0   : >> { %2057 = vst [vmem:[%s2817_s24 + $0x170] sm:$0xff] %v2056_v38  ;;  %2059 = vst [vmem:[%s2817_s24 + $0x178] sm:$0xff] %v2058_v39  ;;  %v2062_v41 = vld [vmem:[%s2821_s25 + $0x188] sm:$0xff]  ;;  %v2064_v42 = vld [vmem:[%s2821_s25 + $0x190] sm:$0xff] }
 0x1c1   : >> { %2061 = vst [vmem:[%s2817_s24 + $0x180] sm:$0xff] %v2060_v40  ;;  %2063 = vst [vmem:[%s2817_s24 + $0x188] sm:$0xff] %v2062_v41  ;;  %v2066_v43 = vld [vmem:[%s2821_s25 + $0x198] sm:$0xff]  ;;  %v2068_v44 = vld [vmem:[%s2821_s25 + $0x1a0] sm:$0xff] }
 0x1c2   : >> { %2065 = vst [vmem:[%s2817_s24 + $0x190] sm:$0xff] %v2064_v42  ;;  %v2070_v45 = vld [vmem:[%s2821_s25 + $0x1a8] sm:$0xff]  ;;  %2067 = vst [vmem:[%s2817_s24 + $0x198] sm:$0xff] %v2066_v43  ;;  %v2072_v46 = vld [vmem:[%s2821_s25 + $0x1b0] sm:$0xff]  ;;  %1960 = sbr.rel (!%p1957_p7) target bundleno = 424 (0x1a8), region = 168 }
 0x1c3   : >> { %2069 = vst [vmem:[%s2817_s24 + $0x1a0] sm:$0xff] %v2068_v44  ;;  %2071 = vst [vmem:[%s2817_s24 + $0x1a8] sm:$0xff] %v2070_v45  ;;  %v2074_v47 = vld [vmem:[%s2821_s25 + $0x1b8] sm:$0xff]  ;;  %v2076_v48 = vld [vmem:[%s2821_s25 + $0x1c0] sm:$0xff] }
 0x1c4   : >> { %2073 = vst [vmem:[%s2817_s24 + $0x1b0] sm:$0xff] %v2072_v46  ;;  %2075 = vst [vmem:[%s2817_s24 + $0x1b8] sm:$0xff] %v2074_v47  ;;  %v2078_v49 = vld [vmem:[%s2821_s25 + $0x1c8] sm:$0xff]  ;;  %v2080_v51 = vld [vmem:[%s2821_s25 + $0x1d0] sm:$0xff] }
 0x1c5   : >> { %2077 = vst [vmem:[%s2817_s24 + $0x1c0] sm:$0xff] %v2076_v48  ;;  %v2082_v52 = vld [vmem:[%s2821_s25 + $0x1d8] sm:$0xff]  ;;  %2079 = vst [vmem:[%s2817_s24 + $0x1c8] sm:$0xff] %v2078_v49  ;;  %v2084_v53 = vld [vmem:[%s2821_s25 + $0x1e0] sm:$0xff] }
 0x1c6   : >> { %2081 = vst [vmem:[%s2817_s24 + $0x1d0] sm:$0xff] %v2080_v51  ;;  %2083 = vst [vmem:[%s2817_s24 + $0x1d8] sm:$0xff] %v2082_v52  ;;  %v2086_v55 = vld [vmem:[%s2821_s25 + $0x1e8] sm:$0xff]  ;;  %v2088_v56 = vld [vmem:[%s2821_s25 + $0x1f0] sm:$0xff] }
 0x1c7   : >> { %2085 = vst [vmem:[%s2817_s24 + $0x1e0] sm:$0xff] %v2084_v53  ;;  %2087 = vst [vmem:[%s2817_s24 + $0x1e8] sm:$0xff] %v2086_v55  ;;  %v2090_v57 = vld [vmem:[%s2821_s25 + $0x1f8] sm:$0xff]  ;;  %s3523_s25 = smov %s3372_s30 }
 0x1c8   : >> { %2089 = vst [vmem:[%s2817_s24 + $0x1f0] sm:$0xff] %v2088_v56  ;;  %2091 = vst [vmem:[%s2817_s24 + $0x1f8] sm:$0xff] %v2090_v57  ;;  %s3522_s24 = smov %s3375_s4 }
 0x1c9 PF: > { %s3481_s5 = sand.u32 63, %s1951_s20   ;;  %s2392_s7 = sshll.u32 %s3305_s23, 13 }
 0x1ca   : > { %s2103_s8 = sshra.s32 %s2392_s7, 4  ;;  %p2383_p8 = scmp.le.s32.totalorder %s3481_s5, 0 }
 0x1cb   : > { %s2104_s9 = scalar_lea.vmem %s3054_s6, %s2103_s8 [#allocation2]   ;;  %s2107_s10 = scalar_lea.vmem %s3095_s11, %s2103_s8  }
 0x1cc   : > { %2243 = sbr.rel (%p2383_p8) target bundleno = 477 (0x1dd), region = 173  ;;  %s2831_s12 = smov (!%p2383_p8), %s2107_s10  }
 0x1cd   : > { %s2835_s15 = smov (!%p2383_p8), %s2104_s9   ;;  %s2839_s28 = smov (!%p2383_p8), 0  }
 0x1ce   : > { %s2843_s27 = smov (!%p2383_p8), 0  }
 0x1d3 LB: >> { %v2119_v58 = vld [vmem:[%s2837_s15] sm:$0xff]  ;;  %s2121_s20 = sadd.s32 1, %s2841_s28  ;;  %s2113_s27 = sadd.s32 1, %s2845_s27   ;;  %s2845_s27 = sphi %s2843_s27, %s2113_s27   ;;  %s2841_s28 = sphi %s2839_s28, %s2840_s28   ;;  %s2837_s15 = sphi %s2835_s15, %s2126_s15   ;;  %s2833_s12 = sphi %s2831_s12, %s2127_s12  }
 0x1d4   : >> { %2120 = vst [vmem:[%s2833_s12] sm:$0xff] %v2119_v58  ;;  %p2122_p9 = scmp.ge.s32.totalorder %s2121_s20, %s3481_s5  ;;  %p2112_p10 = scmp.ge.s32.totalorder %s2113_s27, %s3481_s5 }
 0x1d6   : >> { %s3537_s20 = smov (%p2122_p9, %s2121_s20), 0  ;;  %2115 = sbr.rel (!%p2112_p10) target bundleno = 467 (0x1d3), region = 179 }
 0x1d7   : >> { %s2384_s23 = sshll.u32 %s3537_s20, 3  ;;  %s2840_s28 = smov %s3537_s20  }
 0x1d8   : >> { %s2126_s15 = scalar_lea.vmem %s2104_s9, %s2384_s23 [#allocation2]   ;;  %s2127_s12 = scalar_lea.vmem %s2107_s10, %s2384_s23  }
 0x1dd PF: > { %s2849_s24 = smov 0  }
 0x1de   : > { %s2128_s25 = sshllo.u32 %s2849_s24, %s3101_s17 }
 0x1df   : > { %v2137_v59 = vld [vmem:[%s1948_s21] sm:%s2128_s25] }
 0x1e0   : > { %2138 = vst [vmem:[%s1950_s22] sm:%s2128_s25] %v2137_v59 }
 0x1e1 PF: > { %p2386_p11 = scmp.ge.u32.totalorder %s3097_s14, 8 }
 0x1e2   : > { %s2850_s26 = smov (!%p2386_p11), 0  }
 0x1e3   : > { %1749 = sbr.rel (%p2386_p11) target bundleno = 490 (0x1ea), region = 48  ;;  %s1750_s29 = sshllo.u32 (!%p2386_p11), %s2850_s26, %s3097_s14 }
 0x1e4   : > { %v1759_v60 = vld [vmem:[%s3054_s6] sm:%s1750_s29] (!%p2386_p11) }
 0x1e5   : > { %1760 = vst [vmem:[%s3095_s11] sm:%s1750_s29] (!%p2386_p11), %v1759_v60 }
 0x1ea PF: > { %p10_p12 = scmp.ge.s32.totalorder %s2886_s16, 10   ;;  %s3525_s12 = smov %s2777_s13 }
 0x1eb   : > { %s3526_s13 = smov %s2894_s19  ;;  %s3527_s14 = smov %s2886_s16 }
 0x1ec   :  { %12 = sbr.rel (!%p10_p12) target bundleno = 2 (0x2), region = 190 }

</bundles_post_ra>
